<compile_context>
chip_gen: v5e
topology: v5e:2x2
jax: 0.10.0
libtpu: 0.0.40
codegen_flags: <defaults>
</compile_context>

<pallas_src>
import functools

import jax
import jax.numpy as jnp
from jax.experimental import pallas as pl
from jax.experimental.pallas import tpu as pltpu

IMG_FEATURE_DIM = 2048
HID1 = 512
HID2 = 128
C_PAD = 8  # channels zero-padded (3 real + 1 bias) -> 8 (sublane quantum), NOT 128


def _round_up(x, m):
    return (x + m - 1) // m * m


# --------------------------------------------------------------------------
# Kernel 1: stand-in image encoder (1x1 conv + ReLU + global average pool).
# Grid = (B, num_spatial_tiles); the spatial axis is the reduction axis.
# --------------------------------------------------------------------------
def encoder_kernel(x_ref, we_ref, o_ref, acc_ref, *, inv_s):
    """x_ref : (1, S_TILE, C_PAD) bf16   channel 3 holds 1.0 (bias channel) for
                                          valid rows, 0.0 for padded rows
       we_ref: (C_PAD, F)        bf16   1x1-conv weights; row 3 holds b_enc
       o_ref : (1, 1, F)         f32    pooled features for this batch row
       acc_ref: (1, F)           f32    running spatial sum (GAP accumulator)
    """
    s = pl.program_id(1)

    @pl.when(s == 0)
    def _():
        acc_ref[...] = jnp.zeros_like(acc_ref)

    # Pointwise conv on the MXU (bf16 inputs, f32 accumulation).  The bias is
    # folded into the ones-channel, so padded spatial rows give exactly 0
    # after ReLU -> no per-tile mask needed.
    h = jnp.dot(x_ref[0], we_ref[...], preferred_element_type=jnp.float32)
    h = jnp.maximum(h, 0.0)                                   # (S_TILE, F) f32
    acc_ref[...] += jnp.sum(h, axis=0, keepdims=True)         # (1, F) f32

    @pl.when(s == pl.num_programs(1) - 1)
    def _():
        # Global average pool over the TRUE spatial extent (padded rows are 0).
        o_ref[...] = (acc_ref[...] * inv_s).reshape(o_ref.shape)


# --------------------------------------------------------------------------
# Kernel 2: reward head (runs once over the whole batch, all operands resident).
# --------------------------------------------------------------------------
def head_kernel(f_ref, w1_ref, b1_ref, w2_ref, b2_ref, w3t_ref, b3_ref, o_ref):
    """f_ref : (B, 2048) f32,  w1:(2048,512) b1:(1,512), w2:(512,128) b2:(1,128)
       w3t   : (1, 128) f32 (transposed last layer), b3:(1,1), o_ref:(B,1)
    """
    f = f_ref[...]
    h1 = jnp.dot(f, w1_ref[...], preferred_element_type=jnp.float32) + b1_ref[...]
    h1 = jnp.maximum(h1, 0.0)
    # Dropout(0.1): identity at inference.
    h2 = jnp.dot(h1, w2_ref[...], preferred_element_type=jnp.float32) + b2_ref[...]
    h2 = jnp.maximum(h2, 0.0)
    # Dropout(0.1): identity at inference.
    # Last layer (128 -> 1) as an elementwise multiply + lane reduce (avoids an
    # N=1 MXU matmul).
    r = jnp.sum(h2 * w3t_ref[...], axis=-1, keepdims=True) + b3_ref[...]   # (B, 1)
    o_ref[...] = r


def init_params(key):
    """Deterministic parameter init (PyTorch nn.Linear-style uniform)."""
    ks = jax.random.split(key, 8)

    def linear(kw, kb, fan_in, fan_out):
        bound = 1.0 / jnp.sqrt(jnp.float32(fan_in))
        w = jax.random.uniform(kw, (fan_in, fan_out), jnp.float32, -bound, bound)
        b = jax.random.uniform(kb, (1, fan_out), jnp.float32, -bound, bound)
        return w, b

    w_enc, b_enc = linear(ks[0], ks[1], 3, IMG_FEATURE_DIM)   # stand-in 1x1 conv
    w1, b1 = linear(ks[2], ks[3], IMG_FEATURE_DIM, HID1)
    w2, b2 = linear(ks[4], ks[5], HID1, HID2)
    w3, b3 = linear(ks[6], ks[7], HID2, 1)
    return dict(w_enc=w_enc, b_enc=b_enc, w1=w1, b1=b1, w2=w2, b2=b2, w3=w3, b3=b3)


@functools.partial(jax.jit, static_argnames=("s_tile",))
def reward_model_forward(img_nchw, params, *, s_tile=1024):
    """img_nchw: (B, 3, H, W) float32  ->  reward (B, 1) float32."""
    B, C, H, W = img_nchw.shape
    S = H * W
    F = IMG_FEATURE_DIM

    # ---- image prep: NCHW -> (B, S, C); append ones "bias channel"; pad to
    #      C_PAD channels; cast to bf16 for the MXU. ------------------------
    x = jnp.transpose(img_nchw, (0, 2, 3, 1)).reshape(B, S, C)
    x = jnp.concatenate([x, jnp.ones((B, S, 1), img_nchw.dtype)], axis=-1)
    x = jnp.pad(x, ((0, 0), (0, 0), (0, C_PAD - (C + 1)))).astype(jnp.bfloat16)

    # Encoder weights with the bias folded into the ones-channel row.
    we = jnp.concatenate([params["w_enc"], params["b_enc"]], axis=0)        # (C+1, F)
    we = jnp.pad(we, ((0, C_PAD - (C + 1)), (0, 0))).astype(jnp.bfloat16)   # (C_PAD, F)

    # ---- spatial tiling: pad with zero rows (they contribute exactly 0). --
    st = _round_up(min(int(s_tile), _round_up(S, 16)), 16)   # bf16 sublane quantum
    s_pad = _round_up(S, st)
    if s_pad != S:
        x = jnp.pad(x, ((0, 0), (0, s_pad - S), (0, 0)))
    n_s = s_pad // st

    enc = functools.partial(encoder_kernel, inv_s=1.0 / S)
    const2 = lambda b, s: (0, 0)

    enc_flops = 2 * B * s_pad * C_PAD * F
    enc_bytes = int(x.size) * 2 + int(we.size) * 2 + B * F * 4

    # ---- encoder: spatially-tiled, pipelined, per-batch-row GAP -----------
    features = pl.pallas_call(
        enc,
        out_shape=jax.ShapeDtypeStruct((B, 1, F), jnp.float32),
        grid_spec=pltpu.PrefetchScalarGridSpec(
            num_scalar_prefetch=0,
            grid=(B, n_s),
            in_specs=[
                pl.BlockSpec((1, st, C_PAD), lambda b, s: (b, s, 0)),   # x: pipelined
                pl.BlockSpec((C_PAD, F), const2),                       # we: resident
            ],
            out_specs=pl.BlockSpec((1, 1, F), lambda b, s: (b, 0, 0)),
            scratch_shapes=[pltpu.VMEM((1, F), jnp.float32)],
        ),
        compiler_params=pltpu.CompilerParams(
            dimension_semantics=("parallel", "arbitrary"),
            vmem_limit_bytes=48 << 20),   # safe on v7x (64 MiB); ample on v5e/v6e
        cost_estimate=pl.CostEstimate(
            flops=enc_flops, transcendentals=0, bytes_accessed=enc_bytes),
    )(x, we)

    features = features.reshape(B, F)                                      # (B, 2048)

    # ---- reward head: one tiny pallas_call over the whole batch (f32) -----
    w3t = params["w3"].reshape(1, HID2)   # (1, 128): transposed last layer
    const1 = lambda i: (0, 0)
    reward = pl.pallas_call(
        head_kernel,
        out_shape=jax.ShapeDtypeStruct((B, 1), jnp.float32),
        grid_spec=pltpu.PrefetchScalarGridSpec(
            num_scalar_prefetch=0,
            grid=(1,),
            in_specs=[
                pl.BlockSpec((B, F), const1),
                pl.BlockSpec((F, HID1), const1),
                pl.BlockSpec((1, HID1), const1),
                pl.BlockSpec((HID1, HID2), const1),
                pl.BlockSpec((1, HID2), const1),
                pl.BlockSpec((1, HID2), const1),
                pl.BlockSpec((1, 1), const1),
            ],
            out_specs=pl.BlockSpec((B, 1), const1),
        ),
        compiler_params=pltpu.CompilerParams(
            dimension_semantics=("arbitrary",),
            vmem_limit_bytes=24 << 20),
    )(features, params["w1"], params["b1"], params["w2"], params["b2"], w3t,
      params["b3"])

    return reward   # (B, 1)


def reference_forward(img_nchw, params):
    """Pure-JAX reference of the same (mixed-precision) computation."""
    B, C, H, W = img_nchw.shape
    x = jnp.transpose(img_nchw, (0, 2, 3, 1)).reshape(B, H * W, C).astype(jnp.bfloat16)
    we = params["w_enc"].astype(jnp.bfloat16)
    be = params["b_enc"].astype(jnp.bfloat16).astype(jnp.float32)   # bias folded as bf16
    h = jnp.einsum("bsc,cf->bsf", x, we,
                   preferred_element_type=jnp.float32) + be
    h = jnp.maximum(h, 0.0)
    f = jnp.mean(h, axis=1)                                     # (B, 2048)
    h1 = jnp.maximum(f @ params["w1"] + params["b1"], 0.0)
    h2 = jnp.maximum(h1 @ params["w2"] + params["b2"], 0.0)
    return h2 @ params["w3"] + params["b3"]                     # (B, 1)


if __name__ == "__main__":
    key = jax.random.PRNGKey(0)
    k_img, k_par = jax.random.split(key)

    # Small but multi-tile: S = 36*36 = 1296 -> three 512-row spatial tiles,
    # the last one zero-padded (exercises the mask-free padded-S path).
    B, C, H, W = 2, 3, 36, 36
    img = jax.random.normal(k_img, (B, C, H, W), jnp.float32)
    params = init_params(k_par)

    reward = reward_model_forward(img, params, s_tile=512)
    reward = jax.block_until_ready(reward)

    ref = reference_forward(img, params)
    assert reward.shape == (B, 1) and reward.dtype == jnp.float32
    assert jnp.allclose(reward, ref, rtol=1e-2, atol=1e-2), (reward, ref)

    print("KERNEL_OK")
</pallas_src>

<mosaic_0001>
module attributes {stable_mosaic.version = 11 : i64} {
  func.func @encoder_kernel(%arg0: i32, %arg1: i32, %arg2: memref<1x512x8xbf16, #tpu.memory_space<vmem>>, %arg3: memref<8x2048xbf16, #tpu.memory_space<vmem>>, %arg4: memref<1x1x2048xf32, #tpu.memory_space<vmem>>, %arg5: memref<1x2048xf32, #tpu.memory_space<vmem>>) attributes {dimension_semantics = [#tpu.dimension_semantics<parallel>, #tpu.dimension_semantics<arbitrary>], iteration_bounds = array<i64: 2, 3>, scalar_prefetch = 0 : i64, scratch_operands = 1 : i64, tpu.core_type = #tpu.core_type<tc>, window_params = [{transform_indices = @transform_0, window_bounds = array<i64: 1, 512, 8>}, {pipeline_mode = #tpu.pipeline_mode<synchronous>, transform_indices = @transform_1, window_bounds = array<i64: 8, 2048>}, {transform_indices = @transform_2, window_bounds = array<i64: 1, 1, 2048>}]} {
    %c0_i32 = arith.constant 0 : i32
    %0 = arith.cmpi eq, %arg1, %c0_i32 : i32
    %1 = arith.extui %0 : i1 to i32
    %c0_i32_0 = arith.constant 0 : i32
    %2 = arith.cmpi ne, %1, %c0_i32_0 : i32
    scf.if %2 {
      %cst_12 = arith.constant 0.000000e+00 : f32
      %17 = vector.broadcast %cst_12 : f32 to vector<1x2048xf32>
      %c0_13 = arith.constant 0 : index
      %c0_14 = arith.constant 0 : index
      %18 = vector.load %arg5[%c0_13, %c0_14] : memref<1x2048xf32, #tpu.memory_space<vmem>>, vector<1x2048xf32>
      tpu.vector_store %arg5[%c0_13, %c0_14], %17 {strides = array<i32>} : memref<1x2048xf32, #tpu.memory_space<vmem>>, vector<1x2048xf32>,
    } else {
    }
    %c0 = arith.constant 0 : index
    %c0_1 = arith.constant 0 : index
    %c0_2 = arith.constant 0 : index
    %3 = vector.load %arg2[%c0, %c0_1, %c0_2] : memref<1x512x8xbf16, #tpu.memory_space<vmem>>, vector<1x512x8xbf16>
    %4 = vector.shape_cast %3 : vector<1x512x8xbf16> to vector<512x8xbf16>
    %c0_3 = arith.constant 0 : index
    %c0_4 = arith.constant 0 : index
    %5 = vector.load %arg3[%c0_3, %c0_4] : memref<8x2048xbf16, #tpu.memory_space<vmem>>, vector<8x2048xbf16>
    %cst = arith.constant dense<0.000000e+00> : vector<512x2048xf32>
    %6 = tpu.matmul %4, %5, %cst {dimension_numbers = #tpu.dot_dimension_numbers<[1], [0], [0], [1], [0, 0, 1, 1], [], []>} : vector<512x8xbf16>, vector<8x2048xbf16>, vector<512x2048xf32> -> vector<512x2048xf32>
    %cst_5 = arith.constant 0.000000e+00 : f32
    %7 = vector.broadcast %cst_5 : f32 to vector<512x2048xf32>
    %8 = arith.maximumf %6, %7 : vector<512x2048xf32>
    %c0_6 = arith.constant 0 : index
    %c0_7 = arith.constant 0 : index
    %9 = vector.load %arg5[%c0_6, %c0_7] : memref<1x2048xf32, #tpu.memory_space<vmem>>, vector<1x2048xf32>
    %cst_8 = arith.constant dense<0.000000e+00> : vector<2048xf32>
    %10 = vector.multi_reduction <add>, %8, %cst_8 [0] : vector<512x2048xf32> to vector<2048xf32>
    %11 = vector.shape_cast %10 : vector<2048xf32> to vector<1x2048xf32>
    %12 = arith.addf %9, %11 : vector<1x2048xf32>
    %c0_9 = arith.constant 0 : index
    %c0_10 = arith.constant 0 : index
    %13 = vector.load %arg5[%c0_9, %c0_10] : memref<1x2048xf32, #tpu.memory_space<vmem>>, vector<1x2048xf32>
    tpu.vector_store %arg5[%c0_9, %c0_10], %12 {strides = array<i32>} : memref<1x2048xf32, #tpu.memory_space<vmem>>, vector<1x2048xf32>,
    %c2_i32 = arith.constant 2 : i32
    %14 = arith.cmpi eq, %arg1, %c2_i32 : i32
    %15 = arith.extui %14 : i1 to i32
    %c0_i32_11 = arith.constant 0 : i32
    %16 = arith.cmpi ne, %15, %c0_i32_11 : i32
    scf.if %16 {
      %c0_12 = arith.constant 0 : index
      %c0_13 = arith.constant 0 : index
      %17 = vector.load %arg5[%c0_12, %c0_13] : memref<1x2048xf32, #tpu.memory_space<vmem>>, vector<1x2048xf32>
      %cst_14 = arith.constant 7.71604944E-4 : f32
      %18 = vector.broadcast %cst_14 : f32 to vector<1x2048xf32>
      %19 = arith.mulf %17, %18 : vector<1x2048xf32>
      %20 = vector.shape_cast %19 : vector<1x2048xf32> to vector<1x1x2048xf32>
      %c0_15 = arith.constant 0 : index
      %c0_16 = arith.constant 0 : index
      %c0_17 = arith.constant 0 : index
      %21 = vector.load %arg4[%c0_15, %c0_16, %c0_17] : memref<1x1x2048xf32, #tpu.memory_space<vmem>>, vector<1x1x2048xf32>
      tpu.vector_store %arg4[%c0_15, %c0_16, %c0_17], %20 {strides = array<i32>} : memref<1x1x2048xf32, #tpu.memory_space<vmem>>, vector<1x1x2048xf32>,
    } else {
    }
    return
  }
  func.func @transform_0(%arg0: i32, %arg1: i32) -> (i32, i32, i32) {
    %c0_i32 = arith.constant 0 : i32
    %c0_i32_0 = arith.constant 0 : i32
    return %arg0, %arg1, %c0_i32 : i32, i32, i32
  }
  func.func @transform_1(%arg0: i32, %arg1: i32) -> (i32, i32) {
    %c0_i32 = arith.constant 0 : i32
    %c0_i32_0 = arith.constant 0 : i32
    %c0_i32_1 = arith.constant 0 : i32
    return %c0_i32, %c0_i32_0 : i32, i32
  }
  func.func @transform_2(%arg0: i32, %arg1: i32) -> (i32, i32, i32) {
    %c0_i32 = arith.constant 0 : i32
    %c0_i32_0 = arith.constant 0 : i32
    %c0_i32_1 = arith.constant 0 : i32
    return %arg0, %c0_i32, %c0_i32_0 : i32, i32, i32
  }
}

module attributes {stable_mosaic.version = 11 : i64} {
  func.func @head_kernel(%arg0: i32, %arg1: memref<2x2048xf32, #tpu.memory_space<vmem>>, %arg2: memref<2048x512xf32, #tpu.memory_space<vmem>>, %arg3: memref<1x512xf32, #tpu.memory_space<vmem>>, %arg4: memref<512x128xf32, #tpu.memory_space<vmem>>, %arg5: memref<1x128xf32, #tpu.memory_space<vmem>>, %arg6: memref<1x128xf32, #tpu.memory_space<vmem>>, %arg7: memref<1x1xf32, #tpu.memory_space<vmem>>, %arg8: memref<2x1xf32, #tpu.memory_space<vmem>>) attributes {dimension_semantics = [#tpu.dimension_semantics<arbitrary>], iteration_bounds = array<i64: 1>, scalar_prefetch = 0 : i64, scratch_operands = 0 : i64, tpu.core_type = #tpu.core_type<tc>, window_params = [{pipeline_mode = #tpu.pipeline_mode<synchronous>, transform_indices = @transform_0, window_bounds = array<i64: 2, 2048>}, {pipeline_mode = #tpu.pipeline_mode<synchronous>, transform_indices = @transform_1, window_bounds = array<i64: 2048, 512>}, {pipeline_mode = #tpu.pipeline_mode<synchronous>, transform_indices = @transform_2, window_bounds = array<i64: 1, 512>}, {pipeline_mode = #tpu.pipeline_mode<synchronous>, transform_indices = @transform_3, window_bounds = array<i64: 512, 128>}, {pipeline_mode = #tpu.pipeline_mode<synchronous>, transform_indices = @transform_4, window_bounds = array<i64: 1, 128>}, {pipeline_mode = #tpu.pipeline_mode<synchronous>, transform_indices = @transform_5, window_bounds = array<i64: 1, 128>}, {pipeline_mode = #tpu.pipeline_mode<synchronous>, transform_indices = @transform_6, window_bounds = array<i64: 1, 1>}, {pipeline_mode = #tpu.pipeline_mode<synchronous>, transform_indices = @transform_7, window_bounds = array<i64: 2, 1>}]} {
    %c0 = arith.constant 0 : index
    %c0_0 = arith.constant 0 : index
    %0 = vector.load %arg1[%c0, %c0_0] : memref<2x2048xf32, #tpu.memory_space<vmem>>, vector<2x2048xf32>
    %c0_1 = arith.constant 0 : index
    %c0_2 = arith.constant 0 : index
    %1 = vector.load %arg2[%c0_1, %c0_2] : memref<2048x512xf32, #tpu.memory_space<vmem>>, vector<2048x512xf32>
    %cst = arith.constant dense<0.000000e+00> : vector<2x512xf32>
    %2 = tpu.matmul %0, %1, %cst {dimension_numbers = #tpu.dot_dimension_numbers<[1], [0], [0], [1], [0, 0, 1, 1], [], []>} : vector<2x2048xf32>, vector<2048x512xf32>, vector<2x512xf32> -> vector<2x512xf32>
    %c0_3 = arith.constant 0 : index
    %c0_4 = arith.constant 0 : index
    %3 = vector.load %arg3[%c0_3, %c0_4] : memref<1x512xf32, #tpu.memory_space<vmem>>, vector<1x512xf32>
    %4 = vector.broadcast %3 : vector<1x512xf32> to vector<2x512xf32>
    %5 = arith.addf %2, %4 : vector<2x512xf32>
    %cst_5 = arith.constant 0.000000e+00 : f32
    %6 = vector.broadcast %cst_5 : f32 to vector<2x512xf32>
    %7 = arith.maximumf %5, %6 : vector<2x512xf32>
    %c0_6 = arith.constant 0 : index
    %c0_7 = arith.constant 0 : index
    %8 = vector.load %arg4[%c0_6, %c0_7] : memref<512x128xf32, #tpu.memory_space<vmem>>, vector<512x128xf32>
    %cst_8 = arith.constant dense<0.000000e+00> : vector<2x128xf32>
    %9 = tpu.matmul %7, %8, %cst_8 {dimension_numbers = #tpu.dot_dimension_numbers<[1], [0], [0], [1], [0, 0, 1, 1], [], []>} : vector<2x512xf32>, vector<512x128xf32>, vector<2x128xf32> -> vector<2x128xf32>
    %c0_9 = arith.constant 0 : index
    %c0_10 = arith.constant 0 : index
    %10 = vector.load %arg5[%c0_9, %c0_10] : memref<1x128xf32, #tpu.memory_space<vmem>>, vector<1x128xf32>
    %11 = vector.broadcast %10 : vector<1x128xf32> to vector<2x128xf32>
    %12 = arith.addf %9, %11 : vector<2x128xf32>
    %cst_11 = arith.constant 0.000000e+00 : f32
    %13 = vector.broadcast %cst_11 : f32 to vector<2x128xf32>
    %14 = arith.maximumf %12, %13 : vector<2x128xf32>
    %c0_12 = arith.constant 0 : index
    %c0_13 = arith.constant 0 : index
    %15 = vector.load %arg6[%c0_12, %c0_13] : memref<1x128xf32, #tpu.memory_space<vmem>>, vector<1x128xf32>
    %16 = vector.broadcast %15 : vector<1x128xf32> to vector<2x128xf32>
    %17 = arith.mulf %14, %16 : vector<2x128xf32>
    %cst_14 = arith.constant dense<0.000000e+00> : vector<2xf32>
    %18 = vector.multi_reduction <add>, %17, %cst_14 [1] : vector<2x128xf32> to vector<2xf32>
    %19 = vector.shape_cast %18 : vector<2xf32> to vector<2x1xf32>
    %c0_15 = arith.constant 0 : index
    %c0_16 = arith.constant 0 : index
    %20 = vector.load %arg7[%c0_15, %c0_16] : memref<1x1xf32, #tpu.memory_space<vmem>>, vector<1x1xf32>
    %21 = vector.broadcast %20 : vector<1x1xf32> to vector<2x1xf32>
    %22 = arith.addf %19, %21 : vector<2x1xf32>
    %c0_17 = arith.constant 0 : index
    %c0_18 = arith.constant 0 : index
    %23 = vector.load %arg8[%c0_17, %c0_18] : memref<2x1xf32, #tpu.memory_space<vmem>>, vector<2x1xf32>
    tpu.vector_store %arg8[%c0_17, %c0_18], %22 {strides = array<i32>} : memref<2x1xf32, #tpu.memory_space<vmem>>, vector<2x1xf32>,
    return
  }
  func.func @transform_0(%arg0: i32) -> (i32, i32) {
    %c0_i32 = arith.constant 0 : i32
    %c0_i32_0 = arith.constant 0 : i32
    %c0_i32_1 = arith.constant 0 : i32
    return %c0_i32, %c0_i32_0 : i32, i32
  }
  func.func @transform_1(%arg0: i32) -> (i32, i32) {
    %c0_i32 = arith.constant 0 : i32
    %c0_i32_0 = arith.constant 0 : i32
    %c0_i32_1 = arith.constant 0 : i32
    return %c0_i32, %c0_i32_0 : i32, i32
  }
  func.func @transform_2(%arg0: i32) -> (i32, i32) {
    %c0_i32 = arith.constant 0 : i32
    %c0_i32_0 = arith.constant 0 : i32
    %c0_i32_1 = arith.constant 0 : i32
    return %c0_i32, %c0_i32_0 : i32, i32
  }
  func.func @transform_3(%arg0: i32) -> (i32, i32) {
    %c0_i32 = arith.constant 0 : i32
    %c0_i32_0 = arith.constant 0 : i32
    %c0_i32_1 = arith.constant 0 : i32
    return %c0_i32, %c0_i32_0 : i32, i32
  }
  func.func @transform_4(%arg0: i32) -> (i32, i32) {
    %c0_i32 = arith.constant 0 : i32
    %c0_i32_0 = arith.constant 0 : i32
    %c0_i32_1 = arith.constant 0 : i32
    return %c0_i32, %c0_i32_0 : i32, i32
  }
  func.func @transform_5(%arg0: i32) -> (i32, i32) {
    %c0_i32 = arith.constant 0 : i32
    %c0_i32_0 = arith.constant 0 : i32
    %c0_i32_1 = arith.constant 0 : i32
    return %c0_i32, %c0_i32_0 : i32, i32
  }
  func.func @transform_6(%arg0: i32) -> (i32, i32) {
    %c0_i32 = arith.constant 0 : i32
    %c0_i32_0 = arith.constant 0 : i32
    %c0_i32_1 = arith.constant 0 : i32
    return %c0_i32, %c0_i32_0 : i32, i32
  }
  func.func @transform_7(%arg0: i32) -> (i32, i32) {
    %c0_i32 = arith.constant 0 : i32
    %c0_i32_0 = arith.constant 0 : i32
    %c0_i32_1 = arith.constant 0 : i32
    return %c0_i32, %c0_i32_0 : i32, i32
  }
}

</mosaic_0001>

<bundles_post_ra>
// kernel: reward_model_forward.2
= control target key start
LH: loop header
LB: loop body
LE: loop exit
PB: predicated region body
PF: predicated region fallthrough
CT: control target
= control target key end

     0   :  { %s6443_s9 = smov 0   ;;  %s6445_s10 = smov 0   ;;  %s7343_s0 = inlined_call_operand.vmem [shape: bf16[2,1536,8], index: 0, kind: input, shape index: {}]   ;;  %s7344_s1 = inlined_call_operand.vmem [shape: bf16[8,2048], index: 1, kind: input, shape index: {}]   ;;  %s7345_s2 = inlined_call_operand.vmem [shape: f32[2,1,2048], index: 2, kind: output, shape index: {}]  }
   0x1   :  { %s6447_s11 = smov 0   ;;  %s6449_s12 = smov 0  }
   0x2   :  { %s6451_s13 = smov 0  }
   0x3 LB: > { %s21_s14 = sadd.s32 1, %s6417_s11  ;;  %s24_s15 = sadd.s32 1, %s6421_s12  ;;  %s6425_s13 = sphi %s6451_s13, %s12_s13   ;;  %s6421_s12 = sphi %s6449_s12, %s7349_s12   ;;  %s6417_s11 = sphi %s6447_s11, %s7348_s11   ;;  %s6413_s10 = sphi %s6445_s10, %s7347_s10   ;;  %s6409_s9 = sphi %s6443_s9, %s7346_s9  }
   0x4   : > { %p22_p0 = scmp.ge.s32.totalorder %s21_s14, 3  ;;  %p5569_p1 = scmp.ge.s32.totalorder %s6425_s13, 1 }
   0x5   : > { %p131_p2 = scmp.lt.s32.totalorder %s6425_s13, 7 }
   0x6   : > { %s7351_s14 = smov (%p22_p0, %s21_s14), 0  ;;  %s7353_s15 = smov (!%p22_p0, %s24_s15), %s6421_s12 }
   0x7   : > { %p132_p3 = pnand %p5569_p1, %p131_p2  ;;  %p26_p4 = scmp.ge.s32.totalorder %s7353_s15, 2 }
   0x8   : > { %s5570_s16 = sshll.u32 (!%p132_p3), %s6409_s9, 6  ;;  %p157_p5 = scmp.lt.s32.totalorder (!%p132_p3), %s6413_s10, 1 }
   0x9   : > { %s7355_s15 = smov (%p26_p4, %s7353_s15), 0  ;;  %135 = sbr.rel (%p132_p3) target bundleno = 2240 (0x8c0), region = 28 }
   0xa   : > { %p159_p6 = scmp.lt.s32.totalorder (!%p132_p3), %s5570_s16, 191  ;;  %p5573_p7 = scmp.ne.s32.totalorder (!%p132_p3), %s6409_s9, 0 }
   0xe   : > { %s7357_s10 = smov (!%p157_p5, %s6413_s10), 1  ;;  %s7359_s16 = smov (!%p159_p6, %s5570_s16), 191 }
   0xf   : > { %s6249_s17 = smul.u32 192, %s7357_s10  ;;  %s5572_s18 = sshll.u32 %s7357_s10, 4 }
  0x10   : > { %s6479_s21 = scalar_lea.vmem %s7345_s2, %s5572_s18  ;;  %174 = sbr.rel (%p5573_p7) target bundleno = 24 (0x18), region = 32 }
  0x11   : > { %s162_s22 = sadd.s32 %s6249_s17, %s7359_s16 }
  0x12   : > { %s5571_s23 = sshll.u32 %s162_s22, 2 }
  0x13   : > { %s6484_s26 = scalar_lea.vmem %s7343_s0, %s5571_s23 }
  0x15   : > { %v6427_v0 = vmov 0.0  }
  0x16   : > { %175 = vst [vmem:[#allocation2] sm:$0xff] %v6427_v0 }
  0x17   : > { %176 = vst [vmem:[#allocation2 + $0x8] sm:$0xff] %v6427_v0 }
  0x18 PF: > { %v241_v1 = vld [vmem:[%s7344_s1] sm:$0xff]  ;;  %vm546_vm0 = vcmask 1043456   ;;  %v242_v2 = vld [vmem:[%s7344_s1 + $0x8] sm:$0xff]  ;;  %v244_v7 = vld [vmem:[%s7344_s1 + $0x18] sm:$0xff]  ;;  %vm449_vm1 = vcmask 64512   ;;  %vm5459_vm2 = vcmask 1040384  }
  0x19   : > { %v417_v3 = vunpack.c.l.b16 %v241_v1  ;;  %v418_v4 = vunpack.c.h.b16 %v241_v1  ;;  %v419_v5 = vunpack.c.l.b16 %v242_v2  ;;  %v420_v6 = vunpack.c.h.b16 %v242_v2  ;;  %v243_v8 = vld [vmem:[%s7344_s1 + $0x10] sm:$0xff]  ;;  %v6217_v25 = vld [vmem:[%s6484_s26] sm:$0xff]  ;;  %v6218_v30 = vld [vmem:[%s6484_s26 + $0x8] sm:$0xff]  ;;  %p6214_p8 = scmp.ne.s32.totalorder %s6409_s9, 2 }
  0x1a   : > { %v423_v9 = vunpack.c.l.b16 %v244_v7  ;;  %v424_v10 = vunpack.c.h.b16 %v244_v7  ;;  %v421_v11 = vunpack.c.l.b16 %v243_v8  ;;  %v422_v12 = vunpack.c.h.b16 %v243_v8  ;;  %v6219_v31 = vld [vmem:[%s6484_s26 + $0x10] sm:$0xff]  ;;  %v6220_v32 = vld [vmem:[%s6484_s26 + $0x18] sm:$0xff]  ;;  %v6221_v33 = vld [vmem:[%s6484_s26 + $0x20] sm:$0xff] }
  0x1b   : > { %v433_v13 = vpack.c.b16 %v417_v3, %v417_v3  ;;  %v434_v14 = vpack.c.b16 %v418_v4, %v418_v4  ;;  %v435_v15 = vpack.c.b16 %v419_v5, %v419_v5  ;;  %v436_v16 = vpack.c.b16 %v420_v6, %v420_v6  ;;  %v6222_v34 = vld [vmem:[%s6484_s26 + $0x28] sm:$0xff]  ;;  %v6223_v35 = vld [vmem:[%s6484_s26 + $0x30] sm:$0xff]  ;;  %v6224_v36 = vld [vmem:[%s6484_s26 + $0x38] sm:$0xff] }
  0x1c   : > { %v439_v17 = vpack.c.b16 %v423_v9, %v423_v9  ;;  %v440_v18 = vpack.c.b16 %v424_v10, %v424_v10  ;;  %v437_v19 = vpack.c.b16 %v421_v11, %v421_v11  ;;  %v438_v20 = vpack.c.b16 %v422_v12, %v422_v12  ;;  %v6225_v37 = vld [vmem:[%s6484_s26 + $0x40] sm:$0xff]  ;;  %v6226_v52 = vld [vmem:[%s6484_s26 + $0x48] sm:$0xff] }
  0x1d   : > { %v548_v21 = vsel %vm546_vm0, %v433_v13, 0  ;;  %v551_v22 = vsel %vm546_vm0, %v434_v14, 0  ;;  %v554_v23 = vsel %vm546_vm0, %v435_v15, 0  ;;  %v557_v24 = vsel %vm546_vm0, %v436_v16, 0  ;;  %v6227_v15 = vld [vmem:[%s6484_s26 + $0x50] sm:$0xff] }
  0x1e   : > { %602 = vmatpush.bf16.msra.mxu0 %v548_v21  ;;  %771 = vmatpush.bf16.msra.mxu1 %v551_v22  ;;  %v566_v26 = vsel %vm546_vm0, %v439_v17, 0  ;;  %v569_v27 = vsel %vm546_vm0, %v440_v18, 0  ;;  %v560_v28 = vsel %vm546_vm0, %v437_v19, 0  ;;  %v563_v29 = vsel %vm546_vm0, %v438_v20, 0 }
  0x1f   : > { %940 = vmatpush.bf16.msra.mxu2 %v554_v23  ;;  %1109 = vmatpush.bf16.msra.mxu3 %v557_v24  ;;  %vm5461_vm3 = vcmask 1042434   ;;  %vm5463_vm4 = vcmask 1041408   ;;  %vm5465_vm5 = vcmask 1044484   ;;  %vm5467_vm6 = vcmask 1046534  }
  0x20   : > { %vm5469_vm7 = vcmask 1045508  }
  0x21   : > { %5702 = vmatmul.msk.bf16.vlgmr.msra.gmra.mxu0 %vm449_vm1, %v6217_v25  ;;  %5734 = vmatmul.msk.bf16.vlgmr.msra.gmra.mxu1 %vm449_vm1, %v6217_v25 }
  0x22   : > { %5766 = vmatmul.msk.bf16.vlgmr.msra.gmra.mxu2 %vm449_vm1, %v6217_v25  ;;  %5798 = vmatmul.msk.bf16.vlgmr.msra.gmra.mxu3 %vm449_vm1, %v6217_v25 }
  0x23   : > { %1616 = vmatpush.bf16.msrb.mxu2 %v566_v26  ;;  %1785 = vmatpush.bf16.msrb.mxu3 %v569_v27 }
  0x24   : > { %1278 = vmatpush.bf16.msrb.mxu0 %v560_v28  ;;  %1447 = vmatpush.bf16.msrb.mxu1 %v563_v29 }
  0x31   : > { %5703 = vmatmul.msk.bf16.gmra.mxu0 %vm449_vm1, %v6218_v30  ;;  %5735 = vmatmul.msk.bf16.gmra.mxu1 %vm449_vm1, %v6218_v30 }
  0x32   : > { %5767 = vmatmul.msk.bf16.gmra.mxu2 %vm449_vm1, %v6218_v30  ;;  %5799 = vmatmul.msk.bf16.gmra.mxu3 %vm449_vm1, %v6218_v30 }
  0x41   : > { %5704 = vmatmul.msk.bf16.gmra.mxu0 %vm449_vm1, %v6219_v31  ;;  %5736 = vmatmul.msk.bf16.gmra.mxu1 %vm449_vm1, %v6219_v31 }
  0x42   : > { %5768 = vmatmul.msk.bf16.gmra.mxu2 %vm449_vm1, %v6219_v31  ;;  %5800 = vmatmul.msk.bf16.gmra.mxu3 %vm449_vm1, %v6219_v31 }
  0x51   : > { %5705 = vmatmul.msk.bf16.gmra.mxu0 %vm449_vm1, %v6220_v32  ;;  %5737 = vmatmul.msk.bf16.gmra.mxu1 %vm449_vm1, %v6220_v32 }
  0x52   : > { %5769 = vmatmul.msk.bf16.gmra.mxu2 %vm449_vm1, %v6220_v32  ;;  %5801 = vmatmul.msk.bf16.gmra.mxu3 %vm449_vm1, %v6220_v32 }
  0x61   : > { %5706 = vmatmul.msk.bf16.gmra.mxu0 %vm449_vm1, %v6221_v33  ;;  %5738 = vmatmul.msk.bf16.gmra.mxu1 %vm449_vm1, %v6221_v33 }
  0x62   : > { %5770 = vmatmul.msk.bf16.gmra.mxu2 %vm449_vm1, %v6221_v33  ;;  %5802 = vmatmul.msk.bf16.gmra.mxu3 %vm449_vm1, %v6221_v33 }
  0x71   : > { %5707 = vmatmul.msk.bf16.gmra.mxu0 %vm449_vm1, %v6222_v34  ;;  %5739 = vmatmul.msk.bf16.gmra.mxu1 %vm449_vm1, %v6222_v34 }
  0x72   : > { %5771 = vmatmul.msk.bf16.gmra.mxu2 %vm449_vm1, %v6222_v34  ;;  %5803 = vmatmul.msk.bf16.gmra.mxu3 %vm449_vm1, %v6222_v34 }
  0x81   : > { %5708 = vmatmul.msk.bf16.gmra.mxu0 %vm449_vm1, %v6223_v35  ;;  %5740 = vmatmul.msk.bf16.gmra.mxu1 %vm449_vm1, %v6223_v35 }
  0x82   : > { %5772 = vmatmul.msk.bf16.gmra.mxu2 %vm449_vm1, %v6223_v35  ;;  %5804 = vmatmul.msk.bf16.gmra.mxu3 %vm449_vm1, %v6223_v35 }
  0x91   : > { %5709 = vmatmul.msk.bf16.gmra.mxu0 %vm449_vm1, %v6224_v36  ;;  %5741 = vmatmul.msk.bf16.gmra.mxu1 %vm449_vm1, %v6224_v36 }
  0x92   : > { %5773 = vmatmul.msk.bf16.gmra.mxu2 %vm449_vm1, %v6224_v36  ;;  %5805 = vmatmul.msk.bf16.gmra.mxu3 %vm449_vm1, %v6224_v36 }
  0x9e   : > { %v604_v38 = vpop.f32.mrf.mxu0  ;;  %v773_v39 = vpop.f32.mrf.mxu1 }
  0x9f   : > { %v3299_v44 = vmax.f32 %v604_v38, 0.0  ;;  %v3300_v45 = vmax.f32 %v773_v39, 0.0 }
  0xa1   : > { %5710 = vmatmul.msk.bf16.gmra.mxu0 %vm449_vm1, %v6225_v37  ;;  %5742 = vmatmul.msk.bf16.gmra.mxu1 %vm449_vm1, %v6225_v37 }
  0xa2   : > { %5774 = vmatmul.msk.bf16.gmra.mxu2 %vm449_vm1, %v6225_v37  ;;  %5806 = vmatmul.msk.bf16.gmra.mxu3 %vm449_vm1, %v6225_v37 }
  0xa5   : > { %v942_v40 = vpop.f32.mrf.mxu2  ;;  %v1111_v41 = vpop.f32.mrf.mxu3 }
  0xa6   : > { %v606_v42 = vpop.f32.mrf.mxu0  ;;  %v775_v43 = vpop.f32.mrf.mxu1  ;;  %v3301_v53 = vmax.f32 %v942_v40, 0.0  ;;  %v3302_v54 = vmax.f32 %v1111_v41, 0.0  ;;  %v6228_v40 = vld [vmem:[%s6484_s26 + $0x58] sm:$0xff] }
  0xa7   : > { %v3315_v46 = vmax.f32 %v606_v42, 0.0  ;;  %v3316_v47 = vmax.f32 %v775_v43, 0.0 }
  0xa9   : > { %v4325_v48 = vadd.f32 %v3315_v46, %v3299_v44  ;;  %v4394_v49 = vadd.f32 %v3316_v47, %v3300_v45 }
  0xad   : > { %v944_v50 = vpop.f32.mrf.mxu2  ;;  %v1113_v51 = vpop.f32.mrf.mxu3 }
  0xae   : > { %v3317_v55 = vmax.f32 %v944_v50, 0.0  ;;  %v3318_v56 = vmax.f32 %v1113_v51, 0.0  ;;  %v609_v57 = vpop.f32.mrf.mxu0  ;;  %v778_v58 = vpop.f32.mrf.mxu1 }
  0xaf   : > { %v3331_v59 = vmax.f32 %v609_v57, 0.0  ;;  %v3332_v60 = vmax.f32 %v778_v58, 0.0 }
  0xb0   : > { %v4463_v61 = vadd.f32 %v3317_v55, %v3301_v53  ;;  %v4532_v62 = vadd.f32 %v3318_v56, %v3302_v54 }
  0xb1   : > { %v4326_v63 = vadd.f32 %v4325_v48, %v3331_v59  ;;  %v4395_v0 = vadd.f32 %v4394_v49, %v3332_v60  ;;  %5711 = vmatmul.msk.bf16.gmra.mxu0 %vm449_vm1, %v6226_v52  ;;  %5743 = vmatmul.msk.bf16.gmra.mxu1 %vm449_vm1, %v6226_v52 }
  0xb2   : > { %5775 = vmatmul.msk.bf16.gmra.mxu2 %vm449_vm1, %v6226_v52  ;;  %5807 = vmatmul.msk.bf16.gmra.mxu3 %vm449_vm1, %v6226_v52 }
  0xb5   : > { %v947_v1 = vpop.f32.mrf.mxu2  ;;  %v1116_v2 = vpop.f32.mrf.mxu3 }
  0xb6   : > { %v3333_v3 = vmax.f32 %v947_v1, 0.0  ;;  %v3334_v4 = vmax.f32 %v1116_v2, 0.0  ;;  %v611_v5 = vpop.f32.mrf.mxu0  ;;  %v780_v6 = vpop.f32.mrf.mxu1  ;;  %v6229_v1 = vld [vmem:[%s6484_s26 + $0x60] sm:$0xff] }
  0xb7   : > { %v3347_v7 = vmax.f32 %v611_v5, 0.0  ;;  %v3348_v8 = vmax.f32 %v780_v6, 0.0 }
  0xb8   : > { %v4464_v9 = vadd.f32 %v4463_v61, %v3333_v3  ;;  %v4533_v10 = vadd.f32 %v4532_v62, %v3334_v4 }
  0xb9   : > { %v4327_v11 = vadd.f32 %v4326_v63, %v3347_v7  ;;  %v4396_v12 = vadd.f32 %v4395_v0, %v3348_v8 }
  0xbd   : > { %v949_v13 = vpop.f32.mrf.mxu2  ;;  %v1118_v14 = vpop.f32.mrf.mxu3 }
  0xbe   : > { %v3349_v16 = vmax.f32 %v949_v13, 0.0  ;;  %v3350_v17 = vmax.f32 %v1118_v14, 0.0  ;;  %v614_v18 = vpop.f32.mrf.mxu0  ;;  %v783_v19 = vpop.f32.mrf.mxu1 }
  0xbf   : > { %v3363_v20 = vmax.f32 %v614_v18, 0.0  ;;  %v3364_v21 = vmax.f32 %v783_v19, 0.0 }
  0xc0   : > { %v4465_v22 = vadd.f32 %v4464_v9, %v3349_v16  ;;  %v4534_v23 = vadd.f32 %v4533_v10, %v3350_v17 }
  0xc1   : > { %v4328_v24 = vadd.f32 %v4327_v11, %v3363_v20  ;;  %v4397_v25 = vadd.f32 %v4396_v12, %v3364_v21  ;;  %5712 = vmatmul.msk.bf16.gmra.mxu0 %vm449_vm1, %v6227_v15  ;;  %5744 = vmatmul.msk.bf16.gmra.mxu1 %vm449_vm1, %v6227_v15 }
  0xc2   : > { %5776 = vmatmul.msk.bf16.gmra.mxu2 %vm449_vm1, %v6227_v15  ;;  %5808 = vmatmul.msk.bf16.gmra.mxu3 %vm449_vm1, %v6227_v15 }
  0xc5   : > { %v952_v26 = vpop.f32.mrf.mxu2  ;;  %v1121_v27 = vpop.f32.mrf.mxu3 }
  0xc6   : > { %v3365_v28 = vmax.f32 %v952_v26, 0.0  ;;  %v3366_v29 = vmax.f32 %v1121_v27, 0.0  ;;  %v616_v30 = vpop.f32.mrf.mxu0  ;;  %v785_v31 = vpop.f32.mrf.mxu1  ;;  %v6230_v26 = vld [vmem:[%s6484_s26 + $0x68] sm:$0xff] }
  0xc7   : > { %v3379_v32 = vmax.f32 %v616_v30, 0.0  ;;  %v3380_v33 = vmax.f32 %v785_v31, 0.0 }
  0xc8   : > { %v4466_v34 = vadd.f32 %v4465_v22, %v3365_v28  ;;  %v4535_v35 = vadd.f32 %v4534_v23, %v3366_v29 }
  0xc9   : > { %v4329_v36 = vadd.f32 %v4328_v24, %v3379_v32  ;;  %v4398_v37 = vadd.f32 %v4397_v25, %v3380_v33 }
  0xcd   : > { %v954_v38 = vpop.f32.mrf.mxu2  ;;  %v1123_v39 = vpop.f32.mrf.mxu3 }
  0xce   : > { %v3381_v41 = vmax.f32 %v954_v38, 0.0  ;;  %v3382_v42 = vmax.f32 %v1123_v39, 0.0  ;;  %v619_v43 = vpop.f32.mrf.mxu0  ;;  %v788_v44 = vpop.f32.mrf.mxu1 }
  0xcf   : > { %v3395_v45 = vmax.f32 %v619_v43, 0.0  ;;  %v3396_v46 = vmax.f32 %v788_v44, 0.0 }
  0xd0   : > { %v4467_v47 = vadd.f32 %v4466_v34, %v3381_v41  ;;  %v4536_v48 = vadd.f32 %v4535_v35, %v3382_v42 }
  0xd1   : > { %v4330_v49 = vadd.f32 %v4329_v36, %v3395_v45  ;;  %v4399_v50 = vadd.f32 %v4398_v37, %v3396_v46  ;;  %5713 = vmatmul.msk.bf16.gmra.mxu0 %vm449_vm1, %v6228_v40  ;;  %5745 = vmatmul.msk.bf16.gmra.mxu1 %vm449_vm1, %v6228_v40 }
  0xd2   : > { %5777 = vmatmul.msk.bf16.gmra.mxu2 %vm449_vm1, %v6228_v40  ;;  %5809 = vmatmul.msk.bf16.gmra.mxu3 %vm449_vm1, %v6228_v40 }
  0xd5   : > { %v957_v51 = vpop.f32.mrf.mxu2  ;;  %v1126_v52 = vpop.f32.mrf.mxu3 }
  0xd6   : > { %v3397_v53 = vmax.f32 %v957_v51, 0.0  ;;  %v3398_v54 = vmax.f32 %v1126_v52, 0.0  ;;  %v621_v55 = vpop.f32.mrf.mxu0  ;;  %v790_v56 = vpop.f32.mrf.mxu1  ;;  %v6231_v51 = vld [vmem:[%s6484_s26 + $0x70] sm:$0xff] }
  0xd7   : > { %v3411_v57 = vmax.f32 %v621_v55, 0.0  ;;  %v3412_v58 = vmax.f32 %v790_v56, 0.0 }
  0xd8   : > { %v4468_v59 = vadd.f32 %v4467_v47, %v3397_v53  ;;  %v4537_v60 = vadd.f32 %v4536_v48, %v3398_v54 }
  0xd9   : > { %v4331_v61 = vadd.f32 %v4330_v49, %v3411_v57  ;;  %v4400_v62 = vadd.f32 %v4399_v50, %v3412_v58 }
  0xdd   : > { %v959_v63 = vpop.f32.mrf.mxu2  ;;  %v1128_v0 = vpop.f32.mrf.mxu3 }
  0xde   : > { %v3413_v2 = vmax.f32 %v959_v63, 0.0  ;;  %v3414_v3 = vmax.f32 %v1128_v0, 0.0  ;;  %v624_v4 = vpop.f32.mrf.mxu0  ;;  %v793_v5 = vpop.f32.mrf.mxu1 }
  0xdf   : > { %v3427_v6 = vmax.f32 %v624_v4, 0.0  ;;  %v3428_v7 = vmax.f32 %v793_v5, 0.0 }
  0xe0   : > { %v4469_v8 = vadd.f32 %v4468_v59, %v3413_v2  ;;  %v4538_v9 = vadd.f32 %v4537_v60, %v3414_v3 }
  0xe1   : > { %v4332_v10 = vadd.f32 %v4331_v61, %v3427_v6  ;;  %v4401_v11 = vadd.f32 %v4400_v62, %v3428_v7  ;;  %5714 = vmatmul.msk.bf16.gmra.mxu0 %vm449_vm1, %v6229_v1  ;;  %5746 = vmatmul.msk.bf16.gmra.mxu1 %vm449_vm1, %v6229_v1 }
  0xe2   : > { %5778 = vmatmul.msk.bf16.gmra.mxu2 %vm449_vm1, %v6229_v1  ;;  %5810 = vmatmul.msk.bf16.gmra.mxu3 %vm449_vm1, %v6229_v1 }
  0xe5   : > { %v962_v12 = vpop.f32.mrf.mxu2  ;;  %v1131_v13 = vpop.f32.mrf.mxu3 }
  0xe6   : > { %v3429_v14 = vmax.f32 %v962_v12, 0.0  ;;  %v3430_v15 = vmax.f32 %v1131_v13, 0.0  ;;  %v626_v16 = vpop.f32.mrf.mxu0  ;;  %v795_v17 = vpop.f32.mrf.mxu1  ;;  %v6232_v12 = vld [vmem:[%s6484_s26 + $0x78] sm:$0xff] }
  0xe7   : > { %v3443_v18 = vmax.f32 %v626_v16, 0.0  ;;  %v3444_v19 = vmax.f32 %v795_v17, 0.0 }
  0xe8   : > { %v4470_v20 = vadd.f32 %v4469_v8, %v3429_v14  ;;  %v4539_v21 = vadd.f32 %v4538_v9, %v3430_v15 }
  0xe9   : > { %v4333_v22 = vadd.f32 %v4332_v10, %v3443_v18  ;;  %v4402_v23 = vadd.f32 %v4401_v11, %v3444_v19 }
  0xed   : > { %v964_v24 = vpop.f32.mrf.mxu2  ;;  %v1133_v25 = vpop.f32.mrf.mxu3 }
  0xee   : > { %v3445_v27 = vmax.f32 %v964_v24, 0.0  ;;  %v3446_v28 = vmax.f32 %v1133_v25, 0.0  ;;  %v629_v29 = vpop.f32.mrf.mxu0  ;;  %v798_v30 = vpop.f32.mrf.mxu1 }
  0xef   : > { %v3459_v31 = vmax.f32 %v629_v29, 0.0  ;;  %v3460_v32 = vmax.f32 %v798_v30, 0.0 }
  0xf0   : > { %v4471_v33 = vadd.f32 %v4470_v20, %v3445_v27  ;;  %v4540_v34 = vadd.f32 %v4539_v21, %v3446_v28 }
  0xf1   : > { %v4334_v35 = vadd.f32 %v4333_v22, %v3459_v31  ;;  %v4403_v36 = vadd.f32 %v4402_v23, %v3460_v32  ;;  %5715 = vmatmul.msk.bf16.gmra.mxu0 %vm449_vm1, %v6230_v26  ;;  %5747 = vmatmul.msk.bf16.gmra.mxu1 %vm449_vm1, %v6230_v26 }
  0xf2   : > { %5779 = vmatmul.msk.bf16.gmra.mxu2 %vm449_vm1, %v6230_v26  ;;  %5811 = vmatmul.msk.bf16.gmra.mxu3 %vm449_vm1, %v6230_v26 }
  0xf5   : > { %v967_v37 = vpop.f32.mrf.mxu2  ;;  %v1136_v38 = vpop.f32.mrf.mxu3 }
  0xf6   : > { %v3461_v39 = vmax.f32 %v967_v37, 0.0  ;;  %v3462_v40 = vmax.f32 %v1136_v38, 0.0  ;;  %v631_v41 = vpop.f32.mrf.mxu0  ;;  %v800_v42 = vpop.f32.mrf.mxu1  ;;  %v6233_v37 = vld [vmem:[%s6484_s26 + $0x80] sm:$0xff] }
  0xf7   : > { %v3475_v43 = vmax.f32 %v631_v41, 0.0  ;;  %v3476_v44 = vmax.f32 %v800_v42, 0.0 }
  0xf8   : > { %v4472_v45 = vadd.f32 %v4471_v33, %v3461_v39  ;;  %v4541_v46 = vadd.f32 %v4540_v34, %v3462_v40 }
  0xf9   : > { %v4335_v47 = vadd.f32 %v4334_v35, %v3475_v43  ;;  %v4404_v48 = vadd.f32 %v4403_v36, %v3476_v44 }
  0xfd   : > { %v969_v49 = vpop.f32.mrf.mxu2  ;;  %v1138_v50 = vpop.f32.mrf.mxu3 }
  0xfe   : > { %v3477_v52 = vmax.f32 %v969_v49, 0.0  ;;  %v3478_v53 = vmax.f32 %v1138_v50, 0.0  ;;  %v634_v54 = vpop.f32.mrf.mxu0  ;;  %v803_v55 = vpop.f32.mrf.mxu1 }
  0xff   : > { %v3491_v56 = vmax.f32 %v634_v54, 0.0  ;;  %v3492_v57 = vmax.f32 %v803_v55, 0.0 }
 0x100   : > { %v4473_v58 = vadd.f32 %v4472_v45, %v3477_v52  ;;  %v4542_v59 = vadd.f32 %v4541_v46, %v3478_v53 }
 0x101   : > { %v4336_v60 = vadd.f32 %v4335_v47, %v3491_v56  ;;  %v4405_v61 = vadd.f32 %v4404_v48, %v3492_v57  ;;  %5716 = vmatmul.msk.bf16.gmra.mxu0 %vm449_vm1, %v6231_v51  ;;  %5748 = vmatmul.msk.bf16.gmra.mxu1 %vm449_vm1, %v6231_v51 }
 0x102   : > { %5780 = vmatmul.msk.bf16.gmra.mxu2 %vm449_vm1, %v6231_v51  ;;  %5812 = vmatmul.msk.bf16.gmra.mxu3 %vm449_vm1, %v6231_v51 }
 0x105   : > { %v972_v62 = vpop.f32.mrf.mxu2  ;;  %v1141_v63 = vpop.f32.mrf.mxu3 }
 0x106   : > { %v3493_v0 = vmax.f32 %v972_v62, 0.0  ;;  %v3494_v1 = vmax.f32 %v1141_v63, 0.0  ;;  %v636_v2 = vpop.f32.mrf.mxu0  ;;  %v805_v3 = vpop.f32.mrf.mxu1  ;;  %v6234_v62 = vld [vmem:[%s6484_s26 + $0x88] sm:$0xff] }
 0x107   : > { %v3507_v4 = vmax.f32 %v636_v2, 0.0  ;;  %v3508_v5 = vmax.f32 %v805_v3, 0.0 }
 0x108   : > { %v4474_v6 = vadd.f32 %v4473_v58, %v3493_v0  ;;  %v4543_v7 = vadd.f32 %v4542_v59, %v3494_v1 }
 0x109   : > { %v4337_v8 = vadd.f32 %v4336_v60, %v3507_v4  ;;  %v4406_v9 = vadd.f32 %v4405_v61, %v3508_v5 }
 0x10d   : > { %v974_v10 = vpop.f32.mrf.mxu2  ;;  %v1143_v11 = vpop.f32.mrf.mxu3 }
 0x10e   : > { %v3509_v13 = vmax.f32 %v974_v10, 0.0  ;;  %v3510_v14 = vmax.f32 %v1143_v11, 0.0  ;;  %v639_v15 = vpop.f32.mrf.mxu0  ;;  %v808_v16 = vpop.f32.mrf.mxu1 }
 0x10f   : > { %v3523_v17 = vmax.f32 %v639_v15, 0.0  ;;  %v3524_v18 = vmax.f32 %v808_v16, 0.0 }
 0x110   : > { %v4475_v19 = vadd.f32 %v4474_v6, %v3509_v13  ;;  %v4544_v20 = vadd.f32 %v4543_v7, %v3510_v14 }
 0x111   : > { %v4338_v21 = vadd.f32 %v4337_v8, %v3523_v17  ;;  %v4407_v22 = vadd.f32 %v4406_v9, %v3524_v18  ;;  %5717 = vmatmul.msk.bf16.gmra.mxu0 %vm449_vm1, %v6232_v12  ;;  %5749 = vmatmul.msk.bf16.gmra.mxu1 %vm449_vm1, %v6232_v12 }
 0x112   : > { %5781 = vmatmul.msk.bf16.gmra.mxu2 %vm449_vm1, %v6232_v12  ;;  %5813 = vmatmul.msk.bf16.gmra.mxu3 %vm449_vm1, %v6232_v12 }
 0x115   : > { %v977_v23 = vpop.f32.mrf.mxu2  ;;  %v1146_v24 = vpop.f32.mrf.mxu3 }
 0x116   : > { %v3525_v25 = vmax.f32 %v977_v23, 0.0  ;;  %v3526_v26 = vmax.f32 %v1146_v24, 0.0  ;;  %v641_v27 = vpop.f32.mrf.mxu0  ;;  %v810_v28 = vpop.f32.mrf.mxu1  ;;  %v6235_v23 = vld [vmem:[%s6484_s26 + $0x90] sm:$0xff] }
 0x117   : > { %v3539_v29 = vmax.f32 %v641_v27, 0.0  ;;  %v3540_v30 = vmax.f32 %v810_v28, 0.0 }
 0x118   : > { %v4476_v31 = vadd.f32 %v4475_v19, %v3525_v25  ;;  %v4545_v32 = vadd.f32 %v4544_v20, %v3526_v26 }
 0x119   : > { %v4339_v33 = vadd.f32 %v4338_v21, %v3539_v29  ;;  %v4408_v34 = vadd.f32 %v4407_v22, %v3540_v30 }
 0x11d   : > { %v979_v35 = vpop.f32.mrf.mxu2  ;;  %v1148_v36 = vpop.f32.mrf.mxu3 }
 0x11e   : > { %v3541_v38 = vmax.f32 %v979_v35, 0.0  ;;  %v3542_v39 = vmax.f32 %v1148_v36, 0.0  ;;  %v644_v40 = vpop.f32.mrf.mxu0  ;;  %v813_v41 = vpop.f32.mrf.mxu1 }
 0x11f   : > { %v3555_v42 = vmax.f32 %v644_v40, 0.0  ;;  %v3556_v43 = vmax.f32 %v813_v41, 0.0 }
 0x120   : > { %v4477_v44 = vadd.f32 %v4476_v31, %v3541_v38  ;;  %v4546_v45 = vadd.f32 %v4545_v32, %v3542_v39 }
 0x121   : > { %v4340_v46 = vadd.f32 %v4339_v33, %v3555_v42  ;;  %v4409_v47 = vadd.f32 %v4408_v34, %v3556_v43  ;;  %5718 = vmatmul.msk.bf16.gmra.mxu0 %vm449_vm1, %v6233_v37  ;;  %5750 = vmatmul.msk.bf16.gmra.mxu1 %vm449_vm1, %v6233_v37 }
 0x122   : > { %5782 = vmatmul.msk.bf16.gmra.mxu2 %vm449_vm1, %v6233_v37  ;;  %5814 = vmatmul.msk.bf16.gmra.mxu3 %vm449_vm1, %v6233_v37 }
 0x125   : > { %v982_v48 = vpop.f32.mrf.mxu2  ;;  %v1151_v49 = vpop.f32.mrf.mxu3 }
 0x126   : > { %v3557_v50 = vmax.f32 %v982_v48, 0.0  ;;  %v3558_v51 = vmax.f32 %v1151_v49, 0.0  ;;  %v646_v52 = vpop.f32.mrf.mxu0  ;;  %v815_v53 = vpop.f32.mrf.mxu1  ;;  %v6236_v48 = vld [vmem:[%s6484_s26 + $0x98] sm:$0xff] }
 0x127   : > { %v3571_v54 = vmax.f32 %v646_v52, 0.0  ;;  %v3572_v55 = vmax.f32 %v815_v53, 0.0 }
 0x128   : > { %v4478_v56 = vadd.f32 %v4477_v44, %v3557_v50  ;;  %v4547_v57 = vadd.f32 %v4546_v45, %v3558_v51 }
 0x129   : > { %v4341_v58 = vadd.f32 %v4340_v46, %v3571_v54  ;;  %v4410_v59 = vadd.f32 %v4409_v47, %v3572_v55 }
 0x12d   : > { %v984_v60 = vpop.f32.mrf.mxu2  ;;  %v1153_v61 = vpop.f32.mrf.mxu3 }
 0x12e   : > { %v3573_v63 = vmax.f32 %v984_v60, 0.0  ;;  %v3574_v0 = vmax.f32 %v1153_v61, 0.0  ;;  %v649_v1 = vpop.f32.mrf.mxu0  ;;  %v818_v2 = vpop.f32.mrf.mxu1 }
 0x12f   : > { %v3587_v3 = vmax.f32 %v649_v1, 0.0  ;;  %v3588_v4 = vmax.f32 %v818_v2, 0.0 }
 0x130   : > { %v4479_v5 = vadd.f32 %v4478_v56, %v3573_v63  ;;  %v4548_v6 = vadd.f32 %v4547_v57, %v3574_v0 }
 0x131   : > { %v4342_v7 = vadd.f32 %v4341_v58, %v3587_v3  ;;  %v4411_v8 = vadd.f32 %v4410_v59, %v3588_v4  ;;  %5719 = vmatmul.msk.bf16.gmra.mxu0 %vm449_vm1, %v6234_v62  ;;  %5751 = vmatmul.msk.bf16.gmra.mxu1 %vm449_vm1, %v6234_v62 }
 0x132   : > { %5783 = vmatmul.msk.bf16.gmra.mxu2 %vm449_vm1, %v6234_v62  ;;  %5815 = vmatmul.msk.bf16.gmra.mxu3 %vm449_vm1, %v6234_v62 }
 0x135   : > { %v987_v9 = vpop.f32.mrf.mxu2  ;;  %v1156_v10 = vpop.f32.mrf.mxu3 }
 0x136   : > { %v3589_v11 = vmax.f32 %v987_v9, 0.0  ;;  %v3590_v12 = vmax.f32 %v1156_v10, 0.0  ;;  %v651_v13 = vpop.f32.mrf.mxu0  ;;  %v820_v14 = vpop.f32.mrf.mxu1  ;;  %v6237_v9 = vld [vmem:[%s6484_s26 + $0xa0] sm:$0xff] }
 0x137   : > { %v3603_v15 = vmax.f32 %v651_v13, 0.0  ;;  %v3604_v16 = vmax.f32 %v820_v14, 0.0 }
 0x138   : > { %v4480_v17 = vadd.f32 %v4479_v5, %v3589_v11  ;;  %v4549_v18 = vadd.f32 %v4548_v6, %v3590_v12 }
 0x139   : > { %v4343_v19 = vadd.f32 %v4342_v7, %v3603_v15  ;;  %v4412_v20 = vadd.f32 %v4411_v8, %v3604_v16 }
 0x13d   : > { %v989_v21 = vpop.f32.mrf.mxu2  ;;  %v1158_v22 = vpop.f32.mrf.mxu3 }
 0x13e   : > { %v3605_v24 = vmax.f32 %v989_v21, 0.0  ;;  %v3606_v25 = vmax.f32 %v1158_v22, 0.0  ;;  %v654_v26 = vpop.f32.mrf.mxu0  ;;  %v823_v27 = vpop.f32.mrf.mxu1 }
 0x13f   : > { %v3619_v28 = vmax.f32 %v654_v26, 0.0  ;;  %v3620_v29 = vmax.f32 %v823_v27, 0.0 }
 0x140   : > { %v4481_v30 = vadd.f32 %v4480_v17, %v3605_v24  ;;  %v4550_v31 = vadd.f32 %v4549_v18, %v3606_v25 }
 0x141   : > { %v4344_v32 = vadd.f32 %v4343_v19, %v3619_v28  ;;  %v4413_v33 = vadd.f32 %v4412_v20, %v3620_v29  ;;  %5720 = vmatmul.msk.bf16.gmra.mxu0 %vm449_vm1, %v6235_v23  ;;  %5752 = vmatmul.msk.bf16.gmra.mxu1 %vm449_vm1, %v6235_v23 }
 0x142   : > { %5784 = vmatmul.msk.bf16.gmra.mxu2 %vm449_vm1, %v6235_v23  ;;  %5816 = vmatmul.msk.bf16.gmra.mxu3 %vm449_vm1, %v6235_v23 }
 0x145   : > { %v992_v34 = vpop.f32.mrf.mxu2  ;;  %v1161_v35 = vpop.f32.mrf.mxu3 }
 0x146   : > { %v3621_v36 = vmax.f32 %v992_v34, 0.0  ;;  %v3622_v37 = vmax.f32 %v1161_v35, 0.0  ;;  %v656_v38 = vpop.f32.mrf.mxu0  ;;  %v825_v39 = vpop.f32.mrf.mxu1  ;;  %v6238_v34 = vld [vmem:[%s6484_s26 + $0xa8] sm:$0xff] }
 0x147   : > { %v3635_v40 = vmax.f32 %v656_v38, 0.0  ;;  %v3636_v41 = vmax.f32 %v825_v39, 0.0 }
 0x148   : > { %v4482_v42 = vadd.f32 %v4481_v30, %v3621_v36  ;;  %v4551_v43 = vadd.f32 %v4550_v31, %v3622_v37 }
 0x149   : > { %v4345_v44 = vadd.f32 %v4344_v32, %v3635_v40  ;;  %v4414_v45 = vadd.f32 %v4413_v33, %v3636_v41 }
 0x14d   : > { %v994_v46 = vpop.f32.mrf.mxu2  ;;  %v1163_v47 = vpop.f32.mrf.mxu3 }
 0x14e   : > { %v3637_v49 = vmax.f32 %v994_v46, 0.0  ;;  %v3638_v50 = vmax.f32 %v1163_v47, 0.0  ;;  %v659_v51 = vpop.f32.mrf.mxu0  ;;  %v828_v52 = vpop.f32.mrf.mxu1 }
 0x14f   : > { %v3651_v53 = vmax.f32 %v659_v51, 0.0  ;;  %v3652_v54 = vmax.f32 %v828_v52, 0.0 }
 0x150   : > { %v4483_v55 = vadd.f32 %v4482_v42, %v3637_v49  ;;  %v4552_v56 = vadd.f32 %v4551_v43, %v3638_v50 }
 0x151   : > { %v4346_v57 = vadd.f32 %v4345_v44, %v3651_v53  ;;  %v4415_v58 = vadd.f32 %v4414_v45, %v3652_v54  ;;  %5721 = vmatmul.msk.bf16.gmra.mxu0 %vm449_vm1, %v6236_v48  ;;  %5753 = vmatmul.msk.bf16.gmra.mxu1 %vm449_vm1, %v6236_v48 }
 0x152   : > { %5785 = vmatmul.msk.bf16.gmra.mxu2 %vm449_vm1, %v6236_v48  ;;  %5817 = vmatmul.msk.bf16.gmra.mxu3 %vm449_vm1, %v6236_v48 }
 0x155   : > { %v997_v59 = vpop.f32.mrf.mxu2  ;;  %v1166_v60 = vpop.f32.mrf.mxu3 }
 0x156   : > { %v3653_v61 = vmax.f32 %v997_v59, 0.0  ;;  %v3654_v62 = vmax.f32 %v1166_v60, 0.0  ;;  %v661_v63 = vpop.f32.mrf.mxu0  ;;  %v830_v0 = vpop.f32.mrf.mxu1  ;;  %v6239_v59 = vld [vmem:[%s6484_s26 + $0xb0] sm:$0xff] }
 0x157   : > { %v3667_v1 = vmax.f32 %v661_v63, 0.0  ;;  %v3668_v2 = vmax.f32 %v830_v0, 0.0 }
 0x158   : > { %v4484_v3 = vadd.f32 %v4483_v55, %v3653_v61  ;;  %v4553_v4 = vadd.f32 %v4552_v56, %v3654_v62 }
 0x159   : > { %v4347_v5 = vadd.f32 %v4346_v57, %v3667_v1  ;;  %v4416_v6 = vadd.f32 %v4415_v58, %v3668_v2 }
 0x15d   : > { %v999_v7 = vpop.f32.mrf.mxu2  ;;  %v1168_v8 = vpop.f32.mrf.mxu3 }
 0x15e   : > { %v3669_v10 = vmax.f32 %v999_v7, 0.0  ;;  %v3670_v11 = vmax.f32 %v1168_v8, 0.0  ;;  %v664_v12 = vpop.f32.mrf.mxu0  ;;  %v833_v13 = vpop.f32.mrf.mxu1 }
 0x15f   : > { %v3683_v14 = vmax.f32 %v664_v12, 0.0  ;;  %v3684_v15 = vmax.f32 %v833_v13, 0.0 }
 0x160   : > { %v4485_v16 = vadd.f32 %v4484_v3, %v3669_v10  ;;  %v4554_v17 = vadd.f32 %v4553_v4, %v3670_v11 }
 0x161   : > { %v4348_v18 = vadd.f32 %v4347_v5, %v3683_v14  ;;  %v4417_v19 = vadd.f32 %v4416_v6, %v3684_v15  ;;  %5722 = vmatmul.msk.bf16.gmra.mxu0 %vm449_vm1, %v6237_v9  ;;  %5754 = vmatmul.msk.bf16.gmra.mxu1 %vm449_vm1, %v6237_v9 }
 0x162   : > { %5786 = vmatmul.msk.bf16.gmra.mxu2 %vm449_vm1, %v6237_v9  ;;  %5818 = vmatmul.msk.bf16.gmra.mxu3 %vm449_vm1, %v6237_v9 }
 0x165   : > { %v1002_v20 = vpop.f32.mrf.mxu2  ;;  %v1171_v21 = vpop.f32.mrf.mxu3 }
 0x166   : > { %v3685_v22 = vmax.f32 %v1002_v20, 0.0  ;;  %v3686_v23 = vmax.f32 %v1171_v21, 0.0  ;;  %v666_v24 = vpop.f32.mrf.mxu0  ;;  %v835_v25 = vpop.f32.mrf.mxu1  ;;  %v6240_v20 = vld [vmem:[%s6484_s26 + $0xb8] sm:$0xff] }
 0x167   : > { %v3699_v26 = vmax.f32 %v666_v24, 0.0  ;;  %v3700_v27 = vmax.f32 %v835_v25, 0.0 }
 0x168   : > { %v4486_v28 = vadd.f32 %v4485_v16, %v3685_v22  ;;  %v4555_v29 = vadd.f32 %v4554_v17, %v3686_v23 }
 0x169   : > { %v4349_v30 = vadd.f32 %v4348_v18, %v3699_v26  ;;  %v4418_v31 = vadd.f32 %v4417_v19, %v3700_v27 }
 0x16d   : > { %v1004_v32 = vpop.f32.mrf.mxu2  ;;  %v1173_v33 = vpop.f32.mrf.mxu3 }
 0x16e   : > { %v3701_v35 = vmax.f32 %v1004_v32, 0.0  ;;  %v3702_v36 = vmax.f32 %v1173_v33, 0.0  ;;  %v669_v37 = vpop.f32.mrf.mxu0  ;;  %v838_v38 = vpop.f32.mrf.mxu1 }
 0x16f   : > { %v3715_v39 = vmax.f32 %v669_v37, 0.0  ;;  %v3716_v40 = vmax.f32 %v838_v38, 0.0 }
 0x170   : > { %v4487_v41 = vadd.f32 %v4486_v28, %v3701_v35  ;;  %v4556_v42 = vadd.f32 %v4555_v29, %v3702_v36 }
 0x171   : > { %v4350_v43 = vadd.f32 %v4349_v30, %v3715_v39  ;;  %v4419_v44 = vadd.f32 %v4418_v31, %v3716_v40  ;;  %5723 = vmatmul.msk.bf16.gmra.mxu0 %vm449_vm1, %v6238_v34  ;;  %5755 = vmatmul.msk.bf16.gmra.mxu1 %vm449_vm1, %v6238_v34 }
 0x172   : > { %5787 = vmatmul.msk.bf16.gmra.mxu2 %vm449_vm1, %v6238_v34  ;;  %5819 = vmatmul.msk.bf16.gmra.mxu3 %vm449_vm1, %v6238_v34 }
 0x175   : > { %v1007_v45 = vpop.f32.mrf.mxu2  ;;  %v1176_v46 = vpop.f32.mrf.mxu3 }
 0x176   : > { %v3717_v47 = vmax.f32 %v1007_v45, 0.0  ;;  %v3718_v48 = vmax.f32 %v1176_v46, 0.0  ;;  %v671_v49 = vpop.f32.mrf.mxu0  ;;  %v840_v50 = vpop.f32.mrf.mxu1  ;;  %v6241_v45 = vld [vmem:[%s6484_s26 + $0xc0] sm:$0xff] }
 0x177   : > { %v3731_v51 = vmax.f32 %v671_v49, 0.0  ;;  %v3732_v52 = vmax.f32 %v840_v50, 0.0 }
 0x178   : > { %v4488_v53 = vadd.f32 %v4487_v41, %v3717_v47  ;;  %v4557_v54 = vadd.f32 %v4556_v42, %v3718_v48 }
 0x179   : > { %v4351_v55 = vadd.f32 %v4350_v43, %v3731_v51  ;;  %v4420_v56 = vadd.f32 %v4419_v44, %v3732_v52 }
 0x17d   : > { %v1009_v57 = vpop.f32.mrf.mxu2  ;;  %v1178_v58 = vpop.f32.mrf.mxu3 }
 0x17e   : > { %v3733_v60 = vmax.f32 %v1009_v57, 0.0  ;;  %v3734_v61 = vmax.f32 %v1178_v58, 0.0  ;;  %v674_v62 = vpop.f32.mrf.mxu0  ;;  %v843_v63 = vpop.f32.mrf.mxu1 }
 0x17f   : > { %v3747_v0 = vmax.f32 %v674_v62, 0.0  ;;  %v3748_v1 = vmax.f32 %v843_v63, 0.0 }
 0x180   : > { %v4489_v2 = vadd.f32 %v4488_v53, %v3733_v60  ;;  %v4558_v3 = vadd.f32 %v4557_v54, %v3734_v61 }
 0x181   : > { %v4352_v4 = vadd.f32 %v4351_v55, %v3747_v0  ;;  %v4421_v5 = vadd.f32 %v4420_v56, %v3748_v1  ;;  %5724 = vmatmul.msk.bf16.gmra.mxu0 %vm449_vm1, %v6239_v59  ;;  %5756 = vmatmul.msk.bf16.gmra.mxu1 %vm449_vm1, %v6239_v59 }
 0x182   : > { %5788 = vmatmul.msk.bf16.gmra.mxu2 %vm449_vm1, %v6239_v59  ;;  %5820 = vmatmul.msk.bf16.gmra.mxu3 %vm449_vm1, %v6239_v59 }
 0x185   : > { %v1012_v6 = vpop.f32.mrf.mxu2  ;;  %v1181_v7 = vpop.f32.mrf.mxu3 }
 0x186   : > { %v3749_v8 = vmax.f32 %v1012_v6, 0.0  ;;  %v3750_v9 = vmax.f32 %v1181_v7, 0.0  ;;  %v676_v10 = vpop.f32.mrf.mxu0  ;;  %v845_v11 = vpop.f32.mrf.mxu1  ;;  %v6242_v6 = vld [vmem:[%s6484_s26 + $0xc8] sm:$0xff] }
 0x187   : > { %v3763_v12 = vmax.f32 %v676_v10, 0.0  ;;  %v3764_v13 = vmax.f32 %v845_v11, 0.0 }
 0x188   : > { %v4490_v14 = vadd.f32 %v4489_v2, %v3749_v8  ;;  %v4559_v15 = vadd.f32 %v4558_v3, %v3750_v9 }
 0x189   : > { %v4353_v16 = vadd.f32 %v4352_v4, %v3763_v12  ;;  %v4422_v17 = vadd.f32 %v4421_v5, %v3764_v13 }
 0x18d   : > { %v1014_v18 = vpop.f32.mrf.mxu2  ;;  %v1183_v19 = vpop.f32.mrf.mxu3 }
 0x18e   : > { %v3765_v21 = vmax.f32 %v1014_v18, 0.0  ;;  %v3766_v22 = vmax.f32 %v1183_v19, 0.0  ;;  %v679_v23 = vpop.f32.mrf.mxu0  ;;  %v848_v24 = vpop.f32.mrf.mxu1 }
 0x18f   : > { %v3779_v25 = vmax.f32 %v679_v23, 0.0  ;;  %v3780_v26 = vmax.f32 %v848_v24, 0.0 }
 0x190   : > { %v4491_v27 = vadd.f32 %v4490_v14, %v3765_v21  ;;  %v4560_v28 = vadd.f32 %v4559_v15, %v3766_v22 }
 0x191   : > { %v4354_v29 = vadd.f32 %v4353_v16, %v3779_v25  ;;  %v4423_v30 = vadd.f32 %v4422_v17, %v3780_v26  ;;  %5725 = vmatmul.msk.bf16.gmra.mxu0 %vm449_vm1, %v6240_v20  ;;  %5757 = vmatmul.msk.bf16.gmra.mxu1 %vm449_vm1, %v6240_v20 }
 0x192   : > { %5789 = vmatmul.msk.bf16.gmra.mxu2 %vm449_vm1, %v6240_v20  ;;  %5821 = vmatmul.msk.bf16.gmra.mxu3 %vm449_vm1, %v6240_v20 }
 0x195   : > { %v1017_v31 = vpop.f32.mrf.mxu2  ;;  %v1186_v32 = vpop.f32.mrf.mxu3 }
 0x196   : > { %v3781_v33 = vmax.f32 %v1017_v31, 0.0  ;;  %v3782_v34 = vmax.f32 %v1186_v32, 0.0  ;;  %v681_v35 = vpop.f32.mrf.mxu0  ;;  %v850_v36 = vpop.f32.mrf.mxu1  ;;  %v6243_v31 = vld [vmem:[%s6484_s26 + $0xd0] sm:$0xff] }
 0x197   : > { %v3795_v37 = vmax.f32 %v681_v35, 0.0  ;;  %v3796_v38 = vmax.f32 %v850_v36, 0.0 }
 0x198   : > { %v4492_v39 = vadd.f32 %v4491_v27, %v3781_v33  ;;  %v4561_v40 = vadd.f32 %v4560_v28, %v3782_v34 }
 0x199   : > { %v4355_v41 = vadd.f32 %v4354_v29, %v3795_v37  ;;  %v4424_v42 = vadd.f32 %v4423_v30, %v3796_v38 }
 0x19d   : > { %v1019_v43 = vpop.f32.mrf.mxu2  ;;  %v1188_v44 = vpop.f32.mrf.mxu3 }
 0x19e   : > { %v3797_v46 = vmax.f32 %v1019_v43, 0.0  ;;  %v3798_v47 = vmax.f32 %v1188_v44, 0.0  ;;  %v684_v48 = vpop.f32.mrf.mxu0  ;;  %v853_v49 = vpop.f32.mrf.mxu1 }
 0x19f   : > { %v3811_v50 = vmax.f32 %v684_v48, 0.0  ;;  %v3812_v51 = vmax.f32 %v853_v49, 0.0 }
 0x1a0   : > { %v4493_v52 = vadd.f32 %v4492_v39, %v3797_v46  ;;  %v4562_v53 = vadd.f32 %v4561_v40, %v3798_v47 }
 0x1a1   : > { %v4356_v54 = vadd.f32 %v4355_v41, %v3811_v50  ;;  %v4425_v55 = vadd.f32 %v4424_v42, %v3812_v51  ;;  %5726 = vmatmul.msk.bf16.gmra.mxu0 %vm449_vm1, %v6241_v45  ;;  %5758 = vmatmul.msk.bf16.gmra.mxu1 %vm449_vm1, %v6241_v45 }
 0x1a2   : > { %5790 = vmatmul.msk.bf16.gmra.mxu2 %vm449_vm1, %v6241_v45  ;;  %5822 = vmatmul.msk.bf16.gmra.mxu3 %vm449_vm1, %v6241_v45 }
 0x1a5   : > { %v1022_v56 = vpop.f32.mrf.mxu2  ;;  %v1191_v57 = vpop.f32.mrf.mxu3 }
 0x1a6   : > { %v3813_v58 = vmax.f32 %v1022_v56, 0.0  ;;  %v3814_v59 = vmax.f32 %v1191_v57, 0.0  ;;  %v686_v60 = vpop.f32.mrf.mxu0  ;;  %v855_v61 = vpop.f32.mrf.mxu1  ;;  %v6244_v56 = vld [vmem:[%s6484_s26 + $0xd8] sm:$0xff] }
 0x1a7   : > { %v3827_v62 = vmax.f32 %v686_v60, 0.0  ;;  %v3828_v63 = vmax.f32 %v855_v61, 0.0 }
 0x1a8   : > { %v4494_v0 = vadd.f32 %v4493_v52, %v3813_v58  ;;  %v4563_v1 = vadd.f32 %v4562_v53, %v3814_v59 }
 0x1a9   : > { %v4357_v2 = vadd.f32 %v4356_v54, %v3827_v62  ;;  %v4426_v3 = vadd.f32 %v4425_v55, %v3828_v63 }
 0x1ad   : > { %v1024_v4 = vpop.f32.mrf.mxu2  ;;  %v1193_v5 = vpop.f32.mrf.mxu3 }
 0x1ae   : > { %v3829_v7 = vmax.f32 %v1024_v4, 0.0  ;;  %v3830_v8 = vmax.f32 %v1193_v5, 0.0  ;;  %v689_v9 = vpop.f32.mrf.mxu0  ;;  %v858_v10 = vpop.f32.mrf.mxu1 }
 0x1af   : > { %v3843_v11 = vmax.f32 %v689_v9, 0.0  ;;  %v3844_v12 = vmax.f32 %v858_v10, 0.0 }
 0x1b0   : > { %v4495_v13 = vadd.f32 %v4494_v0, %v3829_v7  ;;  %v4564_v14 = vadd.f32 %v4563_v1, %v3830_v8 }
 0x1b1   : > { %v4358_v15 = vadd.f32 %v4357_v2, %v3843_v11  ;;  %v4427_v16 = vadd.f32 %v4426_v3, %v3844_v12  ;;  %5727 = vmatmul.msk.bf16.gmra.mxu0 %vm449_vm1, %v6242_v6  ;;  %5759 = vmatmul.msk.bf16.gmra.mxu1 %vm449_vm1, %v6242_v6 }
 0x1b2   : > { %5791 = vmatmul.msk.bf16.gmra.mxu2 %vm449_vm1, %v6242_v6  ;;  %5823 = vmatmul.msk.bf16.gmra.mxu3 %vm449_vm1, %v6242_v6 }
 0x1b5   : > { %v1027_v17 = vpop.f32.mrf.mxu2  ;;  %v1196_v18 = vpop.f32.mrf.mxu3 }
 0x1b6   : > { %v3845_v19 = vmax.f32 %v1027_v17, 0.0  ;;  %v3846_v20 = vmax.f32 %v1196_v18, 0.0  ;;  %v691_v21 = vpop.f32.mrf.mxu0  ;;  %v860_v22 = vpop.f32.mrf.mxu1  ;;  %v6245_v17 = vld [vmem:[%s6484_s26 + $0xe0] sm:$0xff] }
 0x1b7   : > { %v3859_v23 = vmax.f32 %v691_v21, 0.0  ;;  %v3860_v24 = vmax.f32 %v860_v22, 0.0 }
 0x1b8   : > { %v4496_v25 = vadd.f32 %v4495_v13, %v3845_v19  ;;  %v4565_v26 = vadd.f32 %v4564_v14, %v3846_v20 }
 0x1b9   : > { %v4359_v27 = vadd.f32 %v4358_v15, %v3859_v23  ;;  %v4428_v28 = vadd.f32 %v4427_v16, %v3860_v24 }
 0x1bd   : > { %v1029_v29 = vpop.f32.mrf.mxu2  ;;  %v1198_v30 = vpop.f32.mrf.mxu3 }
 0x1be   : > { %v3861_v32 = vmax.f32 %v1029_v29, 0.0  ;;  %v3862_v33 = vmax.f32 %v1198_v30, 0.0  ;;  %v694_v34 = vpop.f32.mrf.mxu0  ;;  %v863_v35 = vpop.f32.mrf.mxu1 }
 0x1bf   : > { %v3875_v36 = vmax.f32 %v694_v34, 0.0  ;;  %v3876_v37 = vmax.f32 %v863_v35, 0.0 }
 0x1c0   : > { %v4497_v38 = vadd.f32 %v4496_v25, %v3861_v32  ;;  %v4566_v39 = vadd.f32 %v4565_v26, %v3862_v33 }
 0x1c1   : > { %v4360_v40 = vadd.f32 %v4359_v27, %v3875_v36  ;;  %v4429_v41 = vadd.f32 %v4428_v28, %v3876_v37  ;;  %5728 = vmatmul.msk.bf16.gmra.mxu0 %vm449_vm1, %v6243_v31  ;;  %5760 = vmatmul.msk.bf16.gmra.mxu1 %vm449_vm1, %v6243_v31 }
 0x1c2   : > { %5792 = vmatmul.msk.bf16.gmra.mxu2 %vm449_vm1, %v6243_v31  ;;  %5824 = vmatmul.msk.bf16.gmra.mxu3 %vm449_vm1, %v6243_v31 }
 0x1c5   : > { %v1032_v42 = vpop.f32.mrf.mxu2  ;;  %v1201_v43 = vpop.f32.mrf.mxu3 }
 0x1c6   : > { %v3877_v44 = vmax.f32 %v1032_v42, 0.0  ;;  %v3878_v45 = vmax.f32 %v1201_v43, 0.0  ;;  %v696_v46 = vpop.f32.mrf.mxu0  ;;  %v865_v47 = vpop.f32.mrf.mxu1  ;;  %v6246_v42 = vld [vmem:[%s6484_s26 + $0xe8] sm:$0xff] }
 0x1c7   : > { %v3891_v48 = vmax.f32 %v696_v46, 0.0  ;;  %v3892_v49 = vmax.f32 %v865_v47, 0.0 }
 0x1c8   : > { %v4498_v50 = vadd.f32 %v4497_v38, %v3877_v44  ;;  %v4567_v51 = vadd.f32 %v4566_v39, %v3878_v45 }
 0x1c9   : > { %v4361_v52 = vadd.f32 %v4360_v40, %v3891_v48  ;;  %v4430_v53 = vadd.f32 %v4429_v41, %v3892_v49 }
 0x1cd   : > { %v1034_v54 = vpop.f32.mrf.mxu2  ;;  %v1203_v55 = vpop.f32.mrf.mxu3 }
 0x1ce   : > { %v3893_v57 = vmax.f32 %v1034_v54, 0.0  ;;  %v3894_v58 = vmax.f32 %v1203_v55, 0.0  ;;  %v699_v59 = vpop.f32.mrf.mxu0  ;;  %v868_v60 = vpop.f32.mrf.mxu1 }
 0x1cf   : > { %v3907_v61 = vmax.f32 %v699_v59, 0.0  ;;  %v3908_v62 = vmax.f32 %v868_v60, 0.0 }
 0x1d0   : > { %v4499_v63 = vadd.f32 %v4498_v50, %v3893_v57  ;;  %v4568_v0 = vadd.f32 %v4567_v51, %v3894_v58 }
 0x1d1   : > { %v4362_v1 = vadd.f32 %v4361_v52, %v3907_v61  ;;  %v4431_v2 = vadd.f32 %v4430_v53, %v3908_v62  ;;  %5729 = vmatmul.msk.bf16.gmra.mxu0 %vm449_vm1, %v6244_v56  ;;  %5761 = vmatmul.msk.bf16.gmra.mxu1 %vm449_vm1, %v6244_v56 }
 0x1d2   : > { %5793 = vmatmul.msk.bf16.gmra.mxu2 %vm449_vm1, %v6244_v56  ;;  %5825 = vmatmul.msk.bf16.gmra.mxu3 %vm449_vm1, %v6244_v56 }
 0x1d5   : > { %v1037_v3 = vpop.f32.mrf.mxu2  ;;  %v1206_v4 = vpop.f32.mrf.mxu3 }
 0x1d6   : > { %v3909_v5 = vmax.f32 %v1037_v3, 0.0  ;;  %v3910_v6 = vmax.f32 %v1206_v4, 0.0  ;;  %v701_v7 = vpop.f32.mrf.mxu0  ;;  %v870_v8 = vpop.f32.mrf.mxu1  ;;  %v6247_v3 = vld [vmem:[%s6484_s26 + $0xf0] sm:$0xff] }
 0x1d7   : > { %v3923_v9 = vmax.f32 %v701_v7, 0.0  ;;  %v3924_v10 = vmax.f32 %v870_v8, 0.0 }
 0x1d8   : > { %v4500_v11 = vadd.f32 %v4499_v63, %v3909_v5  ;;  %v4569_v12 = vadd.f32 %v4568_v0, %v3910_v6 }
 0x1d9   : > { %v4363_v13 = vadd.f32 %v4362_v1, %v3923_v9  ;;  %v4432_v14 = vadd.f32 %v4431_v2, %v3924_v10 }
 0x1dd   : > { %v1039_v15 = vpop.f32.mrf.mxu2  ;;  %v1208_v16 = vpop.f32.mrf.mxu3 }
 0x1de   : > { %v3925_v18 = vmax.f32 %v1039_v15, 0.0  ;;  %v3926_v19 = vmax.f32 %v1208_v16, 0.0  ;;  %v704_v20 = vpop.f32.mrf.mxu0  ;;  %v873_v21 = vpop.f32.mrf.mxu1 }
 0x1df   : > { %v3939_v22 = vmax.f32 %v704_v20, 0.0  ;;  %v3940_v23 = vmax.f32 %v873_v21, 0.0 }
 0x1e0   : > { %v4501_v24 = vadd.f32 %v4500_v11, %v3925_v18  ;;  %v4570_v25 = vadd.f32 %v4569_v12, %v3926_v19 }
 0x1e1   : > { %v4364_v26 = vadd.f32 %v4363_v13, %v3939_v22  ;;  %v4433_v27 = vadd.f32 %v4432_v14, %v3940_v23  ;;  %5730 = vmatmul.msk.bf16.gmra.mxu0 %vm449_vm1, %v6245_v17  ;;  %5762 = vmatmul.msk.bf16.gmra.mxu1 %vm449_vm1, %v6245_v17  ;;  %v246_v14 = vld [vmem:[%s7344_s1 + $0x28] sm:$0xff] }
 0x1e2   : > { %5794 = vmatmul.msk.bf16.gmra.mxu2 %vm449_vm1, %v6245_v17  ;;  %5826 = vmatmul.msk.bf16.gmra.mxu3 %vm449_vm1, %v6245_v17  ;;  %v427_v15 = vunpack.c.l.b16 %v246_v14  ;;  %v428_v16 = vunpack.c.h.b16 %v246_v14 }
 0x1e4   : > { %v443_v19 = vpack.c.b16 %v427_v15, %v427_v15  ;;  %v444_v20 = vpack.c.b16 %v428_v16, %v428_v16 }
 0x1e5   : > { %v1042_v28 = vpop.f32.mrf.mxu2  ;;  %v1211_v29 = vpop.f32.mrf.mxu3 }
 0x1e6   : > { %v3941_v30 = vmax.f32 %v1042_v28, 0.0  ;;  %v3942_v31 = vmax.f32 %v1211_v29, 0.0  ;;  %v706_v32 = vpop.f32.mrf.mxu0  ;;  %v875_v33 = vpop.f32.mrf.mxu1  ;;  %v581_v28 = vsel %vm546_vm0, %v444_v20, 0 }
 0x1e7   : > { %v3955_v34 = vmax.f32 %v706_v32, 0.0  ;;  %v3956_v35 = vmax.f32 %v875_v33, 0.0  ;;  %2461 = vmatpush.bf16.msra.mxu3 %v581_v28  ;;  %v245_v33 = vld [vmem:[%s7344_s1 + $0x20] sm:$0xff] }
 0x1e8   : > { %v4502_v36 = vadd.f32 %v4501_v24, %v3941_v30  ;;  %v4571_v37 = vadd.f32 %v4570_v25, %v3942_v31 }
 0x1e9   : > { %v4365_v38 = vadd.f32 %v4364_v26, %v3955_v34  ;;  %v4434_v39 = vadd.f32 %v4433_v27, %v3956_v35  ;;  %v578_v27 = vsel %vm546_vm0, %v443_v19, 0  ;;  %v425_v34 = vunpack.c.l.b16 %v245_v33 }
 0x1ea   : > { %2292 = vmatpush.bf16.msra.mxu2 %v578_v27  ;;  %v426_v35 = vunpack.c.h.b16 %v245_v33 }
 0x1ed   : > { %v1044_v40 = vpop.f32.mrf.mxu2  ;;  %v1213_v41 = vpop.f32.mrf.mxu3 }
 0x1ee   : > { %v3957_v43 = vmax.f32 %v1044_v40, 0.0  ;;  %v3958_v44 = vmax.f32 %v1213_v41, 0.0  ;;  %v709_v45 = vpop.f32.mrf.mxu0  ;;  %v878_v46 = vpop.f32.mrf.mxu1  ;;  %v6248_v40 = vld [vmem:[%s6484_s26 + $0xf8] sm:$0xff] }
 0x1ef   : > { %v3971_v47 = vmax.f32 %v709_v45, 0.0  ;;  %v3972_v48 = vmax.f32 %v878_v46, 0.0 }
 0x1f0   : > { %v4503_v49 = vadd.f32 %v4502_v36, %v3957_v43  ;;  %v4572_v50 = vadd.f32 %v4571_v37, %v3958_v44  ;;  %v441_v36 = vpack.c.b16 %v425_v34, %v425_v34  ;;  %v442_v37 = vpack.c.b16 %v426_v35, %v426_v35 }
 0x1f1   : > { %v4366_v51 = vadd.f32 %v4365_v38, %v3971_v47  ;;  %v4435_v52 = vadd.f32 %v4434_v39, %v3972_v48  ;;  %5731 = vmatmul.msk.bf16.gmra.mxu0 %vm449_vm1, %v6246_v42  ;;  %5763 = vmatmul.msk.bf16.gmra.mxu1 %vm449_vm1, %v6246_v42 }
 0x1f2   : > { %5795 = vmatmul.msk.bf16.gmra.mxu2 %vm449_vm1, %v6246_v42  ;;  %5827 = vmatmul.msk.bf16.gmra.mxu3 %vm449_vm1, %v6246_v42  ;;  %v572_v45 = vsel %vm546_vm0, %v441_v36, 0  ;;  %v575_v46 = vsel %vm546_vm0, %v442_v37, 0 }
 0x1f3   : > { %1954 = vmatpush.bf16.msra.mxu0 %v572_v45  ;;  %2123 = vmatpush.bf16.msra.mxu1 %v575_v46 }
 0x1f5   : > { %v1047_v53 = vpop.f32.mrf.mxu2  ;;  %v1216_v54 = vpop.f32.mrf.mxu3 }
 0x1f6   : > { %v3973_v55 = vmax.f32 %v1047_v53, 0.0  ;;  %v3974_v56 = vmax.f32 %v1216_v54, 0.0  ;;  %v711_v57 = vpop.f32.mrf.mxu0  ;;  %v880_v58 = vpop.f32.mrf.mxu1 }
 0x1f7   : > { %v3987_v59 = vmax.f32 %v711_v57, 0.0  ;;  %v3988_v60 = vmax.f32 %v880_v58, 0.0 }
 0x1f8   : > { %v4504_v61 = vadd.f32 %v4503_v49, %v3973_v55  ;;  %v4573_v62 = vadd.f32 %v4572_v50, %v3974_v56 }
 0x1f9   : > { %v4367_v63 = vadd.f32 %v4366_v51, %v3987_v59  ;;  %v4436_v0 = vadd.f32 %v4435_v52, %v3988_v60 }
 0x1fd   : > { %v1049_v1 = vpop.f32.mrf.mxu2  ;;  %v1218_v2 = vpop.f32.mrf.mxu3 }
 0x1fe   : > { %v3989_v4 = vmax.f32 %v1049_v1, 0.0  ;;  %v3990_v5 = vmax.f32 %v1218_v2, 0.0  ;;  %v714_v6 = vpop.f32.mrf.mxu0  ;;  %v883_v7 = vpop.f32.mrf.mxu1 }
 0x1ff   : > { %v4003_v8 = vmax.f32 %v714_v6, 0.0  ;;  %v4004_v9 = vmax.f32 %v883_v7, 0.0 }
 0x200   : > { %v4505_v10 = vadd.f32 %v4504_v61, %v3989_v4  ;;  %v4574_v11 = vadd.f32 %v4573_v62, %v3990_v5 }
 0x201   : > { %v4368_v12 = vadd.f32 %v4367_v63, %v4003_v8  ;;  %v4437_v13 = vadd.f32 %v4436_v0, %v4004_v9  ;;  %5732 = vmatmul.msk.bf16.gmra.mxu0 %vm449_vm1, %v6247_v3  ;;  %5764 = vmatmul.msk.bf16.gmra.mxu1 %vm449_vm1, %v6247_v3 }
 0x202   : > { %5796 = vmatmul.msk.bf16.gmra.mxu2 %vm449_vm1, %v6247_v3  ;;  %5828 = vmatmul.msk.bf16.gmra.mxu3 %vm449_vm1, %v6247_v3 }
 0x205   : > { %v1052_v17 = vpop.f32.mrf.mxu2  ;;  %v1221_v18 = vpop.f32.mrf.mxu3 }
 0x206   : > { %v4005_v21 = vmax.f32 %v1052_v17, 0.0  ;;  %v4006_v22 = vmax.f32 %v1221_v18, 0.0  ;;  %v716_v23 = vpop.f32.mrf.mxu0  ;;  %v885_v24 = vpop.f32.mrf.mxu1 }
 0x207   : > { %v4019_v25 = vmax.f32 %v716_v23, 0.0  ;;  %v4020_v26 = vmax.f32 %v885_v24, 0.0 }
 0x208   : > { %v4506_v29 = vadd.f32 %v4505_v10, %v4005_v21  ;;  %v4575_v30 = vadd.f32 %v4574_v11, %v4006_v22 }
 0x209   : > { %v4369_v31 = vadd.f32 %v4368_v12, %v4019_v25  ;;  %v4438_v32 = vadd.f32 %v4437_v13, %v4020_v26  ;;  %v6291_v13 = vld [vmem:[%s6484_s26] sm:$0xff] }
 0x20d   : > { %v1054_v38 = vpop.f32.mrf.mxu2  ;;  %v1223_v39 = vpop.f32.mrf.mxu3 }
 0x20e   : > { %v4021_v41 = vmax.f32 %v1054_v38, 0.0  ;;  %v4022_v42 = vmax.f32 %v1223_v39, 0.0  ;;  %v719_v43 = vpop.f32.mrf.mxu0  ;;  %v888_v44 = vpop.f32.mrf.mxu1  ;;  %v6292_v38 = vld [vmem:[%s6484_s26 + $0x8] sm:$0xff] }
 0x20f   : > { %v4035_v47 = vmax.f32 %v719_v43, 0.0  ;;  %v4036_v48 = vmax.f32 %v888_v44, 0.0 }
 0x210   : > { %v4507_v49 = vadd.f32 %v4506_v29, %v4021_v41  ;;  %v4576_v50 = vadd.f32 %v4575_v30, %v4022_v42 }
 0x211   : > { %v4370_v51 = vadd.f32 %v4369_v31, %v4035_v47  ;;  %v4439_v52 = vadd.f32 %v4438_v32, %v4036_v48  ;;  %5733 = vmatmul.msk.bf16.gmra.mxu0 %vm449_vm1, %v6248_v40  ;;  %5765 = vmatmul.msk.bf16.gmra.mxu1 %vm449_vm1, %v6248_v40 }
 0x212   : > { %5797 = vmatmul.msk.bf16.gmra.mxu2 %vm449_vm1, %v6248_v40  ;;  %5829 = vmatmul.msk.bf16.gmra.mxu3 %vm449_vm1, %v6248_v40 }
 0x215   : > { %v1057_v53 = vpop.f32.mrf.mxu2  ;;  %v1226_v54 = vpop.f32.mrf.mxu3 }
 0x216   : > { %v4037_v55 = vmax.f32 %v1057_v53, 0.0  ;;  %v4038_v56 = vmax.f32 %v1226_v54, 0.0  ;;  %v721_v57 = vpop.f32.mrf.mxu0  ;;  %v890_v58 = vpop.f32.mrf.mxu1 }
 0x217   : > { %v4051_v59 = vmax.f32 %v721_v57, 0.0  ;;  %v4052_v60 = vmax.f32 %v890_v58, 0.0 }
 0x218   : > { %v4508_v61 = vadd.f32 %v4507_v49, %v4037_v55  ;;  %v4577_v62 = vadd.f32 %v4576_v50, %v4038_v56 }
 0x219   : > { %v4371_v63 = vadd.f32 %v4370_v51, %v4051_v59  ;;  %v4440_v0 = vadd.f32 %v4439_v52, %v4052_v60 }
 0x21d   : > { %v1059_v1 = vpop.f32.mrf.mxu2  ;;  %v1228_v2 = vpop.f32.mrf.mxu3 }
 0x21e   : > { %v4053_v3 = vmax.f32 %v1059_v1, 0.0  ;;  %v4054_v4 = vmax.f32 %v1228_v2, 0.0  ;;  %v724_v5 = vpop.f32.mrf.mxu0  ;;  %v893_v6 = vpop.f32.mrf.mxu1 }
 0x21f   : > { %v4067_v7 = vmax.f32 %v724_v5, 0.0  ;;  %v4068_v8 = vmax.f32 %v893_v6, 0.0 }
 0x220   : > { %v4509_v9 = vadd.f32 %v4508_v61, %v4053_v3  ;;  %v4578_v10 = vadd.f32 %v4577_v62, %v4054_v4 }
 0x221   : > { %v4372_v11 = vadd.f32 %v4371_v63, %v4067_v7  ;;  %v4441_v12 = vadd.f32 %v4440_v0, %v4068_v8  ;;  %5830 = vmatmul.msk.bf16.vlgmr.msrb.gmra.mxu0 %vm449_vm1, %v6291_v13  ;;  %5862 = vmatmul.msk.bf16.vlgmr.msrb.gmra.mxu1 %vm449_vm1, %v6291_v13  ;;  %v6293_v63 = vld [vmem:[%s6484_s26 + $0x10] sm:$0xff] }
 0x222   : > { %5894 = vmatmul.msk.bf16.vlgmr.msrb.gmra.mxu2 %vm449_vm1, %v6291_v13  ;;  %5926 = vmatmul.msk.bf16.vlgmr.msrb.gmra.mxu3 %vm449_vm1, %v6291_v13 }
 0x225   : > { %v1062_v14 = vpop.f32.mrf.mxu2  ;;  %v1231_v15 = vpop.f32.mrf.mxu3 }
 0x226   : > { %v4069_v16 = vmax.f32 %v1062_v14, 0.0  ;;  %v4070_v17 = vmax.f32 %v1231_v15, 0.0  ;;  %v726_v18 = vpop.f32.mrf.mxu0  ;;  %v895_v19 = vpop.f32.mrf.mxu1 }
 0x227   : > { %v4083_v20 = vmax.f32 %v726_v18, 0.0  ;;  %v4084_v21 = vmax.f32 %v895_v19, 0.0 }
 0x228   : > { %v4510_v22 = vadd.f32 %v4509_v9, %v4069_v16  ;;  %v4579_v23 = vadd.f32 %v4578_v10, %v4070_v17 }
 0x229   : > { %v4373_v24 = vadd.f32 %v4372_v11, %v4083_v20  ;;  %v4442_v25 = vadd.f32 %v4441_v12, %v4084_v21 }
 0x22d   : > { %v1064_v26 = vpop.f32.mrf.mxu2  ;;  %v1233_v27 = vpop.f32.mrf.mxu3 }
 0x22e   : > { %v4085_v28 = vmax.f32 %v1064_v26, 0.0  ;;  %v4086_v29 = vmax.f32 %v1233_v27, 0.0  ;;  %v729_v30 = vpop.f32.mrf.mxu0  ;;  %v898_v31 = vpop.f32.mrf.mxu1 }
 0x22f   : > { %v4099_v32 = vmax.f32 %v729_v30, 0.0  ;;  %v4100_v33 = vmax.f32 %v898_v31, 0.0 }
 0x230   : > { %v4511_v34 = vadd.f32 %v4510_v22, %v4085_v28  ;;  %v4580_v35 = vadd.f32 %v4579_v23, %v4086_v29 }
 0x231   : > { %v4374_v36 = vadd.f32 %v4373_v24, %v4099_v32  ;;  %v4443_v37 = vadd.f32 %v4442_v25, %v4100_v33  ;;  %5831 = vmatmul.msk.bf16.gmra.mxu0 %vm449_vm1, %v6292_v38  ;;  %5863 = vmatmul.msk.bf16.gmra.mxu1 %vm449_vm1, %v6292_v38  ;;  %v6294_v24 = vld [vmem:[%s6484_s26 + $0x18] sm:$0xff] }
 0x232   : > { %5895 = vmatmul.msk.bf16.gmra.mxu2 %vm449_vm1, %v6292_v38  ;;  %5927 = vmatmul.msk.bf16.gmra.mxu3 %vm449_vm1, %v6292_v38 }
 0x235   : > { %v1067_v39 = vpop.f32.mrf.mxu2  ;;  %v1236_v40 = vpop.f32.mrf.mxu3 }
 0x236   : > { %v4101_v41 = vmax.f32 %v1067_v39, 0.0  ;;  %v4102_v42 = vmax.f32 %v1236_v40, 0.0  ;;  %v731_v43 = vpop.f32.mrf.mxu0  ;;  %v900_v44 = vpop.f32.mrf.mxu1 }
 0x237   : > { %v4115_v45 = vmax.f32 %v731_v43, 0.0  ;;  %v4116_v46 = vmax.f32 %v900_v44, 0.0 }
 0x238   : > { %v4512_v47 = vadd.f32 %v4511_v34, %v4101_v41  ;;  %v4581_v48 = vadd.f32 %v4580_v35, %v4102_v42 }
 0x239   : > { %v4375_v49 = vadd.f32 %v4374_v36, %v4115_v45  ;;  %v4444_v50 = vadd.f32 %v4443_v37, %v4116_v46 }
 0x23d   : > { %v1069_v51 = vpop.f32.mrf.mxu2  ;;  %v1238_v52 = vpop.f32.mrf.mxu3 }
 0x23e   : > { %v4117_v53 = vmax.f32 %v1069_v51, 0.0  ;;  %v4118_v54 = vmax.f32 %v1238_v52, 0.0  ;;  %v734_v55 = vpop.f32.mrf.mxu0  ;;  %v903_v56 = vpop.f32.mrf.mxu1 }
 0x23f   : > { %v4131_v57 = vmax.f32 %v734_v55, 0.0  ;;  %v4132_v58 = vmax.f32 %v903_v56, 0.0 }
 0x240   : > { %v4513_v59 = vadd.f32 %v4512_v47, %v4117_v53  ;;  %v4582_v60 = vadd.f32 %v4581_v48, %v4118_v54 }
 0x241   : > { %v4376_v61 = vadd.f32 %v4375_v49, %v4131_v57  ;;  %v4445_v62 = vadd.f32 %v4444_v50, %v4132_v58  ;;  %5832 = vmatmul.msk.bf16.gmra.mxu0 %vm449_vm1, %v6293_v63  ;;  %5864 = vmatmul.msk.bf16.gmra.mxu1 %vm449_vm1, %v6293_v63  ;;  %v6295_v49 = vld [vmem:[%s6484_s26 + $0x20] sm:$0xff] }
 0x242   : > { %5896 = vmatmul.msk.bf16.gmra.mxu2 %vm449_vm1, %v6293_v63  ;;  %5928 = vmatmul.msk.bf16.gmra.mxu3 %vm449_vm1, %v6293_v63 }
 0x245   : > { %v1072_v0 = vpop.f32.mrf.mxu2  ;;  %v1241_v1 = vpop.f32.mrf.mxu3 }
 0x246   : > { %v4133_v2 = vmax.f32 %v1072_v0, 0.0  ;;  %v4134_v3 = vmax.f32 %v1241_v1, 0.0  ;;  %v736_v4 = vpop.f32.mrf.mxu0  ;;  %v905_v5 = vpop.f32.mrf.mxu1 }
 0x247   : > { %v4147_v6 = vmax.f32 %v736_v4, 0.0  ;;  %v4148_v7 = vmax.f32 %v905_v5, 0.0 }
 0x248   : > { %v4514_v8 = vadd.f32 %v4513_v59, %v4133_v2  ;;  %v4583_v9 = vadd.f32 %v4582_v60, %v4134_v3 }
 0x249   : > { %v4377_v10 = vadd.f32 %v4376_v61, %v4147_v6  ;;  %v4446_v11 = vadd.f32 %v4445_v62, %v4148_v7 }
 0x24d   : > { %v1074_v12 = vpop.f32.mrf.mxu2  ;;  %v1243_v13 = vpop.f32.mrf.mxu3 }
 0x24e   : > { %v4149_v14 = vmax.f32 %v1074_v12, 0.0  ;;  %v4150_v15 = vmax.f32 %v1243_v13, 0.0  ;;  %v739_v16 = vpop.f32.mrf.mxu0  ;;  %v908_v17 = vpop.f32.mrf.mxu1 }
 0x24f   : > { %v4163_v18 = vmax.f32 %v739_v16, 0.0  ;;  %v4164_v19 = vmax.f32 %v908_v17, 0.0 }
 0x250   : > { %v4515_v20 = vadd.f32 %v4514_v8, %v4149_v14  ;;  %v4584_v21 = vadd.f32 %v4583_v9, %v4150_v15 }
 0x251   : > { %v4378_v22 = vadd.f32 %v4377_v10, %v4163_v18  ;;  %v4447_v23 = vadd.f32 %v4446_v11, %v4164_v19  ;;  %5833 = vmatmul.msk.bf16.gmra.mxu0 %vm449_vm1, %v6294_v24  ;;  %5865 = vmatmul.msk.bf16.gmra.mxu1 %vm449_vm1, %v6294_v24  ;;  %v6296_v10 = vld [vmem:[%s6484_s26 + $0x28] sm:$0xff] }
 0x252   : > { %5897 = vmatmul.msk.bf16.gmra.mxu2 %vm449_vm1, %v6294_v24  ;;  %5929 = vmatmul.msk.bf16.gmra.mxu3 %vm449_vm1, %v6294_v24 }
 0x255   : > { %v1077_v25 = vpop.f32.mrf.mxu2  ;;  %v1246_v26 = vpop.f32.mrf.mxu3 }
 0x256   : > { %v4165_v27 = vmax.f32 %v1077_v25, 0.0  ;;  %v4166_v28 = vmax.f32 %v1246_v26, 0.0  ;;  %v741_v29 = vpop.f32.mrf.mxu0  ;;  %v910_v30 = vpop.f32.mrf.mxu1 }
 0x257   : > { %v4179_v31 = vmax.f32 %v741_v29, 0.0  ;;  %v4180_v32 = vmax.f32 %v910_v30, 0.0 }
 0x258   : > { %v4516_v33 = vadd.f32 %v4515_v20, %v4165_v27  ;;  %v4585_v34 = vadd.f32 %v4584_v21, %v4166_v28 }
 0x259   : > { %v4379_v35 = vadd.f32 %v4378_v22, %v4179_v31  ;;  %v4448_v36 = vadd.f32 %v4447_v23, %v4180_v32 }
 0x25d   : > { %v1079_v37 = vpop.f32.mrf.mxu2  ;;  %v1248_v38 = vpop.f32.mrf.mxu3 }
 0x25e   : > { %v4181_v39 = vmax.f32 %v1079_v37, 0.0  ;;  %v4182_v40 = vmax.f32 %v1248_v38, 0.0  ;;  %v744_v41 = vpop.f32.mrf.mxu0  ;;  %v913_v42 = vpop.f32.mrf.mxu1 }
 0x25f   : > { %v4195_v43 = vmax.f32 %v744_v41, 0.0  ;;  %v4196_v44 = vmax.f32 %v913_v42, 0.0 }
 0x260   : > { %v4517_v45 = vadd.f32 %v4516_v33, %v4181_v39  ;;  %v4586_v46 = vadd.f32 %v4585_v34, %v4182_v40 }
 0x261   : > { %v4380_v47 = vadd.f32 %v4379_v35, %v4195_v43  ;;  %v4449_v48 = vadd.f32 %v4448_v36, %v4196_v44  ;;  %5834 = vmatmul.msk.bf16.gmra.mxu0 %vm449_vm1, %v6295_v49  ;;  %5866 = vmatmul.msk.bf16.gmra.mxu1 %vm449_vm1, %v6295_v49  ;;  %v6297_v35 = vld [vmem:[%s6484_s26 + $0x30] sm:$0xff] }
 0x262   : > { %5898 = vmatmul.msk.bf16.gmra.mxu2 %vm449_vm1, %v6295_v49  ;;  %5930 = vmatmul.msk.bf16.gmra.mxu3 %vm449_vm1, %v6295_v49 }
 0x265   : > { %v1082_v50 = vpop.f32.mrf.mxu2  ;;  %v1251_v51 = vpop.f32.mrf.mxu3 }
 0x266   : > { %v4197_v52 = vmax.f32 %v1082_v50, 0.0  ;;  %v4198_v53 = vmax.f32 %v1251_v51, 0.0  ;;  %v746_v54 = vpop.f32.mrf.mxu0  ;;  %v915_v55 = vpop.f32.mrf.mxu1 }
 0x267   : > { %v4211_v56 = vmax.f32 %v746_v54, 0.0  ;;  %v4212_v57 = vmax.f32 %v915_v55, 0.0 }
 0x268   : > { %v4518_v58 = vadd.f32 %v4517_v45, %v4197_v52  ;;  %v4587_v59 = vadd.f32 %v4586_v46, %v4198_v53 }
 0x269   : > { %v4381_v60 = vadd.f32 %v4380_v47, %v4211_v56  ;;  %v4450_v61 = vadd.f32 %v4449_v48, %v4212_v57 }
 0x26d   : > { %v1084_v62 = vpop.f32.mrf.mxu2  ;;  %v1253_v63 = vpop.f32.mrf.mxu3 }
 0x26e   : > { %v4213_v0 = vmax.f32 %v1084_v62, 0.0  ;;  %v4214_v1 = vmax.f32 %v1253_v63, 0.0  ;;  %v749_v2 = vpop.f32.mrf.mxu0  ;;  %v918_v3 = vpop.f32.mrf.mxu1 }
 0x26f   : > { %v4227_v4 = vmax.f32 %v749_v2, 0.0  ;;  %v4228_v5 = vmax.f32 %v918_v3, 0.0 }
 0x270   : > { %v4519_v6 = vadd.f32 %v4518_v58, %v4213_v0  ;;  %v4588_v7 = vadd.f32 %v4587_v59, %v4214_v1 }
 0x271   : > { %v4382_v8 = vadd.f32 %v4381_v60, %v4227_v4  ;;  %v4451_v9 = vadd.f32 %v4450_v61, %v4228_v5  ;;  %5835 = vmatmul.msk.bf16.gmra.mxu0 %vm449_vm1, %v6296_v10  ;;  %5867 = vmatmul.msk.bf16.gmra.mxu1 %vm449_vm1, %v6296_v10  ;;  %v6298_v60 = vld [vmem:[%s6484_s26 + $0x38] sm:$0xff] }
 0x272   : > { %5899 = vmatmul.msk.bf16.gmra.mxu2 %vm449_vm1, %v6296_v10  ;;  %5931 = vmatmul.msk.bf16.gmra.mxu3 %vm449_vm1, %v6296_v10 }
 0x275   : > { %v1087_v11 = vpop.f32.mrf.mxu2  ;;  %v1256_v12 = vpop.f32.mrf.mxu3 }
 0x276   : > { %v4229_v13 = vmax.f32 %v1087_v11, 0.0  ;;  %v4230_v14 = vmax.f32 %v1256_v12, 0.0  ;;  %v751_v15 = vpop.f32.mrf.mxu0  ;;  %v920_v16 = vpop.f32.mrf.mxu1 }
 0x277   : > { %v4243_v17 = vmax.f32 %v751_v15, 0.0  ;;  %v4244_v18 = vmax.f32 %v920_v16, 0.0 }
 0x278   : > { %v4520_v19 = vadd.f32 %v4519_v6, %v4229_v13  ;;  %v4589_v20 = vadd.f32 %v4588_v7, %v4230_v14 }
 0x279   : > { %v4383_v21 = vadd.f32 %v4382_v8, %v4243_v17  ;;  %v4452_v22 = vadd.f32 %v4451_v9, %v4244_v18 }
 0x27d   : > { %v1089_v23 = vpop.f32.mrf.mxu2  ;;  %v1258_v24 = vpop.f32.mrf.mxu3 }
 0x27e   : > { %v4245_v25 = vmax.f32 %v1089_v23, 0.0  ;;  %v4246_v26 = vmax.f32 %v1258_v24, 0.0  ;;  %v754_v27 = vpop.f32.mrf.mxu0  ;;  %v923_v28 = vpop.f32.mrf.mxu1 }
 0x27f   : > { %v4259_v29 = vmax.f32 %v754_v27, 0.0  ;;  %v4260_v30 = vmax.f32 %v923_v28, 0.0 }
 0x280   : > { %v4521_v31 = vadd.f32 %v4520_v19, %v4245_v25  ;;  %v4590_v32 = vadd.f32 %v4589_v20, %v4246_v26  ;;  %v6299_v25 = vld [vmem:[%s6484_s26 + $0x40] sm:$0xff] }
 0x281   : > { %v4384_v33 = vadd.f32 %v4383_v21, %v4259_v29  ;;  %v4453_v34 = vadd.f32 %v4452_v22, %v4260_v30  ;;  %5836 = vmatmul.msk.bf16.gmra.mxu0 %vm449_vm1, %v6297_v35  ;;  %5868 = vmatmul.msk.bf16.gmra.mxu1 %vm449_vm1, %v6297_v35 }
 0x282   : > { %5900 = vmatmul.msk.bf16.gmra.mxu2 %vm449_vm1, %v6297_v35  ;;  %5932 = vmatmul.msk.bf16.gmra.mxu3 %vm449_vm1, %v6297_v35 }
 0x285   : > { %v1092_v36 = vpop.f32.mrf.mxu2  ;;  %v1261_v37 = vpop.f32.mrf.mxu3 }
 0x286   : > { %v4261_v38 = vmax.f32 %v1092_v36, 0.0  ;;  %v4262_v39 = vmax.f32 %v1261_v37, 0.0  ;;  %v756_v40 = vpop.f32.mrf.mxu0  ;;  %v925_v41 = vpop.f32.mrf.mxu1 }
 0x287   : > { %v4275_v42 = vmax.f32 %v756_v40, 0.0  ;;  %v4276_v43 = vmax.f32 %v925_v41, 0.0 }
 0x288   : > { %v4522_v44 = vadd.f32 %v4521_v31, %v4261_v38  ;;  %v4591_v45 = vadd.f32 %v4590_v32, %v4262_v39 }
 0x289   : > { %v4385_v46 = vadd.f32 %v4384_v33, %v4275_v42  ;;  %v4454_v47 = vadd.f32 %v4453_v34, %v4276_v43 }
 0x28d   : > { %v1094_v48 = vpop.f32.mrf.mxu2  ;;  %v1263_v49 = vpop.f32.mrf.mxu3 }
 0x28e   : > { %v4277_v50 = vmax.f32 %v1094_v48, 0.0  ;;  %v4278_v51 = vmax.f32 %v1263_v49, 0.0  ;;  %v759_v52 = vpop.f32.mrf.mxu0  ;;  %v928_v53 = vpop.f32.mrf.mxu1 }
 0x28f   : > { %v4291_v54 = vmax.f32 %v759_v52, 0.0  ;;  %v4292_v55 = vmax.f32 %v928_v53, 0.0 }
 0x290   : > { %v4523_v56 = vadd.f32 %v4522_v44, %v4277_v50  ;;  %v4592_v57 = vadd.f32 %v4591_v45, %v4278_v51 }
 0x291   : > { %v4386_v58 = vadd.f32 %v4385_v46, %v4291_v54  ;;  %v4455_v59 = vadd.f32 %v4454_v47, %v4292_v55  ;;  %5837 = vmatmul.msk.bf16.gmra.mxu0 %vm449_vm1, %v6298_v60  ;;  %5869 = vmatmul.msk.bf16.gmra.mxu1 %vm449_vm1, %v6298_v60 }
 0x292   : > { %5901 = vmatmul.msk.bf16.gmra.mxu2 %vm449_vm1, %v6298_v60  ;;  %5933 = vmatmul.msk.bf16.gmra.mxu3 %vm449_vm1, %v6298_v60 }
 0x295   : > { %v1097_v61 = vpop.f32.mrf.mxu2  ;;  %v1266_v62 = vpop.f32.mrf.mxu3 }
 0x296   : > { %v4293_v63 = vmax.f32 %v1097_v61, 0.0  ;;  %v4294_v0 = vmax.f32 %v1266_v62, 0.0  ;;  %v761_v1 = vpop.f32.mrf.mxu0  ;;  %v930_v2 = vpop.f32.mrf.mxu1 }
 0x297   : > { %v4307_v3 = vmax.f32 %v761_v1, 0.0  ;;  %v4308_v4 = vmax.f32 %v930_v2, 0.0 }
 0x298   : > { %v4524_v5 = vadd.f32 %v4523_v56, %v4293_v63  ;;  %v4593_v6 = vadd.f32 %v4592_v57, %v4294_v0 }
 0x299   : > { %v4387_v7 = vadd.f32 %v4386_v58, %v4307_v3  ;;  %v4456_v8 = vadd.f32 %v4455_v59, %v4308_v4 }
 0x29b   : > { %v4388_v9 = vrot.slane %v4387_v7, 4  ;;  %v4457_v10 = vrot.slane %v4456_v8, 4 }
 0x29d   : > { %v4389_v11 = vadd.f32 %v4388_v9, %v4387_v7  ;;  %v4458_v12 = vadd.f32 %v4457_v10, %v4456_v8  ;;  %v1099_v13 = vpop.f32.mrf.mxu2  ;;  %v1268_v14 = vpop.f32.mrf.mxu3  ;;  %v6300_v8 = vld [vmem:[%s6484_s26 + $0x48] sm:$0xff] }
 0x29e   : > { %v4309_v15 = vmax.f32 %v1099_v13, 0.0  ;;  %v4310_v16 = vmax.f32 %v1268_v14, 0.0  ;;  %v1280_v17 = vpop.f32.mrf.mxu0  ;;  %v1449_v18 = vpop.f32.mrf.mxu1 }
 0x29f   : > { %v4390_v19 = vrot.slane %v4389_v11, 2  ;;  %v4459_v20 = vrot.slane %v4458_v12, 2  ;;  %v3303_v37 = vmax.f32 %v1280_v17, 0.0  ;;  %v3304_v38 = vmax.f32 %v1449_v18, 0.0 }
 0x2a0   : > { %v4525_v21 = vadd.f32 %v4524_v5, %v4309_v15  ;;  %v4594_v22 = vadd.f32 %v4593_v6, %v4310_v16 }
 0x2a1   : > { %v4391_v23 = vadd.f32 %v4390_v19, %v4389_v11  ;;  %v4460_v24 = vadd.f32 %v4459_v20, %v4458_v12  ;;  %5838 = vmatmul.msk.bf16.gmra.mxu0 %vm449_vm1, %v6299_v25  ;;  %5870 = vmatmul.msk.bf16.gmra.mxu1 %vm449_vm1, %v6299_v25 }
 0x2a2   : > { %v4526_v26 = vrot.slane %v4525_v21, 4  ;;  %v4595_v27 = vrot.slane %v4594_v22, 4  ;;  %5902 = vmatmul.msk.bf16.gmra.mxu2 %vm449_vm1, %v6299_v25  ;;  %5934 = vmatmul.msk.bf16.gmra.mxu3 %vm449_vm1, %v6299_v25 }
 0x2a3   : > { %v4392_v28 = vrot.slane %v4391_v23, 1  ;;  %v4461_v29 = vrot.slane %v4460_v24, 1 }
 0x2a4   : > { %v4527_v30 = vadd.f32 %v4526_v26, %v4525_v21  ;;  %v4596_v31 = vadd.f32 %v4595_v27, %v4594_v22 }
 0x2a5   : > { %v4462_v32 = vadd.f32 %v4461_v29, %v4460_v24  ;;  %v1618_v33 = vpop.f32.mrf.mxu2  ;;  %v1787_v34 = vpop.f32.mrf.mxu3  ;;  %v4393_v41 = vadd.f32 %v4392_v28, %v4391_v23 }
 0x2a6   : > { %v4528_v35 = vrot.slane %v4527_v30, 2  ;;  %v4597_v36 = vrot.slane %v4596_v31, 2  ;;  %v1282_v39 = vpop.f32.mrf.mxu0  ;;  %v1451_v40 = vpop.f32.mrf.mxu1  ;;  %v3305_v54 = vmax.f32 %v1618_v33, 0.0  ;;  %v3306_v55 = vmax.f32 %v1787_v34, 0.0  ;;  %v6301_v33 = vld [vmem:[%s6484_s26 + $0x50] sm:$0xff] }
 0x2a7   : > { %v5445_v42 = vrot.slane %v4462_v32, 7  ;;  %v3319_v43 = vmax.f32 %v1282_v39, 0.0  ;;  %v3320_v44 = vmax.f32 %v1451_v40, 0.0 }
 0x2a8   : > { %v4529_v45 = vadd.f32 %v4528_v35, %v4527_v30  ;;  %v4598_v46 = vadd.f32 %v4597_v36, %v4596_v31 }
 0x2a9   : > { %v5460_v47 = vsel %vm5459_vm2, %v4393_v41, %v5445_v42  ;;  %v4601_v48 = vadd.f32 %v3319_v43, %v3303_v37  ;;  %v4670_v49 = vadd.f32 %v3320_v44, %v3304_v38 }
 0x2aa   : > { %v4530_v50 = vrot.slane %v4529_v45, 1  ;;  %v4599_v51 = vrot.slane %v4598_v46, 1 }
 0x2ac   : > { %v4531_v52 = vadd.f32 %v4530_v50, %v4529_v45  ;;  %v4600_v53 = vadd.f32 %v4599_v51, %v4598_v46 }
 0x2ad   : > { %v1620_v56 = vpop.f32.mrf.mxu2  ;;  %v1789_v57 = vpop.f32.mrf.mxu3 }
 0x2ae   : > { %v5446_v58 = vrot.slane %v4531_v52, 6  ;;  %v5447_v59 = vrot.slane %v4600_v53, 5  ;;  %v3321_v60 = vmax.f32 %v1620_v56, 0.0  ;;  %v3322_v61 = vmax.f32 %v1789_v57, 0.0  ;;  %v1285_v62 = vpop.f32.mrf.mxu0  ;;  %v1454_v63 = vpop.f32.mrf.mxu1 }
 0x2af   : > { %v3335_v0 = vmax.f32 %v1285_v62, 0.0  ;;  %v3336_v1 = vmax.f32 %v1454_v63, 0.0 }
 0x2b0   : > { %v5462_v2 = vsel %vm5461_vm3, %v5446_v58, %v5447_v59  ;;  %v4739_v3 = vadd.f32 %v3321_v60, %v3305_v54  ;;  %v4808_v4 = vadd.f32 %v3322_v61, %v3306_v55  ;;  %v6302_v58 = vld [vmem:[%s6484_s26 + $0x58] sm:$0xff] }
 0x2b1   : > { %v6725_v5 = vsel %vm5463_vm4, %v5460_v47, %v5462_v2  ;;  %v4602_v6 = vadd.f32 %v4601_v48, %v3335_v0  ;;  %v4671_v7 = vadd.f32 %v4670_v49, %v3336_v1  ;;  %5839 = vmatmul.msk.bf16.gmra.mxu0 %vm449_vm1, %v6300_v8  ;;  %5871 = vmatmul.msk.bf16.gmra.mxu1 %vm449_vm1, %v6300_v8 }
 0x2b2   : > { %5903 = vmatmul.msk.bf16.gmra.mxu2 %vm449_vm1, %v6300_v8  ;;  %5935 = vmatmul.msk.bf16.gmra.mxu3 %vm449_vm1, %v6300_v8 }
 0x2b5   : > { %v1623_v9 = vpop.f32.mrf.mxu2  ;;  %v1792_v10 = vpop.f32.mrf.mxu3 }
 0x2b6   : > { %v3337_v11 = vmax.f32 %v1623_v9, 0.0  ;;  %v3338_v12 = vmax.f32 %v1792_v10, 0.0  ;;  %v1287_v13 = vpop.f32.mrf.mxu0  ;;  %v1456_v14 = vpop.f32.mrf.mxu1 }
 0x2b7   : > { %v3351_v15 = vmax.f32 %v1287_v13, 0.0  ;;  %v3352_v16 = vmax.f32 %v1456_v14, 0.0 }
 0x2b8   : > { %v4740_v17 = vadd.f32 %v4739_v3, %v3337_v11  ;;  %v4809_v18 = vadd.f32 %v4808_v4, %v3338_v12 }
 0x2b9   : > { %v4603_v19 = vadd.f32 %v4602_v6, %v3351_v15  ;;  %v4672_v20 = vadd.f32 %v4671_v7, %v3352_v16 }
 0x2bd   : > { %v1625_v21 = vpop.f32.mrf.mxu2  ;;  %v1794_v22 = vpop.f32.mrf.mxu3 }
 0x2be   : > { %v3353_v23 = vmax.f32 %v1625_v21, 0.0  ;;  %v3354_v24 = vmax.f32 %v1794_v22, 0.0  ;;  %v1290_v25 = vpop.f32.mrf.mxu0  ;;  %v1459_v26 = vpop.f32.mrf.mxu1 }
 0x2bf   : > { %v3367_v27 = vmax.f32 %v1290_v25, 0.0  ;;  %v3368_v28 = vmax.f32 %v1459_v26, 0.0 }
 0x2c0   : > { %v4741_v29 = vadd.f32 %v4740_v17, %v3353_v23  ;;  %v4810_v30 = vadd.f32 %v4809_v18, %v3354_v24 }
 0x2c1   : > { %v4604_v31 = vadd.f32 %v4603_v19, %v3367_v27  ;;  %v4673_v32 = vadd.f32 %v4672_v20, %v3368_v28  ;;  %5840 = vmatmul.msk.bf16.gmra.mxu0 %vm449_vm1, %v6301_v33  ;;  %5872 = vmatmul.msk.bf16.gmra.mxu1 %vm449_vm1, %v6301_v33  ;;  %v6303_v20 = vld [vmem:[%s6484_s26 + $0x60] sm:$0xff] }
 0x2c2   : > { %5904 = vmatmul.msk.bf16.gmra.mxu2 %vm449_vm1, %v6301_v33  ;;  %5936 = vmatmul.msk.bf16.gmra.mxu3 %vm449_vm1, %v6301_v33 }
 0x2c5   : > { %v1628_v34 = vpop.f32.mrf.mxu2  ;;  %v1797_v35 = vpop.f32.mrf.mxu3 }
 0x2c6   : > { %v3369_v36 = vmax.f32 %v1628_v34, 0.0  ;;  %v3370_v37 = vmax.f32 %v1797_v35, 0.0  ;;  %v1292_v38 = vpop.f32.mrf.mxu0  ;;  %v1461_v39 = vpop.f32.mrf.mxu1 }
 0x2c7   : > { %v3383_v40 = vmax.f32 %v1292_v38, 0.0  ;;  %v3384_v41 = vmax.f32 %v1461_v39, 0.0 }
 0x2c8   : > { %v4742_v42 = vadd.f32 %v4741_v29, %v3369_v36  ;;  %v4811_v43 = vadd.f32 %v4810_v30, %v3370_v37 }
 0x2c9   : > { %v4605_v44 = vadd.f32 %v4604_v31, %v3383_v40  ;;  %v4674_v45 = vadd.f32 %v4673_v32, %v3384_v41 }
 0x2cd   : > { %v1630_v46 = vpop.f32.mrf.mxu2  ;;  %v1799_v47 = vpop.f32.mrf.mxu3 }
 0x2ce   : > { %v3385_v48 = vmax.f32 %v1630_v46, 0.0  ;;  %v3386_v49 = vmax.f32 %v1799_v47, 0.0  ;;  %v1295_v50 = vpop.f32.mrf.mxu0  ;;  %v1464_v51 = vpop.f32.mrf.mxu1 }
 0x2cf   : > { %v3399_v52 = vmax.f32 %v1295_v50, 0.0  ;;  %v3400_v53 = vmax.f32 %v1464_v51, 0.0 }
 0x2d0   : > { %v4743_v54 = vadd.f32 %v4742_v42, %v3385_v48  ;;  %v4812_v55 = vadd.f32 %v4811_v43, %v3386_v49 }
 0x2d1   : > { %v4606_v56 = vadd.f32 %v4605_v44, %v3399_v52  ;;  %v4675_v57 = vadd.f32 %v4674_v45, %v3400_v53  ;;  %5841 = vmatmul.msk.bf16.gmra.mxu0 %vm449_vm1, %v6302_v58  ;;  %5873 = vmatmul.msk.bf16.gmra.mxu1 %vm449_vm1, %v6302_v58  ;;  %v6304_v45 = vld [vmem:[%s6484_s26 + $0x68] sm:$0xff] }
 0x2d2   : > { %5905 = vmatmul.msk.bf16.gmra.mxu2 %vm449_vm1, %v6302_v58  ;;  %5937 = vmatmul.msk.bf16.gmra.mxu3 %vm449_vm1, %v6302_v58 }
 0x2d5   : > { %v1633_v59 = vpop.f32.mrf.mxu2  ;;  %v1802_v60 = vpop.f32.mrf.mxu3 }
 0x2d6   : > { %v3401_v61 = vmax.f32 %v1633_v59, 0.0  ;;  %v3402_v62 = vmax.f32 %v1802_v60, 0.0  ;;  %v1297_v63 = vpop.f32.mrf.mxu0  ;;  %v1466_v0 = vpop.f32.mrf.mxu1 }
 0x2d7   : > { %v3415_v1 = vmax.f32 %v1297_v63, 0.0  ;;  %v3416_v2 = vmax.f32 %v1466_v0, 0.0 }
 0x2d8   : > { %v4744_v3 = vadd.f32 %v4743_v54, %v3401_v61  ;;  %v4813_v4 = vadd.f32 %v4812_v55, %v3402_v62 }
 0x2d9   : > { %v4607_v6 = vadd.f32 %v4606_v56, %v3415_v1  ;;  %v4676_v7 = vadd.f32 %v4675_v57, %v3416_v2 }
 0x2dd   : > { %v1635_v8 = vpop.f32.mrf.mxu2  ;;  %v1804_v9 = vpop.f32.mrf.mxu3 }
 0x2de   : > { %v3417_v10 = vmax.f32 %v1635_v8, 0.0  ;;  %v3418_v11 = vmax.f32 %v1804_v9, 0.0  ;;  %v1300_v12 = vpop.f32.mrf.mxu0  ;;  %v1469_v13 = vpop.f32.mrf.mxu1 }
 0x2df   : > { %v3431_v14 = vmax.f32 %v1300_v12, 0.0  ;;  %v3432_v15 = vmax.f32 %v1469_v13, 0.0 }
 0x2e0   : > { %v4745_v16 = vadd.f32 %v4744_v3, %v3417_v10  ;;  %v4814_v17 = vadd.f32 %v4813_v4, %v3418_v11 }
 0x2e1   : > { %v4608_v18 = vadd.f32 %v4607_v6, %v3431_v14  ;;  %v4677_v19 = vadd.f32 %v4676_v7, %v3432_v15  ;;  %5842 = vmatmul.msk.bf16.gmra.mxu0 %vm449_vm1, %v6303_v20  ;;  %5874 = vmatmul.msk.bf16.gmra.mxu1 %vm449_vm1, %v6303_v20  ;;  %v6305_v7 = vld [vmem:[%s6484_s26 + $0x70] sm:$0xff] }
 0x2e2   : > { %5906 = vmatmul.msk.bf16.gmra.mxu2 %vm449_vm1, %v6303_v20  ;;  %5938 = vmatmul.msk.bf16.gmra.mxu3 %vm449_vm1, %v6303_v20 }
 0x2e5   : > { %v1638_v21 = vpop.f32.mrf.mxu2  ;;  %v1807_v22 = vpop.f32.mrf.mxu3 }
 0x2e6   : > { %v3433_v23 = vmax.f32 %v1638_v21, 0.0  ;;  %v3434_v24 = vmax.f32 %v1807_v22, 0.0  ;;  %v1302_v25 = vpop.f32.mrf.mxu0  ;;  %v1471_v26 = vpop.f32.mrf.mxu1 }
 0x2e7   : > { %v3447_v27 = vmax.f32 %v1302_v25, 0.0  ;;  %v3448_v28 = vmax.f32 %v1471_v26, 0.0 }
 0x2e8   : > { %v4746_v29 = vadd.f32 %v4745_v16, %v3433_v23  ;;  %v4815_v30 = vadd.f32 %v4814_v17, %v3434_v24 }
 0x2e9   : > { %v4609_v31 = vadd.f32 %v4608_v18, %v3447_v27  ;;  %v4678_v32 = vadd.f32 %v4677_v19, %v3448_v28 }
 0x2ed   : > { %v1640_v33 = vpop.f32.mrf.mxu2  ;;  %v1809_v34 = vpop.f32.mrf.mxu3 }
 0x2ee   : > { %v3449_v35 = vmax.f32 %v1640_v33, 0.0  ;;  %v3450_v36 = vmax.f32 %v1809_v34, 0.0  ;;  %v1305_v37 = vpop.f32.mrf.mxu0  ;;  %v1474_v38 = vpop.f32.mrf.mxu1 }
 0x2ef   : > { %v3463_v39 = vmax.f32 %v1305_v37, 0.0  ;;  %v3464_v40 = vmax.f32 %v1474_v38, 0.0 }
 0x2f0   : > { %v4747_v41 = vadd.f32 %v4746_v29, %v3449_v35  ;;  %v4816_v42 = vadd.f32 %v4815_v30, %v3450_v36 }
 0x2f1   : > { %v4610_v43 = vadd.f32 %v4609_v31, %v3463_v39  ;;  %v4679_v44 = vadd.f32 %v4678_v32, %v3464_v40  ;;  %5843 = vmatmul.msk.bf16.gmra.mxu0 %vm449_vm1, %v6304_v45  ;;  %5875 = vmatmul.msk.bf16.gmra.mxu1 %vm449_vm1, %v6304_v45  ;;  %v6306_v32 = vld [vmem:[%s6484_s26 + $0x78] sm:$0xff] }
 0x2f2   : > { %5907 = vmatmul.msk.bf16.gmra.mxu2 %vm449_vm1, %v6304_v45  ;;  %5939 = vmatmul.msk.bf16.gmra.mxu3 %vm449_vm1, %v6304_v45 }
 0x2f5   : > { %v1643_v46 = vpop.f32.mrf.mxu2  ;;  %v1812_v47 = vpop.f32.mrf.mxu3 }
 0x2f6   : > { %v3465_v48 = vmax.f32 %v1643_v46, 0.0  ;;  %v3466_v49 = vmax.f32 %v1812_v47, 0.0  ;;  %v1307_v50 = vpop.f32.mrf.mxu0  ;;  %v1476_v51 = vpop.f32.mrf.mxu1 }
 0x2f7   : > { %v3479_v52 = vmax.f32 %v1307_v50, 0.0  ;;  %v3480_v53 = vmax.f32 %v1476_v51, 0.0 }
 0x2f8   : > { %v4748_v54 = vadd.f32 %v4747_v41, %v3465_v48  ;;  %v4817_v55 = vadd.f32 %v4816_v42, %v3466_v49 }
 0x2f9   : > { %v4611_v56 = vadd.f32 %v4610_v43, %v3479_v52  ;;  %v4680_v57 = vadd.f32 %v4679_v44, %v3480_v53 }
 0x2fd   : > { %v1645_v58 = vpop.f32.mrf.mxu2  ;;  %v1814_v59 = vpop.f32.mrf.mxu3 }
 0x2fe   : > { %v3481_v60 = vmax.f32 %v1645_v58, 0.0  ;;  %v3482_v61 = vmax.f32 %v1814_v59, 0.0  ;;  %v1310_v62 = vpop.f32.mrf.mxu0  ;;  %v1479_v63 = vpop.f32.mrf.mxu1 }
 0x2ff   : > { %v3495_v0 = vmax.f32 %v1310_v62, 0.0  ;;  %v3496_v1 = vmax.f32 %v1479_v63, 0.0 }
 0x300   : > { %v4749_v2 = vadd.f32 %v4748_v54, %v3481_v60  ;;  %v4818_v3 = vadd.f32 %v4817_v55, %v3482_v61 }
 0x301   : > { %v4612_v4 = vadd.f32 %v4611_v56, %v3495_v0  ;;  %v4681_v6 = vadd.f32 %v4680_v57, %v3496_v1  ;;  %5844 = vmatmul.msk.bf16.gmra.mxu0 %vm449_vm1, %v6305_v7  ;;  %5876 = vmatmul.msk.bf16.gmra.mxu1 %vm449_vm1, %v6305_v7  ;;  %v6307_v57 = vld [vmem:[%s6484_s26 + $0x80] sm:$0xff] }
 0x302   : > { %5908 = vmatmul.msk.bf16.gmra.mxu2 %vm449_vm1, %v6305_v7  ;;  %5940 = vmatmul.msk.bf16.gmra.mxu3 %vm449_vm1, %v6305_v7 }
 0x305   : > { %v1648_v8 = vpop.f32.mrf.mxu2  ;;  %v1817_v9 = vpop.f32.mrf.mxu3 }
 0x306   : > { %v3497_v10 = vmax.f32 %v1648_v8, 0.0  ;;  %v3498_v11 = vmax.f32 %v1817_v9, 0.0  ;;  %v1312_v12 = vpop.f32.mrf.mxu0  ;;  %v1481_v13 = vpop.f32.mrf.mxu1 }
 0x307   : > { %v3511_v14 = vmax.f32 %v1312_v12, 0.0  ;;  %v3512_v15 = vmax.f32 %v1481_v13, 0.0 }
 0x308   : > { %v4750_v16 = vadd.f32 %v4749_v2, %v3497_v10  ;;  %v4819_v17 = vadd.f32 %v4818_v3, %v3498_v11 }
 0x309   : > { %v4613_v18 = vadd.f32 %v4612_v4, %v3511_v14  ;;  %v4682_v19 = vadd.f32 %v4681_v6, %v3512_v15 }
 0x30d   : > { %v1650_v20 = vpop.f32.mrf.mxu2  ;;  %v1819_v21 = vpop.f32.mrf.mxu3 }
 0x30e   : > { %v3513_v22 = vmax.f32 %v1650_v20, 0.0  ;;  %v3514_v23 = vmax.f32 %v1819_v21, 0.0  ;;  %v1315_v24 = vpop.f32.mrf.mxu0  ;;  %v1484_v25 = vpop.f32.mrf.mxu1 }
 0x30f   : > { %v3527_v26 = vmax.f32 %v1315_v24, 0.0  ;;  %v3528_v27 = vmax.f32 %v1484_v25, 0.0 }
 0x310   : > { %v4751_v28 = vadd.f32 %v4750_v16, %v3513_v22  ;;  %v4820_v29 = vadd.f32 %v4819_v17, %v3514_v23 }
 0x311   : > { %v4614_v30 = vadd.f32 %v4613_v18, %v3527_v26  ;;  %v4683_v31 = vadd.f32 %v4682_v19, %v3528_v27  ;;  %5845 = vmatmul.msk.bf16.gmra.mxu0 %vm449_vm1, %v6306_v32  ;;  %5877 = vmatmul.msk.bf16.gmra.mxu1 %vm449_vm1, %v6306_v32  ;;  %v6308_v19 = vld [vmem:[%s6484_s26 + $0x88] sm:$0xff] }
 0x312   : > { %5909 = vmatmul.msk.bf16.gmra.mxu2 %vm449_vm1, %v6306_v32  ;;  %5941 = vmatmul.msk.bf16.gmra.mxu3 %vm449_vm1, %v6306_v32 }
 0x315   : > { %v1653_v33 = vpop.f32.mrf.mxu2  ;;  %v1822_v34 = vpop.f32.mrf.mxu3 }
 0x316   : > { %v3529_v35 = vmax.f32 %v1653_v33, 0.0  ;;  %v3530_v36 = vmax.f32 %v1822_v34, 0.0  ;;  %v1317_v37 = vpop.f32.mrf.mxu0  ;;  %v1486_v38 = vpop.f32.mrf.mxu1 }
 0x317   : > { %v3543_v39 = vmax.f32 %v1317_v37, 0.0  ;;  %v3544_v40 = vmax.f32 %v1486_v38, 0.0 }
 0x318   : > { %v4752_v41 = vadd.f32 %v4751_v28, %v3529_v35  ;;  %v4821_v42 = vadd.f32 %v4820_v29, %v3530_v36 }
 0x319   : > { %v4615_v43 = vadd.f32 %v4614_v30, %v3543_v39  ;;  %v4684_v44 = vadd.f32 %v4683_v31, %v3544_v40 }
 0x31d   : > { %v1655_v45 = vpop.f32.mrf.mxu2  ;;  %v1824_v46 = vpop.f32.mrf.mxu3 }
 0x31e   : > { %v3545_v47 = vmax.f32 %v1655_v45, 0.0  ;;  %v3546_v48 = vmax.f32 %v1824_v46, 0.0  ;;  %v1320_v49 = vpop.f32.mrf.mxu0  ;;  %v1489_v50 = vpop.f32.mrf.mxu1 }
 0x31f   : > { %v3559_v51 = vmax.f32 %v1320_v49, 0.0  ;;  %v3560_v52 = vmax.f32 %v1489_v50, 0.0 }
 0x320   : > { %v4753_v53 = vadd.f32 %v4752_v41, %v3545_v47  ;;  %v4822_v54 = vadd.f32 %v4821_v42, %v3546_v48 }
 0x321   : > { %v4616_v55 = vadd.f32 %v4615_v43, %v3559_v51  ;;  %v4685_v56 = vadd.f32 %v4684_v44, %v3560_v52  ;;  %5846 = vmatmul.msk.bf16.gmra.mxu0 %vm449_vm1, %v6307_v57  ;;  %5878 = vmatmul.msk.bf16.gmra.mxu1 %vm449_vm1, %v6307_v57  ;;  %v6309_v44 = vld [vmem:[%s6484_s26 + $0x90] sm:$0xff] }
 0x322   : > { %5910 = vmatmul.msk.bf16.gmra.mxu2 %vm449_vm1, %v6307_v57  ;;  %5942 = vmatmul.msk.bf16.gmra.mxu3 %vm449_vm1, %v6307_v57 }
 0x325   : > { %v1658_v58 = vpop.f32.mrf.mxu2  ;;  %v1827_v59 = vpop.f32.mrf.mxu3 }
 0x326   : > { %v3561_v60 = vmax.f32 %v1658_v58, 0.0  ;;  %v3562_v61 = vmax.f32 %v1827_v59, 0.0  ;;  %v1322_v62 = vpop.f32.mrf.mxu0  ;;  %v1491_v63 = vpop.f32.mrf.mxu1 }
 0x327   : > { %v3575_v0 = vmax.f32 %v1322_v62, 0.0  ;;  %v3576_v1 = vmax.f32 %v1491_v63, 0.0 }
 0x328   : > { %v4754_v2 = vadd.f32 %v4753_v53, %v3561_v60  ;;  %v4823_v3 = vadd.f32 %v4822_v54, %v3562_v61 }
 0x329   : > { %v4617_v4 = vadd.f32 %v4616_v55, %v3575_v0  ;;  %v4686_v6 = vadd.f32 %v4685_v56, %v3576_v1 }
 0x32d   : > { %v1660_v7 = vpop.f32.mrf.mxu2  ;;  %v1829_v8 = vpop.f32.mrf.mxu3 }
 0x32e   : > { %v3577_v9 = vmax.f32 %v1660_v7, 0.0  ;;  %v3578_v10 = vmax.f32 %v1829_v8, 0.0  ;;  %v1325_v11 = vpop.f32.mrf.mxu0  ;;  %v1494_v12 = vpop.f32.mrf.mxu1 }
 0x32f   : > { %v3591_v13 = vmax.f32 %v1325_v11, 0.0  ;;  %v3592_v14 = vmax.f32 %v1494_v12, 0.0 }
 0x330   : > { %v4755_v15 = vadd.f32 %v4754_v2, %v3577_v9  ;;  %v4824_v16 = vadd.f32 %v4823_v3, %v3578_v10 }
 0x331   : > { %v4618_v17 = vadd.f32 %v4617_v4, %v3591_v13  ;;  %v4687_v18 = vadd.f32 %v4686_v6, %v3592_v14  ;;  %5847 = vmatmul.msk.bf16.gmra.mxu0 %vm449_vm1, %v6308_v19  ;;  %5879 = vmatmul.msk.bf16.gmra.mxu1 %vm449_vm1, %v6308_v19  ;;  %v6310_v6 = vld [vmem:[%s6484_s26 + $0x98] sm:$0xff] }
 0x332   : > { %5911 = vmatmul.msk.bf16.gmra.mxu2 %vm449_vm1, %v6308_v19  ;;  %5943 = vmatmul.msk.bf16.gmra.mxu3 %vm449_vm1, %v6308_v19 }
 0x335   : > { %v1663_v20 = vpop.f32.mrf.mxu2  ;;  %v1832_v21 = vpop.f32.mrf.mxu3 }
 0x336   : > { %v3593_v22 = vmax.f32 %v1663_v20, 0.0  ;;  %v3594_v23 = vmax.f32 %v1832_v21, 0.0  ;;  %v1327_v24 = vpop.f32.mrf.mxu0  ;;  %v1496_v25 = vpop.f32.mrf.mxu1 }
 0x337   : > { %v3607_v26 = vmax.f32 %v1327_v24, 0.0  ;;  %v3608_v27 = vmax.f32 %v1496_v25, 0.0 }
 0x338   : > { %v4756_v28 = vadd.f32 %v4755_v15, %v3593_v22  ;;  %v4825_v29 = vadd.f32 %v4824_v16, %v3594_v23 }
 0x339   : > { %v4619_v30 = vadd.f32 %v4618_v17, %v3607_v26  ;;  %v4688_v31 = vadd.f32 %v4687_v18, %v3608_v27 }
 0x33d   : > { %v1665_v32 = vpop.f32.mrf.mxu2  ;;  %v1834_v33 = vpop.f32.mrf.mxu3 }
 0x33e   : > { %v3609_v34 = vmax.f32 %v1665_v32, 0.0  ;;  %v3610_v35 = vmax.f32 %v1834_v33, 0.0  ;;  %v1330_v36 = vpop.f32.mrf.mxu0  ;;  %v1499_v37 = vpop.f32.mrf.mxu1 }
 0x33f   : > { %v3623_v38 = vmax.f32 %v1330_v36, 0.0  ;;  %v3624_v39 = vmax.f32 %v1499_v37, 0.0 }
 0x340   : > { %v4757_v40 = vadd.f32 %v4756_v28, %v3609_v34  ;;  %v4826_v41 = vadd.f32 %v4825_v29, %v3610_v35 }
 0x341   : > { %v4620_v42 = vadd.f32 %v4619_v30, %v3623_v38  ;;  %v4689_v43 = vadd.f32 %v4688_v31, %v3624_v39  ;;  %5848 = vmatmul.msk.bf16.gmra.mxu0 %vm449_vm1, %v6309_v44  ;;  %5880 = vmatmul.msk.bf16.gmra.mxu1 %vm449_vm1, %v6309_v44  ;;  %v6311_v31 = vld [vmem:[%s6484_s26 + $0xa0] sm:$0xff] }
 0x342   : > { %5912 = vmatmul.msk.bf16.gmra.mxu2 %vm449_vm1, %v6309_v44  ;;  %5944 = vmatmul.msk.bf16.gmra.mxu3 %vm449_vm1, %v6309_v44 }
 0x345   : > { %v1668_v45 = vpop.f32.mrf.mxu2  ;;  %v1837_v46 = vpop.f32.mrf.mxu3 }
 0x346   : > { %v3625_v47 = vmax.f32 %v1668_v45, 0.0  ;;  %v3626_v48 = vmax.f32 %v1837_v46, 0.0  ;;  %v1332_v49 = vpop.f32.mrf.mxu0  ;;  %v1501_v50 = vpop.f32.mrf.mxu1 }
 0x347   : > { %v3639_v51 = vmax.f32 %v1332_v49, 0.0  ;;  %v3640_v52 = vmax.f32 %v1501_v50, 0.0 }
 0x348   : > { %v4758_v53 = vadd.f32 %v4757_v40, %v3625_v47  ;;  %v4827_v54 = vadd.f32 %v4826_v41, %v3626_v48 }
 0x349   : > { %v4621_v55 = vadd.f32 %v4620_v42, %v3639_v51  ;;  %v4690_v56 = vadd.f32 %v4689_v43, %v3640_v52 }
 0x34d   : > { %v1670_v57 = vpop.f32.mrf.mxu2  ;;  %v1839_v58 = vpop.f32.mrf.mxu3 }
 0x34e   : > { %v3641_v59 = vmax.f32 %v1670_v57, 0.0  ;;  %v3642_v60 = vmax.f32 %v1839_v58, 0.0  ;;  %v1335_v61 = vpop.f32.mrf.mxu0  ;;  %v1504_v62 = vpop.f32.mrf.mxu1 }
 0x34f   : > { %v3655_v63 = vmax.f32 %v1335_v61, 0.0  ;;  %v3656_v0 = vmax.f32 %v1504_v62, 0.0 }
 0x350   : > { %v4759_v1 = vadd.f32 %v4758_v53, %v3641_v59  ;;  %v4828_v2 = vadd.f32 %v4827_v54, %v3642_v60 }
 0x351   : > { %v4622_v3 = vadd.f32 %v4621_v55, %v3655_v63  ;;  %v4691_v4 = vadd.f32 %v4690_v56, %v3656_v0  ;;  %5849 = vmatmul.msk.bf16.gmra.mxu0 %vm449_vm1, %v6310_v6  ;;  %5881 = vmatmul.msk.bf16.gmra.mxu1 %vm449_vm1, %v6310_v6  ;;  %v6312_v56 = vld [vmem:[%s6484_s26 + $0xa8] sm:$0xff] }
 0x352   : > { %5913 = vmatmul.msk.bf16.gmra.mxu2 %vm449_vm1, %v6310_v6  ;;  %5945 = vmatmul.msk.bf16.gmra.mxu3 %vm449_vm1, %v6310_v6 }
 0x355   : > { %v1673_v7 = vpop.f32.mrf.mxu2  ;;  %v1842_v8 = vpop.f32.mrf.mxu3 }
 0x356   : > { %v3657_v9 = vmax.f32 %v1673_v7, 0.0  ;;  %v3658_v10 = vmax.f32 %v1842_v8, 0.0  ;;  %v1337_v11 = vpop.f32.mrf.mxu0  ;;  %v1506_v12 = vpop.f32.mrf.mxu1 }
 0x357   : > { %v3671_v13 = vmax.f32 %v1337_v11, 0.0  ;;  %v3672_v14 = vmax.f32 %v1506_v12, 0.0 }
 0x358   : > { %v4760_v15 = vadd.f32 %v4759_v1, %v3657_v9  ;;  %v4829_v16 = vadd.f32 %v4828_v2, %v3658_v10 }
 0x359   : > { %v4623_v17 = vadd.f32 %v4622_v3, %v3671_v13  ;;  %v4692_v18 = vadd.f32 %v4691_v4, %v3672_v14 }
 0x35d   : > { %v1675_v19 = vpop.f32.mrf.mxu2  ;;  %v1844_v20 = vpop.f32.mrf.mxu3 }
 0x35e   : > { %v3673_v21 = vmax.f32 %v1675_v19, 0.0  ;;  %v3674_v22 = vmax.f32 %v1844_v20, 0.0  ;;  %v1340_v23 = vpop.f32.mrf.mxu0  ;;  %v1509_v24 = vpop.f32.mrf.mxu1 }
 0x35f   : > { %v3687_v25 = vmax.f32 %v1340_v23, 0.0  ;;  %v3688_v26 = vmax.f32 %v1509_v24, 0.0 }
 0x360   : > { %v4761_v27 = vadd.f32 %v4760_v15, %v3673_v21  ;;  %v4830_v28 = vadd.f32 %v4829_v16, %v3674_v22 }
 0x361   : > { %v4624_v29 = vadd.f32 %v4623_v17, %v3687_v25  ;;  %v4693_v30 = vadd.f32 %v4692_v18, %v3688_v26  ;;  %5850 = vmatmul.msk.bf16.gmra.mxu0 %vm449_vm1, %v6311_v31  ;;  %5882 = vmatmul.msk.bf16.gmra.mxu1 %vm449_vm1, %v6311_v31  ;;  %v6313_v18 = vld [vmem:[%s6484_s26 + $0xb0] sm:$0xff] }
 0x362   : > { %5914 = vmatmul.msk.bf16.gmra.mxu2 %vm449_vm1, %v6311_v31  ;;  %5946 = vmatmul.msk.bf16.gmra.mxu3 %vm449_vm1, %v6311_v31 }
 0x365   : > { %v1678_v32 = vpop.f32.mrf.mxu2  ;;  %v1847_v33 = vpop.f32.mrf.mxu3 }
 0x366   : > { %v3689_v34 = vmax.f32 %v1678_v32, 0.0  ;;  %v3690_v35 = vmax.f32 %v1847_v33, 0.0  ;;  %v1342_v36 = vpop.f32.mrf.mxu0  ;;  %v1511_v37 = vpop.f32.mrf.mxu1 }
 0x367   : > { %v3703_v38 = vmax.f32 %v1342_v36, 0.0  ;;  %v3704_v39 = vmax.f32 %v1511_v37, 0.0 }
 0x368   : > { %v4762_v40 = vadd.f32 %v4761_v27, %v3689_v34  ;;  %v4831_v41 = vadd.f32 %v4830_v28, %v3690_v35 }
 0x369   : > { %v4625_v42 = vadd.f32 %v4624_v29, %v3703_v38  ;;  %v4694_v43 = vadd.f32 %v4693_v30, %v3704_v39 }
 0x36d   : > { %v1680_v44 = vpop.f32.mrf.mxu2  ;;  %v1849_v45 = vpop.f32.mrf.mxu3 }
 0x36e   : > { %v3705_v46 = vmax.f32 %v1680_v44, 0.0  ;;  %v3706_v47 = vmax.f32 %v1849_v45, 0.0  ;;  %v1345_v48 = vpop.f32.mrf.mxu0  ;;  %v1514_v49 = vpop.f32.mrf.mxu1 }
 0x36f   : > { %v3719_v50 = vmax.f32 %v1345_v48, 0.0  ;;  %v3720_v51 = vmax.f32 %v1514_v49, 0.0 }
 0x370   : > { %v4763_v52 = vadd.f32 %v4762_v40, %v3705_v46  ;;  %v4832_v53 = vadd.f32 %v4831_v41, %v3706_v47 }
 0x371   : > { %v4626_v54 = vadd.f32 %v4625_v42, %v3719_v50  ;;  %v4695_v55 = vadd.f32 %v4694_v43, %v3720_v51  ;;  %5851 = vmatmul.msk.bf16.gmra.mxu0 %vm449_vm1, %v6312_v56  ;;  %5883 = vmatmul.msk.bf16.gmra.mxu1 %vm449_vm1, %v6312_v56  ;;  %v6314_v43 = vld [vmem:[%s6484_s26 + $0xb8] sm:$0xff] }
 0x372   : > { %5915 = vmatmul.msk.bf16.gmra.mxu2 %vm449_vm1, %v6312_v56  ;;  %5947 = vmatmul.msk.bf16.gmra.mxu3 %vm449_vm1, %v6312_v56 }
 0x375   : > { %v1683_v57 = vpop.f32.mrf.mxu2  ;;  %v1852_v58 = vpop.f32.mrf.mxu3 }
 0x376   : > { %v3721_v59 = vmax.f32 %v1683_v57, 0.0  ;;  %v3722_v60 = vmax.f32 %v1852_v58, 0.0  ;;  %v1347_v61 = vpop.f32.mrf.mxu0  ;;  %v1516_v62 = vpop.f32.mrf.mxu1 }
 0x377   : > { %v3735_v63 = vmax.f32 %v1347_v61, 0.0  ;;  %v3736_v0 = vmax.f32 %v1516_v62, 0.0 }
 0x378   : > { %v4764_v1 = vadd.f32 %v4763_v52, %v3721_v59  ;;  %v4833_v2 = vadd.f32 %v4832_v53, %v3722_v60 }
 0x379   : > { %v4627_v3 = vadd.f32 %v4626_v54, %v3735_v63  ;;  %v4696_v4 = vadd.f32 %v4695_v55, %v3736_v0 }
 0x37d   : > { %v1685_v6 = vpop.f32.mrf.mxu2  ;;  %v1854_v7 = vpop.f32.mrf.mxu3 }
 0x37e   : > { %v3737_v8 = vmax.f32 %v1685_v6, 0.0  ;;  %v3738_v9 = vmax.f32 %v1854_v7, 0.0  ;;  %v1350_v10 = vpop.f32.mrf.mxu0  ;;  %v1519_v11 = vpop.f32.mrf.mxu1 }
 0x37f   : > { %v3751_v12 = vmax.f32 %v1350_v10, 0.0  ;;  %v3752_v13 = vmax.f32 %v1519_v11, 0.0 }
 0x380   : > { %v4765_v14 = vadd.f32 %v4764_v1, %v3737_v8  ;;  %v4834_v15 = vadd.f32 %v4833_v2, %v3738_v9 }
 0x381   : > { %v4628_v16 = vadd.f32 %v4627_v3, %v3751_v12  ;;  %v4697_v17 = vadd.f32 %v4696_v4, %v3752_v13  ;;  %5852 = vmatmul.msk.bf16.gmra.mxu0 %vm449_vm1, %v6313_v18  ;;  %5884 = vmatmul.msk.bf16.gmra.mxu1 %vm449_vm1, %v6313_v18  ;;  %v6315_v4 = vld [vmem:[%s6484_s26 + $0xc0] sm:$0xff] }
 0x382   : > { %5916 = vmatmul.msk.bf16.gmra.mxu2 %vm449_vm1, %v6313_v18  ;;  %5948 = vmatmul.msk.bf16.gmra.mxu3 %vm449_vm1, %v6313_v18 }
 0x385   : > { %v1688_v19 = vpop.f32.mrf.mxu2  ;;  %v1857_v20 = vpop.f32.mrf.mxu3 }
 0x386   : > { %v3753_v21 = vmax.f32 %v1688_v19, 0.0  ;;  %v3754_v22 = vmax.f32 %v1857_v20, 0.0  ;;  %v1352_v23 = vpop.f32.mrf.mxu0  ;;  %v1521_v24 = vpop.f32.mrf.mxu1 }
 0x387   : > { %v3767_v25 = vmax.f32 %v1352_v23, 0.0  ;;  %v3768_v26 = vmax.f32 %v1521_v24, 0.0 }
 0x388   : > { %v4766_v27 = vadd.f32 %v4765_v14, %v3753_v21  ;;  %v4835_v28 = vadd.f32 %v4834_v15, %v3754_v22 }
 0x389   : > { %v4629_v29 = vadd.f32 %v4628_v16, %v3767_v25  ;;  %v4698_v30 = vadd.f32 %v4697_v17, %v3768_v26 }
 0x38d   : > { %v1690_v31 = vpop.f32.mrf.mxu2  ;;  %v1859_v32 = vpop.f32.mrf.mxu3 }
 0x38e   : > { %v3769_v33 = vmax.f32 %v1690_v31, 0.0  ;;  %v3770_v34 = vmax.f32 %v1859_v32, 0.0  ;;  %v1355_v35 = vpop.f32.mrf.mxu0  ;;  %v1524_v36 = vpop.f32.mrf.mxu1 }
 0x38f   : > { %v3783_v37 = vmax.f32 %v1355_v35, 0.0  ;;  %v3784_v38 = vmax.f32 %v1524_v36, 0.0 }
 0x390   : > { %v4767_v39 = vadd.f32 %v4766_v27, %v3769_v33  ;;  %v4836_v40 = vadd.f32 %v4835_v28, %v3770_v34 }
 0x391   : > { %v4630_v41 = vadd.f32 %v4629_v29, %v3783_v37  ;;  %v4699_v42 = vadd.f32 %v4698_v30, %v3784_v38  ;;  %5853 = vmatmul.msk.bf16.gmra.mxu0 %vm449_vm1, %v6314_v43  ;;  %5885 = vmatmul.msk.bf16.gmra.mxu1 %vm449_vm1, %v6314_v43  ;;  %v6316_v30 = vld [vmem:[%s6484_s26 + $0xc8] sm:$0xff] }
 0x392   : > { %5917 = vmatmul.msk.bf16.gmra.mxu2 %vm449_vm1, %v6314_v43  ;;  %5949 = vmatmul.msk.bf16.gmra.mxu3 %vm449_vm1, %v6314_v43 }
 0x395   : > { %v1693_v44 = vpop.f32.mrf.mxu2  ;;  %v1862_v45 = vpop.f32.mrf.mxu3 }
 0x396   : > { %v3785_v46 = vmax.f32 %v1693_v44, 0.0  ;;  %v3786_v47 = vmax.f32 %v1862_v45, 0.0  ;;  %v1357_v48 = vpop.f32.mrf.mxu0  ;;  %v1526_v49 = vpop.f32.mrf.mxu1 }
 0x397   : > { %v3799_v50 = vmax.f32 %v1357_v48, 0.0  ;;  %v3800_v51 = vmax.f32 %v1526_v49, 0.0 }
 0x398   : > { %v4768_v52 = vadd.f32 %v4767_v39, %v3785_v46  ;;  %v4837_v53 = vadd.f32 %v4836_v40, %v3786_v47 }
 0x399   : > { %v4631_v54 = vadd.f32 %v4630_v41, %v3799_v50  ;;  %v4700_v55 = vadd.f32 %v4699_v42, %v3800_v51 }
 0x39d   : > { %v1695_v56 = vpop.f32.mrf.mxu2  ;;  %v1864_v57 = vpop.f32.mrf.mxu3 }
 0x39e   : > { %v3801_v58 = vmax.f32 %v1695_v56, 0.0  ;;  %v3802_v59 = vmax.f32 %v1864_v57, 0.0  ;;  %v1360_v60 = vpop.f32.mrf.mxu0  ;;  %v1529_v61 = vpop.f32.mrf.mxu1 }
 0x39f   : > { %v3815_v62 = vmax.f32 %v1360_v60, 0.0  ;;  %v3816_v63 = vmax.f32 %v1529_v61, 0.0 }
 0x3a0   : > { %v4769_v0 = vadd.f32 %v4768_v52, %v3801_v58  ;;  %v4838_v1 = vadd.f32 %v4837_v53, %v3802_v59 }
 0x3a1   : > { %v4632_v2 = vadd.f32 %v4631_v54, %v3815_v62  ;;  %v4701_v3 = vadd.f32 %v4700_v55, %v3816_v63  ;;  %5854 = vmatmul.msk.bf16.gmra.mxu0 %vm449_vm1, %v6315_v4  ;;  %5886 = vmatmul.msk.bf16.gmra.mxu1 %vm449_vm1, %v6315_v4  ;;  %v6317_v55 = vld [vmem:[%s6484_s26 + $0xd0] sm:$0xff] }
 0x3a2   : > { %5918 = vmatmul.msk.bf16.gmra.mxu2 %vm449_vm1, %v6315_v4  ;;  %5950 = vmatmul.msk.bf16.gmra.mxu3 %vm449_vm1, %v6315_v4 }
 0x3a5   : > { %v1698_v6 = vpop.f32.mrf.mxu2  ;;  %v1867_v7 = vpop.f32.mrf.mxu3 }
 0x3a6   : > { %v3817_v8 = vmax.f32 %v1698_v6, 0.0  ;;  %v3818_v9 = vmax.f32 %v1867_v7, 0.0  ;;  %v1362_v10 = vpop.f32.mrf.mxu0  ;;  %v1531_v11 = vpop.f32.mrf.mxu1 }
 0x3a7   : > { %v3831_v12 = vmax.f32 %v1362_v10, 0.0  ;;  %v3832_v13 = vmax.f32 %v1531_v11, 0.0 }
 0x3a8   : > { %v4770_v14 = vadd.f32 %v4769_v0, %v3817_v8  ;;  %v4839_v15 = vadd.f32 %v4838_v1, %v3818_v9 }
 0x3a9   : > { %v4633_v16 = vadd.f32 %v4632_v2, %v3831_v12  ;;  %v4702_v17 = vadd.f32 %v4701_v3, %v3832_v13 }
 0x3ad   : > { %v1700_v18 = vpop.f32.mrf.mxu2  ;;  %v1869_v19 = vpop.f32.mrf.mxu3 }
 0x3ae   : > { %v3833_v20 = vmax.f32 %v1700_v18, 0.0  ;;  %v3834_v21 = vmax.f32 %v1869_v19, 0.0  ;;  %v1365_v22 = vpop.f32.mrf.mxu0  ;;  %v1534_v23 = vpop.f32.mrf.mxu1 }
 0x3af   : > { %v3847_v24 = vmax.f32 %v1365_v22, 0.0  ;;  %v3848_v25 = vmax.f32 %v1534_v23, 0.0 }
 0x3b0   : > { %v4771_v26 = vadd.f32 %v4770_v14, %v3833_v20  ;;  %v4840_v27 = vadd.f32 %v4839_v15, %v3834_v21 }
 0x3b1   : > { %v4634_v28 = vadd.f32 %v4633_v16, %v3847_v24  ;;  %v4703_v29 = vadd.f32 %v4702_v17, %v3848_v25  ;;  %5855 = vmatmul.msk.bf16.gmra.mxu0 %vm449_vm1, %v6316_v30  ;;  %5887 = vmatmul.msk.bf16.gmra.mxu1 %vm449_vm1, %v6316_v30  ;;  %v6318_v17 = vld [vmem:[%s6484_s26 + $0xd8] sm:$0xff] }
 0x3b2   : > { %5919 = vmatmul.msk.bf16.gmra.mxu2 %vm449_vm1, %v6316_v30  ;;  %5951 = vmatmul.msk.bf16.gmra.mxu3 %vm449_vm1, %v6316_v30 }
 0x3b5   : > { %v1703_v31 = vpop.f32.mrf.mxu2  ;;  %v1872_v32 = vpop.f32.mrf.mxu3 }
 0x3b6   : > { %v3849_v33 = vmax.f32 %v1703_v31, 0.0  ;;  %v3850_v34 = vmax.f32 %v1872_v32, 0.0  ;;  %v1367_v35 = vpop.f32.mrf.mxu0  ;;  %v1536_v36 = vpop.f32.mrf.mxu1 }
 0x3b7   : > { %v3863_v37 = vmax.f32 %v1367_v35, 0.0  ;;  %v3864_v38 = vmax.f32 %v1536_v36, 0.0 }
 0x3b8   : > { %v4772_v39 = vadd.f32 %v4771_v26, %v3849_v33  ;;  %v4841_v40 = vadd.f32 %v4840_v27, %v3850_v34 }
 0x3b9   : > { %v4635_v41 = vadd.f32 %v4634_v28, %v3863_v37  ;;  %v4704_v42 = vadd.f32 %v4703_v29, %v3864_v38 }
 0x3bd   : > { %v1705_v43 = vpop.f32.mrf.mxu2  ;;  %v1874_v44 = vpop.f32.mrf.mxu3 }
 0x3be   : > { %v3865_v45 = vmax.f32 %v1705_v43, 0.0  ;;  %v3866_v46 = vmax.f32 %v1874_v44, 0.0  ;;  %v1370_v47 = vpop.f32.mrf.mxu0  ;;  %v1539_v48 = vpop.f32.mrf.mxu1 }
 0x3bf   : > { %v3879_v49 = vmax.f32 %v1370_v47, 0.0  ;;  %v3880_v50 = vmax.f32 %v1539_v48, 0.0 }
 0x3c0   : > { %v4773_v51 = vadd.f32 %v4772_v39, %v3865_v45  ;;  %v4842_v52 = vadd.f32 %v4841_v40, %v3866_v46 }
 0x3c1   : > { %v4636_v53 = vadd.f32 %v4635_v41, %v3879_v49  ;;  %v4705_v54 = vadd.f32 %v4704_v42, %v3880_v50  ;;  %5856 = vmatmul.msk.bf16.gmra.mxu0 %vm449_vm1, %v6317_v55  ;;  %5888 = vmatmul.msk.bf16.gmra.mxu1 %vm449_vm1, %v6317_v55  ;;  %v6319_v42 = vld [vmem:[%s6484_s26 + $0xe0] sm:$0xff] }
 0x3c2   : > { %5920 = vmatmul.msk.bf16.gmra.mxu2 %vm449_vm1, %v6317_v55  ;;  %5952 = vmatmul.msk.bf16.gmra.mxu3 %vm449_vm1, %v6317_v55 }
 0x3c5   : > { %v1708_v56 = vpop.f32.mrf.mxu2  ;;  %v1877_v57 = vpop.f32.mrf.mxu3 }
 0x3c6   : > { %v3881_v58 = vmax.f32 %v1708_v56, 0.0  ;;  %v3882_v59 = vmax.f32 %v1877_v57, 0.0  ;;  %v1372_v60 = vpop.f32.mrf.mxu0  ;;  %v1541_v61 = vpop.f32.mrf.mxu1 }
 0x3c7   : > { %v3895_v62 = vmax.f32 %v1372_v60, 0.0  ;;  %v3896_v63 = vmax.f32 %v1541_v61, 0.0 }
 0x3c8   : > { %v4774_v0 = vadd.f32 %v4773_v51, %v3881_v58  ;;  %v4843_v1 = vadd.f32 %v4842_v52, %v3882_v59 }
 0x3c9   : > { %v4637_v2 = vadd.f32 %v4636_v53, %v3895_v62  ;;  %v4706_v3 = vadd.f32 %v4705_v54, %v3896_v63 }
 0x3cd   : > { %v1710_v4 = vpop.f32.mrf.mxu2  ;;  %v1879_v6 = vpop.f32.mrf.mxu3 }
 0x3ce   : > { %v3897_v7 = vmax.f32 %v1710_v4, 0.0  ;;  %v3898_v8 = vmax.f32 %v1879_v6, 0.0  ;;  %v1375_v9 = vpop.f32.mrf.mxu0  ;;  %v1544_v10 = vpop.f32.mrf.mxu1 }
 0x3cf   : > { %v3911_v11 = vmax.f32 %v1375_v9, 0.0  ;;  %v3912_v12 = vmax.f32 %v1544_v10, 0.0 }
 0x3d0   : > { %v4775_v13 = vadd.f32 %v4774_v0, %v3897_v7  ;;  %v4844_v14 = vadd.f32 %v4843_v1, %v3898_v8 }
 0x3d1   : > { %v4638_v15 = vadd.f32 %v4637_v2, %v3911_v11  ;;  %v4707_v16 = vadd.f32 %v4706_v3, %v3912_v12  ;;  %5857 = vmatmul.msk.bf16.gmra.mxu0 %vm449_vm1, %v6318_v17  ;;  %5889 = vmatmul.msk.bf16.gmra.mxu1 %vm449_vm1, %v6318_v17  ;;  %v6320_v3 = vld [vmem:[%s6484_s26 + $0xe8] sm:$0xff] }
 0x3d2   : > { %5921 = vmatmul.msk.bf16.gmra.mxu2 %vm449_vm1, %v6318_v17  ;;  %5953 = vmatmul.msk.bf16.gmra.mxu3 %vm449_vm1, %v6318_v17 }
 0x3d5   : > { %v1713_v18 = vpop.f32.mrf.mxu2  ;;  %v1882_v19 = vpop.f32.mrf.mxu3 }
 0x3d6   : > { %v3913_v20 = vmax.f32 %v1713_v18, 0.0  ;;  %v3914_v21 = vmax.f32 %v1882_v19, 0.0  ;;  %v1377_v22 = vpop.f32.mrf.mxu0  ;;  %v1546_v23 = vpop.f32.mrf.mxu1 }
 0x3d7   : > { %v3927_v24 = vmax.f32 %v1377_v22, 0.0  ;;  %v3928_v25 = vmax.f32 %v1546_v23, 0.0 }
 0x3d8   : > { %v4776_v26 = vadd.f32 %v4775_v13, %v3913_v20  ;;  %v4845_v27 = vadd.f32 %v4844_v14, %v3914_v21 }
 0x3d9   : > { %v4639_v28 = vadd.f32 %v4638_v15, %v3927_v24  ;;  %v4708_v29 = vadd.f32 %v4707_v16, %v3928_v25 }
 0x3dd   : > { %v1715_v30 = vpop.f32.mrf.mxu2  ;;  %v1884_v31 = vpop.f32.mrf.mxu3 }
 0x3de   : > { %v3929_v32 = vmax.f32 %v1715_v30, 0.0  ;;  %v3930_v33 = vmax.f32 %v1884_v31, 0.0  ;;  %v1380_v34 = vpop.f32.mrf.mxu0  ;;  %v1549_v35 = vpop.f32.mrf.mxu1  ;;  %v248_v30 = vld [vmem:[%s7344_s1 + $0x38] sm:$0xff] }
 0x3df   : > { %v3943_v36 = vmax.f32 %v1380_v34, 0.0  ;;  %v3944_v37 = vmax.f32 %v1549_v35, 0.0  ;;  %v431_v31 = vunpack.c.l.b16 %v248_v30 }
 0x3e0   : > { %v4777_v38 = vadd.f32 %v4776_v26, %v3929_v32  ;;  %v4846_v39 = vadd.f32 %v4845_v27, %v3930_v33  ;;  %v432_v32 = vunpack.c.h.b16 %v248_v30  ;;  %v6323_v30 = vld [vmem:[%s6484_s26] sm:$0xff] }
 0x3e1   : > { %v4640_v40 = vadd.f32 %v4639_v28, %v3943_v36  ;;  %v4709_v41 = vadd.f32 %v4708_v29, %v3944_v37  ;;  %5858 = vmatmul.msk.bf16.gmra.mxu0 %vm449_vm1, %v6319_v42  ;;  %5890 = vmatmul.msk.bf16.gmra.mxu1 %vm449_vm1, %v6319_v42  ;;  %v6321_v29 = vld [vmem:[%s6484_s26 + $0xf0] sm:$0xff]  ;;  %v447_v35 = vpack.c.b16 %v431_v31, %v431_v31 }
 0x3e2   : > { %5922 = vmatmul.msk.bf16.gmra.mxu2 %vm449_vm1, %v6319_v42  ;;  %5954 = vmatmul.msk.bf16.gmra.mxu3 %vm449_vm1, %v6319_v42  ;;  %v448_v36 = vpack.c.b16 %v432_v32, %v432_v32 }
 0x3e5   : > { %v1718_v43 = vpop.f32.mrf.mxu2  ;;  %v1887_v44 = vpop.f32.mrf.mxu3 }
 0x3e6   : > { %v3945_v45 = vmax.f32 %v1718_v43, 0.0  ;;  %v3946_v46 = vmax.f32 %v1887_v44, 0.0  ;;  %v1382_v47 = vpop.f32.mrf.mxu0  ;;  %v1551_v48 = vpop.f32.mrf.mxu1  ;;  %v590_v43 = vsel %vm546_vm0, %v447_v35, 0  ;;  %v593_v44 = vsel %vm546_vm0, %v448_v36, 0 }
 0x3e7   : > { %v3959_v49 = vmax.f32 %v1382_v47, 0.0  ;;  %v3960_v50 = vmax.f32 %v1551_v48, 0.0  ;;  %2968 = vmatpush.bf16.msrb.mxu2 %v590_v43  ;;  %3137 = vmatpush.bf16.msrb.mxu3 %v593_v44 }
 0x3e8   : > { %v4778_v51 = vadd.f32 %v4777_v38, %v3945_v45  ;;  %v4847_v52 = vadd.f32 %v4846_v39, %v3946_v46 }
 0x3e9   : > { %v4641_v53 = vadd.f32 %v4640_v40, %v3959_v49  ;;  %v4710_v54 = vadd.f32 %v4709_v41, %v3960_v50  ;;  %v247_v49 = vld [vmem:[%s7344_s1 + $0x30] sm:$0xff] }
 0x3ea   : > { %v429_v50 = vunpack.c.l.b16 %v247_v49 }
 0x3ed   : > { %v1720_v55 = vpop.f32.mrf.mxu2  ;;  %v1889_v56 = vpop.f32.mrf.mxu3 }
 0x3ee   : > { %v3961_v57 = vmax.f32 %v1720_v55, 0.0  ;;  %v3962_v58 = vmax.f32 %v1889_v56, 0.0  ;;  %v1385_v59 = vpop.f32.mrf.mxu0  ;;  %v1554_v60 = vpop.f32.mrf.mxu1 }
 0x3ef   : > { %v3975_v61 = vmax.f32 %v1385_v59, 0.0  ;;  %v3976_v62 = vmax.f32 %v1554_v60, 0.0 }
 0x3f0   : > { %v4779_v63 = vadd.f32 %v4778_v51, %v3961_v57  ;;  %v4848_v0 = vadd.f32 %v4847_v52, %v3962_v58  ;;  %v430_v51 = vunpack.c.h.b16 %v247_v49  ;;  %v445_v52 = vpack.c.b16 %v429_v50, %v429_v50 }
 0x3f1   : > { %v4642_v1 = vadd.f32 %v4641_v53, %v3975_v61  ;;  %v4711_v2 = vadd.f32 %v4710_v54, %v3976_v62  ;;  %5859 = vmatmul.msk.bf16.gmra.mxu0 %vm449_vm1, %v6320_v3  ;;  %5891 = vmatmul.msk.bf16.gmra.mxu1 %vm449_vm1, %v6320_v3 }
 0x3f2   : > { %5923 = vmatmul.msk.bf16.gmra.mxu2 %vm449_vm1, %v6320_v3  ;;  %5955 = vmatmul.msk.bf16.gmra.mxu3 %vm449_vm1, %v6320_v3  ;;  %v446_v53 = vpack.c.b16 %v430_v51, %v430_v51  ;;  %v584_v60 = vsel %vm546_vm0, %v445_v52, 0 }
 0x3f3   : > { %2630 = vmatpush.bf16.msrb.mxu0 %v584_v60 }
 0x3f4   : > { %v587_v61 = vsel %vm546_vm0, %v446_v53, 0 }
 0x3f5   : > { %v1723_v4 = vpop.f32.mrf.mxu2  ;;  %v1892_v6 = vpop.f32.mrf.mxu3  ;;  %2799 = vmatpush.bf16.msrb.mxu1 %v587_v61 }
 0x3f6   : > { %v3977_v7 = vmax.f32 %v1723_v4, 0.0  ;;  %v3978_v8 = vmax.f32 %v1892_v6, 0.0  ;;  %v1387_v9 = vpop.f32.mrf.mxu0  ;;  %v1556_v10 = vpop.f32.mrf.mxu1  ;;  %v6322_v4 = vld [vmem:[%s6484_s26 + $0xf8] sm:$0xff] }
 0x3f7   : > { %v3991_v11 = vmax.f32 %v1387_v9, 0.0  ;;  %v3992_v12 = vmax.f32 %v1556_v10, 0.0 }
 0x3f8   : > { %v4780_v13 = vadd.f32 %v4779_v63, %v3977_v7  ;;  %v4849_v14 = vadd.f32 %v4848_v0, %v3978_v8 }
 0x3f9   : > { %v4643_v15 = vadd.f32 %v4642_v1, %v3991_v11  ;;  %v4712_v16 = vadd.f32 %v4711_v2, %v3992_v12 }
 0x3fd   : > { %v1725_v17 = vpop.f32.mrf.mxu2  ;;  %v1894_v18 = vpop.f32.mrf.mxu3 }
 0x3fe   : > { %v3993_v19 = vmax.f32 %v1725_v17, 0.0  ;;  %v3994_v20 = vmax.f32 %v1894_v18, 0.0  ;;  %v1390_v21 = vpop.f32.mrf.mxu0  ;;  %v1559_v22 = vpop.f32.mrf.mxu1 }
 0x3ff   : > { %v4007_v23 = vmax.f32 %v1390_v21, 0.0  ;;  %v4008_v24 = vmax.f32 %v1559_v22, 0.0 }
 0x400   : > { %v4781_v25 = vadd.f32 %v4780_v13, %v3993_v19  ;;  %v4850_v26 = vadd.f32 %v4849_v14, %v3994_v20 }
 0x401   : > { %v4644_v27 = vadd.f32 %v4643_v15, %v4007_v23  ;;  %v4713_v28 = vadd.f32 %v4712_v16, %v4008_v24  ;;  %5860 = vmatmul.msk.bf16.gmra.mxu0 %vm449_vm1, %v6321_v29  ;;  %5892 = vmatmul.msk.bf16.gmra.mxu1 %vm449_vm1, %v6321_v29 }
 0x402   : > { %5924 = vmatmul.msk.bf16.gmra.mxu2 %vm449_vm1, %v6321_v29  ;;  %5956 = vmatmul.msk.bf16.gmra.mxu3 %vm449_vm1, %v6321_v29 }
 0x405   : > { %v1728_v33 = vpop.f32.mrf.mxu2  ;;  %v1897_v34 = vpop.f32.mrf.mxu3 }
 0x406   : > { %v4009_v37 = vmax.f32 %v1728_v33, 0.0  ;;  %v4010_v38 = vmax.f32 %v1897_v34, 0.0  ;;  %v1392_v39 = vpop.f32.mrf.mxu0  ;;  %v1561_v40 = vpop.f32.mrf.mxu1 }
 0x407   : > { %v4023_v41 = vmax.f32 %v1392_v39, 0.0  ;;  %v4024_v42 = vmax.f32 %v1561_v40, 0.0 }
 0x408   : > { %v4782_v45 = vadd.f32 %v4781_v25, %v4009_v37  ;;  %v4851_v46 = vadd.f32 %v4850_v26, %v4010_v38 }
 0x409   : > { %v4645_v47 = vadd.f32 %v4644_v27, %v4023_v41  ;;  %v4714_v48 = vadd.f32 %v4713_v28, %v4024_v42 }
 0x40d   : > { %v1730_v54 = vpop.f32.mrf.mxu2  ;;  %v1899_v55 = vpop.f32.mrf.mxu3 }
 0x40e   : > { %v4025_v56 = vmax.f32 %v1730_v54, 0.0  ;;  %v4026_v57 = vmax.f32 %v1899_v55, 0.0  ;;  %v1395_v58 = vpop.f32.mrf.mxu0  ;;  %v1564_v59 = vpop.f32.mrf.mxu1  ;;  %v6324_v55 = vld [vmem:[%s6484_s26 + $0x8] sm:$0xff] }
 0x40f   : > { %v4039_v62 = vmax.f32 %v1395_v58, 0.0  ;;  %v4040_v63 = vmax.f32 %v1564_v59, 0.0 }
 0x410   : > { %v4783_v0 = vadd.f32 %v4782_v45, %v4025_v56  ;;  %v4852_v1 = vadd.f32 %v4851_v46, %v4026_v57 }
 0x411   : > { %v4646_v2 = vadd.f32 %v4645_v47, %v4039_v62  ;;  %v4715_v3 = vadd.f32 %v4714_v48, %v4040_v63  ;;  %5861 = vmatmul.msk.bf16.gmra.mxu0 %vm449_vm1, %v6322_v4  ;;  %5893 = vmatmul.msk.bf16.gmra.mxu1 %vm449_vm1, %v6322_v4 }
 0x412   : > { %5925 = vmatmul.msk.bf16.gmra.mxu2 %vm449_vm1, %v6322_v4  ;;  %5957 = vmatmul.msk.bf16.gmra.mxu3 %vm449_vm1, %v6322_v4 }
 0x415   : > { %v1733_v6 = vpop.f32.mrf.mxu2  ;;  %v1902_v7 = vpop.f32.mrf.mxu3 }
 0x416   : > { %v4041_v8 = vmax.f32 %v1733_v6, 0.0  ;;  %v4042_v9 = vmax.f32 %v1902_v7, 0.0  ;;  %v1397_v10 = vpop.f32.mrf.mxu0  ;;  %v1566_v11 = vpop.f32.mrf.mxu1 }
 0x417   : > { %v4055_v12 = vmax.f32 %v1397_v10, 0.0  ;;  %v4056_v13 = vmax.f32 %v1566_v11, 0.0 }
 0x418   : > { %v4784_v14 = vadd.f32 %v4783_v0, %v4041_v8  ;;  %v4853_v15 = vadd.f32 %v4852_v1, %v4042_v9 }
 0x419   : > { %v4647_v16 = vadd.f32 %v4646_v2, %v4055_v12  ;;  %v4716_v17 = vadd.f32 %v4715_v3, %v4056_v13 }
 0x41d   : > { %v1735_v18 = vpop.f32.mrf.mxu2  ;;  %v1904_v19 = vpop.f32.mrf.mxu3 }
 0x41e   : > { %v4057_v20 = vmax.f32 %v1735_v18, 0.0  ;;  %v4058_v21 = vmax.f32 %v1904_v19, 0.0  ;;  %v1400_v22 = vpop.f32.mrf.mxu0  ;;  %v1569_v23 = vpop.f32.mrf.mxu1 }
 0x41f   : > { %v4071_v24 = vmax.f32 %v1400_v22, 0.0  ;;  %v4072_v25 = vmax.f32 %v1569_v23, 0.0 }
 0x420   : > { %v4785_v26 = vadd.f32 %v4784_v14, %v4057_v20  ;;  %v4854_v27 = vadd.f32 %v4853_v15, %v4058_v21 }
 0x421   : > { %v4648_v28 = vadd.f32 %v4647_v16, %v4071_v24  ;;  %v4717_v29 = vadd.f32 %v4716_v17, %v4072_v25  ;;  %5958 = vmatmul.msk.bf16.vlgmr.msra.gmra.mxu0 %vm449_vm1, %v6323_v30  ;;  %5990 = vmatmul.msk.bf16.vlgmr.msra.gmra.mxu1 %vm449_vm1, %v6323_v30  ;;  %v6325_v17 = vld [vmem:[%s6484_s26 + $0x10] sm:$0xff] }
 0x422   : > { %6022 = vmatmul.msk.bf16.vlgmr.msra.gmra.mxu2 %vm449_vm1, %v6323_v30  ;;  %6054 = vmatmul.msk.bf16.vlgmr.msra.gmra.mxu3 %vm449_vm1, %v6323_v30  ;;  %v6326_v30 = vld [vmem:[%s6484_s26 + $0x18] sm:$0xff] }
 0x425   : > { %v1738_v31 = vpop.f32.mrf.mxu2  ;;  %v1907_v32 = vpop.f32.mrf.mxu3 }
 0x426   : > { %v4073_v33 = vmax.f32 %v1738_v31, 0.0  ;;  %v4074_v34 = vmax.f32 %v1907_v32, 0.0  ;;  %v1402_v35 = vpop.f32.mrf.mxu0  ;;  %v1571_v36 = vpop.f32.mrf.mxu1 }
 0x427   : > { %v4087_v37 = vmax.f32 %v1402_v35, 0.0  ;;  %v4088_v38 = vmax.f32 %v1571_v36, 0.0 }
 0x428   : > { %v4786_v39 = vadd.f32 %v4785_v26, %v4073_v33  ;;  %v4855_v40 = vadd.f32 %v4854_v27, %v4074_v34 }
 0x429   : > { %v4649_v41 = vadd.f32 %v4648_v28, %v4087_v37  ;;  %v4718_v42 = vadd.f32 %v4717_v29, %v4088_v38 }
 0x42d   : > { %v1740_v43 = vpop.f32.mrf.mxu2  ;;  %v1909_v44 = vpop.f32.mrf.mxu3 }
 0x42e   : > { %v4089_v45 = vmax.f32 %v1740_v43, 0.0  ;;  %v4090_v46 = vmax.f32 %v1909_v44, 0.0  ;;  %v1405_v47 = vpop.f32.mrf.mxu0  ;;  %v1574_v48 = vpop.f32.mrf.mxu1 }
 0x42f   : > { %v4103_v49 = vmax.f32 %v1405_v47, 0.0  ;;  %v4104_v50 = vmax.f32 %v1574_v48, 0.0  ;;  %v6328_v48 = vld [vmem:[%s6484_s26 + $0x28] sm:$0xff] }
 0x430   : > { %v4787_v51 = vadd.f32 %v4786_v39, %v4089_v45  ;;  %v4856_v52 = vadd.f32 %v4855_v40, %v4090_v46  ;;  %v6327_v39 = vld [vmem:[%s6484_s26 + $0x20] sm:$0xff] }
 0x431   : > { %v4650_v53 = vadd.f32 %v4649_v41, %v4103_v49  ;;  %v4719_v54 = vadd.f32 %v4718_v42, %v4104_v50  ;;  %5959 = vmatmul.msk.bf16.gmra.mxu0 %vm449_vm1, %v6324_v55  ;;  %5991 = vmatmul.msk.bf16.gmra.mxu1 %vm449_vm1, %v6324_v55 }
 0x432   : > { %6023 = vmatmul.msk.bf16.gmra.mxu2 %vm449_vm1, %v6324_v55  ;;  %6055 = vmatmul.msk.bf16.gmra.mxu3 %vm449_vm1, %v6324_v55 }
 0x435   : > { %v1743_v56 = vpop.f32.mrf.mxu2  ;;  %v1912_v57 = vpop.f32.mrf.mxu3 }
 0x436   : > { %v4105_v58 = vmax.f32 %v1743_v56, 0.0  ;;  %v4106_v59 = vmax.f32 %v1912_v57, 0.0  ;;  %v1407_v60 = vpop.f32.mrf.mxu0  ;;  %v1576_v61 = vpop.f32.mrf.mxu1 }
 0x437   : > { %v4119_v62 = vmax.f32 %v1407_v60, 0.0  ;;  %v4120_v63 = vmax.f32 %v1576_v61, 0.0 }
 0x438   : > { %v4788_v0 = vadd.f32 %v4787_v51, %v4105_v58  ;;  %v4857_v1 = vadd.f32 %v4856_v52, %v4106_v59  ;;  %v6329_v59 = vld [vmem:[%s6484_s26 + $0x30] sm:$0xff] }
 0x439   : > { %v4651_v2 = vadd.f32 %v4650_v53, %v4119_v62  ;;  %v4720_v3 = vadd.f32 %v4719_v54, %v4120_v63 }
 0x43d   : > { %v1745_v4 = vpop.f32.mrf.mxu2  ;;  %v1914_v6 = vpop.f32.mrf.mxu3 }
 0x43e   : > { %v4121_v7 = vmax.f32 %v1745_v4, 0.0  ;;  %v4122_v8 = vmax.f32 %v1914_v6, 0.0  ;;  %v1410_v9 = vpop.f32.mrf.mxu0  ;;  %v1579_v10 = vpop.f32.mrf.mxu1 }
 0x43f   : > { %v4135_v11 = vmax.f32 %v1410_v9, 0.0  ;;  %v4136_v12 = vmax.f32 %v1579_v10, 0.0 }
 0x440   : > { %v4789_v13 = vadd.f32 %v4788_v0, %v4121_v7  ;;  %v4858_v14 = vadd.f32 %v4857_v1, %v4122_v8 }
 0x441   : > { %v6862_v15 = vadd.f32 %v4651_v2, %v4135_v11  ;;  %v6864_v16 = vadd.f32 %v4720_v3, %v4136_v12  ;;  %5960 = vmatmul.msk.bf16.gmra.mxu0 %vm449_vm1, %v6325_v17  ;;  %5992 = vmatmul.msk.bf16.gmra.mxu1 %vm449_vm1, %v6325_v17 }
 0x442   : > { %6024 = vmatmul.msk.bf16.gmra.mxu2 %vm449_vm1, %v6325_v17  ;;  %6056 = vmatmul.msk.bf16.gmra.mxu3 %vm449_vm1, %v6325_v17 }
 0x445   : > { %v1748_v18 = vpop.f32.mrf.mxu2  ;;  %v1917_v19 = vpop.f32.mrf.mxu3 }
 0x446   : > { %v4137_v20 = vmax.f32 %v1748_v18, 0.0  ;;  %v4138_v21 = vmax.f32 %v1917_v19, 0.0  ;;  %v1412_v22 = vpop.f32.mrf.mxu0  ;;  %v1581_v23 = vpop.f32.mrf.mxu1 }
 0x447   : > { %v4151_v57 = vmax.f32 %v1412_v22, 0.0  ;;  %v4152_v58 = vmax.f32 %v1581_v23, 0.0 }
 0x448   : > { %v6871_v24 = vadd.f32 %v4789_v13, %v4137_v20  ;;  %v6873_v25 = vadd.f32 %v4858_v14, %v4138_v21 }
 0x449   : > { %v4653_v62 = vadd.f32 %v6862_v15, %v4151_v57  ;;  %v4722_v63 = vadd.f32 %v6864_v16, %v4152_v58 }
 0x44d   : > { %v6875_v26 = vpop.f32.mrf.mxu2  ;;  %v6877_v27 = vpop.f32.mrf.mxu3 }
 0x44e   : > { %v1415_v28 = vpop.f32.mrf.mxu0  ;;  %v1584_v29 = vpop.f32.mrf.mxu1  ;;  %v4153_v11 = vmax.f32 %v6875_v26, 0.0  ;;  %v4154_v12 = vmax.f32 %v6877_v27, 0.0 }
 0x44f   : > { %v4167_v60 = vmax.f32 %v1415_v28, 0.0  ;;  %v4168_v61 = vmax.f32 %v1584_v29, 0.0 }
 0x450   : > { %v4791_v23 = vadd.f32 %v6871_v24, %v4153_v11  ;;  %v4860_v26 = vadd.f32 %v6873_v25, %v4154_v12 }
 0x451   : > { %5961 = vmatmul.msk.bf16.gmra.mxu0 %vm449_vm1, %v6326_v30  ;;  %5993 = vmatmul.msk.bf16.gmra.mxu1 %vm449_vm1, %v6326_v30  ;;  %v4654_v7 = vadd.f32 %v4653_v62, %v4167_v60  ;;  %v4723_v8 = vadd.f32 %v4722_v63, %v4168_v61 }
 0x452   : > { %6025 = vmatmul.msk.bf16.gmra.mxu2 %vm449_vm1, %v6326_v30  ;;  %6057 = vmatmul.msk.bf16.gmra.mxu3 %vm449_vm1, %v6326_v30 }
 0x455   : > { %v6884_v31 = vpop.f32.mrf.mxu2  ;;  %v6886_v32 = vpop.f32.mrf.mxu3 }
 0x456   : > { %v1417_v33 = vpop.f32.mrf.mxu0  ;;  %v1586_v34 = vpop.f32.mrf.mxu1  ;;  %v4169_v17 = vmax.f32 %v6884_v31, 0.0  ;;  %v4170_v18 = vmax.f32 %v6886_v32, 0.0 }
 0x457   : > { %v4183_v0 = vmax.f32 %v1417_v33, 0.0  ;;  %v4184_v1 = vmax.f32 %v1586_v34, 0.0 }
 0x459   : > { %v4655_v13 = vadd.f32 %v4654_v7, %v4183_v0  ;;  %v4724_v14 = vadd.f32 %v4723_v8, %v4184_v1 }
 0x45d   : > { %v6888_v35 = vpop.f32.mrf.mxu2  ;;  %v6890_v36 = vpop.f32.mrf.mxu3 }
 0x45e   : > { %v1420_v37 = vpop.f32.mrf.mxu0  ;;  %v1589_v38 = vpop.f32.mrf.mxu1  ;;  %v4185_v27 = vmax.f32 %v6888_v35, 0.0  ;;  %v4186_v28 = vmax.f32 %v6890_v36, 0.0 }
 0x45f   : > { %v4199_v9 = vmax.f32 %v1420_v37, 0.0  ;;  %v4200_v10 = vmax.f32 %v1589_v38, 0.0  ;;  %v4792_v37 = vadd.f32 %v4791_v23, %v4169_v17  ;;  %v4861_v38 = vadd.f32 %v4860_v26, %v4170_v18 }
 0x461   : > { %5962 = vmatmul.msk.bf16.gmra.mxu0 %vm449_vm1, %v6327_v39  ;;  %5994 = vmatmul.msk.bf16.gmra.mxu1 %vm449_vm1, %v6327_v39  ;;  %v4656_v19 = vadd.f32 %v4655_v13, %v4199_v9  ;;  %v4725_v20 = vadd.f32 %v4724_v14, %v4200_v10 }
 0x462   : > { %6026 = vmatmul.msk.bf16.gmra.mxu2 %vm449_vm1, %v6327_v39  ;;  %6058 = vmatmul.msk.bf16.gmra.mxu3 %vm449_vm1, %v6327_v39 }
 0x465   : > { %v6897_v40 = vpop.f32.mrf.mxu2  ;;  %v6899_v41 = vpop.f32.mrf.mxu3 }
 0x466   : > { %v1422_v42 = vpop.f32.mrf.mxu0  ;;  %v1591_v43 = vpop.f32.mrf.mxu1  ;;  %v4201_v24 = vmax.f32 %v6897_v40, 0.0  ;;  %v4202_v25 = vmax.f32 %v6899_v41, 0.0 }
 0x467   : > { %v4215_v15 = vmax.f32 %v1422_v42, 0.0  ;;  %v4216_v16 = vmax.f32 %v1591_v43, 0.0 }
 0x469   : > { %v4657_v29 = vadd.f32 %v4656_v19, %v4215_v15  ;;  %v4726_v30 = vadd.f32 %v4725_v20, %v4216_v16 }
 0x46d   : > { %v6901_v44 = vpop.f32.mrf.mxu2  ;;  %v6903_v45 = vpop.f32.mrf.mxu3 }
 0x46e   : > { %v6905_v46 = vpop.f32.mrf.mxu0  ;;  %v6907_v47 = vpop.f32.mrf.mxu1 }
 0x46f   : > { %v4231_v21 = vmax.f32 %v6905_v46, 0.0  ;;  %v4232_v22 = vmax.f32 %v6907_v47, 0.0  ;;  %v4793_v47 = vadd.f32 %v4792_v37, %v4185_v27 }
 0x471   : > { %5963 = vmatmul.msk.bf16.gmra.mxu0 %vm449_vm1, %v6328_v48  ;;  %5995 = vmatmul.msk.bf16.gmra.mxu1 %vm449_vm1, %v6328_v48  ;;  %v4658_v36 = vadd.f32 %v4657_v29, %v4231_v21  ;;  %v4727_v42 = vadd.f32 %v4726_v30, %v4232_v22 }
 0x472   : > { %6027 = vmatmul.msk.bf16.gmra.mxu2 %vm449_vm1, %v6328_v48  ;;  %6059 = vmatmul.msk.bf16.gmra.mxu3 %vm449_vm1, %v6328_v48  ;;  %v4862_v48 = vadd.f32 %v4861_v38, %v4186_v28 }
 0x474   : > { %v4863_v60 = vadd.f32 %v4862_v48, %v4202_v25 }
 0x475   : > { %v6914_v49 = vpop.f32.mrf.mxu2  ;;  %v6916_v50 = vpop.f32.mrf.mxu3 }
 0x476   : > { %v6918_v51 = vpop.f32.mrf.mxu0  ;;  %v6920_v52 = vpop.f32.mrf.mxu1  ;;  %v4234_v61 = vmax.f32 %v6916_v50, 0.0 }
 0x477   : > { %v4247_v31 = vmax.f32 %v6918_v51, 0.0  ;;  %v4248_v32 = vmax.f32 %v6920_v52, 0.0  ;;  %v4217_v51 = vmax.f32 %v6901_v44, 0.0  ;;  %v4218_v52 = vmax.f32 %v6903_v45, 0.0 }
 0x479   : > { %v4659_v57 = vadd.f32 %v4658_v36, %v4247_v31  ;;  %v4728_v58 = vadd.f32 %v4727_v42, %v4248_v32  ;;  %v4864_v1 = vadd.f32 %v4863_v60, %v4218_v52 }
 0x47b   : > { %v4865_v50 = vadd.f32 %v4864_v1, %v4234_v61 }
 0x47d   : > { %v6922_v53 = vpop.f32.mrf.mxu2  ;;  %v6924_v54 = vpop.f32.mrf.mxu3 }
 0x47e   : > { %v6926_v55 = vpop.f32.mrf.mxu0  ;;  %v6928_v56 = vpop.f32.mrf.mxu1 }
 0x47f   : > { %v4263_v43 = vmax.f32 %v6926_v55, 0.0  ;;  %v4264_v46 = vmax.f32 %v6928_v56, 0.0  ;;  %v4794_v55 = vadd.f32 %v4793_v47, %v4201_v24  ;;  %v4233_v56 = vmax.f32 %v6914_v49, 0.0 }
 0x481   : > { %5964 = vmatmul.msk.bf16.gmra.mxu0 %vm449_vm1, %v6329_v59  ;;  %5996 = vmatmul.msk.bf16.gmra.mxu1 %vm449_vm1, %v6329_v59  ;;  %v4660_v44 = vadd.f32 %v4659_v57, %v4263_v43  ;;  %v4729_v45 = vadd.f32 %v4728_v58, %v4264_v46  ;;  %v4795_v0 = vadd.f32 %v4794_v55, %v4217_v51  ;;  %v6331_v51 = vld [vmem:[%s6484_s26 + $0x40] sm:$0xff] }
 0x482   : > { %6028 = vmatmul.msk.bf16.gmra.mxu2 %vm449_vm1, %v6329_v59  ;;  %6060 = vmatmul.msk.bf16.gmra.mxu3 %vm449_vm1, %v6329_v59  ;;  %v6330_v59 = vld [vmem:[%s6484_s26 + $0x38] sm:$0xff] }
 0x483   : > { %v4796_v10 = vadd.f32 %v4795_v0, %v4233_v56 }
 0x485   : > { %v6937_v2 = vpop.f32.mrf.mxu2  ;;  %v6939_v3 = vpop.f32.mrf.mxu3 }
 0x486   : > { %v6941_v4 = vpop.f32.mrf.mxu0  ;;  %v6943_v6 = vpop.f32.mrf.mxu1  ;;  %v4265_v11 = vmax.f32 %v6937_v2, 0.0  ;;  %v4266_v12 = vmax.f32 %v6939_v3, 0.0 }
 0x487   : > { %v4279_v40 = vmax.f32 %v6941_v4, 0.0  ;;  %v4280_v41 = vmax.f32 %v6943_v6, 0.0  ;;  %v4249_v4 = vmax.f32 %v6922_v53, 0.0  ;;  %v4250_v6 = vmax.f32 %v6924_v54, 0.0 }
 0x489   : > { %v4661_v7 = vadd.f32 %v4660_v44, %v4279_v40  ;;  %v4730_v8 = vadd.f32 %v4729_v45, %v4280_v41  ;;  %v4797_v19 = vadd.f32 %v4796_v10, %v4249_v4  ;;  %v4866_v53 = vadd.f32 %v4865_v50, %v4250_v6 }
 0x48b   : > { %v4798_v23 = vadd.f32 %v4797_v19, %v4265_v11  ;;  %v4867_v26 = vadd.f32 %v4866_v53, %v4266_v12 }
 0x48d   : > { %v6957_v33 = vpop.f32.mrf.mxu2  ;;  %v6959_v34 = vpop.f32.mrf.mxu3 }
 0x48e   : > { %v1435_v35 = vpop.f32.mrf.mxu0  ;;  %v1604_v39 = vpop.f32.mrf.mxu1  ;;  %v4281_v54 = vmax.f32 %v6957_v33, 0.0  ;;  %v4282_v20 = vmax.f32 %v6959_v34, 0.0 }
 0x48f   : > { %v4295_v62 = vmax.f32 %v1435_v35, 0.0  ;;  %v4296_v63 = vmax.f32 %v1604_v39, 0.0 }
 0x490   : > { %v4799_v29 = vadd.f32 %v4798_v23, %v4281_v54  ;;  %v4868_v30 = vadd.f32 %v4867_v26, %v4282_v20 }
 0x491   : > { %5965 = vmatmul.msk.bf16.gmra.mxu0 %vm449_vm1, %v6330_v59  ;;  %5997 = vmatmul.msk.bf16.gmra.mxu1 %vm449_vm1, %v6330_v59  ;;  %v4662_v15 = vadd.f32 %v4661_v7, %v4295_v62  ;;  %v4731_v16 = vadd.f32 %v4730_v8, %v4296_v63 }
 0x492   : > { %6029 = vmatmul.msk.bf16.gmra.mxu2 %vm449_vm1, %v6330_v59  ;;  %6061 = vmatmul.msk.bf16.gmra.mxu3 %vm449_vm1, %v6330_v59 }
 0x495   : > { %v1773_v9 = vpop.f32.mrf.mxu2  ;;  %v1942_v49 = vpop.f32.mrf.mxu3 }
 0x496   : > { %v1437_v13 = vpop.f32.mrf.mxu0  ;;  %v1606_v14 = vpop.f32.mrf.mxu1  ;;  %v4297_v27 = vmax.f32 %v1773_v9, 0.0  ;;  %v4298_v2 = vmax.f32 %v1942_v49, 0.0 }
 0x497   : > { %v4311_v17 = vmax.f32 %v1437_v13, 0.0  ;;  %v4312_v18 = vmax.f32 %v1606_v14, 0.0 }
 0x498   : > { %v4800_v24 = vadd.f32 %v4799_v29, %v4297_v27  ;;  %v4869_v25 = vadd.f32 %v4868_v30, %v4298_v2  ;;  %v4323_v2 = vld [vmem:[#allocation2] sm:$0xff] }
 0x499   : > { %v4663_v21 = vadd.f32 %v4662_v15, %v4311_v17  ;;  %v4732_v22 = vadd.f32 %v4731_v16, %v4312_v18 }
 0x49b   : > { %v4664_v28 = vrot.slane %v4663_v21, 4  ;;  %v4733_v3 = vrot.slane %v4732_v22, 4 }
 0x49d   : > { %v4665_v31 = vadd.f32 %v4664_v28, %v4663_v21  ;;  %v4734_v32 = vadd.f32 %v4733_v3, %v4732_v22  ;;  %v1775_v37 = vpop.f32.mrf.mxu2  ;;  %v1944_v38 = vpop.f32.mrf.mxu3 }
 0x49e   : > { %v4313_v33 = vmax.f32 %v1775_v37, 0.0  ;;  %v4314_v35 = vmax.f32 %v1944_v38, 0.0  ;;  %v1956_v34 = vpop.f32.mrf.mxu0  ;;  %v2125_v39 = vpop.f32.mrf.mxu1  ;;  %v6332_v37 = vld [vmem:[%s6484_s26 + $0x48] sm:$0xff] }
 0x49f   : > { %v4666_v36 = vrot.slane %v4665_v31, 2  ;;  %v4735_v42 = vrot.slane %v4734_v32, 2  ;;  %v3307_v62 = vmax.f32 %v1956_v34, 0.0  ;;  %v3308_v63 = vmax.f32 %v2125_v39, 0.0 }
 0x4a0   : > { %v4801_v43 = vadd.f32 %v4800_v24, %v4313_v33  ;;  %v4870_v46 = vadd.f32 %v4869_v25, %v4314_v35 }
 0x4a1   : > { %v4667_v47 = vadd.f32 %v4666_v36, %v4665_v31  ;;  %v4736_v48 = vadd.f32 %v4735_v42, %v4734_v32  ;;  %5966 = vmatmul.msk.bf16.gmra.mxu0 %vm449_vm1, %v6331_v51  ;;  %5998 = vmatmul.msk.bf16.gmra.mxu1 %vm449_vm1, %v6331_v51 }
 0x4a2   : > { %v4802_v52 = vrot.slane %v4801_v43, 4  ;;  %v4871_v57 = vrot.slane %v4870_v46, 4  ;;  %6030 = vmatmul.msk.bf16.gmra.mxu2 %vm449_vm1, %v6331_v51  ;;  %6062 = vmatmul.msk.bf16.gmra.mxu3 %vm449_vm1, %v6331_v51 }
 0x4a3   : > { %v4668_v58 = vrot.slane %v4667_v47, 1  ;;  %v4737_v40 = vrot.slane %v4736_v48, 1 }
 0x4a4   : > { %v4803_v41 = vadd.f32 %v4802_v52, %v4801_v43  ;;  %v4872_v59 = vadd.f32 %v4871_v57, %v4870_v46 }
 0x4a5   : > { %v4669_v55 = vadd.f32 %v4668_v58, %v4667_v47  ;;  %v4738_v60 = vadd.f32 %v4737_v40, %v4736_v48  ;;  %v2294_v56 = vpop.f32.mrf.mxu2  ;;  %v2463_v61 = vpop.f32.mrf.mxu3 }
 0x4a6   : > { %v4804_v44 = vrot.slane %v4803_v41, 2  ;;  %v4873_v45 = vrot.slane %v4872_v59, 2  ;;  %v1958_v0 = vpop.f32.mrf.mxu0  ;;  %v2127_v1 = vpop.f32.mrf.mxu1  ;;  %v3309_v16 = vmax.f32 %v2294_v56, 0.0  ;;  %v3310_v17 = vmax.f32 %v2463_v61, 0.0 }
 0x4a7   : > { %v5448_v4 = vrot.slane %v4669_v55, 4  ;;  %v5449_v6 = vrot.slane %v4738_v60, 3  ;;  %v3323_v7 = vmax.f32 %v1958_v0, 0.0  ;;  %v3324_v8 = vmax.f32 %v2127_v1, 0.0 }
 0x4a8   : > { %v4805_v9 = vadd.f32 %v4804_v44, %v4803_v41  ;;  %v4874_v49 = vadd.f32 %v4873_v45, %v4872_v59  ;;  %v6333_v45 = vld [vmem:[%s6484_s26 + $0x50] sm:$0xff] }
 0x4a9   : > { %v5466_v10 = vsel %vm5465_vm5, %v5448_v4, %v5449_v6  ;;  %v4877_v50 = vadd.f32 %v3323_v7, %v3307_v62  ;;  %v4946_v11 = vadd.f32 %v3324_v8, %v3308_v63 }
 0x4aa   : > { %v4806_v12 = vrot.slane %v4805_v9, 1  ;;  %v4875_v13 = vrot.slane %v4874_v49, 1 }
 0x4ac   : > { %v4807_v14 = vadd.f32 %v4806_v12, %v4805_v9  ;;  %v4876_v15 = vadd.f32 %v4875_v13, %v4874_v49 }
 0x4ad   : > { %v2296_v18 = vpop.f32.mrf.mxu2  ;;  %v2465_v19 = vpop.f32.mrf.mxu3 }
 0x4ae   : > { %v5450_v53 = vrot.slane %v4807_v14, 2  ;;  %v5451_v54 = vrot.slane %v4876_v15, 1  ;;  %v3325_v20 = vmax.f32 %v2296_v18, 0.0  ;;  %v3326_v21 = vmax.f32 %v2465_v19, 0.0  ;;  %v1961_v22 = vpop.f32.mrf.mxu0  ;;  %v2130_v23 = vpop.f32.mrf.mxu1 }
 0x4af   : > { %v3339_v26 = vmax.f32 %v1961_v22, 0.0  ;;  %v3340_v27 = vmax.f32 %v2130_v23, 0.0 }
 0x4b0   : > { %v5468_v28 = vsel %vm5467_vm6, %v5450_v53, %v5451_v54  ;;  %v5015_v3 = vadd.f32 %v3325_v20, %v3309_v16  ;;  %v5084_v29 = vadd.f32 %v3326_v21, %v3310_v17  ;;  %v6334_v21 = vld [vmem:[%s6484_s26 + $0x58] sm:$0xff] }
 0x4b1   : > { %v5470_v30 = vsel %vm5469_vm7, %v5466_v10, %v5468_v28  ;;  %v4878_v31 = vadd.f32 %v4877_v50, %v3339_v26  ;;  %v4947_v32 = vadd.f32 %v4946_v11, %v3340_v27  ;;  %5967 = vmatmul.msk.bf16.gmra.mxu0 %vm449_vm1, %v6332_v37  ;;  %5999 = vmatmul.msk.bf16.gmra.mxu1 %vm449_vm1, %v6332_v37 }
 0x4b2   : > { %v5471_v38 = vsel %vm546_vm0, %v6725_v5, %v5470_v30  ;;  %6031 = vmatmul.msk.bf16.gmra.mxu2 %vm449_vm1, %v6332_v37  ;;  %6063 = vmatmul.msk.bf16.gmra.mxu3 %vm449_vm1, %v6332_v37 }
 0x4b3   : > { %v5481_v24 = vadd.f32 %v5471_v38, %v4323_v2 }
 0x4b5   : > { %5483 = vst [vmem:[#allocation2] sm:$0xff] %v5481_v24  ;;  %v2299_v25 = vpop.f32.mrf.mxu2  ;;  %v2468_v33 = vpop.f32.mrf.mxu3 }
 0x4b6   : > { %v3341_v35 = vmax.f32 %v2299_v25, 0.0  ;;  %v3342_v34 = vmax.f32 %v2468_v33, 0.0  ;;  %v1963_v39 = vpop.f32.mrf.mxu0  ;;  %v2132_v36 = vpop.f32.mrf.mxu1 }
 0x4b7   : > { %v3355_v42 = vmax.f32 %v1963_v39, 0.0  ;;  %v3356_v43 = vmax.f32 %v2132_v36, 0.0 }
 0x4b8   : > { %v5016_v46 = vadd.f32 %v5015_v3, %v3341_v35  ;;  %v5085_v47 = vadd.f32 %v5084_v29, %v3342_v34 }
 0x4b9   : > { %v4879_v48 = vadd.f32 %v4878_v31, %v3355_v42  ;;  %v4948_v51 = vadd.f32 %v4947_v32, %v3356_v43 }
 0x4bd   : > { %v2301_v5 = vpop.f32.mrf.mxu2  ;;  %v2470_v52 = vpop.f32.mrf.mxu3 }
 0x4be   : > { %v3357_v57 = vmax.f32 %v2301_v5, 0.0  ;;  %v3358_v58 = vmax.f32 %v2470_v52, 0.0  ;;  %v1966_v40 = vpop.f32.mrf.mxu0  ;;  %v2135_v41 = vpop.f32.mrf.mxu1 }
 0x4bf   : > { %v3371_v59 = vmax.f32 %v1966_v40, 0.0  ;;  %v3372_v55 = vmax.f32 %v2135_v41, 0.0 }
 0x4c0   : > { %v5017_v60 = vadd.f32 %v5016_v46, %v3357_v57  ;;  %v5086_v56 = vadd.f32 %v5085_v47, %v3358_v58 }
 0x4c1   : > { %v4880_v61 = vadd.f32 %v4879_v48, %v3371_v59  ;;  %v4949_v44 = vadd.f32 %v4948_v51, %v3372_v55  ;;  %5968 = vmatmul.msk.bf16.gmra.mxu0 %vm449_vm1, %v6333_v45  ;;  %6000 = vmatmul.msk.bf16.gmra.mxu1 %vm449_vm1, %v6333_v45  ;;  %v6335_v48 = vld [vmem:[%s6484_s26 + $0x60] sm:$0xff] }
 0x4c2   : > { %6032 = vmatmul.msk.bf16.gmra.mxu2 %vm449_vm1, %v6333_v45  ;;  %6064 = vmatmul.msk.bf16.gmra.mxu3 %vm449_vm1, %v6333_v45 }
 0x4c5   : > { %v2304_v62 = vpop.f32.mrf.mxu2  ;;  %v2473_v63 = vpop.f32.mrf.mxu3 }
 0x4c6   : > { %v3373_v0 = vmax.f32 %v2304_v62, 0.0  ;;  %v3374_v1 = vmax.f32 %v2473_v63, 0.0  ;;  %v1968_v4 = vpop.f32.mrf.mxu0  ;;  %v2137_v6 = vpop.f32.mrf.mxu1 }
 0x4c7   : > { %v3387_v7 = vmax.f32 %v1968_v4, 0.0  ;;  %v3388_v8 = vmax.f32 %v2137_v6, 0.0 }
 0x4c8   : > { %v5018_v9 = vadd.f32 %v5017_v60, %v3373_v0  ;;  %v5087_v49 = vadd.f32 %v5086_v56, %v3374_v1 }
 0x4c9   : > { %v4881_v10 = vadd.f32 %v4880_v61, %v3387_v7  ;;  %v4950_v50 = vadd.f32 %v4949_v44, %v3388_v8 }
 0x4cd   : > { %v2306_v11 = vpop.f32.mrf.mxu2  ;;  %v2475_v12 = vpop.f32.mrf.mxu3 }
 0x4ce   : > { %v3389_v13 = vmax.f32 %v2306_v11, 0.0  ;;  %v3390_v14 = vmax.f32 %v2475_v12, 0.0  ;;  %v1971_v15 = vpop.f32.mrf.mxu0  ;;  %v2140_v16 = vpop.f32.mrf.mxu1 }
 0x4cf   : > { %v3403_v17 = vmax.f32 %v1971_v15, 0.0  ;;  %v3404_v18 = vmax.f32 %v2140_v16, 0.0 }
 0x4d0   : > { %v5019_v19 = vadd.f32 %v5018_v9, %v3389_v13  ;;  %v5088_v53 = vadd.f32 %v5087_v49, %v3390_v14 }
 0x4d1   : > { %v4882_v54 = vadd.f32 %v4881_v10, %v3403_v17  ;;  %v4951_v20 = vadd.f32 %v4950_v50, %v3404_v18  ;;  %5969 = vmatmul.msk.bf16.gmra.mxu0 %vm449_vm1, %v6334_v21  ;;  %6001 = vmatmul.msk.bf16.gmra.mxu1 %vm449_vm1, %v6334_v21  ;;  %v6336_v10 = vld [vmem:[%s6484_s26 + $0x68] sm:$0xff] }
 0x4d2   : > { %6033 = vmatmul.msk.bf16.gmra.mxu2 %vm449_vm1, %v6334_v21  ;;  %6065 = vmatmul.msk.bf16.gmra.mxu3 %vm449_vm1, %v6334_v21 }
 0x4d5   : > { %v2309_v22 = vpop.f32.mrf.mxu2  ;;  %v2478_v23 = vpop.f32.mrf.mxu3 }
 0x4d6   : > { %v3405_v26 = vmax.f32 %v2309_v22, 0.0  ;;  %v3406_v27 = vmax.f32 %v2478_v23, 0.0  ;;  %v1973_v2 = vpop.f32.mrf.mxu0  ;;  %v2142_v28 = vpop.f32.mrf.mxu1 }
 0x4d7   : > { %v3419_v3 = vmax.f32 %v1973_v2, 0.0  ;;  %v3420_v29 = vmax.f32 %v2142_v28, 0.0 }
 0x4d8   : > { %v5020_v30 = vadd.f32 %v5019_v19, %v3405_v26  ;;  %v5089_v31 = vadd.f32 %v5088_v53, %v3406_v27 }
 0x4d9   : > { %v4883_v32 = vadd.f32 %v4882_v54, %v3419_v3  ;;  %v4952_v37 = vadd.f32 %v4951_v20, %v3420_v29 }
 0x4dd   : > { %v2311_v38 = vpop.f32.mrf.mxu2  ;;  %v2480_v24 = vpop.f32.mrf.mxu3 }
 0x4de   : > { %v3421_v25 = vmax.f32 %v2311_v38, 0.0  ;;  %v3422_v33 = vmax.f32 %v2480_v24, 0.0  ;;  %v1976_v35 = vpop.f32.mrf.mxu0  ;;  %v2145_v34 = vpop.f32.mrf.mxu1 }
 0x4df   : > { %v3435_v39 = vmax.f32 %v1976_v35, 0.0  ;;  %v3436_v36 = vmax.f32 %v2145_v34, 0.0 }
 0x4e0   : > { %v5021_v42 = vadd.f32 %v5020_v30, %v3421_v25  ;;  %v5090_v43 = vadd.f32 %v5089_v31, %v3422_v33 }
 0x4e1   : > { %v4884_v46 = vadd.f32 %v4883_v32, %v3435_v39  ;;  %v4953_v47 = vadd.f32 %v4952_v37, %v3436_v36  ;;  %5970 = vmatmul.msk.bf16.gmra.mxu0 %vm449_vm1, %v6335_v48  ;;  %6002 = vmatmul.msk.bf16.gmra.mxu1 %vm449_vm1, %v6335_v48  ;;  %v6337_v32 = vld [vmem:[%s6484_s26 + $0x70] sm:$0xff] }
 0x4e2   : > { %6034 = vmatmul.msk.bf16.gmra.mxu2 %vm449_vm1, %v6335_v48  ;;  %6066 = vmatmul.msk.bf16.gmra.mxu3 %vm449_vm1, %v6335_v48 }
 0x4e5   : > { %v2314_v51 = vpop.f32.mrf.mxu2  ;;  %v2483_v5 = vpop.f32.mrf.mxu3 }
 0x4e6   : > { %v3437_v52 = vmax.f32 %v2314_v51, 0.0  ;;  %v3438_v57 = vmax.f32 %v2483_v5, 0.0  ;;  %v1978_v58 = vpop.f32.mrf.mxu0  ;;  %v2147_v40 = vpop.f32.mrf.mxu1 }
 0x4e7   : > { %v3451_v41 = vmax.f32 %v1978_v58, 0.0  ;;  %v3452_v59 = vmax.f32 %v2147_v40, 0.0 }
 0x4e8   : > { %v5022_v55 = vadd.f32 %v5021_v42, %v3437_v52  ;;  %v5091_v60 = vadd.f32 %v5090_v43, %v3438_v57 }
 0x4e9   : > { %v4885_v56 = vadd.f32 %v4884_v46, %v3451_v41  ;;  %v4954_v61 = vadd.f32 %v4953_v47, %v3452_v59 }
 0x4ed   : > { %v2316_v44 = vpop.f32.mrf.mxu2  ;;  %v2485_v45 = vpop.f32.mrf.mxu3 }
 0x4ee   : > { %v3453_v62 = vmax.f32 %v2316_v44, 0.0  ;;  %v3454_v63 = vmax.f32 %v2485_v45, 0.0  ;;  %v1981_v0 = vpop.f32.mrf.mxu0  ;;  %v2150_v1 = vpop.f32.mrf.mxu1 }
 0x4ef   : > { %v3467_v4 = vmax.f32 %v1981_v0, 0.0  ;;  %v3468_v6 = vmax.f32 %v2150_v1, 0.0 }
 0x4f0   : > { %v5023_v7 = vadd.f32 %v5022_v55, %v3453_v62  ;;  %v5092_v8 = vadd.f32 %v5091_v60, %v3454_v63 }
 0x4f1   : > { %v4886_v9 = vadd.f32 %v4885_v56, %v3467_v4  ;;  %v4955_v49 = vadd.f32 %v4954_v61, %v3468_v6  ;;  %5971 = vmatmul.msk.bf16.gmra.mxu0 %vm449_vm1, %v6336_v10  ;;  %6003 = vmatmul.msk.bf16.gmra.mxu1 %vm449_vm1, %v6336_v10  ;;  %v6338_v56 = vld [vmem:[%s6484_s26 + $0x78] sm:$0xff] }
 0x4f2   : > { %6035 = vmatmul.msk.bf16.gmra.mxu2 %vm449_vm1, %v6336_v10  ;;  %6067 = vmatmul.msk.bf16.gmra.mxu3 %vm449_vm1, %v6336_v10 }
 0x4f5   : > { %v2319_v50 = vpop.f32.mrf.mxu2  ;;  %v2488_v11 = vpop.f32.mrf.mxu3 }
 0x4f6   : > { %v3469_v12 = vmax.f32 %v2319_v50, 0.0  ;;  %v3470_v13 = vmax.f32 %v2488_v11, 0.0  ;;  %v1983_v14 = vpop.f32.mrf.mxu0  ;;  %v2152_v15 = vpop.f32.mrf.mxu1 }
 0x4f7   : > { %v3483_v16 = vmax.f32 %v1983_v14, 0.0  ;;  %v3484_v17 = vmax.f32 %v2152_v15, 0.0 }
 0x4f8   : > { %v5024_v18 = vadd.f32 %v5023_v7, %v3469_v12  ;;  %v5093_v19 = vadd.f32 %v5092_v8, %v3470_v13 }
 0x4f9   : > { %v4887_v53 = vadd.f32 %v4886_v9, %v3483_v16  ;;  %v4956_v54 = vadd.f32 %v4955_v49, %v3484_v17 }
 0x4fd   : > { %v2321_v20 = vpop.f32.mrf.mxu2  ;;  %v2490_v21 = vpop.f32.mrf.mxu3 }
 0x4fe   : > { %v3485_v22 = vmax.f32 %v2321_v20, 0.0  ;;  %v3486_v23 = vmax.f32 %v2490_v21, 0.0  ;;  %v1986_v26 = vpop.f32.mrf.mxu0  ;;  %v2155_v27 = vpop.f32.mrf.mxu1 }
 0x4ff   : > { %v3499_v2 = vmax.f32 %v1986_v26, 0.0  ;;  %v3500_v28 = vmax.f32 %v2155_v27, 0.0 }
 0x500   : > { %v5025_v3 = vadd.f32 %v5024_v18, %v3485_v22  ;;  %v5094_v29 = vadd.f32 %v5093_v19, %v3486_v23 }
 0x501   : > { %v4888_v30 = vadd.f32 %v4887_v53, %v3499_v2  ;;  %v4957_v31 = vadd.f32 %v4956_v54, %v3500_v28  ;;  %5972 = vmatmul.msk.bf16.gmra.mxu0 %vm449_vm1, %v6337_v32  ;;  %6004 = vmatmul.msk.bf16.gmra.mxu1 %vm449_vm1, %v6337_v32  ;;  %v6339_v53 = vld [vmem:[%s6484_s26 + $0x80] sm:$0xff] }
 0x502   : > { %6036 = vmatmul.msk.bf16.gmra.mxu2 %vm449_vm1, %v6337_v32  ;;  %6068 = vmatmul.msk.bf16.gmra.mxu3 %vm449_vm1, %v6337_v32 }
 0x505   : > { %v2324_v37 = vpop.f32.mrf.mxu2  ;;  %v2493_v38 = vpop.f32.mrf.mxu3 }
 0x506   : > { %v3501_v24 = vmax.f32 %v2324_v37, 0.0  ;;  %v3502_v25 = vmax.f32 %v2493_v38, 0.0  ;;  %v1988_v33 = vpop.f32.mrf.mxu0  ;;  %v2157_v35 = vpop.f32.mrf.mxu1 }
 0x507   : > { %v3515_v34 = vmax.f32 %v1988_v33, 0.0  ;;  %v3516_v39 = vmax.f32 %v2157_v35, 0.0 }
 0x508   : > { %v5026_v36 = vadd.f32 %v5025_v3, %v3501_v24  ;;  %v5095_v42 = vadd.f32 %v5094_v29, %v3502_v25 }
 0x509   : > { %v4889_v43 = vadd.f32 %v4888_v30, %v3515_v34  ;;  %v4958_v46 = vadd.f32 %v4957_v31, %v3516_v39 }
 0x50d   : > { %v2326_v47 = vpop.f32.mrf.mxu2  ;;  %v2495_v48 = vpop.f32.mrf.mxu3 }
 0x50e   : > { %v3517_v51 = vmax.f32 %v2326_v47, 0.0  ;;  %v3518_v5 = vmax.f32 %v2495_v48, 0.0  ;;  %v1991_v52 = vpop.f32.mrf.mxu0  ;;  %v2160_v57 = vpop.f32.mrf.mxu1 }
 0x50f   : > { %v3531_v58 = vmax.f32 %v1991_v52, 0.0  ;;  %v3532_v40 = vmax.f32 %v2160_v57, 0.0 }
 0x510   : > { %v5027_v41 = vadd.f32 %v5026_v36, %v3517_v51  ;;  %v5096_v59 = vadd.f32 %v5095_v42, %v3518_v5 }
 0x511   : > { %v4890_v55 = vadd.f32 %v4889_v43, %v3531_v58  ;;  %v4959_v60 = vadd.f32 %v4958_v46, %v3532_v40  ;;  %5973 = vmatmul.msk.bf16.gmra.mxu0 %vm449_vm1, %v6338_v56  ;;  %6005 = vmatmul.msk.bf16.gmra.mxu1 %vm449_vm1, %v6338_v56  ;;  %v6340_v43 = vld [vmem:[%s6484_s26 + $0x88] sm:$0xff] }
 0x512   : > { %6037 = vmatmul.msk.bf16.gmra.mxu2 %vm449_vm1, %v6338_v56  ;;  %6069 = vmatmul.msk.bf16.gmra.mxu3 %vm449_vm1, %v6338_v56 }
 0x515   : > { %v2329_v61 = vpop.f32.mrf.mxu2  ;;  %v2498_v44 = vpop.f32.mrf.mxu3 }
 0x516   : > { %v3533_v45 = vmax.f32 %v2329_v61, 0.0  ;;  %v3534_v62 = vmax.f32 %v2498_v44, 0.0  ;;  %v1993_v63 = vpop.f32.mrf.mxu0  ;;  %v2162_v0 = vpop.f32.mrf.mxu1 }
 0x517   : > { %v3547_v1 = vmax.f32 %v1993_v63, 0.0  ;;  %v3548_v4 = vmax.f32 %v2162_v0, 0.0 }
 0x518   : > { %v5028_v6 = vadd.f32 %v5027_v41, %v3533_v45  ;;  %v5097_v7 = vadd.f32 %v5096_v59, %v3534_v62 }
 0x519   : > { %v4891_v8 = vadd.f32 %v4890_v55, %v3547_v1  ;;  %v4960_v9 = vadd.f32 %v4959_v60, %v3548_v4 }
 0x51d   : > { %v2331_v49 = vpop.f32.mrf.mxu2  ;;  %v2500_v10 = vpop.f32.mrf.mxu3 }
 0x51e   : > { %v3549_v50 = vmax.f32 %v2331_v49, 0.0  ;;  %v3550_v11 = vmax.f32 %v2500_v10, 0.0  ;;  %v1996_v12 = vpop.f32.mrf.mxu0  ;;  %v2165_v13 = vpop.f32.mrf.mxu1 }
 0x51f   : > { %v3563_v14 = vmax.f32 %v1996_v12, 0.0  ;;  %v3564_v15 = vmax.f32 %v2165_v13, 0.0 }
 0x520   : > { %v5029_v16 = vadd.f32 %v5028_v6, %v3549_v50  ;;  %v5098_v17 = vadd.f32 %v5097_v7, %v3550_v11 }
 0x521   : > { %v4892_v18 = vadd.f32 %v4891_v8, %v3563_v14  ;;  %v4961_v19 = vadd.f32 %v4960_v9, %v3564_v15  ;;  %5974 = vmatmul.msk.bf16.gmra.mxu0 %vm449_vm1, %v6339_v53  ;;  %6006 = vmatmul.msk.bf16.gmra.mxu1 %vm449_vm1, %v6339_v53  ;;  %v6341_v8 = vld [vmem:[%s6484_s26 + $0x90] sm:$0xff] }
 0x522   : > { %6038 = vmatmul.msk.bf16.gmra.mxu2 %vm449_vm1, %v6339_v53  ;;  %6070 = vmatmul.msk.bf16.gmra.mxu3 %vm449_vm1, %v6339_v53 }
 0x525   : > { %v2334_v54 = vpop.f32.mrf.mxu2  ;;  %v2503_v20 = vpop.f32.mrf.mxu3 }
 0x526   : > { %v3565_v21 = vmax.f32 %v2334_v54, 0.0  ;;  %v3566_v22 = vmax.f32 %v2503_v20, 0.0  ;;  %v1998_v23 = vpop.f32.mrf.mxu0  ;;  %v2167_v26 = vpop.f32.mrf.mxu1 }
 0x527   : > { %v3579_v27 = vmax.f32 %v1998_v23, 0.0  ;;  %v3580_v2 = vmax.f32 %v2167_v26, 0.0 }
 0x528   : > { %v5030_v28 = vadd.f32 %v5029_v16, %v3565_v21  ;;  %v5099_v3 = vadd.f32 %v5098_v17, %v3566_v22 }
 0x529   : > { %v4893_v29 = vadd.f32 %v4892_v18, %v3579_v27  ;;  %v4962_v30 = vadd.f32 %v4961_v19, %v3580_v2 }
 0x52d   : > { %v2336_v31 = vpop.f32.mrf.mxu2  ;;  %v2505_v32 = vpop.f32.mrf.mxu3 }
 0x52e   : > { %v3581_v37 = vmax.f32 %v2336_v31, 0.0  ;;  %v3582_v38 = vmax.f32 %v2505_v32, 0.0  ;;  %v2001_v24 = vpop.f32.mrf.mxu0  ;;  %v2170_v25 = vpop.f32.mrf.mxu1 }
 0x52f   : > { %v3595_v33 = vmax.f32 %v2001_v24, 0.0  ;;  %v3596_v35 = vmax.f32 %v2170_v25, 0.0 }
 0x530   : > { %v5031_v34 = vadd.f32 %v5030_v28, %v3581_v37  ;;  %v5100_v39 = vadd.f32 %v5099_v3, %v3582_v38 }
 0x531   : > { %v4894_v36 = vadd.f32 %v4893_v29, %v3595_v33  ;;  %v4963_v42 = vadd.f32 %v4962_v30, %v3596_v35  ;;  %5975 = vmatmul.msk.bf16.gmra.mxu0 %vm449_vm1, %v6340_v43  ;;  %6007 = vmatmul.msk.bf16.gmra.mxu1 %vm449_vm1, %v6340_v43  ;;  %v6342_v29 = vld [vmem:[%s6484_s26 + $0x98] sm:$0xff] }
 0x532   : > { %6039 = vmatmul.msk.bf16.gmra.mxu2 %vm449_vm1, %v6340_v43  ;;  %6071 = vmatmul.msk.bf16.gmra.mxu3 %vm449_vm1, %v6340_v43 }
 0x535   : > { %v2339_v46 = vpop.f32.mrf.mxu2  ;;  %v2508_v47 = vpop.f32.mrf.mxu3 }
 0x536   : > { %v3597_v48 = vmax.f32 %v2339_v46, 0.0  ;;  %v3598_v51 = vmax.f32 %v2508_v47, 0.0  ;;  %v2003_v5 = vpop.f32.mrf.mxu0  ;;  %v2172_v52 = vpop.f32.mrf.mxu1 }
 0x537   : > { %v3611_v57 = vmax.f32 %v2003_v5, 0.0  ;;  %v3612_v58 = vmax.f32 %v2172_v52, 0.0 }
 0x538   : > { %v5032_v40 = vadd.f32 %v5031_v34, %v3597_v48  ;;  %v5101_v41 = vadd.f32 %v5100_v39, %v3598_v51 }
 0x539   : > { %v4895_v59 = vadd.f32 %v4894_v36, %v3611_v57  ;;  %v4964_v55 = vadd.f32 %v4963_v42, %v3612_v58 }
 0x53d   : > { %v2341_v60 = vpop.f32.mrf.mxu2  ;;  %v2510_v56 = vpop.f32.mrf.mxu3 }
 0x53e   : > { %v3613_v61 = vmax.f32 %v2341_v60, 0.0  ;;  %v3614_v44 = vmax.f32 %v2510_v56, 0.0  ;;  %v2006_v45 = vpop.f32.mrf.mxu0  ;;  %v2175_v62 = vpop.f32.mrf.mxu1 }
 0x53f   : > { %v3627_v63 = vmax.f32 %v2006_v45, 0.0  ;;  %v3628_v0 = vmax.f32 %v2175_v62, 0.0 }
 0x540   : > { %v5033_v1 = vadd.f32 %v5032_v40, %v3613_v61  ;;  %v5102_v4 = vadd.f32 %v5101_v41, %v3614_v44 }
 0x541   : > { %v4896_v6 = vadd.f32 %v4895_v59, %v3627_v63  ;;  %v4965_v7 = vadd.f32 %v4964_v55, %v3628_v0  ;;  %5976 = vmatmul.msk.bf16.gmra.mxu0 %vm449_vm1, %v6341_v8  ;;  %6008 = vmatmul.msk.bf16.gmra.mxu1 %vm449_vm1, %v6341_v8  ;;  %v6343_v59 = vld [vmem:[%s6484_s26 + $0xa0] sm:$0xff] }
 0x542   : > { %6040 = vmatmul.msk.bf16.gmra.mxu2 %vm449_vm1, %v6341_v8  ;;  %6072 = vmatmul.msk.bf16.gmra.mxu3 %vm449_vm1, %v6341_v8 }
 0x545   : > { %v2344_v9 = vpop.f32.mrf.mxu2  ;;  %v2513_v49 = vpop.f32.mrf.mxu3 }
 0x546   : > { %v3629_v10 = vmax.f32 %v2344_v9, 0.0  ;;  %v3630_v50 = vmax.f32 %v2513_v49, 0.0  ;;  %v2008_v11 = vpop.f32.mrf.mxu0  ;;  %v2177_v12 = vpop.f32.mrf.mxu1 }
 0x547   : > { %v3643_v13 = vmax.f32 %v2008_v11, 0.0  ;;  %v3644_v14 = vmax.f32 %v2177_v12, 0.0 }
 0x548   : > { %v5034_v15 = vadd.f32 %v5033_v1, %v3629_v10  ;;  %v5103_v16 = vadd.f32 %v5102_v4, %v3630_v50 }
 0x549   : > { %v4897_v17 = vadd.f32 %v4896_v6, %v3643_v13  ;;  %v4966_v18 = vadd.f32 %v4965_v7, %v3644_v14 }
 0x54d   : > { %v2346_v19 = vpop.f32.mrf.mxu2  ;;  %v2515_v53 = vpop.f32.mrf.mxu3 }
 0x54e   : > { %v3645_v54 = vmax.f32 %v2346_v19, 0.0  ;;  %v3646_v20 = vmax.f32 %v2515_v53, 0.0  ;;  %v2011_v21 = vpop.f32.mrf.mxu0  ;;  %v2180_v22 = vpop.f32.mrf.mxu1 }
 0x54f   : > { %v3659_v23 = vmax.f32 %v2011_v21, 0.0  ;;  %v3660_v26 = vmax.f32 %v2180_v22, 0.0 }
 0x550   : > { %v5035_v27 = vadd.f32 %v5034_v15, %v3645_v54  ;;  %v5104_v2 = vadd.f32 %v5103_v16, %v3646_v20 }
 0x551   : > { %v4898_v28 = vadd.f32 %v4897_v17, %v3659_v23  ;;  %v4967_v3 = vadd.f32 %v4966_v18, %v3660_v26  ;;  %5977 = vmatmul.msk.bf16.gmra.mxu0 %vm449_vm1, %v6342_v29  ;;  %6009 = vmatmul.msk.bf16.gmra.mxu1 %vm449_vm1, %v6342_v29  ;;  %v6344_v17 = vld [vmem:[%s6484_s26 + $0xa8] sm:$0xff] }
 0x552   : > { %6041 = vmatmul.msk.bf16.gmra.mxu2 %vm449_vm1, %v6342_v29  ;;  %6073 = vmatmul.msk.bf16.gmra.mxu3 %vm449_vm1, %v6342_v29 }
 0x555   : > { %v2349_v30 = vpop.f32.mrf.mxu2  ;;  %v2518_v31 = vpop.f32.mrf.mxu3 }
 0x556   : > { %v3661_v32 = vmax.f32 %v2349_v30, 0.0  ;;  %v3662_v37 = vmax.f32 %v2518_v31, 0.0  ;;  %v2013_v38 = vpop.f32.mrf.mxu0  ;;  %v2182_v24 = vpop.f32.mrf.mxu1 }
 0x557   : > { %v3675_v25 = vmax.f32 %v2013_v38, 0.0  ;;  %v3676_v33 = vmax.f32 %v2182_v24, 0.0 }
 0x558   : > { %v5036_v35 = vadd.f32 %v5035_v27, %v3661_v32  ;;  %v5105_v34 = vadd.f32 %v5104_v2, %v3662_v37 }
 0x559   : > { %v4899_v39 = vadd.f32 %v4898_v28, %v3675_v25  ;;  %v4968_v36 = vadd.f32 %v4967_v3, %v3676_v33 }
 0x55d   : > { %v2351_v42 = vpop.f32.mrf.mxu2  ;;  %v2520_v43 = vpop.f32.mrf.mxu3 }
 0x55e   : > { %v3677_v46 = vmax.f32 %v2351_v42, 0.0  ;;  %v3678_v47 = vmax.f32 %v2520_v43, 0.0  ;;  %v2016_v48 = vpop.f32.mrf.mxu0  ;;  %v2185_v51 = vpop.f32.mrf.mxu1 }
 0x55f   : > { %v3691_v5 = vmax.f32 %v2016_v48, 0.0  ;;  %v3692_v52 = vmax.f32 %v2185_v51, 0.0 }
 0x560   : > { %v5037_v57 = vadd.f32 %v5036_v35, %v3677_v46  ;;  %v5106_v58 = vadd.f32 %v5105_v34, %v3678_v47 }
 0x561   : > { %v4900_v40 = vadd.f32 %v4899_v39, %v3691_v5  ;;  %v4969_v41 = vadd.f32 %v4968_v36, %v3692_v52  ;;  %5978 = vmatmul.msk.bf16.gmra.mxu0 %vm449_vm1, %v6343_v59  ;;  %6010 = vmatmul.msk.bf16.gmra.mxu1 %vm449_vm1, %v6343_v59  ;;  %v6345_v39 = vld [vmem:[%s6484_s26 + $0xb0] sm:$0xff] }
 0x562   : > { %6042 = vmatmul.msk.bf16.gmra.mxu2 %vm449_vm1, %v6343_v59  ;;  %6074 = vmatmul.msk.bf16.gmra.mxu3 %vm449_vm1, %v6343_v59 }
 0x565   : > { %v2354_v55 = vpop.f32.mrf.mxu2  ;;  %v2523_v60 = vpop.f32.mrf.mxu3 }
 0x566   : > { %v3693_v56 = vmax.f32 %v2354_v55, 0.0  ;;  %v3694_v61 = vmax.f32 %v2523_v60, 0.0  ;;  %v2018_v44 = vpop.f32.mrf.mxu0  ;;  %v2187_v45 = vpop.f32.mrf.mxu1 }
 0x567   : > { %v3707_v62 = vmax.f32 %v2018_v44, 0.0  ;;  %v3708_v63 = vmax.f32 %v2187_v45, 0.0 }
 0x568   : > { %v5038_v0 = vadd.f32 %v5037_v57, %v3693_v56  ;;  %v5107_v1 = vadd.f32 %v5106_v58, %v3694_v61 }
 0x569   : > { %v4901_v4 = vadd.f32 %v4900_v40, %v3707_v62  ;;  %v4970_v6 = vadd.f32 %v4969_v41, %v3708_v63 }
 0x56d   : > { %v2356_v7 = vpop.f32.mrf.mxu2  ;;  %v2525_v8 = vpop.f32.mrf.mxu3 }
 0x56e   : > { %v3709_v9 = vmax.f32 %v2356_v7, 0.0  ;;  %v3710_v49 = vmax.f32 %v2525_v8, 0.0  ;;  %v2021_v10 = vpop.f32.mrf.mxu0  ;;  %v2190_v50 = vpop.f32.mrf.mxu1 }
 0x56f   : > { %v3723_v11 = vmax.f32 %v2021_v10, 0.0  ;;  %v3724_v12 = vmax.f32 %v2190_v50, 0.0 }
 0x570   : > { %v5039_v13 = vadd.f32 %v5038_v0, %v3709_v9  ;;  %v5108_v14 = vadd.f32 %v5107_v1, %v3710_v49 }
 0x571   : > { %v4902_v15 = vadd.f32 %v4901_v4, %v3723_v11  ;;  %v4971_v16 = vadd.f32 %v4970_v6, %v3724_v12  ;;  %5979 = vmatmul.msk.bf16.gmra.mxu0 %vm449_vm1, %v6344_v17  ;;  %6011 = vmatmul.msk.bf16.gmra.mxu1 %vm449_vm1, %v6344_v17  ;;  %v6346_v4 = vld [vmem:[%s6484_s26 + $0xb8] sm:$0xff] }
 0x572   : > { %6043 = vmatmul.msk.bf16.gmra.mxu2 %vm449_vm1, %v6344_v17  ;;  %6075 = vmatmul.msk.bf16.gmra.mxu3 %vm449_vm1, %v6344_v17 }
 0x575   : > { %v2359_v18 = vpop.f32.mrf.mxu2  ;;  %v2528_v19 = vpop.f32.mrf.mxu3 }
 0x576   : > { %v3725_v53 = vmax.f32 %v2359_v18, 0.0  ;;  %v3726_v54 = vmax.f32 %v2528_v19, 0.0  ;;  %v2023_v20 = vpop.f32.mrf.mxu0  ;;  %v2192_v21 = vpop.f32.mrf.mxu1 }
 0x577   : > { %v3739_v22 = vmax.f32 %v2023_v20, 0.0  ;;  %v3740_v23 = vmax.f32 %v2192_v21, 0.0 }
 0x578   : > { %v5040_v26 = vadd.f32 %v5039_v13, %v3725_v53  ;;  %v5109_v27 = vadd.f32 %v5108_v14, %v3726_v54 }
 0x579   : > { %v4903_v2 = vadd.f32 %v4902_v15, %v3739_v22  ;;  %v4972_v28 = vadd.f32 %v4971_v16, %v3740_v23 }
 0x57d   : > { %v2361_v3 = vpop.f32.mrf.mxu2  ;;  %v2530_v29 = vpop.f32.mrf.mxu3 }
 0x57e   : > { %v3741_v30 = vmax.f32 %v2361_v3, 0.0  ;;  %v3742_v31 = vmax.f32 %v2530_v29, 0.0  ;;  %v2026_v32 = vpop.f32.mrf.mxu0  ;;  %v2195_v37 = vpop.f32.mrf.mxu1 }
 0x57f   : > { %v3755_v38 = vmax.f32 %v2026_v32, 0.0  ;;  %v3756_v24 = vmax.f32 %v2195_v37, 0.0 }
 0x580   : > { %v5041_v25 = vadd.f32 %v5040_v26, %v3741_v30  ;;  %v5110_v33 = vadd.f32 %v5109_v27, %v3742_v31 }
 0x581   : > { %v4904_v35 = vadd.f32 %v4903_v2, %v3755_v38  ;;  %v4973_v34 = vadd.f32 %v4972_v28, %v3756_v24  ;;  %5980 = vmatmul.msk.bf16.gmra.mxu0 %vm449_vm1, %v6345_v39  ;;  %6012 = vmatmul.msk.bf16.gmra.mxu1 %vm449_vm1, %v6345_v39  ;;  %v6347_v2 = vld [vmem:[%s6484_s26 + $0xc0] sm:$0xff] }
 0x582   : > { %6044 = vmatmul.msk.bf16.gmra.mxu2 %vm449_vm1, %v6345_v39  ;;  %6076 = vmatmul.msk.bf16.gmra.mxu3 %vm449_vm1, %v6345_v39 }
 0x585   : > { %v2364_v36 = vpop.f32.mrf.mxu2  ;;  %v2533_v42 = vpop.f32.mrf.mxu3 }
 0x586   : > { %v3757_v43 = vmax.f32 %v2364_v36, 0.0  ;;  %v3758_v46 = vmax.f32 %v2533_v42, 0.0  ;;  %v2028_v47 = vpop.f32.mrf.mxu0  ;;  %v2197_v48 = vpop.f32.mrf.mxu1 }
 0x587   : > { %v3771_v51 = vmax.f32 %v2028_v47, 0.0  ;;  %v3772_v5 = vmax.f32 %v2197_v48, 0.0 }
 0x588   : > { %v5042_v52 = vadd.f32 %v5041_v25, %v3757_v43  ;;  %v5111_v57 = vadd.f32 %v5110_v33, %v3758_v46 }
 0x589   : > { %v4905_v58 = vadd.f32 %v4904_v35, %v3771_v51  ;;  %v4974_v40 = vadd.f32 %v4973_v34, %v3772_v5 }
 0x58d   : > { %v2366_v41 = vpop.f32.mrf.mxu2  ;;  %v2535_v59 = vpop.f32.mrf.mxu3 }
 0x58e   : > { %v3773_v55 = vmax.f32 %v2366_v41, 0.0  ;;  %v3774_v60 = vmax.f32 %v2535_v59, 0.0  ;;  %v2031_v56 = vpop.f32.mrf.mxu0  ;;  %v2200_v61 = vpop.f32.mrf.mxu1 }
 0x58f   : > { %v3787_v44 = vmax.f32 %v2031_v56, 0.0  ;;  %v3788_v45 = vmax.f32 %v2200_v61, 0.0 }
 0x590   : > { %v5043_v62 = vadd.f32 %v5042_v52, %v3773_v55  ;;  %v5112_v63 = vadd.f32 %v5111_v57, %v3774_v60 }
 0x591   : > { %v4906_v0 = vadd.f32 %v4905_v58, %v3787_v44  ;;  %v4975_v1 = vadd.f32 %v4974_v40, %v3788_v45  ;;  %5981 = vmatmul.msk.bf16.gmra.mxu0 %vm449_vm1, %v6346_v4  ;;  %6013 = vmatmul.msk.bf16.gmra.mxu1 %vm449_vm1, %v6346_v4  ;;  %v6348_v58 = vld [vmem:[%s6484_s26 + $0xc8] sm:$0xff] }
 0x592   : > { %6045 = vmatmul.msk.bf16.gmra.mxu2 %vm449_vm1, %v6346_v4  ;;  %6077 = vmatmul.msk.bf16.gmra.mxu3 %vm449_vm1, %v6346_v4 }
 0x595   : > { %v2369_v6 = vpop.f32.mrf.mxu2  ;;  %v2538_v7 = vpop.f32.mrf.mxu3 }
 0x596   : > { %v3789_v8 = vmax.f32 %v2369_v6, 0.0  ;;  %v3790_v9 = vmax.f32 %v2538_v7, 0.0  ;;  %v2033_v49 = vpop.f32.mrf.mxu0  ;;  %v2202_v10 = vpop.f32.mrf.mxu1 }
 0x597   : > { %v3803_v50 = vmax.f32 %v2033_v49, 0.0  ;;  %v3804_v11 = vmax.f32 %v2202_v10, 0.0 }
 0x598   : > { %v5044_v12 = vadd.f32 %v5043_v62, %v3789_v8  ;;  %v5113_v13 = vadd.f32 %v5112_v63, %v3790_v9 }
 0x599   : > { %v4907_v14 = vadd.f32 %v4906_v0, %v3803_v50  ;;  %v4976_v15 = vadd.f32 %v4975_v1, %v3804_v11 }
 0x59d   : > { %v2371_v16 = vpop.f32.mrf.mxu2  ;;  %v2540_v17 = vpop.f32.mrf.mxu3 }
 0x59e   : > { %v3805_v18 = vmax.f32 %v2371_v16, 0.0  ;;  %v3806_v19 = vmax.f32 %v2540_v17, 0.0  ;;  %v2036_v53 = vpop.f32.mrf.mxu0  ;;  %v2205_v54 = vpop.f32.mrf.mxu1 }
 0x59f   : > { %v3819_v20 = vmax.f32 %v2036_v53, 0.0  ;;  %v3820_v21 = vmax.f32 %v2205_v54, 0.0 }
 0x5a0   : > { %v5045_v22 = vadd.f32 %v5044_v12, %v3805_v18  ;;  %v5114_v23 = vadd.f32 %v5113_v13, %v3806_v19 }
 0x5a1   : > { %v4908_v26 = vadd.f32 %v4907_v14, %v3819_v20  ;;  %v4977_v27 = vadd.f32 %v4976_v15, %v3820_v21  ;;  %5982 = vmatmul.msk.bf16.gmra.mxu0 %vm449_vm1, %v6347_v2  ;;  %6014 = vmatmul.msk.bf16.gmra.mxu1 %vm449_vm1, %v6347_v2  ;;  %v6349_v14 = vld [vmem:[%s6484_s26 + $0xd0] sm:$0xff] }
 0x5a2   : > { %6046 = vmatmul.msk.bf16.gmra.mxu2 %vm449_vm1, %v6347_v2  ;;  %6078 = vmatmul.msk.bf16.gmra.mxu3 %vm449_vm1, %v6347_v2 }
 0x5a5   : > { %v2374_v28 = vpop.f32.mrf.mxu2  ;;  %v2543_v3 = vpop.f32.mrf.mxu3 }
 0x5a6   : > { %v3821_v29 = vmax.f32 %v2374_v28, 0.0  ;;  %v3822_v30 = vmax.f32 %v2543_v3, 0.0  ;;  %v2038_v31 = vpop.f32.mrf.mxu0  ;;  %v2207_v32 = vpop.f32.mrf.mxu1 }
 0x5a7   : > { %v3835_v37 = vmax.f32 %v2038_v31, 0.0  ;;  %v3836_v38 = vmax.f32 %v2207_v32, 0.0 }
 0x5a8   : > { %v5046_v24 = vadd.f32 %v5045_v22, %v3821_v29  ;;  %v5115_v25 = vadd.f32 %v5114_v23, %v3822_v30 }
 0x5a9   : > { %v4909_v33 = vadd.f32 %v4908_v26, %v3835_v37  ;;  %v4978_v35 = vadd.f32 %v4977_v27, %v3836_v38 }
 0x5ad   : > { %v2376_v34 = vpop.f32.mrf.mxu2  ;;  %v2545_v39 = vpop.f32.mrf.mxu3 }
 0x5ae   : > { %v3837_v36 = vmax.f32 %v2376_v34, 0.0  ;;  %v3838_v42 = vmax.f32 %v2545_v39, 0.0  ;;  %v2041_v43 = vpop.f32.mrf.mxu0  ;;  %v2210_v46 = vpop.f32.mrf.mxu1 }
 0x5af   : > { %v3851_v47 = vmax.f32 %v2041_v43, 0.0  ;;  %v3852_v48 = vmax.f32 %v2210_v46, 0.0 }
 0x5b0   : > { %v5047_v51 = vadd.f32 %v5046_v24, %v3837_v36  ;;  %v5116_v5 = vadd.f32 %v5115_v25, %v3838_v42 }
 0x5b1   : > { %v4910_v52 = vadd.f32 %v4909_v33, %v3851_v47  ;;  %v4979_v57 = vadd.f32 %v4978_v35, %v3852_v48  ;;  %5983 = vmatmul.msk.bf16.gmra.mxu0 %vm449_vm1, %v6348_v58  ;;  %6015 = vmatmul.msk.bf16.gmra.mxu1 %vm449_vm1, %v6348_v58  ;;  %v6350_v33 = vld [vmem:[%s6484_s26 + $0xd8] sm:$0xff] }
 0x5b2   : > { %6047 = vmatmul.msk.bf16.gmra.mxu2 %vm449_vm1, %v6348_v58  ;;  %6079 = vmatmul.msk.bf16.gmra.mxu3 %vm449_vm1, %v6348_v58 }
 0x5b5   : > { %v2379_v40 = vpop.f32.mrf.mxu2  ;;  %v2548_v41 = vpop.f32.mrf.mxu3 }
 0x5b6   : > { %v3853_v59 = vmax.f32 %v2379_v40, 0.0  ;;  %v3854_v55 = vmax.f32 %v2548_v41, 0.0  ;;  %v2043_v60 = vpop.f32.mrf.mxu0  ;;  %v2212_v56 = vpop.f32.mrf.mxu1 }
 0x5b7   : > { %v3867_v61 = vmax.f32 %v2043_v60, 0.0  ;;  %v3868_v44 = vmax.f32 %v2212_v56, 0.0 }
 0x5b8   : > { %v5048_v45 = vadd.f32 %v5047_v51, %v3853_v59  ;;  %v5117_v62 = vadd.f32 %v5116_v5, %v3854_v55 }
 0x5b9   : > { %v4911_v63 = vadd.f32 %v4910_v52, %v3867_v61  ;;  %v4980_v0 = vadd.f32 %v4979_v57, %v3868_v44 }
 0x5bd   : > { %v2381_v1 = vpop.f32.mrf.mxu2  ;;  %v2550_v4 = vpop.f32.mrf.mxu3 }
 0x5be   : > { %v3869_v6 = vmax.f32 %v2381_v1, 0.0  ;;  %v3870_v7 = vmax.f32 %v2550_v4, 0.0  ;;  %v2046_v8 = vpop.f32.mrf.mxu0  ;;  %v2215_v9 = vpop.f32.mrf.mxu1 }
 0x5bf   : > { %v3883_v49 = vmax.f32 %v2046_v8, 0.0  ;;  %v3884_v10 = vmax.f32 %v2215_v9, 0.0 }
 0x5c0   : > { %v5049_v50 = vadd.f32 %v5048_v45, %v3869_v6  ;;  %v5118_v11 = vadd.f32 %v5117_v62, %v3870_v7 }
 0x5c1   : > { %v4912_v12 = vadd.f32 %v4911_v63, %v3883_v49  ;;  %v4981_v13 = vadd.f32 %v4980_v0, %v3884_v10  ;;  %5984 = vmatmul.msk.bf16.gmra.mxu0 %vm449_vm1, %v6349_v14  ;;  %6016 = vmatmul.msk.bf16.gmra.mxu1 %vm449_vm1, %v6349_v14  ;;  %v6351_v63 = vld [vmem:[%s6484_s26 + $0xe0] sm:$0xff] }
 0x5c2   : > { %6048 = vmatmul.msk.bf16.gmra.mxu2 %vm449_vm1, %v6349_v14  ;;  %6080 = vmatmul.msk.bf16.gmra.mxu3 %vm449_vm1, %v6349_v14 }
 0x5c5   : > { %v2384_v15 = vpop.f32.mrf.mxu2  ;;  %v2553_v16 = vpop.f32.mrf.mxu3 }
 0x5c6   : > { %v3885_v17 = vmax.f32 %v2384_v15, 0.0  ;;  %v3886_v18 = vmax.f32 %v2553_v16, 0.0  ;;  %v2048_v19 = vpop.f32.mrf.mxu0  ;;  %v2217_v53 = vpop.f32.mrf.mxu1 }
 0x5c7   : > { %v3899_v54 = vmax.f32 %v2048_v19, 0.0  ;;  %v3900_v20 = vmax.f32 %v2217_v53, 0.0 }
 0x5c8   : > { %v5050_v21 = vadd.f32 %v5049_v50, %v3885_v17  ;;  %v5119_v22 = vadd.f32 %v5118_v11, %v3886_v18 }
 0x5c9   : > { %v4913_v23 = vadd.f32 %v4912_v12, %v3899_v54  ;;  %v4982_v26 = vadd.f32 %v4981_v13, %v3900_v20 }
 0x5cd   : > { %v2386_v27 = vpop.f32.mrf.mxu2  ;;  %v2555_v2 = vpop.f32.mrf.mxu3 }
 0x5ce   : > { %v3901_v28 = vmax.f32 %v2386_v27, 0.0  ;;  %v3902_v3 = vmax.f32 %v2555_v2, 0.0  ;;  %v2051_v29 = vpop.f32.mrf.mxu0  ;;  %v2220_v30 = vpop.f32.mrf.mxu1 }
 0x5cf   : > { %v3915_v31 = vmax.f32 %v2051_v29, 0.0  ;;  %v3916_v32 = vmax.f32 %v2220_v30, 0.0 }
 0x5d0   : > { %v5051_v37 = vadd.f32 %v5050_v21, %v3901_v28  ;;  %v5120_v38 = vadd.f32 %v5119_v22, %v3902_v3 }
 0x5d1   : > { %v4914_v24 = vadd.f32 %v4913_v23, %v3915_v31  ;;  %v4983_v25 = vadd.f32 %v4982_v26, %v3916_v32  ;;  %5985 = vmatmul.msk.bf16.gmra.mxu0 %vm449_vm1, %v6350_v33  ;;  %6017 = vmatmul.msk.bf16.gmra.mxu1 %vm449_vm1, %v6350_v33  ;;  %v6352_v23 = vld [vmem:[%s6484_s26 + $0xe8] sm:$0xff] }
 0x5d2   : > { %6049 = vmatmul.msk.bf16.gmra.mxu2 %vm449_vm1, %v6350_v33  ;;  %6081 = vmatmul.msk.bf16.gmra.mxu3 %vm449_vm1, %v6350_v33 }
 0x5d5   : > { %v2389_v35 = vpop.f32.mrf.mxu2  ;;  %v2558_v34 = vpop.f32.mrf.mxu3 }
 0x5d6   : > { %v3917_v39 = vmax.f32 %v2389_v35, 0.0  ;;  %v3918_v36 = vmax.f32 %v2558_v34, 0.0  ;;  %v2053_v42 = vpop.f32.mrf.mxu0  ;;  %v2222_v43 = vpop.f32.mrf.mxu1 }
 0x5d7   : > { %v3931_v46 = vmax.f32 %v2053_v42, 0.0  ;;  %v3932_v47 = vmax.f32 %v2222_v43, 0.0 }
 0x5d8   : > { %v5052_v48 = vadd.f32 %v5051_v37, %v3917_v39  ;;  %v5121_v51 = vadd.f32 %v5120_v38, %v3918_v36 }
 0x5d9   : > { %v4915_v5 = vadd.f32 %v4914_v24, %v3931_v46  ;;  %v4984_v52 = vadd.f32 %v4983_v25, %v3932_v47 }
 0x5dd   : > { %v2391_v57 = vpop.f32.mrf.mxu2  ;;  %v2560_v58 = vpop.f32.mrf.mxu3 }
 0x5de   : > { %v3933_v40 = vmax.f32 %v2391_v57, 0.0  ;;  %v3934_v41 = vmax.f32 %v2560_v58, 0.0  ;;  %v2056_v59 = vpop.f32.mrf.mxu0  ;;  %v2225_v55 = vpop.f32.mrf.mxu1 }
 0x5df   : > { %v3947_v60 = vmax.f32 %v2056_v59, 0.0  ;;  %v3948_v56 = vmax.f32 %v2225_v55, 0.0 }
 0x5e0   : > { %v5053_v61 = vadd.f32 %v5052_v48, %v3933_v40  ;;  %v5122_v44 = vadd.f32 %v5121_v51, %v3934_v41 }
 0x5e1   : > { %v4916_v45 = vadd.f32 %v4915_v5, %v3947_v60  ;;  %v4985_v62 = vadd.f32 %v4984_v52, %v3948_v56  ;;  %5986 = vmatmul.msk.bf16.gmra.mxu0 %vm449_vm1, %v6351_v63  ;;  %6018 = vmatmul.msk.bf16.gmra.mxu1 %vm449_vm1, %v6351_v63  ;;  %v6353_v5 = vld [vmem:[%s6484_s26 + $0xf0] sm:$0xff] }
 0x5e2   : > { %6050 = vmatmul.msk.bf16.gmra.mxu2 %vm449_vm1, %v6351_v63  ;;  %6082 = vmatmul.msk.bf16.gmra.mxu3 %vm449_vm1, %v6351_v63 }
 0x5e5   : > { %v2394_v0 = vpop.f32.mrf.mxu2  ;;  %v2563_v1 = vpop.f32.mrf.mxu3 }
 0x5e6   : > { %v3949_v4 = vmax.f32 %v2394_v0, 0.0  ;;  %v3950_v6 = vmax.f32 %v2563_v1, 0.0  ;;  %v2058_v7 = vpop.f32.mrf.mxu0  ;;  %v2227_v8 = vpop.f32.mrf.mxu1 }
 0x5e7   : > { %v3963_v9 = vmax.f32 %v2058_v7, 0.0  ;;  %v3964_v49 = vmax.f32 %v2227_v8, 0.0 }
 0x5e8   : > { %v5054_v10 = vadd.f32 %v5053_v61, %v3949_v4  ;;  %v5123_v50 = vadd.f32 %v5122_v44, %v3950_v6 }
 0x5e9   : > { %v4917_v11 = vadd.f32 %v4916_v45, %v3963_v9  ;;  %v4986_v12 = vadd.f32 %v4985_v62, %v3964_v49 }
 0x5ed   : > { %v2396_v13 = vpop.f32.mrf.mxu2  ;;  %v2565_v14 = vpop.f32.mrf.mxu3 }
 0x5ee   : > { %v3965_v15 = vmax.f32 %v2396_v13, 0.0  ;;  %v3966_v16 = vmax.f32 %v2565_v14, 0.0  ;;  %v2061_v17 = vpop.f32.mrf.mxu0  ;;  %v2230_v18 = vpop.f32.mrf.mxu1 }
 0x5ef   : > { %v3979_v19 = vmax.f32 %v2061_v17, 0.0  ;;  %v3980_v53 = vmax.f32 %v2230_v18, 0.0 }
 0x5f0   : > { %v5055_v54 = vadd.f32 %v5054_v10, %v3965_v15  ;;  %v5124_v20 = vadd.f32 %v5123_v50, %v3966_v16 }
 0x5f1   : > { %v4918_v21 = vadd.f32 %v4917_v11, %v3979_v19  ;;  %v4987_v22 = vadd.f32 %v4986_v12, %v3980_v53  ;;  %5987 = vmatmul.msk.bf16.gmra.mxu0 %vm449_vm1, %v6352_v23  ;;  %6019 = vmatmul.msk.bf16.gmra.mxu1 %vm449_vm1, %v6352_v23  ;;  %v6354_v11 = vld [vmem:[%s6484_s26 + $0xf8] sm:$0xff] }
 0x5f2   : > { %6051 = vmatmul.msk.bf16.gmra.mxu2 %vm449_vm1, %v6352_v23  ;;  %6083 = vmatmul.msk.bf16.gmra.mxu3 %vm449_vm1, %v6352_v23 }
 0x5f5   : > { %v2399_v26 = vpop.f32.mrf.mxu2  ;;  %v2568_v27 = vpop.f32.mrf.mxu3 }
 0x5f6   : > { %v3981_v2 = vmax.f32 %v2399_v26, 0.0  ;;  %v3982_v28 = vmax.f32 %v2568_v27, 0.0  ;;  %v2063_v3 = vpop.f32.mrf.mxu0  ;;  %v2232_v29 = vpop.f32.mrf.mxu1 }
 0x5f7   : > { %v3995_v30 = vmax.f32 %v2063_v3, 0.0  ;;  %v3996_v31 = vmax.f32 %v2232_v29, 0.0 }
 0x5f8   : > { %v5056_v32 = vadd.f32 %v5055_v54, %v3981_v2  ;;  %v5125_v37 = vadd.f32 %v5124_v20, %v3982_v28 }
 0x5f9   : > { %v4919_v38 = vadd.f32 %v4918_v21, %v3995_v30  ;;  %v4988_v24 = vadd.f32 %v4987_v22, %v3996_v31 }
 0x5fd   : > { %v2401_v25 = vpop.f32.mrf.mxu2  ;;  %v2570_v33 = vpop.f32.mrf.mxu3 }
 0x5fe   : > { %v3997_v35 = vmax.f32 %v2401_v25, 0.0  ;;  %v3998_v34 = vmax.f32 %v2570_v33, 0.0  ;;  %v2066_v39 = vpop.f32.mrf.mxu0  ;;  %v2235_v36 = vpop.f32.mrf.mxu1 }
 0x5ff   : > { %v4011_v42 = vmax.f32 %v2066_v39, 0.0  ;;  %v4012_v43 = vmax.f32 %v2235_v36, 0.0 }
 0x600   : > { %v5057_v46 = vadd.f32 %v5056_v32, %v3997_v35  ;;  %v5126_v47 = vadd.f32 %v5125_v37, %v3998_v34 }
 0x601   : > { %v4920_v48 = vadd.f32 %v4919_v38, %v4011_v42  ;;  %v4989_v51 = vadd.f32 %v4988_v24, %v4012_v43  ;;  %5988 = vmatmul.msk.bf16.gmra.mxu0 %vm449_vm1, %v6353_v5  ;;  %6020 = vmatmul.msk.bf16.gmra.mxu1 %vm449_vm1, %v6353_v5  ;;  %v6355_v38 = vld [vmem:[%s6484_s26] sm:$0xff] }
 0x602   : > { %6052 = vmatmul.msk.bf16.gmra.mxu2 %vm449_vm1, %v6353_v5  ;;  %6084 = vmatmul.msk.bf16.gmra.mxu3 %vm449_vm1, %v6353_v5 }
 0x605   : > { %v2404_v52 = vpop.f32.mrf.mxu2  ;;  %v2573_v57 = vpop.f32.mrf.mxu3 }
 0x606   : > { %v4013_v58 = vmax.f32 %v2404_v52, 0.0  ;;  %v4014_v40 = vmax.f32 %v2573_v57, 0.0  ;;  %v2068_v41 = vpop.f32.mrf.mxu0  ;;  %v2237_v59 = vpop.f32.mrf.mxu1 }
 0x607   : > { %v4027_v55 = vmax.f32 %v2068_v41, 0.0  ;;  %v4028_v60 = vmax.f32 %v2237_v59, 0.0 }
 0x608   : > { %v5058_v56 = vadd.f32 %v5057_v46, %v4013_v58  ;;  %v5127_v61 = vadd.f32 %v5126_v47, %v4014_v40 }
 0x609   : > { %v4921_v44 = vadd.f32 %v4920_v48, %v4027_v55  ;;  %v4990_v45 = vadd.f32 %v4989_v51, %v4028_v60 }
 0x60d   : > { %v2406_v62 = vpop.f32.mrf.mxu2  ;;  %v2575_v63 = vpop.f32.mrf.mxu3 }
 0x60e   : > { %v4029_v0 = vmax.f32 %v2406_v62, 0.0  ;;  %v4030_v1 = vmax.f32 %v2575_v63, 0.0  ;;  %v2071_v4 = vpop.f32.mrf.mxu0  ;;  %v2240_v6 = vpop.f32.mrf.mxu1 }
 0x60f   : > { %v4043_v7 = vmax.f32 %v2071_v4, 0.0  ;;  %v4044_v8 = vmax.f32 %v2240_v6, 0.0 }
 0x610   : > { %v5059_v9 = vadd.f32 %v5058_v56, %v4029_v0  ;;  %v5128_v49 = vadd.f32 %v5127_v61, %v4030_v1 }
 0x611   : > { %v4922_v10 = vadd.f32 %v4921_v44, %v4043_v7  ;;  %v4991_v50 = vadd.f32 %v4990_v45, %v4044_v8  ;;  %5989 = vmatmul.msk.bf16.gmra.mxu0 %vm449_vm1, %v6354_v11  ;;  %6021 = vmatmul.msk.bf16.gmra.mxu1 %vm449_vm1, %v6354_v11  ;;  %v6356_v44 = vld [vmem:[%s6484_s26 + $0x8] sm:$0xff] }
 0x612   : > { %6053 = vmatmul.msk.bf16.gmra.mxu2 %vm449_vm1, %v6354_v11  ;;  %6085 = vmatmul.msk.bf16.gmra.mxu3 %vm449_vm1, %v6354_v11 }
 0x615   : > { %v2409_v12 = vpop.f32.mrf.mxu2  ;;  %v2578_v13 = vpop.f32.mrf.mxu3 }
 0x616   : > { %v4045_v14 = vmax.f32 %v2409_v12, 0.0  ;;  %v4046_v15 = vmax.f32 %v2578_v13, 0.0  ;;  %v2073_v16 = vpop.f32.mrf.mxu0  ;;  %v2242_v17 = vpop.f32.mrf.mxu1 }
 0x617   : > { %v4059_v18 = vmax.f32 %v2073_v16, 0.0  ;;  %v4060_v19 = vmax.f32 %v2242_v17, 0.0 }
 0x618   : > { %v5060_v53 = vadd.f32 %v5059_v9, %v4045_v14  ;;  %v5129_v54 = vadd.f32 %v5128_v49, %v4046_v15 }
 0x619   : > { %v4923_v20 = vadd.f32 %v4922_v10, %v4059_v18  ;;  %v4992_v21 = vadd.f32 %v4991_v50, %v4060_v19 }
 0x61d   : > { %v2411_v22 = vpop.f32.mrf.mxu2  ;;  %v2580_v23 = vpop.f32.mrf.mxu3 }
 0x61e   : > { %v4061_v26 = vmax.f32 %v2411_v22, 0.0  ;;  %v4062_v27 = vmax.f32 %v2580_v23, 0.0  ;;  %v2076_v2 = vpop.f32.mrf.mxu0  ;;  %v2245_v28 = vpop.f32.mrf.mxu1 }
 0x61f   : > { %v4075_v3 = vmax.f32 %v2076_v2, 0.0  ;;  %v4076_v29 = vmax.f32 %v2245_v28, 0.0 }
 0x620   : > { %v5061_v30 = vadd.f32 %v5060_v53, %v4061_v26  ;;  %v5130_v31 = vadd.f32 %v5129_v54, %v4062_v27 }
 0x621   : > { %v4924_v32 = vadd.f32 %v4923_v20, %v4075_v3  ;;  %v4993_v37 = vadd.f32 %v4992_v21, %v4076_v29  ;;  %6086 = vmatmul.msk.bf16.vlgmr.msrb.gmra.mxu0 %vm449_vm1, %v6355_v38  ;;  %6118 = vmatmul.msk.bf16.vlgmr.msrb.gmra.mxu1 %vm449_vm1, %v6355_v38  ;;  %v6357_v20 = vld [vmem:[%s6484_s26 + $0x10] sm:$0xff] }
 0x622   : > { %6150 = vmatmul.msk.bf16.vlgmr.msrb.gmra.mxu2 %vm449_vm1, %v6355_v38  ;;  %6182 = vmatmul.msk.bf16.vlgmr.msrb.gmra.mxu3 %vm449_vm1, %v6355_v38 }
 0x625   : > { %v2414_v24 = vpop.f32.mrf.mxu2  ;;  %v2583_v25 = vpop.f32.mrf.mxu3 }
 0x626   : > { %v4077_v33 = vmax.f32 %v2414_v24, 0.0  ;;  %v4078_v35 = vmax.f32 %v2583_v25, 0.0  ;;  %v2078_v34 = vpop.f32.mrf.mxu0  ;;  %v2247_v39 = vpop.f32.mrf.mxu1 }
 0x627   : > { %v4091_v36 = vmax.f32 %v2078_v34, 0.0  ;;  %v4092_v42 = vmax.f32 %v2247_v39, 0.0 }
 0x628   : > { %v5062_v43 = vadd.f32 %v5061_v30, %v4077_v33  ;;  %v5131_v46 = vadd.f32 %v5130_v31, %v4078_v35 }
 0x629   : > { %v4925_v47 = vadd.f32 %v4924_v32, %v4091_v36  ;;  %v4994_v48 = vadd.f32 %v4993_v37, %v4092_v42 }
 0x62d   : > { %v2416_v51 = vpop.f32.mrf.mxu2  ;;  %v2585_v5 = vpop.f32.mrf.mxu3 }
 0x62e   : > { %v4093_v52 = vmax.f32 %v2416_v51, 0.0  ;;  %v4094_v57 = vmax.f32 %v2585_v5, 0.0  ;;  %v2081_v58 = vpop.f32.mrf.mxu0  ;;  %v2250_v40 = vpop.f32.mrf.mxu1 }
 0x62f   : > { %v4107_v41 = vmax.f32 %v2081_v58, 0.0  ;;  %v4108_v59 = vmax.f32 %v2250_v40, 0.0 }
 0x630   : > { %v5063_v55 = vadd.f32 %v5062_v43, %v4093_v52  ;;  %v5132_v60 = vadd.f32 %v5131_v46, %v4094_v57 }
 0x631   : > { %v4926_v56 = vadd.f32 %v4925_v47, %v4107_v41  ;;  %v4995_v61 = vadd.f32 %v4994_v48, %v4108_v59  ;;  %6087 = vmatmul.msk.bf16.gmra.mxu0 %vm449_vm1, %v6356_v44  ;;  %6119 = vmatmul.msk.bf16.gmra.mxu1 %vm449_vm1, %v6356_v44  ;;  %v6358_v47 = vld [vmem:[%s6484_s26 + $0x18] sm:$0xff] }
 0x632   : > { %6151 = vmatmul.msk.bf16.gmra.mxu2 %vm449_vm1, %v6356_v44  ;;  %6183 = vmatmul.msk.bf16.gmra.mxu3 %vm449_vm1, %v6356_v44 }
 0x635   : > { %v2419_v45 = vpop.f32.mrf.mxu2  ;;  %v2588_v62 = vpop.f32.mrf.mxu3 }
 0x636   : > { %v4109_v63 = vmax.f32 %v2419_v45, 0.0  ;;  %v4110_v0 = vmax.f32 %v2588_v62, 0.0  ;;  %v2083_v1 = vpop.f32.mrf.mxu0  ;;  %v2252_v4 = vpop.f32.mrf.mxu1 }
 0x637   : > { %v4123_v6 = vmax.f32 %v2083_v1, 0.0  ;;  %v4124_v7 = vmax.f32 %v2252_v4, 0.0 }
 0x638   : > { %v5064_v8 = vadd.f32 %v5063_v55, %v4109_v63  ;;  %v5133_v9 = vadd.f32 %v5132_v60, %v4110_v0 }
 0x639   : > { %v4927_v49 = vadd.f32 %v4926_v56, %v4123_v6  ;;  %v4996_v10 = vadd.f32 %v4995_v61, %v4124_v7 }
 0x63d   : > { %v2421_v50 = vpop.f32.mrf.mxu2  ;;  %v2590_v11 = vpop.f32.mrf.mxu3 }
 0x63e   : > { %v4125_v12 = vmax.f32 %v2421_v50, 0.0  ;;  %v4126_v13 = vmax.f32 %v2590_v11, 0.0  ;;  %v2086_v14 = vpop.f32.mrf.mxu0  ;;  %v2255_v15 = vpop.f32.mrf.mxu1 }
 0x63f   : > { %v4139_v16 = vmax.f32 %v2086_v14, 0.0  ;;  %v4140_v17 = vmax.f32 %v2255_v15, 0.0 }
 0x640   : > { %v5065_v18 = vadd.f32 %v5064_v8, %v4125_v12  ;;  %v5134_v19 = vadd.f32 %v5133_v9, %v4126_v13 }
 0x641   : > { %v4928_v53 = vadd.f32 %v4927_v49, %v4139_v16  ;;  %v4997_v54 = vadd.f32 %v4996_v10, %v4140_v17  ;;  %6088 = vmatmul.msk.bf16.gmra.mxu0 %vm449_vm1, %v6357_v20  ;;  %6120 = vmatmul.msk.bf16.gmra.mxu1 %vm449_vm1, %v6357_v20  ;;  %v6359_v49 = vld [vmem:[%s6484_s26 + $0x20] sm:$0xff] }
 0x642   : > { %6152 = vmatmul.msk.bf16.gmra.mxu2 %vm449_vm1, %v6357_v20  ;;  %6184 = vmatmul.msk.bf16.gmra.mxu3 %vm449_vm1, %v6357_v20 }
 0x645   : > { %v2424_v21 = vpop.f32.mrf.mxu2  ;;  %v2593_v22 = vpop.f32.mrf.mxu3 }
 0x646   : > { %v4141_v23 = vmax.f32 %v2424_v21, 0.0  ;;  %v4142_v26 = vmax.f32 %v2593_v22, 0.0  ;;  %v2088_v27 = vpop.f32.mrf.mxu0  ;;  %v2257_v2 = vpop.f32.mrf.mxu1 }
 0x647   : > { %v4155_v28 = vmax.f32 %v2088_v27, 0.0  ;;  %v4156_v3 = vmax.f32 %v2257_v2, 0.0 }
 0x648   : > { %v5066_v29 = vadd.f32 %v5065_v18, %v4141_v23  ;;  %v5135_v30 = vadd.f32 %v5134_v19, %v4142_v26 }
 0x649   : > { %v4929_v31 = vadd.f32 %v4928_v53, %v4155_v28  ;;  %v4998_v32 = vadd.f32 %v4997_v54, %v4156_v3 }
 0x64d   : > { %v2426_v37 = vpop.f32.mrf.mxu2  ;;  %v2595_v38 = vpop.f32.mrf.mxu3 }
 0x64e   : > { %v4157_v24 = vmax.f32 %v2426_v37, 0.0  ;;  %v4158_v25 = vmax.f32 %v2595_v38, 0.0  ;;  %v2091_v33 = vpop.f32.mrf.mxu0  ;;  %v2260_v35 = vpop.f32.mrf.mxu1 }
 0x64f   : > { %v4171_v34 = vmax.f32 %v2091_v33, 0.0  ;;  %v4172_v39 = vmax.f32 %v2260_v35, 0.0 }
 0x650   : > { %v5067_v36 = vadd.f32 %v5066_v29, %v4157_v24  ;;  %v5136_v42 = vadd.f32 %v5135_v30, %v4158_v25 }
 0x651   : > { %v4930_v43 = vadd.f32 %v4929_v31, %v4171_v34  ;;  %v4999_v46 = vadd.f32 %v4998_v32, %v4172_v39  ;;  %6089 = vmatmul.msk.bf16.gmra.mxu0 %vm449_vm1, %v6358_v47  ;;  %6121 = vmatmul.msk.bf16.gmra.mxu1 %vm449_vm1, %v6358_v47  ;;  %v6360_v31 = vld [vmem:[%s6484_s26 + $0x28] sm:$0xff] }
 0x652   : > { %6153 = vmatmul.msk.bf16.gmra.mxu2 %vm449_vm1, %v6358_v47  ;;  %6185 = vmatmul.msk.bf16.gmra.mxu3 %vm449_vm1, %v6358_v47 }
 0x655   : > { %v2429_v48 = vpop.f32.mrf.mxu2  ;;  %v2598_v51 = vpop.f32.mrf.mxu3 }
 0x656   : > { %v4173_v5 = vmax.f32 %v2429_v48, 0.0  ;;  %v4174_v52 = vmax.f32 %v2598_v51, 0.0  ;;  %v2093_v57 = vpop.f32.mrf.mxu0  ;;  %v2262_v58 = vpop.f32.mrf.mxu1 }
 0x657   : > { %v4187_v40 = vmax.f32 %v2093_v57, 0.0  ;;  %v4188_v41 = vmax.f32 %v2262_v58, 0.0 }
 0x658   : > { %v5068_v59 = vadd.f32 %v5067_v36, %v4173_v5  ;;  %v5137_v55 = vadd.f32 %v5136_v42, %v4174_v52 }
 0x659   : > { %v4931_v60 = vadd.f32 %v4930_v43, %v4187_v40  ;;  %v5000_v56 = vadd.f32 %v4999_v46, %v4188_v41 }
 0x65d   : > { %v2431_v61 = vpop.f32.mrf.mxu2  ;;  %v2600_v44 = vpop.f32.mrf.mxu3 }
 0x65e   : > { %v4189_v45 = vmax.f32 %v2431_v61, 0.0  ;;  %v4190_v62 = vmax.f32 %v2600_v44, 0.0  ;;  %v2096_v63 = vpop.f32.mrf.mxu0  ;;  %v2265_v0 = vpop.f32.mrf.mxu1 }
 0x65f   : > { %v4203_v1 = vmax.f32 %v2096_v63, 0.0  ;;  %v4204_v4 = vmax.f32 %v2265_v0, 0.0 }
 0x660   : > { %v5069_v6 = vadd.f32 %v5068_v59, %v4189_v45  ;;  %v5138_v7 = vadd.f32 %v5137_v55, %v4190_v62 }
 0x661   : > { %v4932_v8 = vadd.f32 %v4931_v60, %v4203_v1  ;;  %v5001_v9 = vadd.f32 %v5000_v56, %v4204_v4  ;;  %6090 = vmatmul.msk.bf16.gmra.mxu0 %vm449_vm1, %v6359_v49  ;;  %6122 = vmatmul.msk.bf16.gmra.mxu1 %vm449_vm1, %v6359_v49  ;;  %v6361_v60 = vld [vmem:[%s6484_s26 + $0x30] sm:$0xff] }
 0x662   : > { %6154 = vmatmul.msk.bf16.gmra.mxu2 %vm449_vm1, %v6359_v49  ;;  %6186 = vmatmul.msk.bf16.gmra.mxu3 %vm449_vm1, %v6359_v49 }
 0x665   : > { %v2434_v10 = vpop.f32.mrf.mxu2  ;;  %v2603_v50 = vpop.f32.mrf.mxu3 }
 0x666   : > { %v4205_v11 = vmax.f32 %v2434_v10, 0.0  ;;  %v4206_v12 = vmax.f32 %v2603_v50, 0.0  ;;  %v2098_v13 = vpop.f32.mrf.mxu0  ;;  %v2267_v14 = vpop.f32.mrf.mxu1 }
 0x667   : > { %v4219_v15 = vmax.f32 %v2098_v13, 0.0  ;;  %v4220_v16 = vmax.f32 %v2267_v14, 0.0 }
 0x668   : > { %v5070_v17 = vadd.f32 %v5069_v6, %v4205_v11  ;;  %v5139_v18 = vadd.f32 %v5138_v7, %v4206_v12 }
 0x669   : > { %v4933_v19 = vadd.f32 %v4932_v8, %v4219_v15  ;;  %v5002_v53 = vadd.f32 %v5001_v9, %v4220_v16 }
 0x66d   : > { %v2436_v54 = vpop.f32.mrf.mxu2  ;;  %v2605_v20 = vpop.f32.mrf.mxu3 }
 0x66e   : > { %v4221_v21 = vmax.f32 %v2436_v54, 0.0  ;;  %v4222_v22 = vmax.f32 %v2605_v20, 0.0  ;;  %v2101_v23 = vpop.f32.mrf.mxu0  ;;  %v2270_v26 = vpop.f32.mrf.mxu1 }
 0x66f   : > { %v4235_v27 = vmax.f32 %v2101_v23, 0.0  ;;  %v4236_v2 = vmax.f32 %v2270_v26, 0.0 }
 0x670   : > { %v5071_v28 = vadd.f32 %v5070_v17, %v4221_v21  ;;  %v5140_v3 = vadd.f32 %v5139_v18, %v4222_v22 }
 0x671   : > { %v4934_v29 = vadd.f32 %v4933_v19, %v4235_v27  ;;  %v5003_v30 = vadd.f32 %v5002_v53, %v4236_v2  ;;  %6091 = vmatmul.msk.bf16.gmra.mxu0 %vm449_vm1, %v6360_v31  ;;  %6123 = vmatmul.msk.bf16.gmra.mxu1 %vm449_vm1, %v6360_v31  ;;  %v6362_v19 = vld [vmem:[%s6484_s26 + $0x38] sm:$0xff] }
 0x672   : > { %6155 = vmatmul.msk.bf16.gmra.mxu2 %vm449_vm1, %v6360_v31  ;;  %6187 = vmatmul.msk.bf16.gmra.mxu3 %vm449_vm1, %v6360_v31 }
 0x675   : > { %v2439_v32 = vpop.f32.mrf.mxu2  ;;  %v2608_v37 = vpop.f32.mrf.mxu3 }
 0x676   : > { %v4237_v38 = vmax.f32 %v2439_v32, 0.0  ;;  %v4238_v24 = vmax.f32 %v2608_v37, 0.0  ;;  %v2103_v25 = vpop.f32.mrf.mxu0  ;;  %v2272_v33 = vpop.f32.mrf.mxu1 }
 0x677   : > { %v4251_v35 = vmax.f32 %v2103_v25, 0.0  ;;  %v4252_v34 = vmax.f32 %v2272_v33, 0.0 }
 0x678   : > { %v5072_v39 = vadd.f32 %v5071_v28, %v4237_v38  ;;  %v5141_v36 = vadd.f32 %v5140_v3, %v4238_v24 }
 0x679   : > { %v4935_v42 = vadd.f32 %v4934_v29, %v4251_v35  ;;  %v5004_v43 = vadd.f32 %v5003_v30, %v4252_v34 }
 0x67d   : > { %v2441_v46 = vpop.f32.mrf.mxu2  ;;  %v2610_v47 = vpop.f32.mrf.mxu3 }
 0x67e   : > { %v4253_v48 = vmax.f32 %v2441_v46, 0.0  ;;  %v4254_v51 = vmax.f32 %v2610_v47, 0.0  ;;  %v2106_v5 = vpop.f32.mrf.mxu0  ;;  %v2275_v52 = vpop.f32.mrf.mxu1 }
 0x67f   : > { %v4267_v57 = vmax.f32 %v2106_v5, 0.0  ;;  %v4268_v58 = vmax.f32 %v2275_v52, 0.0 }
 0x680   : > { %v5073_v40 = vadd.f32 %v5072_v39, %v4253_v48  ;;  %v5142_v41 = vadd.f32 %v5141_v36, %v4254_v51  ;;  %v6363_v48 = vld [vmem:[%s6484_s26 + $0x40] sm:$0xff] }
 0x681   : > { %v4936_v59 = vadd.f32 %v4935_v42, %v4267_v57  ;;  %v5005_v55 = vadd.f32 %v5004_v43, %v4268_v58  ;;  %6092 = vmatmul.msk.bf16.gmra.mxu0 %vm449_vm1, %v6361_v60  ;;  %6124 = vmatmul.msk.bf16.gmra.mxu1 %vm449_vm1, %v6361_v60 }
 0x682   : > { %6156 = vmatmul.msk.bf16.gmra.mxu2 %vm449_vm1, %v6361_v60  ;;  %6188 = vmatmul.msk.bf16.gmra.mxu3 %vm449_vm1, %v6361_v60 }
 0x685   : > { %v2444_v56 = vpop.f32.mrf.mxu2  ;;  %v2613_v61 = vpop.f32.mrf.mxu3 }
 0x686   : > { %v4269_v44 = vmax.f32 %v2444_v56, 0.0  ;;  %v4270_v45 = vmax.f32 %v2613_v61, 0.0  ;;  %v2108_v62 = vpop.f32.mrf.mxu0  ;;  %v2277_v63 = vpop.f32.mrf.mxu1 }
 0x687   : > { %v4283_v0 = vmax.f32 %v2108_v62, 0.0  ;;  %v4284_v1 = vmax.f32 %v2277_v63, 0.0 }
 0x688   : > { %v5074_v4 = vadd.f32 %v5073_v40, %v4269_v44  ;;  %v5143_v6 = vadd.f32 %v5142_v41, %v4270_v45 }
 0x689   : > { %v4937_v7 = vadd.f32 %v4936_v59, %v4283_v0  ;;  %v5006_v8 = vadd.f32 %v5005_v55, %v4284_v1 }
 0x68d   : > { %v2446_v9 = vpop.f32.mrf.mxu2  ;;  %v2615_v49 = vpop.f32.mrf.mxu3 }
 0x68e   : > { %v4285_v10 = vmax.f32 %v2446_v9, 0.0  ;;  %v4286_v50 = vmax.f32 %v2615_v49, 0.0  ;;  %v2111_v11 = vpop.f32.mrf.mxu0  ;;  %v2280_v12 = vpop.f32.mrf.mxu1 }
 0x68f   : > { %v4299_v13 = vmax.f32 %v2111_v11, 0.0  ;;  %v4300_v14 = vmax.f32 %v2280_v12, 0.0 }
 0x690   : > { %v5075_v15 = vadd.f32 %v5074_v4, %v4285_v10  ;;  %v5144_v16 = vadd.f32 %v5143_v6, %v4286_v50 }
 0x691   : > { %v4938_v17 = vadd.f32 %v4937_v7, %v4299_v13  ;;  %v5007_v18 = vadd.f32 %v5006_v8, %v4300_v14  ;;  %6093 = vmatmul.msk.bf16.gmra.mxu0 %vm449_vm1, %v6362_v19  ;;  %6125 = vmatmul.msk.bf16.gmra.mxu1 %vm449_vm1, %v6362_v19 }
 0x692   : > { %6157 = vmatmul.msk.bf16.gmra.mxu2 %vm449_vm1, %v6362_v19  ;;  %6189 = vmatmul.msk.bf16.gmra.mxu3 %vm449_vm1, %v6362_v19 }
 0x695   : > { %v2449_v53 = vpop.f32.mrf.mxu2  ;;  %v2618_v54 = vpop.f32.mrf.mxu3 }
 0x696   : > { %v4301_v20 = vmax.f32 %v2449_v53, 0.0  ;;  %v4302_v21 = vmax.f32 %v2618_v54, 0.0  ;;  %v2113_v22 = vpop.f32.mrf.mxu0  ;;  %v2282_v23 = vpop.f32.mrf.mxu1 }
 0x697   : > { %v4315_v26 = vmax.f32 %v2113_v22, 0.0  ;;  %v4316_v27 = vmax.f32 %v2282_v23, 0.0 }
 0x698   : > { %v5076_v2 = vadd.f32 %v5075_v15, %v4301_v20  ;;  %v5145_v28 = vadd.f32 %v5144_v16, %v4302_v21 }
 0x699   : > { %v4939_v3 = vadd.f32 %v4938_v17, %v4315_v26  ;;  %v5008_v29 = vadd.f32 %v5007_v18, %v4316_v27 }
 0x69b   : > { %v4940_v30 = vrot.slane %v4939_v3, 4  ;;  %v5009_v31 = vrot.slane %v5008_v29, 4 }
 0x69d   : > { %v4941_v32 = vadd.f32 %v4940_v30, %v4939_v3  ;;  %v5010_v37 = vadd.f32 %v5009_v31, %v5008_v29  ;;  %v2451_v38 = vpop.f32.mrf.mxu2  ;;  %v2620_v24 = vpop.f32.mrf.mxu3  ;;  %v6364_v29 = vld [vmem:[%s6484_s26 + $0x48] sm:$0xff] }
 0x69e   : > { %v4317_v25 = vmax.f32 %v2451_v38, 0.0  ;;  %v4318_v33 = vmax.f32 %v2620_v24, 0.0  ;;  %v2632_v35 = vpop.f32.mrf.mxu0  ;;  %v2801_v34 = vpop.f32.mrf.mxu1 }
 0x69f   : > { %v4942_v39 = vrot.slane %v4941_v32, 2  ;;  %v5011_v36 = vrot.slane %v5010_v37, 2  ;;  %v3311_v61 = vmax.f32 %v2632_v35, 0.0  ;;  %v3312_v44 = vmax.f32 %v2801_v34, 0.0 }
 0x6a0   : > { %v5077_v42 = vadd.f32 %v5076_v2, %v4317_v25  ;;  %v5146_v43 = vadd.f32 %v5145_v28, %v4318_v33 }
 0x6a1   : > { %v4943_v46 = vadd.f32 %v4942_v39, %v4941_v32  ;;  %v5012_v47 = vadd.f32 %v5011_v36, %v5010_v37  ;;  %6094 = vmatmul.msk.bf16.gmra.mxu0 %vm449_vm1, %v6363_v48  ;;  %6126 = vmatmul.msk.bf16.gmra.mxu1 %vm449_vm1, %v6363_v48 }
 0x6a2   : > { %v5078_v51 = vrot.slane %v5077_v42, 4  ;;  %v5147_v5 = vrot.slane %v5146_v43, 4  ;;  %6158 = vmatmul.msk.bf16.gmra.mxu2 %vm449_vm1, %v6363_v48  ;;  %6190 = vmatmul.msk.bf16.gmra.mxu3 %vm449_vm1, %v6363_v48 }
 0x6a3   : > { %v4944_v52 = vrot.slane %v4943_v46, 1  ;;  %v5013_v57 = vrot.slane %v5012_v47, 1 }
 0x6a4   : > { %v5079_v58 = vadd.f32 %v5078_v51, %v5077_v42  ;;  %v5148_v40 = vadd.f32 %v5147_v5, %v5146_v43 }
 0x6a5   : > { %v5014_v41 = vadd.f32 %v5013_v57, %v5012_v47  ;;  %v2970_v59 = vpop.f32.mrf.mxu2  ;;  %v3139_v55 = vpop.f32.mrf.mxu3  ;;  %v4945_v63 = vadd.f32 %v4944_v52, %v4943_v46 }
 0x6a6   : > { %v5080_v60 = vrot.slane %v5079_v58, 2  ;;  %v5149_v56 = vrot.slane %v5148_v40, 2  ;;  %v2634_v45 = vpop.f32.mrf.mxu0  ;;  %v2803_v62 = vpop.f32.mrf.mxu1  ;;  %v3313_v13 = vmax.f32 %v2970_v59, 0.0  ;;  %v3314_v14 = vmax.f32 %v3139_v55, 0.0  ;;  %v6365_v59 = vld [vmem:[%s6484_s26 + $0x50] sm:$0xff] }
 0x6a7   : > { %v5452_v0 = vrot.slane %v5014_v41, 7  ;;  %v3327_v1 = vmax.f32 %v2634_v45, 0.0  ;;  %v3328_v4 = vmax.f32 %v2803_v62, 0.0 }
 0x6a8   : > { %v5081_v6 = vadd.f32 %v5080_v60, %v5079_v58  ;;  %v5150_v7 = vadd.f32 %v5149_v56, %v5148_v40 }
 0x6a9   : > { %v5472_v8 = vsel %vm5459_vm2, %v4945_v63, %v5452_v0  ;;  %v5153_v9 = vadd.f32 %v3327_v1, %v3311_v61  ;;  %v5222_v49 = vadd.f32 %v3328_v4, %v3312_v44 }
 0x6aa   : > { %v5082_v10 = vrot.slane %v5081_v6, 1  ;;  %v5151_v50 = vrot.slane %v5150_v7, 1 }
 0x6ac   : > { %v5083_v11 = vadd.f32 %v5082_v10, %v5081_v6  ;;  %v5152_v12 = vadd.f32 %v5151_v50, %v5150_v7 }
 0x6ad   : > { %v2972_v15 = vpop.f32.mrf.mxu2  ;;  %v3141_v16 = vpop.f32.mrf.mxu3 }
 0x6ae   : > { %v5453_v17 = vrot.slane %v5083_v11, 6  ;;  %v5454_v18 = vrot.slane %v5152_v12, 5  ;;  %v3329_v19 = vmax.f32 %v2972_v15, 0.0  ;;  %v3330_v53 = vmax.f32 %v3141_v16, 0.0  ;;  %v2637_v54 = vpop.f32.mrf.mxu0  ;;  %v2806_v20 = vpop.f32.mrf.mxu1 }
 0x6af   : > { %v3343_v21 = vmax.f32 %v2637_v54, 0.0  ;;  %v3344_v22 = vmax.f32 %v2806_v20, 0.0 }
 0x6b0   : > { %v5473_v23 = vsel %vm5461_vm3, %v5453_v17, %v5454_v18  ;;  %v5291_v26 = vadd.f32 %v3329_v19, %v3313_v13  ;;  %v5360_v27 = vadd.f32 %v3330_v53, %v3314_v14  ;;  %v6366_v17 = vld [vmem:[%s6484_s26 + $0x58] sm:$0xff] }
 0x6b1   : > { %v7155_v2 = vsel %vm5463_vm4, %v5472_v8, %v5473_v23  ;;  %v5154_v28 = vadd.f32 %v5153_v9, %v3343_v21  ;;  %v5223_v3 = vadd.f32 %v5222_v49, %v3344_v22  ;;  %6095 = vmatmul.msk.bf16.gmra.mxu0 %vm449_vm1, %v6364_v29  ;;  %6127 = vmatmul.msk.bf16.gmra.mxu1 %vm449_vm1, %v6364_v29 }
 0x6b2   : > { %6159 = vmatmul.msk.bf16.gmra.mxu2 %vm449_vm1, %v6364_v29  ;;  %6191 = vmatmul.msk.bf16.gmra.mxu3 %vm449_vm1, %v6364_v29 }
 0x6b5   : > { %v2975_v30 = vpop.f32.mrf.mxu2  ;;  %v3144_v31 = vpop.f32.mrf.mxu3 }
 0x6b6   : > { %v3345_v32 = vmax.f32 %v2975_v30, 0.0  ;;  %v3346_v37 = vmax.f32 %v3144_v31, 0.0  ;;  %v2639_v38 = vpop.f32.mrf.mxu0  ;;  %v2808_v24 = vpop.f32.mrf.mxu1 }
 0x6b7   : > { %v3359_v25 = vmax.f32 %v2639_v38, 0.0  ;;  %v3360_v33 = vmax.f32 %v2808_v24, 0.0 }
 0x6b8   : > { %v5292_v35 = vadd.f32 %v5291_v26, %v3345_v32  ;;  %v5361_v34 = vadd.f32 %v5360_v27, %v3346_v37 }
 0x6b9   : > { %v5155_v39 = vadd.f32 %v5154_v28, %v3359_v25  ;;  %v5224_v36 = vadd.f32 %v5223_v3, %v3360_v33 }
 0x6bd   : > { %v2977_v42 = vpop.f32.mrf.mxu2  ;;  %v3146_v43 = vpop.f32.mrf.mxu3 }
 0x6be   : > { %v3361_v46 = vmax.f32 %v2977_v42, 0.0  ;;  %v3362_v47 = vmax.f32 %v3146_v43, 0.0  ;;  %v2642_v48 = vpop.f32.mrf.mxu0  ;;  %v2811_v51 = vpop.f32.mrf.mxu1 }
 0x6bf   : > { %v3375_v5 = vmax.f32 %v2642_v48, 0.0  ;;  %v3376_v52 = vmax.f32 %v2811_v51, 0.0 }
 0x6c0   : > { %v5293_v57 = vadd.f32 %v5292_v35, %v3361_v46  ;;  %v5362_v58 = vadd.f32 %v5361_v34, %v3362_v47 }
 0x6c1   : > { %v5156_v40 = vadd.f32 %v5155_v39, %v3375_v5  ;;  %v5225_v41 = vadd.f32 %v5224_v36, %v3376_v52  ;;  %6096 = vmatmul.msk.bf16.gmra.mxu0 %vm449_vm1, %v6365_v59  ;;  %6128 = vmatmul.msk.bf16.gmra.mxu1 %vm449_vm1, %v6365_v59  ;;  %v6367_v36 = vld [vmem:[%s6484_s26 + $0x60] sm:$0xff] }
 0x6c2   : > { %6160 = vmatmul.msk.bf16.gmra.mxu2 %vm449_vm1, %v6365_v59  ;;  %6192 = vmatmul.msk.bf16.gmra.mxu3 %vm449_vm1, %v6365_v59 }
 0x6c5   : > { %v2980_v55 = vpop.f32.mrf.mxu2  ;;  %v3149_v60 = vpop.f32.mrf.mxu3 }
 0x6c6   : > { %v3377_v56 = vmax.f32 %v2980_v55, 0.0  ;;  %v3378_v61 = vmax.f32 %v3149_v60, 0.0  ;;  %v2644_v44 = vpop.f32.mrf.mxu0  ;;  %v2813_v45 = vpop.f32.mrf.mxu1 }
 0x6c7   : > { %v3391_v62 = vmax.f32 %v2644_v44, 0.0  ;;  %v3392_v63 = vmax.f32 %v2813_v45, 0.0 }
 0x6c8   : > { %v5294_v0 = vadd.f32 %v5293_v57, %v3377_v56  ;;  %v5363_v1 = vadd.f32 %v5362_v58, %v3378_v61 }
 0x6c9   : > { %v5157_v4 = vadd.f32 %v5156_v40, %v3391_v62  ;;  %v5226_v6 = vadd.f32 %v5225_v41, %v3392_v63 }
 0x6cd   : > { %v2982_v7 = vpop.f32.mrf.mxu2  ;;  %v3151_v8 = vpop.f32.mrf.mxu3 }
 0x6ce   : > { %v3393_v9 = vmax.f32 %v2982_v7, 0.0  ;;  %v3394_v49 = vmax.f32 %v3151_v8, 0.0  ;;  %v2647_v10 = vpop.f32.mrf.mxu0  ;;  %v2816_v50 = vpop.f32.mrf.mxu1 }
 0x6cf   : > { %v3407_v11 = vmax.f32 %v2647_v10, 0.0  ;;  %v3408_v12 = vmax.f32 %v2816_v50, 0.0 }
 0x6d0   : > { %v5295_v13 = vadd.f32 %v5294_v0, %v3393_v9  ;;  %v5364_v14 = vadd.f32 %v5363_v1, %v3394_v49 }
 0x6d1   : > { %v5158_v15 = vadd.f32 %v5157_v4, %v3407_v11  ;;  %v5227_v16 = vadd.f32 %v5226_v6, %v3408_v12  ;;  %6097 = vmatmul.msk.bf16.gmra.mxu0 %vm449_vm1, %v6366_v17  ;;  %6129 = vmatmul.msk.bf16.gmra.mxu1 %vm449_vm1, %v6366_v17  ;;  %v6368_v6 = vld [vmem:[%s6484_s26 + $0x68] sm:$0xff] }
 0x6d2   : > { %6161 = vmatmul.msk.bf16.gmra.mxu2 %vm449_vm1, %v6366_v17  ;;  %6193 = vmatmul.msk.bf16.gmra.mxu3 %vm449_vm1, %v6366_v17 }
 0x6d5   : > { %v2985_v18 = vpop.f32.mrf.mxu2  ;;  %v3154_v19 = vpop.f32.mrf.mxu3 }
 0x6d6   : > { %v3409_v53 = vmax.f32 %v2985_v18, 0.0  ;;  %v3410_v54 = vmax.f32 %v3154_v19, 0.0  ;;  %v2649_v20 = vpop.f32.mrf.mxu0  ;;  %v2818_v21 = vpop.f32.mrf.mxu1 }
 0x6d7   : > { %v3423_v22 = vmax.f32 %v2649_v20, 0.0  ;;  %v3424_v23 = vmax.f32 %v2818_v21, 0.0 }
 0x6d8   : > { %v5296_v26 = vadd.f32 %v5295_v13, %v3409_v53  ;;  %v5365_v27 = vadd.f32 %v5364_v14, %v3410_v54 }
 0x6d9   : > { %v5159_v28 = vadd.f32 %v5158_v15, %v3423_v22  ;;  %v5228_v3 = vadd.f32 %v5227_v16, %v3424_v23 }
 0x6dd   : > { %v2987_v29 = vpop.f32.mrf.mxu2  ;;  %v3156_v30 = vpop.f32.mrf.mxu3 }
 0x6de   : > { %v3425_v31 = vmax.f32 %v2987_v29, 0.0  ;;  %v3426_v32 = vmax.f32 %v3156_v30, 0.0  ;;  %v2652_v37 = vpop.f32.mrf.mxu0  ;;  %v2821_v38 = vpop.f32.mrf.mxu1 }
 0x6df   : > { %v3439_v24 = vmax.f32 %v2652_v37, 0.0  ;;  %v3440_v25 = vmax.f32 %v2821_v38, 0.0 }
 0x6e0   : > { %v5297_v33 = vadd.f32 %v5296_v26, %v3425_v31  ;;  %v5366_v35 = vadd.f32 %v5365_v27, %v3426_v32 }
 0x6e1   : > { %v5160_v34 = vadd.f32 %v5159_v28, %v3439_v24  ;;  %v5229_v39 = vadd.f32 %v5228_v3, %v3440_v25  ;;  %6098 = vmatmul.msk.bf16.gmra.mxu0 %vm449_vm1, %v6367_v36  ;;  %6130 = vmatmul.msk.bf16.gmra.mxu1 %vm449_vm1, %v6367_v36  ;;  %v6369_v3 = vld [vmem:[%s6484_s26 + $0x70] sm:$0xff] }
 0x6e2   : > { %6162 = vmatmul.msk.bf16.gmra.mxu2 %vm449_vm1, %v6367_v36  ;;  %6194 = vmatmul.msk.bf16.gmra.mxu3 %vm449_vm1, %v6367_v36 }
 0x6e5   : > { %v2990_v42 = vpop.f32.mrf.mxu2  ;;  %v3159_v43 = vpop.f32.mrf.mxu3 }
 0x6e6   : > { %v3441_v46 = vmax.f32 %v2990_v42, 0.0  ;;  %v3442_v47 = vmax.f32 %v3159_v43, 0.0  ;;  %v2654_v48 = vpop.f32.mrf.mxu0  ;;  %v2823_v51 = vpop.f32.mrf.mxu1 }
 0x6e7   : > { %v3455_v5 = vmax.f32 %v2654_v48, 0.0  ;;  %v3456_v52 = vmax.f32 %v2823_v51, 0.0 }
 0x6e8   : > { %v5298_v57 = vadd.f32 %v5297_v33, %v3441_v46  ;;  %v5367_v58 = vadd.f32 %v5366_v35, %v3442_v47 }
 0x6e9   : > { %v5161_v40 = vadd.f32 %v5160_v34, %v3455_v5  ;;  %v5230_v41 = vadd.f32 %v5229_v39, %v3456_v52 }
 0x6ed   : > { %v2992_v59 = vpop.f32.mrf.mxu2  ;;  %v3161_v55 = vpop.f32.mrf.mxu3 }
 0x6ee   : > { %v3457_v60 = vmax.f32 %v2992_v59, 0.0  ;;  %v3458_v56 = vmax.f32 %v3161_v55, 0.0  ;;  %v2657_v61 = vpop.f32.mrf.mxu0  ;;  %v2826_v44 = vpop.f32.mrf.mxu1 }
 0x6ef   : > { %v3471_v45 = vmax.f32 %v2657_v61, 0.0  ;;  %v3472_v62 = vmax.f32 %v2826_v44, 0.0 }
 0x6f0   : > { %v5299_v63 = vadd.f32 %v5298_v57, %v3457_v60  ;;  %v5368_v0 = vadd.f32 %v5367_v58, %v3458_v56 }
 0x6f1   : > { %v5162_v1 = vadd.f32 %v5161_v40, %v3471_v45  ;;  %v5231_v4 = vadd.f32 %v5230_v41, %v3472_v62  ;;  %6099 = vmatmul.msk.bf16.gmra.mxu0 %vm449_vm1, %v6368_v6  ;;  %6131 = vmatmul.msk.bf16.gmra.mxu1 %vm449_vm1, %v6368_v6  ;;  %v6370_v41 = vld [vmem:[%s6484_s26 + $0x78] sm:$0xff] }
 0x6f2   : > { %6163 = vmatmul.msk.bf16.gmra.mxu2 %vm449_vm1, %v6368_v6  ;;  %6195 = vmatmul.msk.bf16.gmra.mxu3 %vm449_vm1, %v6368_v6 }
 0x6f5   : > { %v2995_v7 = vpop.f32.mrf.mxu2  ;;  %v3164_v8 = vpop.f32.mrf.mxu3 }
 0x6f6   : > { %v3473_v9 = vmax.f32 %v2995_v7, 0.0  ;;  %v3474_v49 = vmax.f32 %v3164_v8, 0.0  ;;  %v2659_v10 = vpop.f32.mrf.mxu0  ;;  %v2828_v50 = vpop.f32.mrf.mxu1 }
 0x6f7   : > { %v3487_v11 = vmax.f32 %v2659_v10, 0.0  ;;  %v3488_v12 = vmax.f32 %v2828_v50, 0.0 }
 0x6f8   : > { %v5300_v13 = vadd.f32 %v5299_v63, %v3473_v9  ;;  %v5369_v14 = vadd.f32 %v5368_v0, %v3474_v49 }
 0x6f9   : > { %v5163_v15 = vadd.f32 %v5162_v1, %v3487_v11  ;;  %v5232_v16 = vadd.f32 %v5231_v4, %v3488_v12 }
 0x6fd   : > { %v2997_v17 = vpop.f32.mrf.mxu2  ;;  %v3166_v18 = vpop.f32.mrf.mxu3 }
 0x6fe   : > { %v3489_v19 = vmax.f32 %v2997_v17, 0.0  ;;  %v3490_v53 = vmax.f32 %v3166_v18, 0.0  ;;  %v2662_v54 = vpop.f32.mrf.mxu0  ;;  %v2831_v20 = vpop.f32.mrf.mxu1 }
 0x6ff   : > { %v3503_v21 = vmax.f32 %v2662_v54, 0.0  ;;  %v3504_v22 = vmax.f32 %v2831_v20, 0.0 }
 0x700   : > { %v5301_v23 = vadd.f32 %v5300_v13, %v3489_v19  ;;  %v5370_v26 = vadd.f32 %v5369_v14, %v3490_v53 }
 0x701   : > { %v5164_v27 = vadd.f32 %v5163_v15, %v3503_v21  ;;  %v5233_v28 = vadd.f32 %v5232_v16, %v3504_v22  ;;  %6100 = vmatmul.msk.bf16.gmra.mxu0 %vm449_vm1, %v6369_v3  ;;  %6132 = vmatmul.msk.bf16.gmra.mxu1 %vm449_vm1, %v6369_v3  ;;  %v6371_v16 = vld [vmem:[%s6484_s26 + $0x80] sm:$0xff] }
 0x702   : > { %6164 = vmatmul.msk.bf16.gmra.mxu2 %vm449_vm1, %v6369_v3  ;;  %6196 = vmatmul.msk.bf16.gmra.mxu3 %vm449_vm1, %v6369_v3 }
 0x705   : > { %v3000_v29 = vpop.f32.mrf.mxu2  ;;  %v3169_v30 = vpop.f32.mrf.mxu3 }
 0x706   : > { %v3505_v31 = vmax.f32 %v3000_v29, 0.0  ;;  %v3506_v32 = vmax.f32 %v3169_v30, 0.0  ;;  %v2664_v37 = vpop.f32.mrf.mxu0  ;;  %v2833_v38 = vpop.f32.mrf.mxu1 }
 0x707   : > { %v3519_v24 = vmax.f32 %v2664_v37, 0.0  ;;  %v3520_v25 = vmax.f32 %v2833_v38, 0.0 }
 0x708   : > { %v5302_v33 = vadd.f32 %v5301_v23, %v3505_v31  ;;  %v5371_v35 = vadd.f32 %v5370_v26, %v3506_v32 }
 0x709   : > { %v5165_v34 = vadd.f32 %v5164_v27, %v3519_v24  ;;  %v5234_v39 = vadd.f32 %v5233_v28, %v3520_v25 }
 0x70d   : > { %v3002_v36 = vpop.f32.mrf.mxu2  ;;  %v3171_v42 = vpop.f32.mrf.mxu3 }
 0x70e   : > { %v3521_v43 = vmax.f32 %v3002_v36, 0.0  ;;  %v3522_v46 = vmax.f32 %v3171_v42, 0.0  ;;  %v2667_v47 = vpop.f32.mrf.mxu0  ;;  %v2836_v48 = vpop.f32.mrf.mxu1 }
 0x70f   : > { %v3535_v51 = vmax.f32 %v2667_v47, 0.0  ;;  %v3536_v5 = vmax.f32 %v2836_v48, 0.0 }
 0x710   : > { %v5303_v52 = vadd.f32 %v5302_v33, %v3521_v43  ;;  %v5372_v57 = vadd.f32 %v5371_v35, %v3522_v46 }
 0x711   : > { %v5166_v58 = vadd.f32 %v5165_v34, %v3535_v51  ;;  %v5235_v40 = vadd.f32 %v5234_v39, %v3536_v5  ;;  %6101 = vmatmul.msk.bf16.gmra.mxu0 %vm449_vm1, %v6370_v41  ;;  %6133 = vmatmul.msk.bf16.gmra.mxu1 %vm449_vm1, %v6370_v41  ;;  %v6372_v39 = vld [vmem:[%s6484_s26 + $0x88] sm:$0xff] }
 0x712   : > { %6165 = vmatmul.msk.bf16.gmra.mxu2 %vm449_vm1, %v6370_v41  ;;  %6197 = vmatmul.msk.bf16.gmra.mxu3 %vm449_vm1, %v6370_v41 }
 0x715   : > { %v3005_v59 = vpop.f32.mrf.mxu2  ;;  %v3174_v55 = vpop.f32.mrf.mxu3 }
 0x716   : > { %v3537_v60 = vmax.f32 %v3005_v59, 0.0  ;;  %v3538_v56 = vmax.f32 %v3174_v55, 0.0  ;;  %v2669_v61 = vpop.f32.mrf.mxu0  ;;  %v2838_v44 = vpop.f32.mrf.mxu1 }
 0x717   : > { %v3551_v45 = vmax.f32 %v2669_v61, 0.0  ;;  %v3552_v62 = vmax.f32 %v2838_v44, 0.0 }
 0x718   : > { %v5304_v63 = vadd.f32 %v5303_v52, %v3537_v60  ;;  %v5373_v0 = vadd.f32 %v5372_v57, %v3538_v56 }
 0x719   : > { %v5167_v1 = vadd.f32 %v5166_v58, %v3551_v45  ;;  %v5236_v4 = vadd.f32 %v5235_v40, %v3552_v62 }
 0x71d   : > { %v3007_v6 = vpop.f32.mrf.mxu2  ;;  %v3176_v7 = vpop.f32.mrf.mxu3 }
 0x71e   : > { %v3553_v8 = vmax.f32 %v3007_v6, 0.0  ;;  %v3554_v9 = vmax.f32 %v3176_v7, 0.0  ;;  %v2672_v49 = vpop.f32.mrf.mxu0  ;;  %v2841_v10 = vpop.f32.mrf.mxu1 }
 0x71f   : > { %v3567_v50 = vmax.f32 %v2672_v49, 0.0  ;;  %v3568_v11 = vmax.f32 %v2841_v10, 0.0 }
 0x720   : > { %v5305_v12 = vadd.f32 %v5304_v63, %v3553_v8  ;;  %v5374_v13 = vadd.f32 %v5373_v0, %v3554_v9 }
 0x721   : > { %v5168_v14 = vadd.f32 %v5167_v1, %v3567_v50  ;;  %v5237_v15 = vadd.f32 %v5236_v4, %v3568_v11  ;;  %6102 = vmatmul.msk.bf16.gmra.mxu0 %vm449_vm1, %v6371_v16  ;;  %6134 = vmatmul.msk.bf16.gmra.mxu1 %vm449_vm1, %v6371_v16  ;;  %v6373_v4 = vld [vmem:[%s6484_s26 + $0x90] sm:$0xff] }
 0x722   : > { %6166 = vmatmul.msk.bf16.gmra.mxu2 %vm449_vm1, %v6371_v16  ;;  %6198 = vmatmul.msk.bf16.gmra.mxu3 %vm449_vm1, %v6371_v16 }
 0x725   : > { %v3010_v17 = vpop.f32.mrf.mxu2  ;;  %v3179_v18 = vpop.f32.mrf.mxu3 }
 0x726   : > { %v3569_v19 = vmax.f32 %v3010_v17, 0.0  ;;  %v3570_v53 = vmax.f32 %v3179_v18, 0.0  ;;  %v2674_v54 = vpop.f32.mrf.mxu0  ;;  %v2843_v20 = vpop.f32.mrf.mxu1 }
 0x727   : > { %v3583_v21 = vmax.f32 %v2674_v54, 0.0  ;;  %v3584_v22 = vmax.f32 %v2843_v20, 0.0 }
 0x728   : > { %v5306_v23 = vadd.f32 %v5305_v12, %v3569_v19  ;;  %v5375_v26 = vadd.f32 %v5374_v13, %v3570_v53 }
 0x729   : > { %v5169_v27 = vadd.f32 %v5168_v14, %v3583_v21  ;;  %v5238_v28 = vadd.f32 %v5237_v15, %v3584_v22 }
 0x72d   : > { %v3012_v3 = vpop.f32.mrf.mxu2  ;;  %v3181_v29 = vpop.f32.mrf.mxu3 }
 0x72e   : > { %v3585_v30 = vmax.f32 %v3012_v3, 0.0  ;;  %v3586_v31 = vmax.f32 %v3181_v29, 0.0  ;;  %v2677_v32 = vpop.f32.mrf.mxu0  ;;  %v2846_v37 = vpop.f32.mrf.mxu1 }
 0x72f   : > { %v3599_v38 = vmax.f32 %v2677_v32, 0.0  ;;  %v3600_v24 = vmax.f32 %v2846_v37, 0.0 }
 0x730   : > { %v5307_v25 = vadd.f32 %v5306_v23, %v3585_v30  ;;  %v5376_v33 = vadd.f32 %v5375_v26, %v3586_v31 }
 0x731   : > { %v5170_v35 = vadd.f32 %v5169_v27, %v3599_v38  ;;  %v5239_v34 = vadd.f32 %v5238_v28, %v3600_v24  ;;  %6103 = vmatmul.msk.bf16.gmra.mxu0 %vm449_vm1, %v6372_v39  ;;  %6135 = vmatmul.msk.bf16.gmra.mxu1 %vm449_vm1, %v6372_v39  ;;  %v6374_v28 = vld [vmem:[%s6484_s26 + $0x98] sm:$0xff] }
 0x732   : > { %6167 = vmatmul.msk.bf16.gmra.mxu2 %vm449_vm1, %v6372_v39  ;;  %6199 = vmatmul.msk.bf16.gmra.mxu3 %vm449_vm1, %v6372_v39 }
 0x735   : > { %v3015_v36 = vpop.f32.mrf.mxu2  ;;  %v3184_v42 = vpop.f32.mrf.mxu3 }
 0x736   : > { %v3601_v43 = vmax.f32 %v3015_v36, 0.0  ;;  %v3602_v46 = vmax.f32 %v3184_v42, 0.0  ;;  %v2679_v47 = vpop.f32.mrf.mxu0  ;;  %v2848_v48 = vpop.f32.mrf.mxu1 }
 0x737   : > { %v3615_v51 = vmax.f32 %v2679_v47, 0.0  ;;  %v3616_v5 = vmax.f32 %v2848_v48, 0.0 }
 0x738   : > { %v5308_v52 = vadd.f32 %v5307_v25, %v3601_v43  ;;  %v5377_v57 = vadd.f32 %v5376_v33, %v3602_v46 }
 0x739   : > { %v5171_v58 = vadd.f32 %v5170_v35, %v3615_v51  ;;  %v5240_v40 = vadd.f32 %v5239_v34, %v3616_v5 }
 0x73d   : > { %v3017_v41 = vpop.f32.mrf.mxu2  ;;  %v3186_v59 = vpop.f32.mrf.mxu3 }
 0x73e   : > { %v3617_v55 = vmax.f32 %v3017_v41, 0.0  ;;  %v3618_v60 = vmax.f32 %v3186_v59, 0.0  ;;  %v2682_v56 = vpop.f32.mrf.mxu0  ;;  %v2851_v61 = vpop.f32.mrf.mxu1 }
 0x73f   : > { %v3631_v44 = vmax.f32 %v2682_v56, 0.0  ;;  %v3632_v45 = vmax.f32 %v2851_v61, 0.0 }
 0x740   : > { %v5309_v62 = vadd.f32 %v5308_v52, %v3617_v55  ;;  %v5378_v63 = vadd.f32 %v5377_v57, %v3618_v60 }
 0x741   : > { %v5172_v0 = vadd.f32 %v5171_v58, %v3631_v44  ;;  %v5241_v1 = vadd.f32 %v5240_v40, %v3632_v45  ;;  %6104 = vmatmul.msk.bf16.gmra.mxu0 %vm449_vm1, %v6373_v4  ;;  %6136 = vmatmul.msk.bf16.gmra.mxu1 %vm449_vm1, %v6373_v4  ;;  %v6375_v40 = vld [vmem:[%s6484_s26 + $0xa0] sm:$0xff] }
 0x742   : > { %6168 = vmatmul.msk.bf16.gmra.mxu2 %vm449_vm1, %v6373_v4  ;;  %6200 = vmatmul.msk.bf16.gmra.mxu3 %vm449_vm1, %v6373_v4 }
 0x745   : > { %v3020_v6 = vpop.f32.mrf.mxu2  ;;  %v3189_v7 = vpop.f32.mrf.mxu3 }
 0x746   : > { %v3633_v8 = vmax.f32 %v3020_v6, 0.0  ;;  %v3634_v9 = vmax.f32 %v3189_v7, 0.0  ;;  %v2684_v49 = vpop.f32.mrf.mxu0  ;;  %v2853_v10 = vpop.f32.mrf.mxu1 }
 0x747   : > { %v3647_v50 = vmax.f32 %v2684_v49, 0.0  ;;  %v3648_v11 = vmax.f32 %v2853_v10, 0.0 }
 0x748   : > { %v5310_v12 = vadd.f32 %v5309_v62, %v3633_v8  ;;  %v5379_v13 = vadd.f32 %v5378_v63, %v3634_v9 }
 0x749   : > { %v5173_v14 = vadd.f32 %v5172_v0, %v3647_v50  ;;  %v5242_v15 = vadd.f32 %v5241_v1, %v3648_v11 }
 0x74d   : > { %v3022_v16 = vpop.f32.mrf.mxu2  ;;  %v3191_v17 = vpop.f32.mrf.mxu3 }
 0x74e   : > { %v3649_v18 = vmax.f32 %v3022_v16, 0.0  ;;  %v3650_v19 = vmax.f32 %v3191_v17, 0.0  ;;  %v2687_v53 = vpop.f32.mrf.mxu0  ;;  %v2856_v54 = vpop.f32.mrf.mxu1 }
 0x74f   : > { %v3663_v20 = vmax.f32 %v2687_v53, 0.0  ;;  %v3664_v21 = vmax.f32 %v2856_v54, 0.0 }
 0x750   : > { %v5311_v22 = vadd.f32 %v5310_v12, %v3649_v18  ;;  %v5380_v23 = vadd.f32 %v5379_v13, %v3650_v19 }
 0x751   : > { %v5174_v26 = vadd.f32 %v5173_v14, %v3663_v20  ;;  %v5243_v27 = vadd.f32 %v5242_v15, %v3664_v21  ;;  %6105 = vmatmul.msk.bf16.gmra.mxu0 %vm449_vm1, %v6374_v28  ;;  %6137 = vmatmul.msk.bf16.gmra.mxu1 %vm449_vm1, %v6374_v28  ;;  %v6376_v15 = vld [vmem:[%s6484_s26 + $0xa8] sm:$0xff] }
 0x752   : > { %6169 = vmatmul.msk.bf16.gmra.mxu2 %vm449_vm1, %v6374_v28  ;;  %6201 = vmatmul.msk.bf16.gmra.mxu3 %vm449_vm1, %v6374_v28 }
 0x755   : > { %v3025_v3 = vpop.f32.mrf.mxu2  ;;  %v3194_v29 = vpop.f32.mrf.mxu3 }
 0x756   : > { %v3665_v30 = vmax.f32 %v3025_v3, 0.0  ;;  %v3666_v31 = vmax.f32 %v3194_v29, 0.0  ;;  %v2689_v32 = vpop.f32.mrf.mxu0  ;;  %v2858_v37 = vpop.f32.mrf.mxu1 }
 0x757   : > { %v3679_v38 = vmax.f32 %v2689_v32, 0.0  ;;  %v3680_v24 = vmax.f32 %v2858_v37, 0.0 }
 0x758   : > { %v5312_v25 = vadd.f32 %v5311_v22, %v3665_v30  ;;  %v5381_v33 = vadd.f32 %v5380_v23, %v3666_v31 }
 0x759   : > { %v5175_v35 = vadd.f32 %v5174_v26, %v3679_v38  ;;  %v5244_v34 = vadd.f32 %v5243_v27, %v3680_v24 }
 0x75d   : > { %v3027_v39 = vpop.f32.mrf.mxu2  ;;  %v3196_v36 = vpop.f32.mrf.mxu3 }
 0x75e   : > { %v3681_v42 = vmax.f32 %v3027_v39, 0.0  ;;  %v3682_v43 = vmax.f32 %v3196_v36, 0.0  ;;  %v2692_v46 = vpop.f32.mrf.mxu0  ;;  %v2861_v47 = vpop.f32.mrf.mxu1 }
 0x75f   : > { %v3695_v48 = vmax.f32 %v2692_v46, 0.0  ;;  %v3696_v51 = vmax.f32 %v2861_v47, 0.0 }
 0x760   : > { %v5313_v5 = vadd.f32 %v5312_v25, %v3681_v42  ;;  %v5382_v52 = vadd.f32 %v5381_v33, %v3682_v43 }
 0x761   : > { %v5176_v57 = vadd.f32 %v5175_v35, %v3695_v48  ;;  %v5245_v58 = vadd.f32 %v5244_v34, %v3696_v51  ;;  %6106 = vmatmul.msk.bf16.gmra.mxu0 %vm449_vm1, %v6375_v40  ;;  %6138 = vmatmul.msk.bf16.gmra.mxu1 %vm449_vm1, %v6375_v40  ;;  %v6377_v34 = vld [vmem:[%s6484_s26 + $0xb0] sm:$0xff] }
 0x762   : > { %6170 = vmatmul.msk.bf16.gmra.mxu2 %vm449_vm1, %v6375_v40  ;;  %6202 = vmatmul.msk.bf16.gmra.mxu3 %vm449_vm1, %v6375_v40 }
 0x765   : > { %v3030_v41 = vpop.f32.mrf.mxu2  ;;  %v3199_v59 = vpop.f32.mrf.mxu3 }
 0x766   : > { %v3697_v55 = vmax.f32 %v3030_v41, 0.0  ;;  %v3698_v60 = vmax.f32 %v3199_v59, 0.0  ;;  %v2694_v56 = vpop.f32.mrf.mxu0  ;;  %v2863_v61 = vpop.f32.mrf.mxu1 }
 0x767   : > { %v3711_v44 = vmax.f32 %v2694_v56, 0.0  ;;  %v3712_v45 = vmax.f32 %v2863_v61, 0.0 }
 0x768   : > { %v5314_v62 = vadd.f32 %v5313_v5, %v3697_v55  ;;  %v5383_v63 = vadd.f32 %v5382_v52, %v3698_v60 }
 0x769   : > { %v5177_v0 = vadd.f32 %v5176_v57, %v3711_v44  ;;  %v5246_v1 = vadd.f32 %v5245_v58, %v3712_v45 }
 0x76d   : > { %v3032_v4 = vpop.f32.mrf.mxu2  ;;  %v3201_v6 = vpop.f32.mrf.mxu3 }
 0x76e   : > { %v3713_v7 = vmax.f32 %v3032_v4, 0.0  ;;  %v3714_v8 = vmax.f32 %v3201_v6, 0.0  ;;  %v2697_v9 = vpop.f32.mrf.mxu0  ;;  %v2866_v49 = vpop.f32.mrf.mxu1 }
 0x76f   : > { %v3727_v10 = vmax.f32 %v2697_v9, 0.0  ;;  %v3728_v50 = vmax.f32 %v2866_v49, 0.0 }
 0x770   : > { %v5315_v11 = vadd.f32 %v5314_v62, %v3713_v7  ;;  %v5384_v12 = vadd.f32 %v5383_v63, %v3714_v8 }
 0x771   : > { %v5178_v13 = vadd.f32 %v5177_v0, %v3727_v10  ;;  %v5247_v14 = vadd.f32 %v5246_v1, %v3728_v50  ;;  %6107 = vmatmul.msk.bf16.gmra.mxu0 %vm449_vm1, %v6376_v15  ;;  %6139 = vmatmul.msk.bf16.gmra.mxu1 %vm449_vm1, %v6376_v15  ;;  %v6378_v1 = vld [vmem:[%s6484_s26 + $0xb8] sm:$0xff] }
 0x772   : > { %6171 = vmatmul.msk.bf16.gmra.mxu2 %vm449_vm1, %v6376_v15  ;;  %6203 = vmatmul.msk.bf16.gmra.mxu3 %vm449_vm1, %v6376_v15 }
 0x775   : > { %v3035_v16 = vpop.f32.mrf.mxu2  ;;  %v3204_v17 = vpop.f32.mrf.mxu3 }
 0x776   : > { %v3729_v18 = vmax.f32 %v3035_v16, 0.0  ;;  %v3730_v19 = vmax.f32 %v3204_v17, 0.0  ;;  %v2699_v53 = vpop.f32.mrf.mxu0  ;;  %v2868_v54 = vpop.f32.mrf.mxu1 }
 0x777   : > { %v3743_v20 = vmax.f32 %v2699_v53, 0.0  ;;  %v3744_v21 = vmax.f32 %v2868_v54, 0.0 }
 0x778   : > { %v5316_v22 = vadd.f32 %v5315_v11, %v3729_v18  ;;  %v5385_v23 = vadd.f32 %v5384_v12, %v3730_v19 }
 0x779   : > { %v5179_v26 = vadd.f32 %v5178_v13, %v3743_v20  ;;  %v5248_v27 = vadd.f32 %v5247_v14, %v3744_v21 }
 0x77d   : > { %v3037_v28 = vpop.f32.mrf.mxu2  ;;  %v3206_v3 = vpop.f32.mrf.mxu3 }
 0x77e   : > { %v3745_v29 = vmax.f32 %v3037_v28, 0.0  ;;  %v3746_v30 = vmax.f32 %v3206_v3, 0.0  ;;  %v2702_v31 = vpop.f32.mrf.mxu0  ;;  %v2871_v32 = vpop.f32.mrf.mxu1 }
 0x77f   : > { %v3759_v37 = vmax.f32 %v2702_v31, 0.0  ;;  %v3760_v38 = vmax.f32 %v2871_v32, 0.0 }
 0x780   : > { %v5317_v24 = vadd.f32 %v5316_v22, %v3745_v29  ;;  %v5386_v25 = vadd.f32 %v5385_v23, %v3746_v30 }
 0x781   : > { %v5180_v33 = vadd.f32 %v5179_v26, %v3759_v37  ;;  %v5249_v35 = vadd.f32 %v5248_v27, %v3760_v38  ;;  %6108 = vmatmul.msk.bf16.gmra.mxu0 %vm449_vm1, %v6377_v34  ;;  %6140 = vmatmul.msk.bf16.gmra.mxu1 %vm449_vm1, %v6377_v34  ;;  %v6379_v27 = vld [vmem:[%s6484_s26 + $0xc0] sm:$0xff] }
 0x782   : > { %6172 = vmatmul.msk.bf16.gmra.mxu2 %vm449_vm1, %v6377_v34  ;;  %6204 = vmatmul.msk.bf16.gmra.mxu3 %vm449_vm1, %v6377_v34 }
 0x785   : > { %v3040_v39 = vpop.f32.mrf.mxu2  ;;  %v3209_v36 = vpop.f32.mrf.mxu3 }
 0x786   : > { %v3761_v42 = vmax.f32 %v3040_v39, 0.0  ;;  %v3762_v43 = vmax.f32 %v3209_v36, 0.0  ;;  %v2704_v46 = vpop.f32.mrf.mxu0  ;;  %v2873_v47 = vpop.f32.mrf.mxu1 }
 0x787   : > { %v3775_v48 = vmax.f32 %v2704_v46, 0.0  ;;  %v3776_v51 = vmax.f32 %v2873_v47, 0.0 }
 0x788   : > { %v5318_v5 = vadd.f32 %v5317_v24, %v3761_v42  ;;  %v5387_v52 = vadd.f32 %v5386_v25, %v3762_v43 }
 0x789   : > { %v5181_v57 = vadd.f32 %v5180_v33, %v3775_v48  ;;  %v5250_v58 = vadd.f32 %v5249_v35, %v3776_v51 }
 0x78d   : > { %v3042_v40 = vpop.f32.mrf.mxu2  ;;  %v3211_v41 = vpop.f32.mrf.mxu3 }
 0x78e   : > { %v3777_v59 = vmax.f32 %v3042_v40, 0.0  ;;  %v3778_v55 = vmax.f32 %v3211_v41, 0.0  ;;  %v2707_v60 = vpop.f32.mrf.mxu0  ;;  %v2876_v56 = vpop.f32.mrf.mxu1 }
 0x78f   : > { %v3791_v61 = vmax.f32 %v2707_v60, 0.0  ;;  %v3792_v44 = vmax.f32 %v2876_v56, 0.0 }
 0x790   : > { %v5319_v45 = vadd.f32 %v5318_v5, %v3777_v59  ;;  %v5388_v62 = vadd.f32 %v5387_v52, %v3778_v55 }
 0x791   : > { %v5182_v63 = vadd.f32 %v5181_v57, %v3791_v61  ;;  %v5251_v0 = vadd.f32 %v5250_v58, %v3792_v44  ;;  %6109 = vmatmul.msk.bf16.gmra.mxu0 %vm449_vm1, %v6378_v1  ;;  %6141 = vmatmul.msk.bf16.gmra.mxu1 %vm449_vm1, %v6378_v1  ;;  %v6380_v58 = vld [vmem:[%s6484_s26 + $0xc8] sm:$0xff] }
 0x792   : > { %6173 = vmatmul.msk.bf16.gmra.mxu2 %vm449_vm1, %v6378_v1  ;;  %6205 = vmatmul.msk.bf16.gmra.mxu3 %vm449_vm1, %v6378_v1 }
 0x795   : > { %v3045_v4 = vpop.f32.mrf.mxu2  ;;  %v3214_v6 = vpop.f32.mrf.mxu3 }
 0x796   : > { %v3793_v7 = vmax.f32 %v3045_v4, 0.0  ;;  %v3794_v8 = vmax.f32 %v3214_v6, 0.0  ;;  %v2709_v9 = vpop.f32.mrf.mxu0  ;;  %v2878_v49 = vpop.f32.mrf.mxu1 }
 0x797   : > { %v3807_v10 = vmax.f32 %v2709_v9, 0.0  ;;  %v3808_v50 = vmax.f32 %v2878_v49, 0.0 }
 0x798   : > { %v5320_v11 = vadd.f32 %v5319_v45, %v3793_v7  ;;  %v5389_v12 = vadd.f32 %v5388_v62, %v3794_v8 }
 0x799   : > { %v5183_v13 = vadd.f32 %v5182_v63, %v3807_v10  ;;  %v5252_v14 = vadd.f32 %v5251_v0, %v3808_v50 }
 0x79d   : > { %v3047_v15 = vpop.f32.mrf.mxu2  ;;  %v3216_v16 = vpop.f32.mrf.mxu3 }
 0x79e   : > { %v3809_v17 = vmax.f32 %v3047_v15, 0.0  ;;  %v3810_v18 = vmax.f32 %v3216_v16, 0.0  ;;  %v2712_v19 = vpop.f32.mrf.mxu0  ;;  %v2881_v53 = vpop.f32.mrf.mxu1 }
 0x79f   : > { %v3823_v54 = vmax.f32 %v2712_v19, 0.0  ;;  %v3824_v20 = vmax.f32 %v2881_v53, 0.0 }
 0x7a0   : > { %v5321_v21 = vadd.f32 %v5320_v11, %v3809_v17  ;;  %v5390_v22 = vadd.f32 %v5389_v12, %v3810_v18 }
 0x7a1   : > { %v5184_v23 = vadd.f32 %v5183_v13, %v3823_v54  ;;  %v5253_v26 = vadd.f32 %v5252_v14, %v3824_v20  ;;  %6110 = vmatmul.msk.bf16.gmra.mxu0 %vm449_vm1, %v6379_v27  ;;  %6142 = vmatmul.msk.bf16.gmra.mxu1 %vm449_vm1, %v6379_v27  ;;  %v6381_v14 = vld [vmem:[%s6484_s26 + $0xd0] sm:$0xff] }
 0x7a2   : > { %6174 = vmatmul.msk.bf16.gmra.mxu2 %vm449_vm1, %v6379_v27  ;;  %6206 = vmatmul.msk.bf16.gmra.mxu3 %vm449_vm1, %v6379_v27 }
 0x7a5   : > { %v3050_v28 = vpop.f32.mrf.mxu2  ;;  %v3219_v3 = vpop.f32.mrf.mxu3 }
 0x7a6   : > { %v3825_v29 = vmax.f32 %v3050_v28, 0.0  ;;  %v3826_v30 = vmax.f32 %v3219_v3, 0.0  ;;  %v2714_v31 = vpop.f32.mrf.mxu0  ;;  %v2883_v32 = vpop.f32.mrf.mxu1 }
 0x7a7   : > { %v3839_v37 = vmax.f32 %v2714_v31, 0.0  ;;  %v3840_v38 = vmax.f32 %v2883_v32, 0.0 }
 0x7a8   : > { %v5322_v24 = vadd.f32 %v5321_v21, %v3825_v29  ;;  %v5391_v25 = vadd.f32 %v5390_v22, %v3826_v30 }
 0x7a9   : > { %v5185_v33 = vadd.f32 %v5184_v23, %v3839_v37  ;;  %v5254_v35 = vadd.f32 %v5253_v26, %v3840_v38 }
 0x7ad   : > { %v3052_v34 = vpop.f32.mrf.mxu2  ;;  %v3221_v39 = vpop.f32.mrf.mxu3 }
 0x7ae   : > { %v3841_v36 = vmax.f32 %v3052_v34, 0.0  ;;  %v3842_v42 = vmax.f32 %v3221_v39, 0.0  ;;  %v2717_v43 = vpop.f32.mrf.mxu0  ;;  %v2886_v46 = vpop.f32.mrf.mxu1 }
 0x7af   : > { %v3855_v47 = vmax.f32 %v2717_v43, 0.0  ;;  %v3856_v48 = vmax.f32 %v2886_v46, 0.0 }
 0x7b0   : > { %v5323_v51 = vadd.f32 %v5322_v24, %v3841_v36  ;;  %v5392_v5 = vadd.f32 %v5391_v25, %v3842_v42 }
 0x7b1   : > { %v5186_v52 = vadd.f32 %v5185_v33, %v3855_v47  ;;  %v5255_v57 = vadd.f32 %v5254_v35, %v3856_v48  ;;  %6111 = vmatmul.msk.bf16.gmra.mxu0 %vm449_vm1, %v6380_v58  ;;  %6143 = vmatmul.msk.bf16.gmra.mxu1 %vm449_vm1, %v6380_v58  ;;  %v6382_v35 = vld [vmem:[%s6484_s26 + $0xd8] sm:$0xff] }
 0x7b2   : > { %6175 = vmatmul.msk.bf16.gmra.mxu2 %vm449_vm1, %v6380_v58  ;;  %6207 = vmatmul.msk.bf16.gmra.mxu3 %vm449_vm1, %v6380_v58 }
 0x7b5   : > { %v3055_v40 = vpop.f32.mrf.mxu2  ;;  %v3224_v41 = vpop.f32.mrf.mxu3 }
 0x7b6   : > { %v3857_v59 = vmax.f32 %v3055_v40, 0.0  ;;  %v3858_v55 = vmax.f32 %v3224_v41, 0.0  ;;  %v2719_v60 = vpop.f32.mrf.mxu0  ;;  %v2888_v56 = vpop.f32.mrf.mxu1 }
 0x7b7   : > { %v3871_v61 = vmax.f32 %v2719_v60, 0.0  ;;  %v3872_v44 = vmax.f32 %v2888_v56, 0.0 }
 0x7b8   : > { %v5324_v45 = vadd.f32 %v5323_v51, %v3857_v59  ;;  %v5393_v62 = vadd.f32 %v5392_v5, %v3858_v55 }
 0x7b9   : > { %v5187_v63 = vadd.f32 %v5186_v52, %v3871_v61  ;;  %v5256_v0 = vadd.f32 %v5255_v57, %v3872_v44 }
 0x7bd   : > { %v3057_v1 = vpop.f32.mrf.mxu2  ;;  %v3226_v4 = vpop.f32.mrf.mxu3 }
 0x7be   : > { %v3873_v6 = vmax.f32 %v3057_v1, 0.0  ;;  %v3874_v7 = vmax.f32 %v3226_v4, 0.0  ;;  %v2722_v8 = vpop.f32.mrf.mxu0  ;;  %v2891_v9 = vpop.f32.mrf.mxu1 }
 0x7bf   : > { %v3887_v49 = vmax.f32 %v2722_v8, 0.0  ;;  %v3888_v10 = vmax.f32 %v2891_v9, 0.0 }
 0x7c0   : > { %v5325_v50 = vadd.f32 %v5324_v45, %v3873_v6  ;;  %v5394_v11 = vadd.f32 %v5393_v62, %v3874_v7 }
 0x7c1   : > { %v5188_v12 = vadd.f32 %v5187_v63, %v3887_v49  ;;  %v5257_v13 = vadd.f32 %v5256_v0, %v3888_v10  ;;  %6112 = vmatmul.msk.bf16.gmra.mxu0 %vm449_vm1, %v6381_v14  ;;  %6144 = vmatmul.msk.bf16.gmra.mxu1 %vm449_vm1, %v6381_v14  ;;  %v6383_v0 = vld [vmem:[%s6484_s26 + $0xe0] sm:$0xff] }
 0x7c2   : > { %6176 = vmatmul.msk.bf16.gmra.mxu2 %vm449_vm1, %v6381_v14  ;;  %6208 = vmatmul.msk.bf16.gmra.mxu3 %vm449_vm1, %v6381_v14 }
 0x7c5   : > { %v3060_v15 = vpop.f32.mrf.mxu2  ;;  %v3229_v16 = vpop.f32.mrf.mxu3 }
 0x7c6   : > { %v3889_v17 = vmax.f32 %v3060_v15, 0.0  ;;  %v3890_v18 = vmax.f32 %v3229_v16, 0.0  ;;  %v2724_v19 = vpop.f32.mrf.mxu0  ;;  %v2893_v53 = vpop.f32.mrf.mxu1 }
 0x7c7   : > { %v3903_v54 = vmax.f32 %v2724_v19, 0.0  ;;  %v3904_v20 = vmax.f32 %v2893_v53, 0.0 }
 0x7c8   : > { %v5326_v21 = vadd.f32 %v5325_v50, %v3889_v17  ;;  %v5395_v22 = vadd.f32 %v5394_v11, %v3890_v18 }
 0x7c9   : > { %v5189_v23 = vadd.f32 %v5188_v12, %v3903_v54  ;;  %v5258_v26 = vadd.f32 %v5257_v13, %v3904_v20 }
 0x7cd   : > { %v3062_v27 = vpop.f32.mrf.mxu2  ;;  %v3231_v28 = vpop.f32.mrf.mxu3 }
 0x7ce   : > { %v3905_v3 = vmax.f32 %v3062_v27, 0.0  ;;  %v3906_v29 = vmax.f32 %v3231_v28, 0.0  ;;  %v2727_v30 = vpop.f32.mrf.mxu0  ;;  %v2896_v31 = vpop.f32.mrf.mxu1 }
 0x7cf   : > { %v3919_v32 = vmax.f32 %v2727_v30, 0.0  ;;  %v3920_v37 = vmax.f32 %v2896_v31, 0.0 }
 0x7d0   : > { %v5327_v38 = vadd.f32 %v5326_v21, %v3905_v3  ;;  %v5396_v24 = vadd.f32 %v5395_v22, %v3906_v29 }
 0x7d1   : > { %v5190_v25 = vadd.f32 %v5189_v23, %v3919_v32  ;;  %v5259_v33 = vadd.f32 %v5258_v26, %v3920_v37  ;;  %6113 = vmatmul.msk.bf16.gmra.mxu0 %vm449_vm1, %v6382_v35  ;;  %6145 = vmatmul.msk.bf16.gmra.mxu1 %vm449_vm1, %v6382_v35  ;;  %v6384_v26 = vld [vmem:[%s6484_s26 + $0xe8] sm:$0xff] }
 0x7d2   : > { %6177 = vmatmul.msk.bf16.gmra.mxu2 %vm449_vm1, %v6382_v35  ;;  %6209 = vmatmul.msk.bf16.gmra.mxu3 %vm449_vm1, %v6382_v35 }
 0x7d5   : > { %v3065_v34 = vpop.f32.mrf.mxu2  ;;  %v3234_v39 = vpop.f32.mrf.mxu3 }
 0x7d6   : > { %v3921_v36 = vmax.f32 %v3065_v34, 0.0  ;;  %v3922_v42 = vmax.f32 %v3234_v39, 0.0  ;;  %v2729_v43 = vpop.f32.mrf.mxu0  ;;  %v2898_v46 = vpop.f32.mrf.mxu1 }
 0x7d7   : > { %v3935_v47 = vmax.f32 %v2729_v43, 0.0  ;;  %v3936_v48 = vmax.f32 %v2898_v46, 0.0 }
 0x7d8   : > { %v5328_v51 = vadd.f32 %v5327_v38, %v3921_v36  ;;  %v5397_v5 = vadd.f32 %v5396_v24, %v3922_v42 }
 0x7d9   : > { %v5191_v52 = vadd.f32 %v5190_v25, %v3935_v47  ;;  %v5260_v57 = vadd.f32 %v5259_v33, %v3936_v48 }
 0x7dd   : > { %v3067_v58 = vpop.f32.mrf.mxu2  ;;  %v3236_v40 = vpop.f32.mrf.mxu3 }
 0x7de   : > { %v3937_v41 = vmax.f32 %v3067_v58, 0.0  ;;  %v3938_v59 = vmax.f32 %v3236_v40, 0.0  ;;  %v2732_v55 = vpop.f32.mrf.mxu0  ;;  %v2901_v60 = vpop.f32.mrf.mxu1 }
 0x7df   : > { %v3951_v56 = vmax.f32 %v2732_v55, 0.0  ;;  %v3952_v61 = vmax.f32 %v2901_v60, 0.0 }
 0x7e0   : > { %v5329_v44 = vadd.f32 %v5328_v51, %v3937_v41  ;;  %v5398_v45 = vadd.f32 %v5397_v5, %v3938_v59 }
 0x7e1   : > { %v5192_v62 = vadd.f32 %v5191_v52, %v3951_v56  ;;  %v5261_v63 = vadd.f32 %v5260_v57, %v3952_v61  ;;  %6114 = vmatmul.msk.bf16.gmra.mxu0 %vm449_vm1, %v6383_v0  ;;  %6146 = vmatmul.msk.bf16.gmra.mxu1 %vm449_vm1, %v6383_v0  ;;  %v6385_v57 = vld [vmem:[%s6484_s26 + $0xf0] sm:$0xff] }
 0x7e2   : > { %6178 = vmatmul.msk.bf16.gmra.mxu2 %vm449_vm1, %v6383_v0  ;;  %6210 = vmatmul.msk.bf16.gmra.mxu3 %vm449_vm1, %v6383_v0 }
 0x7e5   : > { %v3070_v1 = vpop.f32.mrf.mxu2  ;;  %v3239_v4 = vpop.f32.mrf.mxu3 }
 0x7e6   : > { %v3953_v6 = vmax.f32 %v3070_v1, 0.0  ;;  %v3954_v7 = vmax.f32 %v3239_v4, 0.0  ;;  %v2734_v8 = vpop.f32.mrf.mxu0  ;;  %v2903_v9 = vpop.f32.mrf.mxu1 }
 0x7e7   : > { %v3967_v49 = vmax.f32 %v2734_v8, 0.0  ;;  %v3968_v10 = vmax.f32 %v2903_v9, 0.0 }
 0x7e8   : > { %v5330_v50 = vadd.f32 %v5329_v44, %v3953_v6  ;;  %v5399_v11 = vadd.f32 %v5398_v45, %v3954_v7 }
 0x7e9   : > { %v5193_v12 = vadd.f32 %v5192_v62, %v3967_v49  ;;  %v5262_v13 = vadd.f32 %v5261_v63, %v3968_v10 }
 0x7ed   : > { %v3072_v14 = vpop.f32.mrf.mxu2  ;;  %v3241_v15 = vpop.f32.mrf.mxu3 }
 0x7ee   : > { %v3969_v16 = vmax.f32 %v3072_v14, 0.0  ;;  %v3970_v17 = vmax.f32 %v3241_v15, 0.0  ;;  %v2737_v18 = vpop.f32.mrf.mxu0  ;;  %v2906_v19 = vpop.f32.mrf.mxu1 }
 0x7ef   : > { %v3983_v53 = vmax.f32 %v2737_v18, 0.0  ;;  %v3984_v54 = vmax.f32 %v2906_v19, 0.0 }
 0x7f0   : > { %v5331_v20 = vadd.f32 %v5330_v50, %v3969_v16  ;;  %v5400_v21 = vadd.f32 %v5399_v11, %v3970_v17 }
 0x7f1   : > { %v5194_v22 = vadd.f32 %v5193_v12, %v3983_v53  ;;  %v5263_v23 = vadd.f32 %v5262_v13, %v3984_v54  ;;  %6115 = vmatmul.msk.bf16.gmra.mxu0 %vm449_vm1, %v6384_v26  ;;  %6147 = vmatmul.msk.bf16.gmra.mxu1 %vm449_vm1, %v6384_v26  ;;  %v6386_v13 = vld [vmem:[%s6484_s26 + $0xf8] sm:$0xff] }
 0x7f2   : > { %6179 = vmatmul.msk.bf16.gmra.mxu2 %vm449_vm1, %v6384_v26  ;;  %6211 = vmatmul.msk.bf16.gmra.mxu3 %vm449_vm1, %v6384_v26 }
 0x7f5   : > { %v3075_v27 = vpop.f32.mrf.mxu2  ;;  %v3244_v28 = vpop.f32.mrf.mxu3 }
 0x7f6   : > { %v3985_v3 = vmax.f32 %v3075_v27, 0.0  ;;  %v3986_v29 = vmax.f32 %v3244_v28, 0.0  ;;  %v2739_v30 = vpop.f32.mrf.mxu0  ;;  %v2908_v31 = vpop.f32.mrf.mxu1 }
 0x7f7   : > { %v3999_v32 = vmax.f32 %v2739_v30, 0.0  ;;  %v4000_v37 = vmax.f32 %v2908_v31, 0.0 }
 0x7f8   : > { %v5332_v38 = vadd.f32 %v5331_v20, %v3985_v3  ;;  %v5401_v24 = vadd.f32 %v5400_v21, %v3986_v29 }
 0x7f9   : > { %v5195_v25 = vadd.f32 %v5194_v22, %v3999_v32  ;;  %v5264_v33 = vadd.f32 %v5263_v23, %v4000_v37 }
 0x7fd   : > { %v3077_v35 = vpop.f32.mrf.mxu2  ;;  %v3246_v34 = vpop.f32.mrf.mxu3 }
 0x7fe   : > { %v4001_v39 = vmax.f32 %v3077_v35, 0.0  ;;  %v4002_v36 = vmax.f32 %v3246_v34, 0.0  ;;  %v2742_v42 = vpop.f32.mrf.mxu0  ;;  %v2911_v43 = vpop.f32.mrf.mxu1 }
 0x7ff   : > { %v4015_v46 = vmax.f32 %v2742_v42, 0.0  ;;  %v4016_v47 = vmax.f32 %v2911_v43, 0.0 }
 0x800   : > { %v5333_v48 = vadd.f32 %v5332_v38, %v4001_v39  ;;  %v5402_v51 = vadd.f32 %v5401_v24, %v4002_v36 }
 0x801   : > { %v5196_v5 = vadd.f32 %v5195_v25, %v4015_v46  ;;  %v5265_v52 = vadd.f32 %v5264_v33, %v4016_v47  ;;  %6116 = vmatmul.msk.bf16.gmra.mxu0 %vm449_vm1, %v6385_v57  ;;  %6148 = vmatmul.msk.bf16.gmra.mxu1 %vm449_vm1, %v6385_v57 }
 0x802   : > { %6180 = vmatmul.msk.bf16.gmra.mxu2 %vm449_vm1, %v6385_v57  ;;  %6212 = vmatmul.msk.bf16.gmra.mxu3 %vm449_vm1, %v6385_v57 }
 0x805   : > { %v3080_v58 = vpop.f32.mrf.mxu2  ;;  %v3249_v40 = vpop.f32.mrf.mxu3 }
 0x806   : > { %v4017_v41 = vmax.f32 %v3080_v58, 0.0  ;;  %v4018_v59 = vmax.f32 %v3249_v40, 0.0  ;;  %v2744_v55 = vpop.f32.mrf.mxu0  ;;  %v2913_v60 = vpop.f32.mrf.mxu1 }
 0x807   : > { %v4031_v56 = vmax.f32 %v2744_v55, 0.0  ;;  %v4032_v61 = vmax.f32 %v2913_v60, 0.0 }
 0x808   : > { %v5334_v44 = vadd.f32 %v5333_v48, %v4017_v41  ;;  %v5403_v45 = vadd.f32 %v5402_v51, %v4018_v59 }
 0x809   : > { %v5197_v62 = vadd.f32 %v5196_v5, %v4031_v56  ;;  %v5266_v63 = vadd.f32 %v5265_v52, %v4032_v61 }
 0x80d   : > { %v3082_v0 = vpop.f32.mrf.mxu2  ;;  %v3251_v1 = vpop.f32.mrf.mxu3 }
 0x80e   : > { %v4033_v4 = vmax.f32 %v3082_v0, 0.0  ;;  %v4034_v6 = vmax.f32 %v3251_v1, 0.0  ;;  %v2747_v7 = vpop.f32.mrf.mxu0  ;;  %v2916_v8 = vpop.f32.mrf.mxu1 }
 0x80f   : > { %v4047_v9 = vmax.f32 %v2747_v7, 0.0  ;;  %v4048_v49 = vmax.f32 %v2916_v8, 0.0 }
 0x810   : > { %v5335_v10 = vadd.f32 %v5334_v44, %v4033_v4  ;;  %v5404_v50 = vadd.f32 %v5403_v45, %v4034_v6 }
 0x811   : > { %v5198_v11 = vadd.f32 %v5197_v62, %v4047_v9  ;;  %v5267_v12 = vadd.f32 %v5266_v63, %v4048_v49  ;;  %6117 = vmatmul.msk.bf16.gmra.mxu0 %vm449_vm1, %v6386_v13  ;;  %6149 = vmatmul.msk.bf16.gmra.mxu1 %vm449_vm1, %v6386_v13 }
 0x812   : > { %6181 = vmatmul.msk.bf16.gmra.mxu2 %vm449_vm1, %v6386_v13  ;;  %6213 = vmatmul.msk.bf16.gmra.mxu3 %vm449_vm1, %v6386_v13 }
 0x815   : > { %v3085_v14 = vpop.f32.mrf.mxu2  ;;  %v3254_v15 = vpop.f32.mrf.mxu3 }
 0x816   : > { %v4049_v16 = vmax.f32 %v3085_v14, 0.0  ;;  %v4050_v17 = vmax.f32 %v3254_v15, 0.0  ;;  %v2749_v18 = vpop.f32.mrf.mxu0  ;;  %v2918_v19 = vpop.f32.mrf.mxu1 }
 0x817   : > { %v4063_v53 = vmax.f32 %v2749_v18, 0.0  ;;  %v4064_v54 = vmax.f32 %v2918_v19, 0.0 }
 0x818   : > { %v5336_v20 = vadd.f32 %v5335_v10, %v4049_v16  ;;  %v5405_v21 = vadd.f32 %v5404_v50, %v4050_v17 }
 0x819   : > { %v5199_v22 = vadd.f32 %v5198_v11, %v4063_v53  ;;  %v5268_v23 = vadd.f32 %v5267_v12, %v4064_v54 }
 0x81d   : > { %v3087_v26 = vpop.f32.mrf.mxu2  ;;  %v3256_v27 = vpop.f32.mrf.mxu3 }
 0x81e   : > { %v4065_v28 = vmax.f32 %v3087_v26, 0.0  ;;  %v4066_v3 = vmax.f32 %v3256_v27, 0.0  ;;  %v2752_v29 = vpop.f32.mrf.mxu0  ;;  %v2921_v30 = vpop.f32.mrf.mxu1 }
 0x81f   : > { %v4079_v31 = vmax.f32 %v2752_v29, 0.0  ;;  %v4080_v32 = vmax.f32 %v2921_v30, 0.0 }
 0x820   : > { %v5337_v37 = vadd.f32 %v5336_v20, %v4065_v28  ;;  %v5406_v38 = vadd.f32 %v5405_v21, %v4066_v3 }
 0x821   : > { %v5200_v24 = vadd.f32 %v5199_v22, %v4079_v31  ;;  %v5269_v25 = vadd.f32 %v5268_v23, %v4080_v32 }
 0x825   : > { %v3090_v33 = vpop.f32.mrf.mxu2  ;;  %v3259_v35 = vpop.f32.mrf.mxu3 }
 0x826   : > { %v4081_v34 = vmax.f32 %v3090_v33, 0.0  ;;  %v4082_v39 = vmax.f32 %v3259_v35, 0.0  ;;  %v2754_v36 = vpop.f32.mrf.mxu0  ;;  %v2923_v42 = vpop.f32.mrf.mxu1 }
 0x827   : > { %v4095_v43 = vmax.f32 %v2754_v36, 0.0  ;;  %v4096_v46 = vmax.f32 %v2923_v42, 0.0 }
 0x828   : > { %v5338_v47 = vadd.f32 %v5337_v37, %v4081_v34  ;;  %v5407_v48 = vadd.f32 %v5406_v38, %v4082_v39 }
 0x829   : > { %v5201_v51 = vadd.f32 %v5200_v24, %v4095_v43  ;;  %v5270_v5 = vadd.f32 %v5269_v25, %v4096_v46 }
 0x82d   : > { %v3092_v52 = vpop.f32.mrf.mxu2  ;;  %v3261_v57 = vpop.f32.mrf.mxu3 }
 0x82e   : > { %v4097_v58 = vmax.f32 %v3092_v52, 0.0  ;;  %v4098_v40 = vmax.f32 %v3261_v57, 0.0  ;;  %v2757_v41 = vpop.f32.mrf.mxu0  ;;  %v2926_v59 = vpop.f32.mrf.mxu1 }
 0x82f   : > { %v4111_v55 = vmax.f32 %v2757_v41, 0.0  ;;  %v4112_v60 = vmax.f32 %v2926_v59, 0.0 }
 0x830   : > { %v5339_v56 = vadd.f32 %v5338_v47, %v4097_v58  ;;  %v5408_v61 = vadd.f32 %v5407_v48, %v4098_v40 }
 0x831   : > { %v5202_v44 = vadd.f32 %v5201_v51, %v4111_v55  ;;  %v5271_v45 = vadd.f32 %v5270_v5, %v4112_v60 }
 0x835   : > { %v3095_v62 = vpop.f32.mrf.mxu2  ;;  %v3264_v63 = vpop.f32.mrf.mxu3 }
 0x836   : > { %v4113_v0 = vmax.f32 %v3095_v62, 0.0  ;;  %v4114_v1 = vmax.f32 %v3264_v63, 0.0  ;;  %v2759_v4 = vpop.f32.mrf.mxu0  ;;  %v2928_v6 = vpop.f32.mrf.mxu1 }
 0x837   : > { %v4127_v7 = vmax.f32 %v2759_v4, 0.0  ;;  %v4128_v8 = vmax.f32 %v2928_v6, 0.0 }
 0x838   : > { %v5340_v9 = vadd.f32 %v5339_v56, %v4113_v0  ;;  %v5409_v49 = vadd.f32 %v5408_v61, %v4114_v1 }
 0x839   : > { %v5203_v10 = vadd.f32 %v5202_v44, %v4127_v7  ;;  %v5272_v50 = vadd.f32 %v5271_v45, %v4128_v8 }
 0x83d   : > { %v3097_v11 = vpop.f32.mrf.mxu2  ;;  %v3266_v12 = vpop.f32.mrf.mxu3 }
 0x83e   : > { %v4129_v13 = vmax.f32 %v3097_v11, 0.0  ;;  %v4130_v14 = vmax.f32 %v3266_v12, 0.0  ;;  %v2762_v15 = vpop.f32.mrf.mxu0  ;;  %v2931_v16 = vpop.f32.mrf.mxu1 }
 0x83f   : > { %v4143_v17 = vmax.f32 %v2762_v15, 0.0  ;;  %v4144_v18 = vmax.f32 %v2931_v16, 0.0 }
 0x840   : > { %v5341_v19 = vadd.f32 %v5340_v9, %v4129_v13  ;;  %v5410_v53 = vadd.f32 %v5409_v49, %v4130_v14 }
 0x841   : > { %v5204_v54 = vadd.f32 %v5203_v10, %v4143_v17  ;;  %v5273_v20 = vadd.f32 %v5272_v50, %v4144_v18 }
 0x845   : > { %v3100_v21 = vpop.f32.mrf.mxu2  ;;  %v3269_v22 = vpop.f32.mrf.mxu3 }
 0x846   : > { %v4145_v23 = vmax.f32 %v3100_v21, 0.0  ;;  %v4146_v26 = vmax.f32 %v3269_v22, 0.0  ;;  %v2764_v27 = vpop.f32.mrf.mxu0  ;;  %v2933_v28 = vpop.f32.mrf.mxu1 }
 0x847   : > { %v4159_v61 = vmax.f32 %v2764_v27, 0.0  ;;  %v4160_v44 = vmax.f32 %v2933_v28, 0.0 }
 0x848   : > { %v5342_v3 = vadd.f32 %v5341_v19, %v4145_v23  ;;  %v5411_v29 = vadd.f32 %v5410_v53, %v4146_v26 }
 0x849   : > { %v5205_v63 = vadd.f32 %v5204_v54, %v4159_v61  ;;  %v5274_v0 = vadd.f32 %v5273_v20, %v4160_v44 }
 0x84d   : > { %v3102_v30 = vpop.f32.mrf.mxu2  ;;  %v3271_v31 = vpop.f32.mrf.mxu3 }
 0x84e   : > { %v2767_v32 = vpop.f32.mrf.mxu0  ;;  %v2936_v37 = vpop.f32.mrf.mxu1  ;;  %v4161_v12 = vmax.f32 %v3102_v30, 0.0  ;;  %v4162_v13 = vmax.f32 %v3271_v31, 0.0 }
 0x84f   : > { %v4175_v45 = vmax.f32 %v2767_v32, 0.0  ;;  %v4176_v62 = vmax.f32 %v2936_v37, 0.0 }
 0x850   : > { %v5343_v22 = vadd.f32 %v5342_v3, %v4161_v12  ;;  %v5412_v23 = vadd.f32 %v5411_v29, %v4162_v13 }
 0x851   : > { %v5206_v49 = vadd.f32 %v5205_v63, %v4175_v45  ;;  %v5275_v10 = vadd.f32 %v5274_v0, %v4176_v62 }
 0x855   : > { %v7272_v38 = vpop.f32.mrf.mxu2  ;;  %v7274_v24 = vpop.f32.mrf.mxu3 }
 0x856   : > { %v2769_v25 = vpop.f32.mrf.mxu0  ;;  %v2938_v33 = vpop.f32.mrf.mxu1  ;;  %v4177_v18 = vmax.f32 %v7272_v38, 0.0  ;;  %v4178_v19 = vmax.f32 %v7274_v24, 0.0 }
 0x857   : > { %v4191_v1 = vmax.f32 %v2769_v25, 0.0  ;;  %v4192_v4 = vmax.f32 %v2938_v33, 0.0 }
 0x858   : > { %v5344_v33 = vadd.f32 %v5343_v22, %v4177_v18  ;;  %v5413_v38 = vadd.f32 %v5412_v23, %v4178_v19 }
 0x859   : > { %v5207_v14 = vadd.f32 %v5206_v49, %v4191_v1  ;;  %v5276_v15 = vadd.f32 %v5275_v10, %v4192_v4 }
 0x85d   : > { %v7276_v35 = vpop.f32.mrf.mxu2  ;;  %v7278_v34 = vpop.f32.mrf.mxu3 }
 0x85e   : > { %v2772_v39 = vpop.f32.mrf.mxu0  ;;  %v2941_v36 = vpop.f32.mrf.mxu1  ;;  %v4193_v26 = vmax.f32 %v7276_v35, 0.0  ;;  %v4194_v27 = vmax.f32 %v7278_v34, 0.0 }
 0x85f   : > { %v4207_v50 = vmax.f32 %v2772_v39, 0.0  ;;  %v4208_v11 = vmax.f32 %v2941_v36, 0.0 }
 0x861   : > { %v5208_v53 = vadd.f32 %v5207_v14, %v4207_v50  ;;  %v5277_v54 = vadd.f32 %v5276_v15, %v4208_v11 }
 0x865   : > { %v7280_v42 = vpop.f32.mrf.mxu2  ;;  %v7282_v43 = vpop.f32.mrf.mxu3 }
 0x866   : > { %v2774_v46 = vpop.f32.mrf.mxu0  ;;  %v2943_v47 = vpop.f32.mrf.mxu1  ;;  %v4209_v24 = vmax.f32 %v7280_v42, 0.0  ;;  %v4210_v39 = vmax.f32 %v7282_v43, 0.0 }
 0x867   : > { %v4223_v16 = vmax.f32 %v2774_v46, 0.0  ;;  %v4224_v17 = vmax.f32 %v2943_v47, 0.0  ;;  %v5345_v47 = vadd.f32 %v5344_v33, %v4193_v26 }
 0x869   : > { %v5209_v28 = vadd.f32 %v5208_v53, %v4223_v16  ;;  %v5278_v30 = vadd.f32 %v5277_v54, %v4224_v17  ;;  %v5346_v45 = vadd.f32 %v5345_v47, %v4209_v24 }
 0x86d   : > { %v7284_v48 = vpop.f32.mrf.mxu2  ;;  %v7286_v51 = vpop.f32.mrf.mxu3 }
 0x86e   : > { %v2777_v5 = vpop.f32.mrf.mxu0  ;;  %v2946_v52 = vpop.f32.mrf.mxu1 }
 0x86f   : > { %v4239_v20 = vmax.f32 %v2777_v5, 0.0  ;;  %v4240_v21 = vmax.f32 %v2946_v52, 0.0  ;;  %v5414_v5 = vadd.f32 %v5413_v38, %v4194_v27  ;;  %v4225_v52 = vmax.f32 %v7284_v48, 0.0 }
 0x871   : > { %v5210_v3 = vadd.f32 %v5209_v28, %v4239_v20  ;;  %v5279_v29 = vadd.f32 %v5278_v30, %v4240_v21  ;;  %v5415_v43 = vadd.f32 %v5414_v5, %v4210_v39  ;;  %v5347_v4 = vadd.f32 %v5346_v45, %v4225_v52 }
 0x875   : > { %v7288_v57 = vpop.f32.mrf.mxu2  ;;  %v7290_v58 = vpop.f32.mrf.mxu3 }
 0x876   : > { %v2779_v40 = vpop.f32.mrf.mxu0  ;;  %v2948_v41 = vpop.f32.mrf.mxu1  ;;  %v4241_v62 = vmax.f32 %v7288_v57, 0.0  ;;  %v4242_v63 = vmax.f32 %v7290_v58, 0.0 }
 0x877   : > { %v4255_v31 = vmax.f32 %v2779_v40, 0.0  ;;  %v4256_v32 = vmax.f32 %v2948_v41, 0.0  ;;  %v4226_v40 = vmax.f32 %v7286_v51, 0.0 }
 0x878   : > { %v5348_v11 = vadd.f32 %v5347_v4, %v4241_v62 }
 0x879   : > { %v5211_v41 = vadd.f32 %v5210_v3, %v4255_v31  ;;  %v5280_v61 = vadd.f32 %v5279_v29, %v4256_v32  ;;  %v5416_v49 = vadd.f32 %v5415_v43, %v4226_v40 }
 0x87b   : > { %v5417_v12 = vadd.f32 %v5416_v49, %v4242_v63 }
 0x87d   : > { %v7292_v59 = vpop.f32.mrf.mxu2  ;;  %v7294_v55 = vpop.f32.mrf.mxu3 }
 0x87e   : > { %v7296_v60 = vpop.f32.mrf.mxu0  ;;  %v7298_v56 = vpop.f32.mrf.mxu1  ;;  %v4257_v48 = vmax.f32 %v7292_v59, 0.0  ;;  %v4258_v51 = vmax.f32 %v7294_v55, 0.0 }
 0x87f   : > { %v4271_v35 = vmax.f32 %v7296_v60, 0.0  ;;  %v4272_v34 = vmax.f32 %v7298_v56, 0.0 }
 0x880   : > { %v5349_v19 = vadd.f32 %v5348_v11, %v4257_v48  ;;  %v5418_v59 = vadd.f32 %v5417_v12, %v4258_v51 }
 0x881   : > { %v5212_v0 = vadd.f32 %v5211_v41, %v4271_v35  ;;  %v5281_v60 = vadd.f32 %v5280_v61, %v4272_v34 }
 0x885   : > { %v7300_v6 = vpop.f32.mrf.mxu2  ;;  %v7302_v7 = vpop.f32.mrf.mxu3 }
 0x886   : > { %v2784_v8 = vpop.f32.mrf.mxu0  ;;  %v2953_v9 = vpop.f32.mrf.mxu1  ;;  %v4273_v57 = vmax.f32 %v7300_v6, 0.0  ;;  %v4274_v58 = vmax.f32 %v7302_v7, 0.0 }
 0x887   : > { %v4287_v44 = vmax.f32 %v2784_v8, 0.0  ;;  %v4288_v42 = vmax.f32 %v2953_v9, 0.0 }
 0x888   : > { %v5350_v21 = vadd.f32 %v5349_v19, %v4273_v57  ;;  %v5419_v22 = vadd.f32 %v5418_v59, %v4274_v58 }
 0x889   : > { %v5213_v10 = vadd.f32 %v5212_v0, %v4287_v44  ;;  %v5282_v50 = vadd.f32 %v5281_v60, %v4288_v42 }
 0x88d   : > { %v3122_v37 = vpop.f32.mrf.mxu2  ;;  %v3291_v25 = vpop.f32.mrf.mxu3 }
 0x88e   : > { %v2787_v36 = vpop.f32.mrf.mxu0  ;;  %v2956_v46 = vpop.f32.mrf.mxu1  ;;  %v4289_v53 = vmax.f32 %v3122_v37, 0.0  ;;  %v4290_v55 = vmax.f32 %v3291_v25, 0.0 }
 0x88f   : > { %v4303_v1 = vmax.f32 %v2787_v36, 0.0  ;;  %v4304_v56 = vmax.f32 %v2956_v46, 0.0 }
 0x890   : > { %v5351_v28 = vadd.f32 %v5350_v21, %v4289_v53  ;;  %v5420_v7 = vadd.f32 %v5419_v22, %v4290_v55 }
 0x891   : > { %v5214_v15 = vadd.f32 %v5213_v10, %v4303_v1  ;;  %v5283_v16 = vadd.f32 %v5282_v50, %v4304_v56  ;;  %v4324_v10 = vld [vmem:[#allocation2 + $0x8] sm:$0xff] }
 0x895   : > { %v3125_v8 = vpop.f32.mrf.mxu2  ;;  %v3294_v9 = vpop.f32.mrf.mxu3 }
 0x896   : > { %v2789_v13 = vpop.f32.mrf.mxu0  ;;  %v2958_v14 = vpop.f32.mrf.mxu1  ;;  %v4305_v23 = vmax.f32 %v3125_v8, 0.0  ;;  %v4306_v26 = vmax.f32 %v3294_v9, 0.0 }
 0x897   : > { %v4319_v17 = vmax.f32 %v2789_v13, 0.0  ;;  %v4320_v18 = vmax.f32 %v2958_v14, 0.0 }
 0x898   : > { %v5352_v38 = vadd.f32 %v5351_v28, %v4305_v23  ;;  %v5421_v24 = vadd.f32 %v5420_v7, %v4306_v26 }
 0x899   : > { %v5215_v54 = vadd.f32 %v5214_v15, %v4319_v17  ;;  %v5284_v20 = vadd.f32 %v5283_v16, %v4320_v18 }
 0x89b   : > { %v5216_v27 = vrot.slane %v5215_v54, 4  ;;  %v5285_v6 = vrot.slane %v5284_v20, 4 }
 0x89d   : > { %v5217_v30 = vadd.f32 %v5216_v27, %v5215_v54  ;;  %v5286_v31 = vadd.f32 %v5285_v6, %v5284_v20  ;;  %v3127_v32 = vpop.f32.mrf.mxu2  ;;  %v3296_v33 = vpop.f32.mrf.mxu3 }
 0x89e   : > { %v4321_v39 = vmax.f32 %v3127_v32, 0.0  ;;  %v4322_v36 = vmax.f32 %v3296_v33, 0.0 }
 0x89f   : > { %v5218_v37 = vrot.slane %v5217_v30, 2  ;;  %v5287_v25 = vrot.slane %v5286_v31, 2 }
 0x8a0   : > { %v5353_v46 = vadd.f32 %v5352_v38, %v4321_v39  ;;  %v5422_v3 = vadd.f32 %v5421_v24, %v4322_v36 }
 0x8a1   : > { %v5219_v29 = vadd.f32 %v5218_v37, %v5217_v30  ;;  %v5288_v35 = vadd.f32 %v5287_v25, %v5286_v31 }
 0x8a2   : > { %v5354_v34 = vrot.slane %v5353_v46, 4  ;;  %v5423_v47 = vrot.slane %v5422_v3, 4 }
 0x8a3   : > { %v5220_v5 = vrot.slane %v5219_v29, 1  ;;  %v5289_v52 = vrot.slane %v5288_v35, 1 }
 0x8a4   : > { %v5355_v40 = vadd.f32 %v5354_v34, %v5353_v46  ;;  %v5424_v41 = vadd.f32 %v5423_v47, %v5422_v3 }
 0x8a5   : > { %v5221_v61 = vadd.f32 %v5220_v5, %v5219_v29  ;;  %v5290_v44 = vadd.f32 %v5289_v52, %v5288_v35 }
 0x8a6   : > { %v5356_v42 = vrot.slane %v5355_v40, 2  ;;  %v5425_v45 = vrot.slane %v5424_v41, 2 }
 0x8a7   : > { %v5455_v43 = vrot.slane %v5221_v61, 4  ;;  %v5456_v62 = vrot.slane %v5290_v44, 3 }
 0x8a8   : > { %v5357_v63 = vadd.f32 %v5356_v42, %v5355_v40  ;;  %v5426_v0 = vadd.f32 %v5425_v45, %v5424_v41 }
 0x8a9   : > { %v5475_v60 = vsel %vm5465_vm5, %v5455_v43, %v5456_v62 }
 0x8aa   : > { %v5358_v1 = vrot.slane %v5357_v63, 1  ;;  %v5427_v56 = vrot.slane %v5426_v0, 1 }
 0x8ac   : > { %v5359_v4 = vadd.f32 %v5358_v1, %v5357_v63  ;;  %v5428_v49 = vadd.f32 %v5427_v56, %v5426_v0 }
 0x8ae   : > { %v5457_v48 = vrot.slane %v5359_v4, 2  ;;  %v5458_v51 = vrot.slane %v5428_v49, 1 }
 0x8b0   : > { %v5476_v50 = vsel %vm5467_vm6, %v5457_v48, %v5458_v51 }
 0x8b1   : > { %v5477_v8 = vsel %vm5469_vm7, %v5475_v60, %v5476_v50  ;;  %5488 = sbr.rel (%p6214_p8) target bundleno = 2240 (0x8c0), region = 36 }
 0x8b2   : > { %v5478_v9 = vsel %vm546_vm0, %v7155_v2, %v5477_v8 }
 0x8b3   : > { %v5482_v11 = vadd.f32 %v5478_v9, %v4324_v10 }
 0x8b5   : > { %5484 = vst [vmem:[#allocation2 + $0x8] sm:$0xff] %v5482_v11 }
 0x8b6   : > { %v5489_v12 = vld [vmem:[#allocation2] sm:$0xff] }
 0x8b7   : > { %v5491_v58 = vmul.f32 0.00077160494, %v5489_v12 }
 0x8b9   : > { %5493 = vst [vmem:[%s6479_s21] sm:$0xff] %v5491_v58 }
 0x8bc   : > { %v5490_v57 = vld [vmem:[#allocation2 + $0x8] sm:$0xff] }
 0x8bd   : > { %v5492_v13 = vmul.f32 0.00077160494, %v5490_v57 }
 0x8bf   : > { %5494 = vst [vmem:[%s6479_s21 + $0x8] sm:$0xff] %v5492_v13 }
 0x8c0 PF: > { %s12_s13 = sadd.s32 1, %s6425_s13   ;;  %s7346_s9 = smov %s6417_s11 }
 0x8c1   : > { %p9_p9 = scmp.ge.s32.totalorder %s12_s13, 8   ;;  %s7347_s10 = smov %s6421_s12 }
 0x8c2   : > { %s7348_s11 = smov %s7351_s14  ;;  %s7349_s12 = smov %s7355_s15 }
 0x8c3   :  { %11 = sbr.rel (!%p9_p9) target bundleno = 3 (0x3), region = 66 }

// kernel: reward_model_forward.3
= control target key start
LH: loop header
LB: loop body
LE: loop exit
PB: predicated region body
PF: predicated region fallthrough
CT: control target
= control target key end

     0   :  { %s3048_s0 = inlined_call_operand.vmem [shape: f32[2,2048], index: 0, kind: input, shape index: {}]   ;;  %s3049_s1 = inlined_call_operand.hbm [shape: f32[2048,512], index: 1, kind: input, shape index: {}]   ;;  %s3050_s2 = inlined_call_operand.vmem [shape: f32[1,512], index: 2, kind: input, shape index: {}]   ;;  %s3051_s3 = inlined_call_operand.vmem [shape: f32[512,128], index: 3, kind: input, shape index: {}]   ;;  %s3052_s4 = inlined_call_operand.vmem [shape: f32[1,128], index: 4, kind: input, shape index: {}]   ;;  %s3053_s5 = inlined_call_operand.vmem [shape: f32[1,128], index: 5, kind: input, shape index: {}]   ;;  %s3054_s6 = inlined_call_operand.<no memory space> [shape: f32[1,1], index: 6, kind: input, shape index: {}]   ;;  %s3055_s7 = inlined_call_operand.vmem [shape: f32[2,1], index: 7, kind: output, shape index: {}]  }
   0x1   :  { %v12_v0 = vstv %s3054_s6 }
   0x2   :  { %13 = vst [vmem:[#allocation2] sm:$0x1] %v12_v0 }
   0x3   :  { %14 = vsyncpa [#allocation4], 0  ;;  %s21_s28 = sshll.u32 %s3049_s1, 4  ;;  %s2633_s29 = smov [#allocation3]   ;;  %s22_s28 = int_to_ptr.hbm [resolvable:$true] %s21_s28 }
   0x4   :  { %s23_s30 = sshll.u32 %s2633_s29, 4  ;;  %s2634_s8 = smov 512   ;;  %s24_s30 = int_to_ptr.vmem [resolvable:$true] %s23_s30 }
   0x5   :  { %s2635_s9 = smov 32  }
   0x6   :  { %29 = dma.hbm_to_vmem [thread:$0]  %s22_s28, 131072, %s24_s30, [#allocation4], %s2634_s8, %s2634_s8, %s2635_s9  }
   0x7   :  { %2631 = dma.done.wait [#allocation4], 131072  }
   0x8   :  { %2632 = vsyncadd [#allocation4], 4294836224  ;;  %v108_v1 = vld [vmem:[#allocation3 + $0x1e0] sm:$0xff]  ;;  %vm2561_vm0 = vcmask 1041408   ;;  %vm2570_vm1 = vcmask 1024  }
   0x9   :  { %v172_v2 = vld [vmem:[#allocation3 + $0x3e0] sm:$0xff]  ;;  %1123 = vmatpush.msra.mxu0 %v108_v1 }
   0xa   :  { %v236_v3 = vld [vmem:[#allocation3 + $0x5e0] sm:$0xff]  ;;  %1143 = vmatpush.msra.mxu1 %v172_v2 }
   0xb   :  { %v104_v4 = vld [vmem:[#allocation3 + $0x1c0] sm:$0xff]  ;;  %1163 = vmatpush.msra.mxu2 %v236_v3 }
   0xc   :  { %v168_v5 = vld [vmem:[#allocation3 + $0x3c0] sm:$0xff]  ;;  %1124 = vmatpush.msra.mxu0 %v104_v4 }
   0xd   :  { %v232_v6 = vld [vmem:[#allocation3 + $0x5c0] sm:$0xff]  ;;  %1144 = vmatpush.msra.mxu1 %v168_v5 }
   0xe   :  { %v300_v7 = vld [vmem:[#allocation3 + $0x7e0] sm:$0xff]  ;;  %1164 = vmatpush.msra.mxu2 %v232_v6 }
   0xf   :  { %v100_v8 = vld [vmem:[#allocation3 + $0x1a0] sm:$0xff]  ;;  %1183 = vmatpush.msra.mxu3 %v300_v7 }
  0x10   :  { %v164_v9 = vld [vmem:[#allocation3 + $0x3a0] sm:$0xff]  ;;  %1125 = vmatpush.msra.mxu0 %v100_v8 }
  0x11   :  { %v228_v10 = vld [vmem:[#allocation3 + $0x5a0] sm:$0xff]  ;;  %1145 = vmatpush.msra.mxu1 %v164_v9 }
  0x12   :  { %v296_v11 = vld [vmem:[#allocation3 + $0x7c0] sm:$0xff]  ;;  %1165 = vmatpush.msra.mxu2 %v228_v10 }
  0x13   :  { %v96_v12 = vld [vmem:[#allocation3 + $0x180] sm:$0xff]  ;;  %1184 = vmatpush.msra.mxu3 %v296_v11 }
  0x14   :  { %v160_v13 = vld [vmem:[#allocation3 + $0x380] sm:$0xff]  ;;  %1126 = vmatpush.msra.mxu0 %v96_v12 }
  0x15   :  { %v224_v14 = vld [vmem:[#allocation3 + $0x580] sm:$0xff]  ;;  %1146 = vmatpush.msra.mxu1 %v160_v13 }
  0x16   :  { %v292_v15 = vld [vmem:[#allocation3 + $0x7a0] sm:$0xff]  ;;  %1166 = vmatpush.msra.mxu2 %v224_v14 }
  0x17   :  { %v92_v16 = vld [vmem:[#allocation3 + $0x160] sm:$0xff]  ;;  %1185 = vmatpush.msra.mxu3 %v292_v15 }
  0x18   :  { %v156_v17 = vld [vmem:[#allocation3 + $0x360] sm:$0xff]  ;;  %1127 = vmatpush.msra.mxu0 %v92_v16 }
  0x19   :  { %v220_v18 = vld [vmem:[#allocation3 + $0x560] sm:$0xff]  ;;  %1147 = vmatpush.msra.mxu1 %v156_v17 }
  0x1a   :  { %v288_v19 = vld [vmem:[#allocation3 + $0x780] sm:$0xff]  ;;  %1167 = vmatpush.msra.mxu2 %v220_v18 }
  0x1b   :  { %v88_v20 = vld [vmem:[#allocation3 + $0x140] sm:$0xff]  ;;  %1186 = vmatpush.msra.mxu3 %v288_v19 }
  0x1c   :  { %v152_v21 = vld [vmem:[#allocation3 + $0x340] sm:$0xff]  ;;  %1128 = vmatpush.msra.mxu0 %v88_v20 }
  0x1d   :  { %v216_v22 = vld [vmem:[#allocation3 + $0x540] sm:$0xff]  ;;  %1148 = vmatpush.msra.mxu1 %v152_v21 }
  0x1e   :  { %v284_v23 = vld [vmem:[#allocation3 + $0x760] sm:$0xff]  ;;  %1168 = vmatpush.msra.mxu2 %v216_v22 }
  0x1f   :  { %v84_v24 = vld [vmem:[#allocation3 + $0x120] sm:$0xff]  ;;  %1187 = vmatpush.msra.mxu3 %v284_v23 }
  0x20   :  { %v148_v25 = vld [vmem:[#allocation3 + $0x320] sm:$0xff]  ;;  %1129 = vmatpush.msra.mxu0 %v84_v24 }
  0x21   :  { %v212_v26 = vld [vmem:[#allocation3 + $0x520] sm:$0xff]  ;;  %1149 = vmatpush.msra.mxu1 %v148_v25 }
  0x22   :  { %v280_v27 = vld [vmem:[#allocation3 + $0x740] sm:$0xff]  ;;  %1169 = vmatpush.msra.mxu2 %v212_v26  ;;  %v44_v26 = vld [vmem:[%s3048_s0] sm:$0xff] }
  0x23   :  { %v80_v28 = vld [vmem:[#allocation3 + $0x100] sm:$0xff]  ;;  %1188 = vmatpush.msra.mxu3 %v280_v27  ;;  %1086 = vst [vmem:[#allocation1] ss:$4 sm:$0xff] %v44_v26 }
  0x24   :  { %v144_v29 = vld [vmem:[#allocation3 + $0x300] sm:$0xff]  ;;  %1130 = vmatpush.msra.mxu0 %v80_v28 }
  0x25   :  { %v208_v30 = vld [vmem:[#allocation3 + $0x500] sm:$0xff]  ;;  %1150 = vmatpush.msra.mxu1 %v144_v29 }
  0x26   :  { %v276_v31 = vld [vmem:[#allocation3 + $0x720] sm:$0xff]  ;;  %1170 = vmatpush.msra.mxu2 %v208_v30 }
  0x27   :  { %v76_v32 = vld [vmem:[#allocation3 + $0xe0] sm:$0xff]  ;;  %1189 = vmatpush.msra.mxu3 %v276_v31 }
  0x28   :  { %v140_v33 = vld [vmem:[#allocation3 + $0x2e0] sm:$0xff]  ;;  %1131 = vmatpush.msra.mxu0 %v76_v32 }
  0x29   :  { %v204_v34 = vld [vmem:[#allocation3 + $0x4e0] sm:$0xff]  ;;  %1151 = vmatpush.msra.mxu1 %v140_v33 }
  0x2a   :  { %v272_v35 = vld [vmem:[#allocation3 + $0x700] sm:$0xff]  ;;  %1171 = vmatpush.msra.mxu2 %v204_v34 }
  0x2b   :  { %v72_v36 = vld [vmem:[#allocation3 + $0xc0] sm:$0xff]  ;;  %1190 = vmatpush.msra.mxu3 %v272_v35 }
  0x2c   :  { %v136_v37 = vld [vmem:[#allocation3 + $0x2c0] sm:$0xff]  ;;  %1132 = vmatpush.msra.mxu0 %v72_v36 }
  0x2d   :  { %v200_v38 = vld [vmem:[#allocation3 + $0x4c0] sm:$0xff]  ;;  %1152 = vmatpush.msra.mxu1 %v136_v37 }
  0x2e   :  { %v268_v39 = vld [vmem:[#allocation3 + $0x6e0] sm:$0xff]  ;;  %1172 = vmatpush.msra.mxu2 %v200_v38 }
  0x2f   :  { %v68_v40 = vld [vmem:[#allocation3 + $0xa0] sm:$0xff]  ;;  %1191 = vmatpush.msra.mxu3 %v268_v39 }
  0x30   :  { %v132_v41 = vld [vmem:[#allocation3 + $0x2a0] sm:$0xff]  ;;  %1133 = vmatpush.msra.mxu0 %v68_v40 }
  0x31   :  { %v196_v42 = vld [vmem:[#allocation3 + $0x4a0] sm:$0xff]  ;;  %1153 = vmatpush.msra.mxu1 %v132_v41 }
  0x32   :  { %v264_v43 = vld [vmem:[#allocation3 + $0x6c0] sm:$0xff]  ;;  %1173 = vmatpush.msra.mxu2 %v196_v42 }
  0x33   :  { %v64_v44 = vld [vmem:[#allocation3 + $0x80] sm:$0xff]  ;;  %1192 = vmatpush.msra.mxu3 %v264_v43 }
  0x34   :  { %v128_v45 = vld [vmem:[#allocation3 + $0x280] sm:$0xff]  ;;  %1134 = vmatpush.msra.mxu0 %v64_v44 }
  0x35   :  { %v192_v46 = vld [vmem:[#allocation3 + $0x480] sm:$0xff]  ;;  %1154 = vmatpush.msra.mxu1 %v128_v45 }
  0x36   :  { %v260_v47 = vld [vmem:[#allocation3 + $0x6a0] sm:$0xff]  ;;  %1174 = vmatpush.msra.mxu2 %v192_v46 }
  0x37   :  { %v60_v48 = vld [vmem:[#allocation3 + $0x60] sm:$0xff]  ;;  %1193 = vmatpush.msra.mxu3 %v260_v47 }
  0x38   :  { %v124_v49 = vld [vmem:[#allocation3 + $0x260] sm:$0xff]  ;;  %1135 = vmatpush.msra.mxu0 %v60_v48  ;;  %v2691_v48 = vld.sshfl [vmem:[#allocation1] sm:$0xff pattern:$0x73625140] }
  0x39   :  { %v188_v50 = vld [vmem:[#allocation3 + $0x460] sm:$0xff]  ;;  %1155 = vmatpush.msra.mxu1 %v124_v49 }
  0x3a   :  { %v256_v51 = vld [vmem:[#allocation3 + $0x680] sm:$0xff]  ;;  %1175 = vmatpush.msra.mxu2 %v188_v50 }
  0x3b   :  { %v56_v52 = vld [vmem:[#allocation3 + $0x40] sm:$0xff]  ;;  %1194 = vmatpush.msra.mxu3 %v256_v51  ;;  %v2697_v51 = vld.sshfl [vmem:[#allocation1 + $0x18] sm:$0xff pattern:$0x73625140] }
  0x3c   :  { %v120_v53 = vld [vmem:[#allocation3 + $0x240] sm:$0xff]  ;;  %1136 = vmatpush.msra.mxu0 %v56_v52 }
  0x3d   :  { %v184_v54 = vld [vmem:[#allocation3 + $0x440] sm:$0xff]  ;;  %1156 = vmatpush.msra.mxu1 %v120_v53 }
  0x3e   :  { %v252_v55 = vld [vmem:[#allocation3 + $0x660] sm:$0xff]  ;;  %1176 = vmatpush.msra.mxu2 %v184_v54 }
  0x3f   :  { %v52_v56 = vld [vmem:[#allocation3 + $0x20] sm:$0xff]  ;;  %1195 = vmatpush.msra.mxu3 %v252_v55 }
  0x40   :  { %v116_v57 = vld [vmem:[#allocation3 + $0x220] sm:$0xff]  ;;  %1137 = vmatpush.msra.mxu0 %v52_v56 }
  0x41   :  { %v180_v58 = vld [vmem:[#allocation3 + $0x420] sm:$0xff]  ;;  %1157 = vmatpush.msra.mxu1 %v116_v57 }
  0x42   :  { %v248_v59 = vld [vmem:[#allocation3 + $0x640] sm:$0xff]  ;;  %1177 = vmatpush.msra.mxu2 %v180_v58 }
  0x43   :  { %v48_v60 = vld [vmem:[#allocation3] sm:$0xff]  ;;  %1196 = vmatpush.msra.mxu3 %v248_v59 }
  0x44   :  { %v112_v61 = vld [vmem:[#allocation3 + $0x200] sm:$0xff]  ;;  %1138 = vmatpush.msra.mxu0 %v48_v60 }
  0x45   :  { %v176_v62 = vld [vmem:[#allocation3 + $0x400] sm:$0xff]  ;;  %1158 = vmatpush.msra.mxu1 %v112_v61  ;;  %1139 = vmatmul.f32.vlgmr.msra.gmra.mxu0 %v2691_v48 }
  0x46   :  { %v244_v63 = vld [vmem:[#allocation3 + $0x620] sm:$0xff]  ;;  %1178 = vmatpush.msra.mxu2 %v176_v62 }
  0x47   :  { %v364_v0 = vld [vmem:[#allocation3 + $0x9e0] sm:$0xff]  ;;  %1197 = vmatpush.msra.mxu3 %v244_v63  ;;  %v47_v63 = vld [vmem:[%s3048_s0 + $0x18] sm:$0xff] }
  0x48   :  { %v428_v1 = vld [vmem:[#allocation3 + $0xbe0] sm:$0xff]  ;;  %1203 = vmatpush.msrb.mxu0 %v364_v0 }
  0x49   :  { %v492_v2 = vld [vmem:[#allocation3 + $0xde0] sm:$0xff]  ;;  %1223 = vmatpush.msrb.mxu1 %v428_v1 }
  0x4a   :  { %v240_v3 = vld [vmem:[#allocation3 + $0x600] sm:$0xff]  ;;  %1243 = vmatpush.msrb.mxu2 %v492_v2 }
  0x4b   :  { %v360_v4 = vld [vmem:[#allocation3 + $0x9c0] sm:$0xff]  ;;  %1198 = vmatpush.msra.mxu3 %v240_v3 }
  0x4c   :  { %v424_v5 = vld [vmem:[#allocation3 + $0xbc0] sm:$0xff]  ;;  %1204 = vmatpush.msrb.mxu0 %v360_v4  ;;  %1199 = vmatmul.f32.vlgmr.msra.gmra.mxu3 %v2697_v51 }
  0x4d   :  { %v488_v6 = vld [vmem:[#allocation3 + $0xdc0] sm:$0xff]  ;;  %1224 = vmatpush.msrb.mxu1 %v424_v5 }
  0x4e   :  { %v556_v7 = vld [vmem:[#allocation3 + $0xfe0] sm:$0xff]  ;;  %1244 = vmatpush.msrb.mxu2 %v488_v6 }
  0x4f   :  { %v356_v8 = vld [vmem:[#allocation3 + $0x9a0] sm:$0xff]  ;;  %1263 = vmatpush.msrb.mxu3 %v556_v7 }
  0x50   :  { %v420_v9 = vld [vmem:[#allocation3 + $0xba0] sm:$0xff]  ;;  %1205 = vmatpush.msrb.mxu0 %v356_v8 }
  0x51   :  { %v484_v10 = vld [vmem:[#allocation3 + $0xda0] sm:$0xff]  ;;  %1225 = vmatpush.msrb.mxu1 %v420_v9 }
  0x52   :  { %v552_v11 = vld [vmem:[#allocation3 + $0xfc0] sm:$0xff]  ;;  %1245 = vmatpush.msrb.mxu2 %v484_v10 }
  0x53   :  { %v352_v12 = vld [vmem:[#allocation3 + $0x980] sm:$0xff]  ;;  %1264 = vmatpush.msrb.mxu3 %v552_v11 }
  0x54   :  { %v416_v13 = vld [vmem:[#allocation3 + $0xb80] sm:$0xff]  ;;  %1206 = vmatpush.msrb.mxu0 %v352_v12 }
  0x55   :  { %v480_v14 = vld [vmem:[#allocation3 + $0xd80] sm:$0xff]  ;;  %1226 = vmatpush.msrb.mxu1 %v416_v13 }
  0x56   :  { %v548_v15 = vld [vmem:[#allocation3 + $0xfa0] sm:$0xff]  ;;  %1246 = vmatpush.msrb.mxu2 %v480_v14 }
  0x57   :  { %v348_v16 = vld [vmem:[#allocation3 + $0x960] sm:$0xff]  ;;  %1265 = vmatpush.msrb.mxu3 %v548_v15 }
  0x58   :  { %v412_v17 = vld [vmem:[#allocation3 + $0xb60] sm:$0xff]  ;;  %1207 = vmatpush.msrb.mxu0 %v348_v16 }
  0x59   :  { %v476_v18 = vld [vmem:[#allocation3 + $0xd60] sm:$0xff]  ;;  %1227 = vmatpush.msrb.mxu1 %v412_v17 }
  0x5a   :  { %v544_v19 = vld [vmem:[#allocation3 + $0xf80] sm:$0xff]  ;;  %1247 = vmatpush.msrb.mxu2 %v476_v18 }
  0x5b   :  { %v344_v20 = vld [vmem:[#allocation3 + $0x940] sm:$0xff]  ;;  %1266 = vmatpush.msrb.mxu3 %v544_v19 }
  0x5c   :  { %v408_v21 = vld [vmem:[#allocation3 + $0xb40] sm:$0xff]  ;;  %1208 = vmatpush.msrb.mxu0 %v344_v20 }
  0x5d   :  { %v472_v22 = vld [vmem:[#allocation3 + $0xd40] sm:$0xff]  ;;  %1228 = vmatpush.msrb.mxu1 %v408_v21 }
  0x5e   :  { %v540_v23 = vld [vmem:[#allocation3 + $0xf60] sm:$0xff]  ;;  %1248 = vmatpush.msrb.mxu2 %v472_v22 }
  0x5f   :  { %v340_v24 = vld [vmem:[#allocation3 + $0x920] sm:$0xff]  ;;  %1267 = vmatpush.msrb.mxu3 %v540_v23 }
  0x60   :  { %v404_v25 = vld [vmem:[#allocation3 + $0xb20] sm:$0xff]  ;;  %1209 = vmatpush.msrb.mxu0 %v340_v24 }
  0x61   :  { %v468_v27 = vld [vmem:[#allocation3 + $0xd20] sm:$0xff]  ;;  %1229 = vmatpush.msrb.mxu1 %v404_v25 }
  0x62   :  { %v536_v28 = vld [vmem:[#allocation3 + $0xf40] sm:$0xff]  ;;  %1249 = vmatpush.msrb.mxu2 %v468_v27 }
  0x63   :  { %v336_v29 = vld [vmem:[#allocation3 + $0x900] sm:$0xff]  ;;  %1268 = vmatpush.msrb.mxu3 %v536_v28 }
  0x64   :  { %v400_v30 = vld [vmem:[#allocation3 + $0xb00] sm:$0xff]  ;;  %1210 = vmatpush.msrb.mxu0 %v336_v29 }
  0x65   :  { %v464_v31 = vld [vmem:[#allocation3 + $0xd00] sm:$0xff]  ;;  %1230 = vmatpush.msrb.mxu1 %v400_v30 }
  0x66   :  { %v532_v32 = vld [vmem:[#allocation3 + $0xf20] sm:$0xff]  ;;  %1250 = vmatpush.msrb.mxu2 %v464_v31 }
  0x67   :  { %v332_v33 = vld [vmem:[#allocation3 + $0x8e0] sm:$0xff]  ;;  %1269 = vmatpush.msrb.mxu3 %v532_v32 }
  0x68   :  { %v396_v34 = vld [vmem:[#allocation3 + $0xae0] sm:$0xff]  ;;  %1211 = vmatpush.msrb.mxu0 %v332_v33 }
  0x69   :  { %v460_v35 = vld [vmem:[#allocation3 + $0xce0] sm:$0xff]  ;;  %1231 = vmatpush.msrb.mxu1 %v396_v34 }
  0x6a   :  { %v528_v36 = vld [vmem:[#allocation3 + $0xf00] sm:$0xff]  ;;  %1251 = vmatpush.msrb.mxu2 %v460_v35 }
  0x6b   :  { %v328_v37 = vld [vmem:[#allocation3 + $0x8c0] sm:$0xff]  ;;  %1270 = vmatpush.msrb.mxu3 %v528_v36 }
  0x6c   :  { %v392_v38 = vld [vmem:[#allocation3 + $0xac0] sm:$0xff]  ;;  %1212 = vmatpush.msrb.mxu0 %v328_v37 }
  0x6d   :  { %v456_v39 = vld [vmem:[#allocation3 + $0xcc0] sm:$0xff]  ;;  %1232 = vmatpush.msrb.mxu1 %v392_v38 }
  0x6e   :  { %v524_v40 = vld [vmem:[#allocation3 + $0xee0] sm:$0xff]  ;;  %1252 = vmatpush.msrb.mxu2 %v456_v39 }
  0x6f   :  { %v324_v41 = vld [vmem:[#allocation3 + $0x8a0] sm:$0xff]  ;;  %1271 = vmatpush.msrb.mxu3 %v524_v40 }
  0x70   :  { %v388_v42 = vld [vmem:[#allocation3 + $0xaa0] sm:$0xff]  ;;  %1213 = vmatpush.msrb.mxu0 %v324_v41 }
  0x71   :  { %v45_v43 = vld [vmem:[%s3048_s0 + $0x8] sm:$0xff]  ;;  %v46_v46 = vld [vmem:[%s3048_s0 + $0x10] sm:$0xff]  ;;  %1233 = vmatpush.msrb.mxu1 %v388_v42 }
  0x72   :  { %v452_v44 = vld [vmem:[#allocation3 + $0xca0] sm:$0xff]  ;;  %1088 = vst [vmem:[#allocation1 + $0x20] ss:$4 sm:$0xff] %v45_v43 }
  0x73   :  { %v520_v45 = vld [vmem:[#allocation3 + $0xec0] sm:$0xff]  ;;  %1253 = vmatpush.msrb.mxu2 %v452_v44 }
  0x74   :  { %v320_v47 = vld [vmem:[#allocation3 + $0x880] sm:$0xff]  ;;  %1272 = vmatpush.msrb.mxu3 %v520_v45 }
  0x75   :  { %v2693_v49 = vld.sshfl [vmem:[#allocation1 + $0x8] sm:$0xff pattern:$0x73625140]  ;;  %v2695_v50 = vld.sshfl [vmem:[#allocation1 + $0x10] sm:$0xff pattern:$0x73625140]  ;;  %1214 = vmatpush.msrb.mxu0 %v320_v47 }
  0x76   :  { %v384_v52 = vld [vmem:[#allocation3 + $0xa80] sm:$0xff]  ;;  %1097 = vst [vmem:[#allocation1] ss:$4 sm:$0xff] %v46_v46  ;;  %1159 = vmatmul.f32.vlgmr.msra.gmra.mxu1 %v2693_v49  ;;  %1179 = vmatmul.f32.vlgmr.msra.gmra.mxu2 %v2695_v50 }
  0x77   :  { %v448_v53 = vld [vmem:[#allocation3 + $0xc80] sm:$0xff]  ;;  %1234 = vmatpush.msrb.mxu1 %v384_v52 }
  0x78   :  { %v516_v54 = vld [vmem:[#allocation3 + $0xea0] sm:$0xff]  ;;  %1254 = vmatpush.msrb.mxu2 %v448_v53 }
  0x79   :  { %v316_v55 = vld [vmem:[#allocation3 + $0x860] sm:$0xff]  ;;  %1273 = vmatpush.msrb.mxu3 %v516_v54  ;;  %v2704_v1 = vld.sshfl [vmem:[#allocation1 + $0x20] sm:$0xff pattern:$0x73625140] }
  0x7a   :  { %v380_v56 = vld [vmem:[#allocation3 + $0xa60] sm:$0xff]  ;;  %1215 = vmatpush.msrb.mxu0 %v316_v55  ;;  %v2706_v2 = vld.sshfl [vmem:[#allocation1 + $0x38] sm:$0xff pattern:$0x73625140] }
  0x7b   :  { %v444_v57 = vld [vmem:[#allocation3 + $0xc60] sm:$0xff]  ;;  %1235 = vmatpush.msrb.mxu1 %v380_v56 }
  0x7c   :  { %v512_v58 = vld [vmem:[#allocation3 + $0xe80] sm:$0xff]  ;;  %1255 = vmatpush.msrb.mxu2 %v444_v57 }
  0x7d   :  { %v312_v59 = vld [vmem:[#allocation3 + $0x840] sm:$0xff]  ;;  %1274 = vmatpush.msrb.mxu3 %v512_v58 }
  0x7e   :  { %v376_v60 = vld [vmem:[#allocation3 + $0xa40] sm:$0xff]  ;;  %1216 = vmatpush.msrb.mxu0 %v312_v59 }
  0x7f   :  { %v440_v61 = vld [vmem:[#allocation3 + $0xc40] sm:$0xff]  ;;  %1236 = vmatpush.msrb.mxu1 %v376_v60 }
  0x80   :  { %v508_v62 = vld [vmem:[#allocation3 + $0xe60] sm:$0xff]  ;;  %1256 = vmatpush.msrb.mxu2 %v440_v61 }
  0x81   :  { %v2702_v0 = vld.sshfl [vmem:[#allocation1 + $0x30] sm:$0xff pattern:$0x73625140]  ;;  %v2708_v3 = vld.sshfl [vmem:[#allocation1 + $0x28] sm:$0xff pattern:$0x73625140]  ;;  %1275 = vmatpush.msrb.mxu3 %v508_v62 }
  0x82   :  { %v308_v4 = vld [vmem:[#allocation3 + $0x820] sm:$0xff]  ;;  %1098 = vst [vmem:[#allocation1 + $0x20] ss:$4 sm:$0xff] %v47_v63 }
  0x83   :  { %v372_v5 = vld [vmem:[#allocation3 + $0xa20] sm:$0xff]  ;;  %1217 = vmatpush.msrb.mxu0 %v308_v4 }
  0x84   :  { %v436_v6 = vld [vmem:[#allocation3 + $0xc20] sm:$0xff]  ;;  %1237 = vmatpush.msrb.mxu1 %v372_v5 }
  0x85   :  { %v504_v7 = vld [vmem:[#allocation3 + $0xe40] sm:$0xff]  ;;  %1257 = vmatpush.msrb.mxu2 %v436_v6 }
  0x86   :  { %v304_v8 = vld [vmem:[#allocation3 + $0x800] sm:$0xff]  ;;  %1276 = vmatpush.msrb.mxu3 %v504_v7 }
  0x87   :  { %v368_v9 = vld [vmem:[#allocation3 + $0xa00] sm:$0xff]  ;;  %1218 = vmatpush.msrb.mxu0 %v304_v8 }
  0x88   :  { %v432_v10 = vld [vmem:[#allocation3 + $0xc00] sm:$0xff]  ;;  %1238 = vmatpush.msrb.mxu1 %v368_v9  ;;  %1219 = vmatmul.f32.vlgmr.msrb.gmra.mxu0 %v2704_v1 }
  0x89   :  { %v500_v11 = vld [vmem:[#allocation3 + $0xe20] sm:$0xff]  ;;  %1258 = vmatpush.msrb.mxu2 %v432_v10  ;;  %1239 = vmatmul.f32.vlgmr.msrb.gmra.mxu1 %v2708_v3 }
  0x8a   :  { %v620_v12 = vld [vmem:[#allocation3 + $0x11e0] sm:$0xff]  ;;  %1277 = vmatpush.msrb.mxu3 %v500_v11  ;;  %1259 = vmatmul.f32.vlgmr.msrb.gmra.mxu2 %v2702_v0 }
  0x8b   :  { %v684_v13 = vld [vmem:[#allocation3 + $0x13e0] sm:$0xff]  ;;  %1283 = vmatpush.msra.mxu0 %v620_v12 }
  0x8c   :  { %v748_v14 = vld [vmem:[#allocation3 + $0x15e0] sm:$0xff]  ;;  %1303 = vmatpush.msra.mxu1 %v684_v13 }
  0x8d   :  { %v496_v15 = vld [vmem:[#allocation3 + $0xe00] sm:$0xff]  ;;  %1323 = vmatpush.msra.mxu2 %v748_v14 }
  0x8e   :  { %v616_v16 = vld [vmem:[#allocation3 + $0x11c0] sm:$0xff]  ;;  %1278 = vmatpush.msrb.mxu3 %v496_v15 }
  0x8f   :  { %v680_v17 = vld [vmem:[#allocation3 + $0x13c0] sm:$0xff]  ;;  %1284 = vmatpush.msra.mxu0 %v616_v16  ;;  %1279 = vmatmul.f32.vlgmr.msrb.gmra.mxu3 %v2706_v2 }
  0x90   :  { %v744_v18 = vld [vmem:[#allocation3 + $0x15c0] sm:$0xff]  ;;  %1304 = vmatpush.msra.mxu1 %v680_v17 }
  0x91   :  { %v812_v19 = vld [vmem:[#allocation3 + $0x17e0] sm:$0xff]  ;;  %1324 = vmatpush.msra.mxu2 %v744_v18 }
  0x92   :  { %v612_v20 = vld [vmem:[#allocation3 + $0x11a0] sm:$0xff]  ;;  %1343 = vmatpush.msra.mxu3 %v812_v19 }
  0x93   :  { %v676_v21 = vld [vmem:[#allocation3 + $0x13a0] sm:$0xff]  ;;  %1285 = vmatpush.msra.mxu0 %v612_v20  ;;  %v1099_v20 = vld.sshfl [vmem:[#allocation1] sm:$0xff pattern:$0x73625140] }
  0x94   :  { %v740_v22 = vld [vmem:[#allocation3 + $0x15a0] sm:$0xff]  ;;  %1305 = vmatpush.msra.mxu1 %v676_v21 }
  0x95   :  { %v808_v23 = vld [vmem:[#allocation3 + $0x17c0] sm:$0xff]  ;;  %1325 = vmatpush.msra.mxu2 %v740_v22 }
  0x96   :  { %v608_v24 = vld [vmem:[#allocation3 + $0x1180] sm:$0xff]  ;;  %1344 = vmatpush.msra.mxu3 %v808_v23 }
  0x97   :  { %v672_v25 = vld [vmem:[#allocation3 + $0x1380] sm:$0xff]  ;;  %1286 = vmatpush.msra.mxu0 %v608_v24 }
  0x98   :  { %v736_v26 = vld [vmem:[#allocation3 + $0x1580] sm:$0xff]  ;;  %1306 = vmatpush.msra.mxu1 %v672_v25 }
  0x99   :  { %v804_v27 = vld [vmem:[#allocation3 + $0x17a0] sm:$0xff]  ;;  %1326 = vmatpush.msra.mxu2 %v736_v26 }
  0x9a   :  { %v604_v28 = vld [vmem:[#allocation3 + $0x1160] sm:$0xff]  ;;  %1345 = vmatpush.msra.mxu3 %v804_v27  ;;  %v1102_v27 = vld.sshfl [vmem:[#allocation1 + $0x18] sm:$0xff pattern:$0x73625140] }
  0x9b   :  { %v668_v29 = vld [vmem:[#allocation3 + $0x1360] sm:$0xff]  ;;  %1287 = vmatpush.msra.mxu0 %v604_v28 }
  0x9c   :  { %v732_v30 = vld [vmem:[#allocation3 + $0x1560] sm:$0xff]  ;;  %1307 = vmatpush.msra.mxu1 %v668_v29 }
  0x9d   :  { %v800_v31 = vld [vmem:[#allocation3 + $0x1780] sm:$0xff]  ;;  %1327 = vmatpush.msra.mxu2 %v732_v30 }
  0x9e   :  { %v600_v32 = vld [vmem:[#allocation3 + $0x1140] sm:$0xff]  ;;  %1346 = vmatpush.msra.mxu3 %v800_v31 }
  0x9f   :  { %v664_v33 = vld [vmem:[#allocation3 + $0x1340] sm:$0xff]  ;;  %1288 = vmatpush.msra.mxu0 %v600_v32 }
  0xa0   :  { %v728_v34 = vld [vmem:[#allocation3 + $0x1540] sm:$0xff]  ;;  %1308 = vmatpush.msra.mxu1 %v664_v33 }
  0xa1   :  { %v796_v35 = vld [vmem:[#allocation3 + $0x1760] sm:$0xff]  ;;  %1328 = vmatpush.msra.mxu2 %v728_v34 }
  0xa2   :  { %v596_v36 = vld [vmem:[#allocation3 + $0x1120] sm:$0xff]  ;;  %1347 = vmatpush.msra.mxu3 %v796_v35 }
  0xa3   :  { %v660_v37 = vld [vmem:[#allocation3 + $0x1320] sm:$0xff]  ;;  %1289 = vmatpush.msra.mxu0 %v596_v36 }
  0xa4   :  { %v724_v38 = vld [vmem:[#allocation3 + $0x1520] sm:$0xff]  ;;  %1309 = vmatpush.msra.mxu1 %v660_v37 }
  0xa5   :  { %v792_v39 = vld [vmem:[#allocation3 + $0x1740] sm:$0xff]  ;;  %1329 = vmatpush.msra.mxu2 %v724_v38 }
  0xa6   :  { %v592_v40 = vld [vmem:[#allocation3 + $0x1100] sm:$0xff]  ;;  %1348 = vmatpush.msra.mxu3 %v792_v39 }
  0xa7   :  { %v656_v41 = vld [vmem:[#allocation3 + $0x1300] sm:$0xff]  ;;  %1290 = vmatpush.msra.mxu0 %v592_v40 }
  0xa8   :  { %v720_v42 = vld [vmem:[#allocation3 + $0x1500] sm:$0xff]  ;;  %1310 = vmatpush.msra.mxu1 %v656_v41 }
  0xa9   :  { %v788_v43 = vld [vmem:[#allocation3 + $0x1720] sm:$0xff]  ;;  %1330 = vmatpush.msra.mxu2 %v720_v42 }
  0xaa   :  { %v588_v44 = vld [vmem:[#allocation3 + $0x10e0] sm:$0xff]  ;;  %1349 = vmatpush.msra.mxu3 %v788_v43 }
  0xab   :  { %v652_v45 = vld [vmem:[#allocation3 + $0x12e0] sm:$0xff]  ;;  %1291 = vmatpush.msra.mxu0 %v588_v44 }
  0xac   :  { %v716_v46 = vld [vmem:[#allocation3 + $0x14e0] sm:$0xff]  ;;  %1311 = vmatpush.msra.mxu1 %v652_v45 }
  0xad   :  { %v784_v47 = vld [vmem:[#allocation3 + $0x1700] sm:$0xff]  ;;  %1331 = vmatpush.msra.mxu2 %v716_v46 }
  0xae   :  { %v584_v52 = vld [vmem:[#allocation3 + $0x10c0] sm:$0xff]  ;;  %1350 = vmatpush.msra.mxu3 %v784_v47 }
  0xaf   :  { %v648_v53 = vld [vmem:[#allocation3 + $0x12c0] sm:$0xff]  ;;  %1292 = vmatpush.msra.mxu0 %v584_v52 }
  0xb0   :  { %v712_v54 = vld [vmem:[#allocation3 + $0x14c0] sm:$0xff]  ;;  %1312 = vmatpush.msra.mxu1 %v648_v53 }
  0xb1   :  { %v780_v55 = vld [vmem:[#allocation3 + $0x16e0] sm:$0xff]  ;;  %1332 = vmatpush.msra.mxu2 %v712_v54 }
  0xb2   :  { %v580_v56 = vld [vmem:[#allocation3 + $0x10a0] sm:$0xff]  ;;  %1351 = vmatpush.msra.mxu3 %v780_v55 }
  0xb3   :  { %v644_v57 = vld [vmem:[#allocation3 + $0x12a0] sm:$0xff]  ;;  %1293 = vmatpush.msra.mxu0 %v580_v56 }
  0xb4   :  { %v708_v58 = vld [vmem:[#allocation3 + $0x14a0] sm:$0xff]  ;;  %1313 = vmatpush.msra.mxu1 %v644_v57 }
  0xb5   :  { %v776_v59 = vld [vmem:[#allocation3 + $0x16c0] sm:$0xff]  ;;  %1333 = vmatpush.msra.mxu2 %v708_v58 }
  0xb6   :  { %v576_v60 = vld [vmem:[#allocation3 + $0x1080] sm:$0xff]  ;;  %1352 = vmatpush.msra.mxu3 %v776_v59 }
  0xb7   :  { %v640_v61 = vld [vmem:[#allocation3 + $0x1280] sm:$0xff]  ;;  %1294 = vmatpush.msra.mxu0 %v576_v60 }
  0xb8   :  { %v704_v62 = vld [vmem:[#allocation3 + $0x1480] sm:$0xff]  ;;  %1314 = vmatpush.msra.mxu1 %v640_v61 }
  0xb9   :  { %v772_v63 = vld [vmem:[#allocation3 + $0x16a0] sm:$0xff]  ;;  %1334 = vmatpush.msra.mxu2 %v704_v62 }
  0xba   :  { %v572_v4 = vld [vmem:[#allocation3 + $0x1060] sm:$0xff]  ;;  %1353 = vmatpush.msra.mxu3 %v772_v63 }
  0xbb   :  { %v636_v5 = vld [vmem:[#allocation3 + $0x1260] sm:$0xff]  ;;  %1295 = vmatpush.msra.mxu0 %v572_v4 }
  0xbc   :  { %v700_v6 = vld [vmem:[#allocation3 + $0x1460] sm:$0xff]  ;;  %1315 = vmatpush.msra.mxu1 %v636_v5 }
  0xbd   :  { %v768_v7 = vld [vmem:[#allocation3 + $0x1680] sm:$0xff]  ;;  %1335 = vmatpush.msra.mxu2 %v700_v6 }
  0xbe   :  { %v568_v8 = vld [vmem:[#allocation3 + $0x1040] sm:$0xff]  ;;  %1354 = vmatpush.msra.mxu3 %v768_v7 }
  0xbf   :  { %v632_v9 = vld [vmem:[#allocation3 + $0x1240] sm:$0xff]  ;;  %1296 = vmatpush.msra.mxu0 %v568_v8 }
  0xc0   :  { %v696_v10 = vld [vmem:[#allocation3 + $0x1440] sm:$0xff]  ;;  %1316 = vmatpush.msra.mxu1 %v632_v9 }
  0xc1   :  { %v764_v11 = vld [vmem:[#allocation3 + $0x1660] sm:$0xff]  ;;  %1336 = vmatpush.msra.mxu2 %v696_v10 }
  0xc2   :  { %v564_v12 = vld [vmem:[#allocation3 + $0x1020] sm:$0xff]  ;;  %1355 = vmatpush.msra.mxu3 %v764_v11 }
  0xc3   :  { %v628_v13 = vld [vmem:[#allocation3 + $0x1220] sm:$0xff]  ;;  %1297 = vmatpush.msra.mxu0 %v564_v12 }
  0xc4   :  { %v692_v14 = vld [vmem:[#allocation3 + $0x1420] sm:$0xff]  ;;  %1317 = vmatpush.msra.mxu1 %v628_v13 }
  0xc5   :  { %v760_v15 = vld [vmem:[#allocation3 + $0x1640] sm:$0xff]  ;;  %1337 = vmatpush.msra.mxu2 %v692_v14 }
  0xc6   :  { %v560_v16 = vld [vmem:[#allocation3 + $0x1000] sm:$0xff]  ;;  %1356 = vmatpush.msra.mxu3 %v760_v15 }
  0xc7   :  { %v624_v17 = vld [vmem:[#allocation3 + $0x1200] sm:$0xff]  ;;  %1298 = vmatpush.msra.mxu0 %v560_v16 }
  0xc8   :  { %v688_v18 = vld [vmem:[#allocation3 + $0x1400] sm:$0xff]  ;;  %1318 = vmatpush.msra.mxu1 %v624_v17  ;;  %1299 = vmatmul.f32.vlgmr.msra.gmra.mxu0 %v1099_v20 }
  0xc9   :  { %v756_v19 = vld [vmem:[#allocation3 + $0x1620] sm:$0xff]  ;;  %1338 = vmatpush.msra.mxu2 %v688_v18 }
  0xca   :  { %v1101_v21 = vld.sshfl [vmem:[#allocation1 + $0x10] sm:$0xff pattern:$0x73625140]  ;;  %1357 = vmatpush.msra.mxu3 %v756_v19  ;;  %v1100_v26 = vld.sshfl [vmem:[#allocation1 + $0x8] sm:$0xff pattern:$0x73625140] }
  0xcb   :  { %v876_v22 = vld [vmem:[#allocation3 + $0x19e0] sm:$0xff]  ;;  %1339 = vmatmul.f32.vlgmr.msra.gmra.mxu2 %v1101_v21  ;;  %1319 = vmatmul.f32.vlgmr.msra.gmra.mxu1 %v1100_v26 }
  0xcc   :  { %v940_v23 = vld [vmem:[#allocation3 + $0x1be0] sm:$0xff]  ;;  %1363 = vmatpush.msrb.mxu0 %v876_v22 }
  0xcd   :  { %v1004_v24 = vld [vmem:[#allocation3 + $0x1de0] sm:$0xff]  ;;  %1383 = vmatpush.msrb.mxu1 %v940_v23 }
  0xce   :  { %v752_v25 = vld [vmem:[#allocation3 + $0x1600] sm:$0xff]  ;;  %1403 = vmatpush.msrb.mxu2 %v1004_v24 }
  0xcf   :  { %v872_v28 = vld [vmem:[#allocation3 + $0x19c0] sm:$0xff]  ;;  %1358 = vmatpush.msra.mxu3 %v752_v25 }
  0xd0   :  { %v936_v29 = vld [vmem:[#allocation3 + $0x1bc0] sm:$0xff]  ;;  %1359 = vmatmul.f32.vlgmr.msra.gmra.mxu3 %v1102_v27  ;;  %1364 = vmatpush.msrb.mxu0 %v872_v28 }
  0xd1   :  { %v1000_v30 = vld [vmem:[#allocation3 + $0x1dc0] sm:$0xff]  ;;  %1384 = vmatpush.msrb.mxu1 %v936_v29 }
  0xd2   :  { %v1068_v31 = vld [vmem:[#allocation3 + $0x1fe0] sm:$0xff]  ;;  %1404 = vmatpush.msrb.mxu2 %v1000_v30 }
  0xd3   :  { %v868_v32 = vld [vmem:[#allocation3 + $0x19a0] sm:$0xff]  ;;  %1423 = vmatpush.msrb.mxu3 %v1068_v31 }
  0xd4   :  { %v932_v33 = vld [vmem:[#allocation3 + $0x1ba0] sm:$0xff]  ;;  %1365 = vmatpush.msrb.mxu0 %v868_v32  ;;  %v1103_v32 = vld.sshfl [vmem:[#allocation1 + $0x20] sm:$0xff pattern:$0x73625140] }
  0xd5   :  { %v996_v34 = vld [vmem:[#allocation3 + $0x1da0] sm:$0xff]  ;;  %1385 = vmatpush.msrb.mxu1 %v932_v33 }
  0xd6   :  { %v1064_v35 = vld [vmem:[#allocation3 + $0x1fc0] sm:$0xff]  ;;  %1405 = vmatpush.msrb.mxu2 %v996_v34  ;;  %v109_v34 = vld [vmem:[#allocation3 + $0x1e8] sm:$0xff] }
  0xd7   :  { %v864_v36 = vld [vmem:[#allocation3 + $0x1980] sm:$0xff]  ;;  %1424 = vmatpush.msrb.mxu3 %v1064_v35  ;;  %v173_v35 = vld [vmem:[#allocation3 + $0x3e8] sm:$0xff] }
  0xd8   :  { %v928_v37 = vld [vmem:[#allocation3 + $0x1b80] sm:$0xff]  ;;  %1366 = vmatpush.msrb.mxu0 %v864_v36  ;;  %v237_v36 = vld [vmem:[#allocation3 + $0x5e8] sm:$0xff] }
  0xd9   :  { %v992_v38 = vld [vmem:[#allocation3 + $0x1d80] sm:$0xff]  ;;  %1386 = vmatpush.msrb.mxu1 %v928_v37 }
  0xda   :  { %v1060_v39 = vld [vmem:[#allocation3 + $0x1fa0] sm:$0xff]  ;;  %1406 = vmatpush.msrb.mxu2 %v992_v38 }
  0xdb   :  { %v860_v40 = vld [vmem:[#allocation3 + $0x1960] sm:$0xff]  ;;  %1425 = vmatpush.msrb.mxu3 %v1060_v39  ;;  %v1106_v39 = vld.sshfl [vmem:[#allocation1 + $0x38] sm:$0xff pattern:$0x73625140] }
  0xdc   :  { %v924_v41 = vld [vmem:[#allocation3 + $0x1b60] sm:$0xff]  ;;  %1367 = vmatpush.msrb.mxu0 %v860_v40  ;;  %v105_v40 = vld [vmem:[#allocation3 + $0x1c8] sm:$0xff] }
  0xdd   :  { %v988_v42 = vld [vmem:[#allocation3 + $0x1d60] sm:$0xff]  ;;  %1387 = vmatpush.msrb.mxu1 %v924_v41  ;;  %v169_v41 = vld [vmem:[#allocation3 + $0x3c8] sm:$0xff] }
  0xde   :  { %v1056_v43 = vld [vmem:[#allocation3 + $0x1f80] sm:$0xff]  ;;  %1407 = vmatpush.msrb.mxu2 %v988_v42  ;;  %v233_v42 = vld [vmem:[#allocation3 + $0x5c8] sm:$0xff] }
  0xdf   :  { %v856_v44 = vld [vmem:[#allocation3 + $0x1940] sm:$0xff]  ;;  %1426 = vmatpush.msrb.mxu3 %v1056_v43  ;;  %v301_v43 = vld [vmem:[#allocation3 + $0x7e8] sm:$0xff] }
  0xe0   :  { %v920_v45 = vld [vmem:[#allocation3 + $0x1b40] sm:$0xff]  ;;  %1368 = vmatpush.msrb.mxu0 %v856_v44  ;;  %v101_v44 = vld [vmem:[#allocation3 + $0x1a8] sm:$0xff] }
  0xe1   :  { %v984_v46 = vld [vmem:[#allocation3 + $0x1d40] sm:$0xff]  ;;  %1388 = vmatpush.msrb.mxu1 %v920_v45  ;;  %v165_v45 = vld [vmem:[#allocation3 + $0x3a8] sm:$0xff] }
  0xe2   :  { %v1052_v47 = vld [vmem:[#allocation3 + $0x1f60] sm:$0xff]  ;;  %1408 = vmatpush.msrb.mxu2 %v984_v46  ;;  %v229_v46 = vld [vmem:[#allocation3 + $0x5a8] sm:$0xff] }
  0xe3   :  { %v852_v52 = vld [vmem:[#allocation3 + $0x1920] sm:$0xff]  ;;  %1427 = vmatpush.msrb.mxu3 %v1052_v47  ;;  %v297_v47 = vld [vmem:[#allocation3 + $0x7c8] sm:$0xff] }
  0xe4   :  { %v916_v53 = vld [vmem:[#allocation3 + $0x1b20] sm:$0xff]  ;;  %1369 = vmatpush.msrb.mxu0 %v852_v52  ;;  %v97_v52 = vld [vmem:[#allocation3 + $0x188] sm:$0xff] }
  0xe5   :  { %v980_v54 = vld [vmem:[#allocation3 + $0x1d20] sm:$0xff]  ;;  %1389 = vmatpush.msrb.mxu1 %v916_v53  ;;  %v161_v53 = vld [vmem:[#allocation3 + $0x388] sm:$0xff] }
  0xe6   :  { %v1048_v55 = vld [vmem:[#allocation3 + $0x1f40] sm:$0xff]  ;;  %1409 = vmatpush.msrb.mxu2 %v980_v54  ;;  %v225_v54 = vld [vmem:[#allocation3 + $0x588] sm:$0xff] }
  0xe7   :  { %v848_v56 = vld [vmem:[#allocation3 + $0x1900] sm:$0xff]  ;;  %1428 = vmatpush.msrb.mxu3 %v1048_v55  ;;  %v293_v55 = vld [vmem:[#allocation3 + $0x7a8] sm:$0xff] }
  0xe8   :  { %v912_v57 = vld [vmem:[#allocation3 + $0x1b00] sm:$0xff]  ;;  %1370 = vmatpush.msrb.mxu0 %v848_v56  ;;  %v93_v56 = vld [vmem:[#allocation3 + $0x168] sm:$0xff] }
  0xe9   :  { %v976_v58 = vld [vmem:[#allocation3 + $0x1d00] sm:$0xff]  ;;  %1390 = vmatpush.msrb.mxu1 %v912_v57  ;;  %v157_v57 = vld [vmem:[#allocation3 + $0x368] sm:$0xff] }
  0xea   :  { %v1044_v59 = vld [vmem:[#allocation3 + $0x1f20] sm:$0xff]  ;;  %1410 = vmatpush.msrb.mxu2 %v976_v58  ;;  %v221_v58 = vld [vmem:[#allocation3 + $0x568] sm:$0xff] }
  0xeb   :  { %v844_v60 = vld [vmem:[#allocation3 + $0x18e0] sm:$0xff]  ;;  %1429 = vmatpush.msrb.mxu3 %v1044_v59  ;;  %v289_v59 = vld [vmem:[#allocation3 + $0x788] sm:$0xff] }
  0xec   :  { %v908_v61 = vld [vmem:[#allocation3 + $0x1ae0] sm:$0xff]  ;;  %1371 = vmatpush.msrb.mxu0 %v844_v60  ;;  %v89_v60 = vld [vmem:[#allocation3 + $0x148] sm:$0xff] }
  0xed   :  { %v972_v62 = vld [vmem:[#allocation3 + $0x1ce0] sm:$0xff]  ;;  %1391 = vmatpush.msrb.mxu1 %v908_v61  ;;  %v153_v61 = vld [vmem:[#allocation3 + $0x348] sm:$0xff] }
  0xee   :  { %v1040_v63 = vld [vmem:[#allocation3 + $0x1f00] sm:$0xff]  ;;  %1411 = vmatpush.msrb.mxu2 %v972_v62  ;;  %v217_v62 = vld [vmem:[#allocation3 + $0x548] sm:$0xff] }
  0xef   :  { %v840_v4 = vld [vmem:[#allocation3 + $0x18c0] sm:$0xff]  ;;  %1430 = vmatpush.msrb.mxu3 %v1040_v63  ;;  %v285_v63 = vld [vmem:[#allocation3 + $0x768] sm:$0xff] }
  0xf0   :  { %v904_v5 = vld [vmem:[#allocation3 + $0x1ac0] sm:$0xff]  ;;  %1372 = vmatpush.msrb.mxu0 %v840_v4  ;;  %v85_v4 = vld [vmem:[#allocation3 + $0x128] sm:$0xff] }
  0xf1   :  { %v968_v6 = vld [vmem:[#allocation3 + $0x1cc0] sm:$0xff]  ;;  %1392 = vmatpush.msrb.mxu1 %v904_v5  ;;  %v149_v5 = vld [vmem:[#allocation3 + $0x328] sm:$0xff] }
  0xf2   :  { %v1036_v7 = vld [vmem:[#allocation3 + $0x1ee0] sm:$0xff]  ;;  %1412 = vmatpush.msrb.mxu2 %v968_v6  ;;  %v213_v6 = vld [vmem:[#allocation3 + $0x528] sm:$0xff] }
  0xf3   :  { %v836_v8 = vld [vmem:[#allocation3 + $0x18a0] sm:$0xff]  ;;  %1431 = vmatpush.msrb.mxu3 %v1036_v7  ;;  %v281_v7 = vld [vmem:[#allocation3 + $0x748] sm:$0xff] }
  0xf4   :  { %v900_v9 = vld [vmem:[#allocation3 + $0x1aa0] sm:$0xff]  ;;  %1373 = vmatpush.msrb.mxu0 %v836_v8  ;;  %v81_v8 = vld [vmem:[#allocation3 + $0x108] sm:$0xff] }
  0xf5   :  { %v964_v10 = vld [vmem:[#allocation3 + $0x1ca0] sm:$0xff]  ;;  %1393 = vmatpush.msrb.mxu1 %v900_v9  ;;  %v145_v9 = vld [vmem:[#allocation3 + $0x308] sm:$0xff] }
  0xf6   :  { %v1032_v11 = vld [vmem:[#allocation3 + $0x1ec0] sm:$0xff]  ;;  %1413 = vmatpush.msrb.mxu2 %v964_v10  ;;  %v209_v10 = vld [vmem:[#allocation3 + $0x508] sm:$0xff] }
  0xf7   :  { %v832_v12 = vld [vmem:[#allocation3 + $0x1880] sm:$0xff]  ;;  %1432 = vmatpush.msrb.mxu3 %v1032_v11  ;;  %v277_v11 = vld [vmem:[#allocation3 + $0x728] sm:$0xff] }
  0xf8   :  { %v896_v13 = vld [vmem:[#allocation3 + $0x1a80] sm:$0xff]  ;;  %1374 = vmatpush.msrb.mxu0 %v832_v12  ;;  %v77_v12 = vld [vmem:[#allocation3 + $0xe8] sm:$0xff] }
  0xf9   :  { %v960_v14 = vld [vmem:[#allocation3 + $0x1c80] sm:$0xff]  ;;  %1394 = vmatpush.msrb.mxu1 %v896_v13  ;;  %v141_v13 = vld [vmem:[#allocation3 + $0x2e8] sm:$0xff] }
  0xfa   :  { %v1028_v15 = vld [vmem:[#allocation3 + $0x1ea0] sm:$0xff]  ;;  %1414 = vmatpush.msrb.mxu2 %v960_v14  ;;  %v205_v14 = vld [vmem:[#allocation3 + $0x4e8] sm:$0xff] }
  0xfb   :  { %v828_v16 = vld [vmem:[#allocation3 + $0x1860] sm:$0xff]  ;;  %1433 = vmatpush.msrb.mxu3 %v1028_v15  ;;  %v273_v15 = vld [vmem:[#allocation3 + $0x708] sm:$0xff] }
  0xfc   :  { %v892_v17 = vld [vmem:[#allocation3 + $0x1a60] sm:$0xff]  ;;  %1375 = vmatpush.msrb.mxu0 %v828_v16  ;;  %v73_v16 = vld [vmem:[#allocation3 + $0xc8] sm:$0xff] }
  0xfd   :  { %v956_v18 = vld [vmem:[#allocation3 + $0x1c60] sm:$0xff]  ;;  %1395 = vmatpush.msrb.mxu1 %v892_v17  ;;  %v137_v17 = vld [vmem:[#allocation3 + $0x2c8] sm:$0xff] }
  0xfe   :  { %v1024_v19 = vld [vmem:[#allocation3 + $0x1e80] sm:$0xff]  ;;  %1415 = vmatpush.msrb.mxu2 %v956_v18  ;;  %v201_v18 = vld [vmem:[#allocation3 + $0x4c8] sm:$0xff] }
  0xff   :  { %v824_v20 = vld [vmem:[#allocation3 + $0x1840] sm:$0xff]  ;;  %1434 = vmatpush.msrb.mxu3 %v1024_v19  ;;  %v269_v19 = vld [vmem:[#allocation3 + $0x6e8] sm:$0xff] }
 0x100   :  { %v888_v21 = vld [vmem:[#allocation3 + $0x1a40] sm:$0xff]  ;;  %1376 = vmatpush.msrb.mxu0 %v824_v20  ;;  %v69_v20 = vld [vmem:[#allocation3 + $0xa8] sm:$0xff] }
 0x101   :  { %v952_v22 = vld [vmem:[#allocation3 + $0x1c40] sm:$0xff]  ;;  %1396 = vmatpush.msrb.mxu1 %v888_v21  ;;  %v133_v21 = vld [vmem:[#allocation3 + $0x2a8] sm:$0xff] }
 0x102   :  { %v1020_v23 = vld [vmem:[#allocation3 + $0x1e60] sm:$0xff]  ;;  %1416 = vmatpush.msrb.mxu2 %v952_v22  ;;  %v197_v22 = vld [vmem:[#allocation3 + $0x4a8] sm:$0xff] }
 0x103   :  { %v820_v24 = vld [vmem:[#allocation3 + $0x1820] sm:$0xff]  ;;  %1435 = vmatpush.msrb.mxu3 %v1020_v23  ;;  %v265_v23 = vld [vmem:[#allocation3 + $0x6c8] sm:$0xff] }
 0x104   :  { %v884_v25 = vld [vmem:[#allocation3 + $0x1a20] sm:$0xff]  ;;  %1377 = vmatpush.msrb.mxu0 %v820_v24  ;;  %v65_v24 = vld [vmem:[#allocation3 + $0x88] sm:$0xff] }
 0x105   :  { %v948_v26 = vld [vmem:[#allocation3 + $0x1c20] sm:$0xff]  ;;  %1397 = vmatpush.msrb.mxu1 %v884_v25  ;;  %v129_v25 = vld [vmem:[#allocation3 + $0x288] sm:$0xff] }
 0x106   :  { %v1016_v27 = vld [vmem:[#allocation3 + $0x1e40] sm:$0xff]  ;;  %1417 = vmatpush.msrb.mxu2 %v948_v26  ;;  %v193_v26 = vld [vmem:[#allocation3 + $0x488] sm:$0xff] }
 0x107   :  { %v816_v28 = vld [vmem:[#allocation3 + $0x1800] sm:$0xff]  ;;  %1436 = vmatpush.msrb.mxu3 %v1016_v27  ;;  %v261_v27 = vld [vmem:[#allocation3 + $0x6a8] sm:$0xff] }
 0x108   :  { %v880_v29 = vld [vmem:[#allocation3 + $0x1a00] sm:$0xff]  ;;  %1378 = vmatpush.msrb.mxu0 %v816_v28  ;;  %v61_v28 = vld [vmem:[#allocation3 + $0x68] sm:$0xff] }
 0x109   :  { %v944_v30 = vld [vmem:[#allocation3 + $0x1c00] sm:$0xff]  ;;  %1398 = vmatpush.msrb.mxu1 %v880_v29  ;;  %1379 = vmatmul.f32.vlgmr.msrb.gmra.mxu0 %v1103_v32  ;;  %v125_v29 = vld [vmem:[#allocation3 + $0x268] sm:$0xff] }
 0x10a   :  { %v1012_v31 = vld [vmem:[#allocation3 + $0x1e20] sm:$0xff]  ;;  %1418 = vmatpush.msrb.mxu2 %v944_v30  ;;  %1443 = vmatpush.msra.mxu0 %v109_v34  ;;  %v189_v30 = vld [vmem:[#allocation3 + $0x468] sm:$0xff] }
 0x10b   :  { %v1105_v33 = vld.sshfl [vmem:[#allocation1 + $0x30] sm:$0xff pattern:$0x73625140]  ;;  %1437 = vmatpush.msrb.mxu3 %v1012_v31  ;;  %v1104_v38 = vld.sshfl [vmem:[#allocation1 + $0x28] sm:$0xff pattern:$0x73625140]  ;;  %1463 = vmatpush.msra.mxu1 %v173_v35 }
 0x10c   :  { %v1008_v37 = vld [vmem:[#allocation3 + $0x1e00] sm:$0xff]  ;;  %1419 = vmatmul.f32.vlgmr.msrb.gmra.mxu2 %v1105_v33  ;;  %1399 = vmatmul.f32.vlgmr.msrb.gmra.mxu1 %v1104_v38  ;;  %v257_v31 = vld [vmem:[#allocation3 + $0x688] sm:$0xff] }
 0x10d   :  { %1483 = vmatpush.msra.mxu2 %v237_v36  ;;  %1438 = vmatpush.msrb.mxu3 %v1008_v37  ;;  %v57_v32 = vld [vmem:[#allocation3 + $0x48] sm:$0xff] }
 0x10e   :  { %1439 = vmatmul.f32.vlgmr.msrb.gmra.mxu3 %v1106_v39  ;;  %1444 = vmatpush.msra.mxu0 %v105_v40  ;;  %v121_v33 = vld [vmem:[#allocation3 + $0x248] sm:$0xff] }
 0x10f   :  { %1464 = vmatpush.msra.mxu1 %v169_v41  ;;  %1484 = vmatpush.msra.mxu2 %v233_v42  ;;  %v185_v34 = vld [vmem:[#allocation3 + $0x448] sm:$0xff] }
 0x110   :  { %1503 = vmatpush.msra.mxu3 %v301_v43  ;;  %1445 = vmatpush.msra.mxu0 %v101_v44  ;;  %v253_v35 = vld [vmem:[#allocation3 + $0x668] sm:$0xff] }
 0x111   :  { %1465 = vmatpush.msra.mxu1 %v165_v45  ;;  %1485 = vmatpush.msra.mxu2 %v229_v46  ;;  %v53_v36 = vld [vmem:[#allocation3 + $0x28] sm:$0xff] }
 0x112   :  { %1504 = vmatpush.msra.mxu3 %v297_v47  ;;  %1446 = vmatpush.msra.mxu0 %v97_v52  ;;  %v117_v37 = vld [vmem:[#allocation3 + $0x228] sm:$0xff] }
 0x113   :  { %1466 = vmatpush.msra.mxu1 %v161_v53  ;;  %1486 = vmatpush.msra.mxu2 %v225_v54  ;;  %v181_v38 = vld [vmem:[#allocation3 + $0x428] sm:$0xff] }
 0x114   :  { %1505 = vmatpush.msra.mxu3 %v293_v55  ;;  %1447 = vmatpush.msra.mxu0 %v93_v56  ;;  %v249_v39 = vld [vmem:[#allocation3 + $0x648] sm:$0xff] }
 0x115   :  { %1467 = vmatpush.msra.mxu1 %v157_v57  ;;  %1487 = vmatpush.msra.mxu2 %v221_v58  ;;  %v49_v40 = vld [vmem:[#allocation3 + $0x8] sm:$0xff] }
 0x116   :  { %1506 = vmatpush.msra.mxu3 %v289_v59  ;;  %1448 = vmatpush.msra.mxu0 %v89_v60  ;;  %v113_v41 = vld [vmem:[#allocation3 + $0x208] sm:$0xff] }
 0x117   :  { %1468 = vmatpush.msra.mxu1 %v153_v61  ;;  %1488 = vmatpush.msra.mxu2 %v217_v62  ;;  %v177_v42 = vld [vmem:[#allocation3 + $0x408] sm:$0xff] }
 0x118   :  { %1507 = vmatpush.msra.mxu3 %v285_v63  ;;  %1449 = vmatpush.msra.mxu0 %v85_v4  ;;  %v245_v43 = vld [vmem:[#allocation3 + $0x628] sm:$0xff] }
 0x119   :  { %1469 = vmatpush.msra.mxu1 %v149_v5  ;;  %1489 = vmatpush.msra.mxu2 %v213_v6  ;;  %v365_v44 = vld [vmem:[#allocation3 + $0x9e8] sm:$0xff] }
 0x11a   :  { %1508 = vmatpush.msra.mxu3 %v281_v7  ;;  %1450 = vmatpush.msra.mxu0 %v81_v8  ;;  %v429_v45 = vld [vmem:[#allocation3 + $0xbe8] sm:$0xff] }
 0x11b   :  { %1470 = vmatpush.msra.mxu1 %v145_v9  ;;  %1490 = vmatpush.msra.mxu2 %v209_v10  ;;  %v493_v46 = vld [vmem:[#allocation3 + $0xde8] sm:$0xff] }
 0x11c   :  { %1509 = vmatpush.msra.mxu3 %v277_v11  ;;  %1451 = vmatpush.msra.mxu0 %v77_v12  ;;  %v241_v47 = vld [vmem:[#allocation3 + $0x608] sm:$0xff] }
 0x11d   :  { %1471 = vmatpush.msra.mxu1 %v141_v13  ;;  %1491 = vmatpush.msra.mxu2 %v205_v14  ;;  %v361_v52 = vld [vmem:[#allocation3 + $0x9c8] sm:$0xff] }
 0x11e   :  { %1510 = vmatpush.msra.mxu3 %v273_v15  ;;  %1452 = vmatpush.msra.mxu0 %v73_v16  ;;  %v425_v53 = vld [vmem:[#allocation3 + $0xbc8] sm:$0xff] }
 0x11f   :  { %1472 = vmatpush.msra.mxu1 %v137_v17  ;;  %1492 = vmatpush.msra.mxu2 %v201_v18  ;;  %v489_v54 = vld [vmem:[#allocation3 + $0xdc8] sm:$0xff] }
 0x120   :  { %1511 = vmatpush.msra.mxu3 %v269_v19  ;;  %1453 = vmatpush.msra.mxu0 %v69_v20  ;;  %v557_v55 = vld [vmem:[#allocation3 + $0xfe8] sm:$0xff] }
 0x121   :  { %1473 = vmatpush.msra.mxu1 %v133_v21  ;;  %1493 = vmatpush.msra.mxu2 %v197_v22  ;;  %v357_v56 = vld [vmem:[#allocation3 + $0x9a8] sm:$0xff] }
 0x122   :  { %1512 = vmatpush.msra.mxu3 %v265_v23  ;;  %1454 = vmatpush.msra.mxu0 %v65_v24  ;;  %v421_v57 = vld [vmem:[#allocation3 + $0xba8] sm:$0xff] }
 0x123   :  { %1474 = vmatpush.msra.mxu1 %v129_v25  ;;  %1494 = vmatpush.msra.mxu2 %v193_v26  ;;  %v485_v58 = vld [vmem:[#allocation3 + $0xda8] sm:$0xff] }
 0x124   :  { %1513 = vmatpush.msra.mxu3 %v261_v27  ;;  %1455 = vmatpush.msra.mxu0 %v61_v28  ;;  %v553_v59 = vld [vmem:[#allocation3 + $0xfc8] sm:$0xff] }
 0x125   :  { %1475 = vmatpush.msra.mxu1 %v125_v29  ;;  %1495 = vmatpush.msra.mxu2 %v189_v30  ;;  %v353_v60 = vld [vmem:[#allocation3 + $0x988] sm:$0xff] }
 0x126   :  { %1514 = vmatpush.msra.mxu3 %v257_v31  ;;  %1456 = vmatpush.msra.mxu0 %v57_v32  ;;  %v417_v61 = vld [vmem:[#allocation3 + $0xb88] sm:$0xff] }
 0x127   :  { %1476 = vmatpush.msra.mxu1 %v121_v33  ;;  %1496 = vmatpush.msra.mxu2 %v185_v34  ;;  %v481_v62 = vld [vmem:[#allocation3 + $0xd88] sm:$0xff] }
 0x128   :  { %1515 = vmatpush.msra.mxu3 %v253_v35  ;;  %1457 = vmatpush.msra.mxu0 %v53_v36  ;;  %v549_v63 = vld [vmem:[#allocation3 + $0xfa8] sm:$0xff] }
 0x129   :  { %1477 = vmatpush.msra.mxu1 %v117_v37  ;;  %1497 = vmatpush.msra.mxu2 %v181_v38  ;;  %v349_v4 = vld [vmem:[#allocation3 + $0x968] sm:$0xff] }
 0x12a   :  { %1516 = vmatpush.msra.mxu3 %v249_v39  ;;  %1458 = vmatpush.msra.mxu0 %v49_v40  ;;  %v413_v5 = vld [vmem:[#allocation3 + $0xb68] sm:$0xff] }
 0x12b   :  { %1478 = vmatpush.msra.mxu1 %v113_v41  ;;  %1498 = vmatpush.msra.mxu2 %v177_v42  ;;  %v477_v6 = vld [vmem:[#allocation3 + $0xd68] sm:$0xff] }
 0x12c   :  { %1517 = vmatpush.msra.mxu3 %v245_v43  ;;  %1523 = vmatpush.msrb.mxu0 %v365_v44  ;;  %v545_v7 = vld [vmem:[#allocation3 + $0xf88] sm:$0xff] }
 0x12d   :  { %1543 = vmatpush.msrb.mxu1 %v429_v45  ;;  %1563 = vmatpush.msrb.mxu2 %v493_v46  ;;  %v345_v8 = vld [vmem:[#allocation3 + $0x948] sm:$0xff] }
 0x12e   :  { %1518 = vmatpush.msra.mxu3 %v241_v47  ;;  %1524 = vmatpush.msrb.mxu0 %v361_v52  ;;  %v409_v9 = vld [vmem:[#allocation3 + $0xb48] sm:$0xff] }
 0x12f   :  { %1544 = vmatpush.msrb.mxu1 %v425_v53  ;;  %1564 = vmatpush.msrb.mxu2 %v489_v54  ;;  %v473_v10 = vld [vmem:[#allocation3 + $0xd48] sm:$0xff] }
 0x130   :  { %1583 = vmatpush.msrb.mxu3 %v557_v55  ;;  %1525 = vmatpush.msrb.mxu0 %v357_v56  ;;  %v541_v11 = vld [vmem:[#allocation3 + $0xf68] sm:$0xff] }
 0x131   :  { %1545 = vmatpush.msrb.mxu1 %v421_v57  ;;  %1565 = vmatpush.msrb.mxu2 %v485_v58  ;;  %v341_v12 = vld [vmem:[#allocation3 + $0x928] sm:$0xff] }
 0x132   :  { %1584 = vmatpush.msrb.mxu3 %v553_v59  ;;  %1526 = vmatpush.msrb.mxu0 %v353_v60  ;;  %v405_v13 = vld [vmem:[#allocation3 + $0xb28] sm:$0xff] }
 0x133   :  { %1546 = vmatpush.msrb.mxu1 %v417_v61  ;;  %1566 = vmatpush.msrb.mxu2 %v481_v62  ;;  %v469_v14 = vld [vmem:[#allocation3 + $0xd28] sm:$0xff] }
 0x134   :  { %1585 = vmatpush.msrb.mxu3 %v549_v63  ;;  %1527 = vmatpush.msrb.mxu0 %v349_v4  ;;  %v537_v15 = vld [vmem:[#allocation3 + $0xf48] sm:$0xff] }
 0x135   :  { %1547 = vmatpush.msrb.mxu1 %v413_v5  ;;  %1567 = vmatpush.msrb.mxu2 %v477_v6  ;;  %v337_v16 = vld [vmem:[#allocation3 + $0x908] sm:$0xff] }
 0x136   :  { %1586 = vmatpush.msrb.mxu3 %v545_v7  ;;  %1528 = vmatpush.msrb.mxu0 %v345_v8  ;;  %v401_v17 = vld [vmem:[#allocation3 + $0xb08] sm:$0xff] }
 0x137   :  { %1548 = vmatpush.msrb.mxu1 %v409_v9  ;;  %1568 = vmatpush.msrb.mxu2 %v473_v10  ;;  %v465_v18 = vld [vmem:[#allocation3 + $0xd08] sm:$0xff] }
 0x138   :  { %1587 = vmatpush.msrb.mxu3 %v541_v11  ;;  %1529 = vmatpush.msrb.mxu0 %v341_v12  ;;  %v533_v19 = vld [vmem:[#allocation3 + $0xf28] sm:$0xff] }
 0x139   :  { %1549 = vmatpush.msrb.mxu1 %v405_v13  ;;  %1569 = vmatpush.msrb.mxu2 %v469_v14  ;;  %v333_v20 = vld [vmem:[#allocation3 + $0x8e8] sm:$0xff] }
 0x13a   :  { %1588 = vmatpush.msrb.mxu3 %v537_v15  ;;  %v397_v21 = vld [vmem:[#allocation3 + $0xae8] sm:$0xff]  ;;  %1530 = vmatpush.msrb.mxu0 %v337_v16 }
 0x13b   :  { %1550 = vmatpush.msrb.mxu1 %v401_v17  ;;  %v461_v22 = vld [vmem:[#allocation3 + $0xce8] sm:$0xff]  ;;  %1570 = vmatpush.msrb.mxu2 %v465_v18 }
 0x13c   :  { %v529_v23 = vld [vmem:[#allocation3 + $0xf08] sm:$0xff]  ;;  %1589 = vmatpush.msrb.mxu3 %v533_v19  ;;  %1531 = vmatpush.msrb.mxu0 %v333_v20 }
 0x13d   :  { %v329_v24 = vld [vmem:[#allocation3 + $0x8c8] sm:$0xff]  ;;  %1551 = vmatpush.msrb.mxu1 %v397_v21  ;;  %1571 = vmatpush.msrb.mxu2 %v461_v22 }
 0x13e   :  { %v393_v25 = vld [vmem:[#allocation3 + $0xac8] sm:$0xff]  ;;  %1590 = vmatpush.msrb.mxu3 %v529_v23  ;;  %1532 = vmatpush.msrb.mxu0 %v329_v24 }
 0x13f   :  { %v457_v26 = vld [vmem:[#allocation3 + $0xcc8] sm:$0xff]  ;;  %1552 = vmatpush.msrb.mxu1 %v393_v25  ;;  %1459 = vmatmul.f32.vlgmr.msra.gmra.mxu0 %v2691_v48 }
 0x140   :  { %v525_v27 = vld [vmem:[#allocation3 + $0xee8] sm:$0xff]  ;;  %1572 = vmatpush.msrb.mxu2 %v457_v26  ;;  %1479 = vmatmul.f32.vlgmr.msra.gmra.mxu1 %v2693_v49 }
 0x141   :  { %v325_v28 = vld [vmem:[#allocation3 + $0x8a8] sm:$0xff]  ;;  %1591 = vmatpush.msrb.mxu3 %v525_v27  ;;  %1499 = vmatmul.f32.vlgmr.msra.gmra.mxu2 %v2695_v50 }
 0x142   :  { %v389_v29 = vld [vmem:[#allocation3 + $0xaa8] sm:$0xff]  ;;  %1533 = vmatpush.msrb.mxu0 %v325_v28  ;;  %1519 = vmatmul.f32.vlgmr.msra.gmra.mxu3 %v2697_v51 }
 0x143   :  { %v453_v30 = vld [vmem:[#allocation3 + $0xca8] sm:$0xff]  ;;  %1553 = vmatpush.msrb.mxu1 %v389_v29 }
 0x144   :  { %v521_v31 = vld [vmem:[#allocation3 + $0xec8] sm:$0xff]  ;;  %1573 = vmatpush.msrb.mxu2 %v453_v30 }
 0x145   :  { %v321_v32 = vld [vmem:[#allocation3 + $0x888] sm:$0xff]  ;;  %1592 = vmatpush.msrb.mxu3 %v521_v31 }
 0x146   :  { %v385_v33 = vld [vmem:[#allocation3 + $0xa88] sm:$0xff]  ;;  %1534 = vmatpush.msrb.mxu0 %v321_v32 }
 0x147   :  { %v449_v34 = vld [vmem:[#allocation3 + $0xc88] sm:$0xff]  ;;  %1554 = vmatpush.msrb.mxu1 %v385_v33 }
 0x148   :  { %v517_v35 = vld [vmem:[#allocation3 + $0xea8] sm:$0xff]  ;;  %1574 = vmatpush.msrb.mxu2 %v449_v34 }
 0x149   :  { %v317_v36 = vld [vmem:[#allocation3 + $0x868] sm:$0xff]  ;;  %1593 = vmatpush.msrb.mxu3 %v517_v35 }
 0x14a   :  { %v381_v37 = vld [vmem:[#allocation3 + $0xa68] sm:$0xff]  ;;  %1535 = vmatpush.msrb.mxu0 %v317_v36 }
 0x14b   :  { %v445_v38 = vld [vmem:[#allocation3 + $0xc68] sm:$0xff]  ;;  %1555 = vmatpush.msrb.mxu1 %v381_v37 }
 0x14c   :  { %v513_v39 = vld [vmem:[#allocation3 + $0xe88] sm:$0xff]  ;;  %1575 = vmatpush.msrb.mxu2 %v445_v38 }
 0x14d   :  { %v313_v40 = vld [vmem:[#allocation3 + $0x848] sm:$0xff]  ;;  %1594 = vmatpush.msrb.mxu3 %v513_v39 }
 0x14e   :  { %v377_v41 = vld [vmem:[#allocation3 + $0xa48] sm:$0xff]  ;;  %1536 = vmatpush.msrb.mxu0 %v313_v40 }
 0x14f   :  { %v441_v42 = vld [vmem:[#allocation3 + $0xc48] sm:$0xff]  ;;  %1556 = vmatpush.msrb.mxu1 %v377_v41 }
 0x150   :  { %v509_v43 = vld [vmem:[#allocation3 + $0xe68] sm:$0xff]  ;;  %1576 = vmatpush.msrb.mxu2 %v441_v42 }
 0x151   :  { %v309_v44 = vld [vmem:[#allocation3 + $0x828] sm:$0xff]  ;;  %1595 = vmatpush.msrb.mxu3 %v509_v43 }
 0x152   :  { %v373_v45 = vld [vmem:[#allocation3 + $0xa28] sm:$0xff]  ;;  %1537 = vmatpush.msrb.mxu0 %v309_v44 }
 0x153   :  { %v437_v46 = vld [vmem:[#allocation3 + $0xc28] sm:$0xff]  ;;  %1557 = vmatpush.msrb.mxu1 %v373_v45 }
 0x154   :  { %v505_v47 = vld [vmem:[#allocation3 + $0xe48] sm:$0xff]  ;;  %1577 = vmatpush.msrb.mxu2 %v437_v46 }
 0x155   :  { %v305_v52 = vld [vmem:[#allocation3 + $0x808] sm:$0xff]  ;;  %1596 = vmatpush.msrb.mxu3 %v505_v47 }
 0x156   :  { %v369_v53 = vld [vmem:[#allocation3 + $0xa08] sm:$0xff]  ;;  %1538 = vmatpush.msrb.mxu0 %v305_v52 }
 0x157   :  { %v433_v54 = vld [vmem:[#allocation3 + $0xc08] sm:$0xff]  ;;  %1558 = vmatpush.msrb.mxu1 %v369_v53  ;;  %1539 = vmatmul.f32.vlgmr.msrb.gmra.mxu0 %v2704_v1 }
 0x158   :  { %v501_v55 = vld [vmem:[#allocation3 + $0xe28] sm:$0xff]  ;;  %1578 = vmatpush.msrb.mxu2 %v433_v54  ;;  %1559 = vmatmul.f32.vlgmr.msrb.gmra.mxu1 %v2708_v3 }
 0x159   :  { %v621_v56 = vld [vmem:[#allocation3 + $0x11e8] sm:$0xff]  ;;  %1597 = vmatpush.msrb.mxu3 %v501_v55  ;;  %1579 = vmatmul.f32.vlgmr.msrb.gmra.mxu2 %v2702_v0 }
 0x15a   :  { %v685_v57 = vld [vmem:[#allocation3 + $0x13e8] sm:$0xff]  ;;  %1603 = vmatpush.msra.mxu0 %v621_v56 }
 0x15b   :  { %v749_v58 = vld [vmem:[#allocation3 + $0x15e8] sm:$0xff]  ;;  %1623 = vmatpush.msra.mxu1 %v685_v57 }
 0x15c   :  { %v497_v59 = vld [vmem:[#allocation3 + $0xe08] sm:$0xff]  ;;  %1643 = vmatpush.msra.mxu2 %v749_v58 }
 0x15d   :  { %v617_v60 = vld [vmem:[#allocation3 + $0x11c8] sm:$0xff]  ;;  %1598 = vmatpush.msrb.mxu3 %v497_v59 }
 0x15e   :  { %v681_v61 = vld [vmem:[#allocation3 + $0x13c8] sm:$0xff]  ;;  %1604 = vmatpush.msra.mxu0 %v617_v60  ;;  %1599 = vmatmul.f32.vlgmr.msrb.gmra.mxu3 %v2706_v2 }
 0x15f   :  { %v745_v62 = vld [vmem:[#allocation3 + $0x15c8] sm:$0xff]  ;;  %1624 = vmatpush.msra.mxu1 %v681_v61 }
 0x160   :  { %v813_v63 = vld [vmem:[#allocation3 + $0x17e8] sm:$0xff]  ;;  %1644 = vmatpush.msra.mxu2 %v745_v62 }
 0x161   :  { %v613_v4 = vld [vmem:[#allocation3 + $0x11a8] sm:$0xff]  ;;  %1663 = vmatpush.msra.mxu3 %v813_v63 }
 0x162   :  { %v677_v5 = vld [vmem:[#allocation3 + $0x13a8] sm:$0xff]  ;;  %1605 = vmatpush.msra.mxu0 %v613_v4 }
 0x163   :  { %v741_v6 = vld [vmem:[#allocation3 + $0x15a8] sm:$0xff]  ;;  %1625 = vmatpush.msra.mxu1 %v677_v5 }
 0x164   :  { %v809_v7 = vld [vmem:[#allocation3 + $0x17c8] sm:$0xff]  ;;  %1645 = vmatpush.msra.mxu2 %v741_v6 }
 0x165   :  { %v609_v8 = vld [vmem:[#allocation3 + $0x1188] sm:$0xff]  ;;  %1664 = vmatpush.msra.mxu3 %v809_v7 }
 0x166   :  { %v673_v9 = vld [vmem:[#allocation3 + $0x1388] sm:$0xff]  ;;  %1606 = vmatpush.msra.mxu0 %v609_v8  ;;  %v2583_v8 = vld.sshfl [vmem:[#allocation1] sm:$0xff pattern:$0x73625140] }
 0x167   :  { %v737_v10 = vld [vmem:[#allocation3 + $0x1588] sm:$0xff]  ;;  %1626 = vmatpush.msra.mxu1 %v673_v9 }
 0x168   :  { %v805_v11 = vld [vmem:[#allocation3 + $0x17a8] sm:$0xff]  ;;  %1646 = vmatpush.msra.mxu2 %v737_v10 }
 0x169   :  { %v605_v12 = vld [vmem:[#allocation3 + $0x1168] sm:$0xff]  ;;  %1665 = vmatpush.msra.mxu3 %v805_v11 }
 0x16a   :  { %v669_v13 = vld [vmem:[#allocation3 + $0x1368] sm:$0xff]  ;;  %1607 = vmatpush.msra.mxu0 %v605_v12 }
 0x16b   :  { %v733_v14 = vld [vmem:[#allocation3 + $0x1568] sm:$0xff]  ;;  %1627 = vmatpush.msra.mxu1 %v669_v13 }
 0x16c   :  { %v801_v15 = vld [vmem:[#allocation3 + $0x1788] sm:$0xff]  ;;  %1647 = vmatpush.msra.mxu2 %v733_v14  ;;  %v2585_v14 = vld.sshfl [vmem:[#allocation1 + $0x8] sm:$0xff pattern:$0x73625140] }
 0x16d   :  { %v601_v16 = vld [vmem:[#allocation3 + $0x1148] sm:$0xff]  ;;  %1666 = vmatpush.msra.mxu3 %v801_v15 }
 0x16e   :  { %v665_v17 = vld [vmem:[#allocation3 + $0x1348] sm:$0xff]  ;;  %1608 = vmatpush.msra.mxu0 %v601_v16 }
 0x16f   :  { %v729_v18 = vld [vmem:[#allocation3 + $0x1548] sm:$0xff]  ;;  %1628 = vmatpush.msra.mxu1 %v665_v17 }
 0x170   :  { %v797_v19 = vld [vmem:[#allocation3 + $0x1768] sm:$0xff]  ;;  %1648 = vmatpush.msra.mxu2 %v729_v18 }
 0x171   :  { %v597_v20 = vld [vmem:[#allocation3 + $0x1128] sm:$0xff]  ;;  %1667 = vmatpush.msra.mxu3 %v797_v19 }
 0x172   :  { %v661_v21 = vld [vmem:[#allocation3 + $0x1328] sm:$0xff]  ;;  %1609 = vmatpush.msra.mxu0 %v597_v20 }
 0x173   :  { %v725_v22 = vld [vmem:[#allocation3 + $0x1528] sm:$0xff]  ;;  %1629 = vmatpush.msra.mxu1 %v661_v21 }
 0x174   :  { %v793_v23 = vld [vmem:[#allocation3 + $0x1748] sm:$0xff]  ;;  %1649 = vmatpush.msra.mxu2 %v725_v22 }
 0x175   :  { %v593_v24 = vld [vmem:[#allocation3 + $0x1108] sm:$0xff]  ;;  %1668 = vmatpush.msra.mxu3 %v793_v23 }
 0x176   :  { %v657_v25 = vld [vmem:[#allocation3 + $0x1308] sm:$0xff]  ;;  %1610 = vmatpush.msra.mxu0 %v593_v24 }
 0x177   :  { %v721_v26 = vld [vmem:[#allocation3 + $0x1508] sm:$0xff]  ;;  %1630 = vmatpush.msra.mxu1 %v657_v25 }
 0x178   :  { %v789_v27 = vld [vmem:[#allocation3 + $0x1728] sm:$0xff]  ;;  %1650 = vmatpush.msra.mxu2 %v721_v26 }
 0x179   :  { %v589_v28 = vld [vmem:[#allocation3 + $0x10e8] sm:$0xff]  ;;  %1669 = vmatpush.msra.mxu3 %v789_v27 }
 0x17a   :  { %v653_v29 = vld [vmem:[#allocation3 + $0x12e8] sm:$0xff]  ;;  %1611 = vmatpush.msra.mxu0 %v589_v28 }
 0x17b   :  { %v717_v30 = vld [vmem:[#allocation3 + $0x14e8] sm:$0xff]  ;;  %1631 = vmatpush.msra.mxu1 %v653_v29 }
 0x17c   :  { %v785_v31 = vld [vmem:[#allocation3 + $0x1708] sm:$0xff]  ;;  %1651 = vmatpush.msra.mxu2 %v717_v30 }
 0x17d   :  { %v585_v32 = vld [vmem:[#allocation3 + $0x10c8] sm:$0xff]  ;;  %1670 = vmatpush.msra.mxu3 %v785_v31 }
 0x17e   :  { %v649_v33 = vld [vmem:[#allocation3 + $0x12c8] sm:$0xff]  ;;  %1612 = vmatpush.msra.mxu0 %v585_v32 }
 0x17f   :  { %v713_v34 = vld [vmem:[#allocation3 + $0x14c8] sm:$0xff]  ;;  %1632 = vmatpush.msra.mxu1 %v649_v33 }
 0x180   :  { %v781_v35 = vld [vmem:[#allocation3 + $0x16e8] sm:$0xff]  ;;  %1652 = vmatpush.msra.mxu2 %v713_v34 }
 0x181   :  { %v581_v36 = vld [vmem:[#allocation3 + $0x10a8] sm:$0xff]  ;;  %1671 = vmatpush.msra.mxu3 %v781_v35 }
 0x182   :  { %v645_v37 = vld [vmem:[#allocation3 + $0x12a8] sm:$0xff]  ;;  %1613 = vmatpush.msra.mxu0 %v581_v36 }
 0x183   :  { %v709_v38 = vld [vmem:[#allocation3 + $0x14a8] sm:$0xff]  ;;  %1633 = vmatpush.msra.mxu1 %v645_v37 }
 0x184   :  { %v777_v39 = vld [vmem:[#allocation3 + $0x16c8] sm:$0xff]  ;;  %1653 = vmatpush.msra.mxu2 %v709_v38 }
 0x185   :  { %v577_v40 = vld [vmem:[#allocation3 + $0x1088] sm:$0xff]  ;;  %1672 = vmatpush.msra.mxu3 %v777_v39 }
 0x186   :  { %v641_v41 = vld [vmem:[#allocation3 + $0x1288] sm:$0xff]  ;;  %1614 = vmatpush.msra.mxu0 %v577_v40 }
 0x187   :  { %v705_v42 = vld [vmem:[#allocation3 + $0x1488] sm:$0xff]  ;;  %1634 = vmatpush.msra.mxu1 %v641_v41 }
 0x188   :  { %v773_v43 = vld [vmem:[#allocation3 + $0x16a8] sm:$0xff]  ;;  %1654 = vmatpush.msra.mxu2 %v705_v42 }
 0x189   :  { %v573_v44 = vld [vmem:[#allocation3 + $0x1068] sm:$0xff]  ;;  %1673 = vmatpush.msra.mxu3 %v773_v43 }
 0x18a   :  { %v637_v45 = vld [vmem:[#allocation3 + $0x1268] sm:$0xff]  ;;  %1615 = vmatpush.msra.mxu0 %v573_v44 }
 0x18b   :  { %v701_v46 = vld [vmem:[#allocation3 + $0x1468] sm:$0xff]  ;;  %1635 = vmatpush.msra.mxu1 %v637_v45 }
 0x18c   :  { %v769_v47 = vld [vmem:[#allocation3 + $0x1688] sm:$0xff]  ;;  %1655 = vmatpush.msra.mxu2 %v701_v46 }
 0x18d   :  { %v569_v52 = vld [vmem:[#allocation3 + $0x1048] sm:$0xff]  ;;  %1674 = vmatpush.msra.mxu3 %v769_v47 }
 0x18e   :  { %v633_v53 = vld [vmem:[#allocation3 + $0x1248] sm:$0xff]  ;;  %1616 = vmatpush.msra.mxu0 %v569_v52 }
 0x18f   :  { %v697_v54 = vld [vmem:[#allocation3 + $0x1448] sm:$0xff]  ;;  %1636 = vmatpush.msra.mxu1 %v633_v53 }
 0x190   :  { %v765_v55 = vld [vmem:[#allocation3 + $0x1668] sm:$0xff]  ;;  %1656 = vmatpush.msra.mxu2 %v697_v54 }
 0x191   :  { %v565_v56 = vld [vmem:[#allocation3 + $0x1028] sm:$0xff]  ;;  %1675 = vmatpush.msra.mxu3 %v765_v55 }
 0x192   :  { %v629_v57 = vld [vmem:[#allocation3 + $0x1228] sm:$0xff]  ;;  %1617 = vmatpush.msra.mxu0 %v565_v56 }
 0x193   :  { %v693_v58 = vld [vmem:[#allocation3 + $0x1428] sm:$0xff]  ;;  %1637 = vmatpush.msra.mxu1 %v629_v57 }
 0x194   :  { %v761_v59 = vld [vmem:[#allocation3 + $0x1648] sm:$0xff]  ;;  %1657 = vmatpush.msra.mxu2 %v693_v58 }
 0x195   :  { %v561_v60 = vld [vmem:[#allocation3 + $0x1008] sm:$0xff]  ;;  %1676 = vmatpush.msra.mxu3 %v761_v59 }
 0x196   :  { %v625_v61 = vld [vmem:[#allocation3 + $0x1208] sm:$0xff]  ;;  %1618 = vmatpush.msra.mxu0 %v561_v60 }
 0x197   :  { %v689_v62 = vld [vmem:[#allocation3 + $0x1408] sm:$0xff]  ;;  %1638 = vmatpush.msra.mxu1 %v625_v61  ;;  %1619 = vmatmul.f32.vlgmr.msra.gmra.mxu0 %v2583_v8 }
 0x198   :  { %v757_v63 = vld [vmem:[#allocation3 + $0x1628] sm:$0xff]  ;;  %1658 = vmatpush.msra.mxu2 %v689_v62  ;;  %1639 = vmatmul.f32.vlgmr.msra.gmra.mxu1 %v2585_v14 }
 0x199   :  { %v877_v4 = vld [vmem:[#allocation3 + $0x19e8] sm:$0xff]  ;;  %1677 = vmatpush.msra.mxu3 %v757_v63 }
 0x19a   :  { %v941_v5 = vld [vmem:[#allocation3 + $0x1be8] sm:$0xff]  ;;  %1683 = vmatpush.msrb.mxu0 %v877_v4 }
 0x19b   :  { %v1005_v6 = vld [vmem:[#allocation3 + $0x1de8] sm:$0xff]  ;;  %1703 = vmatpush.msrb.mxu1 %v941_v5 }
 0x19c   :  { %v753_v7 = vld [vmem:[#allocation3 + $0x1608] sm:$0xff]  ;;  %1723 = vmatpush.msrb.mxu2 %v1005_v6 }
 0x19d   :  { %v2584_v9 = vld.sshfl [vmem:[#allocation1 + $0x10] sm:$0xff pattern:$0x73625140]  ;;  %1678 = vmatpush.msra.mxu3 %v753_v7  ;;  %v2586_v15 = vld.sshfl [vmem:[#allocation1 + $0x18] sm:$0xff pattern:$0x73625140] }
 0x19e   :  { %1659 = vmatmul.f32.vlgmr.msra.gmra.mxu2 %v2584_v9  ;;  %v873_v10 = vld [vmem:[#allocation3 + $0x19c8] sm:$0xff]  ;;  %1679 = vmatmul.f32.vlgmr.msra.gmra.mxu3 %v2586_v15 }
 0x19f   :  { %v937_v11 = vld [vmem:[#allocation3 + $0x1bc8] sm:$0xff]  ;;  %1684 = vmatpush.msrb.mxu0 %v873_v10 }
 0x1a0   :  { %v1001_v12 = vld [vmem:[#allocation3 + $0x1dc8] sm:$0xff]  ;;  %1704 = vmatpush.msrb.mxu1 %v937_v11 }
 0x1a1   :  { %v1069_v13 = vld [vmem:[#allocation3 + $0x1fe8] sm:$0xff]  ;;  %1724 = vmatpush.msrb.mxu2 %v1001_v12 }
 0x1a2   :  { %v869_v16 = vld [vmem:[#allocation3 + $0x19a8] sm:$0xff]  ;;  %1743 = vmatpush.msrb.mxu3 %v1069_v13 }
 0x1a3   :  { %v933_v17 = vld [vmem:[#allocation3 + $0x1ba8] sm:$0xff]  ;;  %1685 = vmatpush.msrb.mxu0 %v869_v16  ;;  %v110_v16 = vld [vmem:[#allocation3 + $0x1f0] sm:$0xff] }
 0x1a4   :  { %v997_v18 = vld [vmem:[#allocation3 + $0x1da8] sm:$0xff]  ;;  %1705 = vmatpush.msrb.mxu1 %v933_v17  ;;  %v174_v17 = vld [vmem:[#allocation3 + $0x3f0] sm:$0xff] }
 0x1a5   :  { %v1065_v19 = vld [vmem:[#allocation3 + $0x1fc8] sm:$0xff]  ;;  %1725 = vmatpush.msrb.mxu2 %v997_v18  ;;  %v238_v18 = vld [vmem:[#allocation3 + $0x5f0] sm:$0xff] }
 0x1a6   :  { %v865_v20 = vld [vmem:[#allocation3 + $0x1988] sm:$0xff]  ;;  %1744 = vmatpush.msrb.mxu3 %v1065_v19 }
 0x1a7   :  { %v929_v21 = vld [vmem:[#allocation3 + $0x1b88] sm:$0xff]  ;;  %1686 = vmatpush.msrb.mxu0 %v865_v20  ;;  %v2587_v20 = vld.sshfl [vmem:[#allocation1 + $0x20] sm:$0xff pattern:$0x73625140] }
 0x1a8   :  { %v993_v22 = vld [vmem:[#allocation3 + $0x1d88] sm:$0xff]  ;;  %1706 = vmatpush.msrb.mxu1 %v929_v21 }
 0x1a9   :  { %v1061_v23 = vld [vmem:[#allocation3 + $0x1fa8] sm:$0xff]  ;;  %1726 = vmatpush.msrb.mxu2 %v993_v22  ;;  %v106_v22 = vld [vmem:[#allocation3 + $0x1d0] sm:$0xff] }
 0x1aa   :  { %v861_v24 = vld [vmem:[#allocation3 + $0x1968] sm:$0xff]  ;;  %1745 = vmatpush.msrb.mxu3 %v1061_v23  ;;  %v170_v23 = vld [vmem:[#allocation3 + $0x3d0] sm:$0xff] }
 0x1ab   :  { %v925_v25 = vld [vmem:[#allocation3 + $0x1b68] sm:$0xff]  ;;  %1687 = vmatpush.msrb.mxu0 %v861_v24  ;;  %v234_v24 = vld [vmem:[#allocation3 + $0x5d0] sm:$0xff] }
 0x1ac   :  { %v989_v26 = vld [vmem:[#allocation3 + $0x1d68] sm:$0xff]  ;;  %1707 = vmatpush.msrb.mxu1 %v925_v25  ;;  %v302_v25 = vld [vmem:[#allocation3 + $0x7f0] sm:$0xff] }
 0x1ad   :  { %v1057_v27 = vld [vmem:[#allocation3 + $0x1f88] sm:$0xff]  ;;  %1727 = vmatpush.msrb.mxu2 %v989_v26  ;;  %v2589_v26 = vld.sshfl [vmem:[#allocation1 + $0x28] sm:$0xff pattern:$0x73625140] }
 0x1ae   :  { %v857_v28 = vld [vmem:[#allocation3 + $0x1948] sm:$0xff]  ;;  %1746 = vmatpush.msrb.mxu3 %v1057_v27 }
 0x1af   :  { %v921_v29 = vld [vmem:[#allocation3 + $0x1b48] sm:$0xff]  ;;  %1688 = vmatpush.msrb.mxu0 %v857_v28  ;;  %v102_v28 = vld [vmem:[#allocation3 + $0x1b0] sm:$0xff] }
 0x1b0   :  { %v985_v30 = vld [vmem:[#allocation3 + $0x1d48] sm:$0xff]  ;;  %1708 = vmatpush.msrb.mxu1 %v921_v29  ;;  %v166_v29 = vld [vmem:[#allocation3 + $0x3b0] sm:$0xff] }
 0x1b1   :  { %v1053_v31 = vld [vmem:[#allocation3 + $0x1f68] sm:$0xff]  ;;  %1728 = vmatpush.msrb.mxu2 %v985_v30  ;;  %v230_v30 = vld [vmem:[#allocation3 + $0x5b0] sm:$0xff] }
 0x1b2   :  { %v853_v32 = vld [vmem:[#allocation3 + $0x1928] sm:$0xff]  ;;  %1747 = vmatpush.msrb.mxu3 %v1053_v31  ;;  %v298_v31 = vld [vmem:[#allocation3 + $0x7d0] sm:$0xff] }
 0x1b3   :  { %v917_v33 = vld [vmem:[#allocation3 + $0x1b28] sm:$0xff]  ;;  %1689 = vmatpush.msrb.mxu0 %v853_v32  ;;  %v98_v32 = vld [vmem:[#allocation3 + $0x190] sm:$0xff] }
 0x1b4   :  { %v981_v34 = vld [vmem:[#allocation3 + $0x1d28] sm:$0xff]  ;;  %1709 = vmatpush.msrb.mxu1 %v917_v33  ;;  %v162_v33 = vld [vmem:[#allocation3 + $0x390] sm:$0xff] }
 0x1b5   :  { %v1049_v35 = vld [vmem:[#allocation3 + $0x1f48] sm:$0xff]  ;;  %1729 = vmatpush.msrb.mxu2 %v981_v34  ;;  %v226_v34 = vld [vmem:[#allocation3 + $0x590] sm:$0xff] }
 0x1b6   :  { %v849_v36 = vld [vmem:[#allocation3 + $0x1908] sm:$0xff]  ;;  %1748 = vmatpush.msrb.mxu3 %v1049_v35  ;;  %v294_v35 = vld [vmem:[#allocation3 + $0x7b0] sm:$0xff] }
 0x1b7   :  { %v913_v37 = vld [vmem:[#allocation3 + $0x1b08] sm:$0xff]  ;;  %1690 = vmatpush.msrb.mxu0 %v849_v36  ;;  %v94_v36 = vld [vmem:[#allocation3 + $0x170] sm:$0xff] }
 0x1b8   :  { %v977_v38 = vld [vmem:[#allocation3 + $0x1d08] sm:$0xff]  ;;  %1710 = vmatpush.msrb.mxu1 %v913_v37  ;;  %v158_v37 = vld [vmem:[#allocation3 + $0x370] sm:$0xff] }
 0x1b9   :  { %v1045_v39 = vld [vmem:[#allocation3 + $0x1f28] sm:$0xff]  ;;  %1730 = vmatpush.msrb.mxu2 %v977_v38  ;;  %v222_v38 = vld [vmem:[#allocation3 + $0x570] sm:$0xff] }
 0x1ba   :  { %v845_v40 = vld [vmem:[#allocation3 + $0x18e8] sm:$0xff]  ;;  %1749 = vmatpush.msrb.mxu3 %v1045_v39  ;;  %v290_v39 = vld [vmem:[#allocation3 + $0x790] sm:$0xff] }
 0x1bb   :  { %v909_v41 = vld [vmem:[#allocation3 + $0x1ae8] sm:$0xff]  ;;  %1691 = vmatpush.msrb.mxu0 %v845_v40  ;;  %v90_v40 = vld [vmem:[#allocation3 + $0x150] sm:$0xff] }
 0x1bc   :  { %v973_v42 = vld [vmem:[#allocation3 + $0x1ce8] sm:$0xff]  ;;  %1711 = vmatpush.msrb.mxu1 %v909_v41  ;;  %v154_v41 = vld [vmem:[#allocation3 + $0x350] sm:$0xff] }
 0x1bd   :  { %v1041_v43 = vld [vmem:[#allocation3 + $0x1f08] sm:$0xff]  ;;  %1731 = vmatpush.msrb.mxu2 %v973_v42  ;;  %v218_v42 = vld [vmem:[#allocation3 + $0x550] sm:$0xff] }
 0x1be   :  { %v841_v44 = vld [vmem:[#allocation3 + $0x18c8] sm:$0xff]  ;;  %1750 = vmatpush.msrb.mxu3 %v1041_v43  ;;  %v286_v43 = vld [vmem:[#allocation3 + $0x770] sm:$0xff] }
 0x1bf   :  { %v905_v45 = vld [vmem:[#allocation3 + $0x1ac8] sm:$0xff]  ;;  %1692 = vmatpush.msrb.mxu0 %v841_v44  ;;  %v86_v44 = vld [vmem:[#allocation3 + $0x130] sm:$0xff] }
 0x1c0   :  { %v969_v46 = vld [vmem:[#allocation3 + $0x1cc8] sm:$0xff]  ;;  %1712 = vmatpush.msrb.mxu1 %v905_v45  ;;  %v150_v45 = vld [vmem:[#allocation3 + $0x330] sm:$0xff] }
 0x1c1   :  { %v1037_v47 = vld [vmem:[#allocation3 + $0x1ee8] sm:$0xff]  ;;  %1732 = vmatpush.msrb.mxu2 %v969_v46  ;;  %v214_v46 = vld [vmem:[#allocation3 + $0x530] sm:$0xff] }
 0x1c2   :  { %v837_v52 = vld [vmem:[#allocation3 + $0x18a8] sm:$0xff]  ;;  %1751 = vmatpush.msrb.mxu3 %v1037_v47  ;;  %v282_v47 = vld [vmem:[#allocation3 + $0x750] sm:$0xff] }
 0x1c3   :  { %v901_v53 = vld [vmem:[#allocation3 + $0x1aa8] sm:$0xff]  ;;  %1693 = vmatpush.msrb.mxu0 %v837_v52  ;;  %v82_v52 = vld [vmem:[#allocation3 + $0x110] sm:$0xff] }
 0x1c4   :  { %v965_v54 = vld [vmem:[#allocation3 + $0x1ca8] sm:$0xff]  ;;  %1713 = vmatpush.msrb.mxu1 %v901_v53  ;;  %v146_v53 = vld [vmem:[#allocation3 + $0x310] sm:$0xff] }
 0x1c5   :  { %v1033_v55 = vld [vmem:[#allocation3 + $0x1ec8] sm:$0xff]  ;;  %1733 = vmatpush.msrb.mxu2 %v965_v54  ;;  %v210_v54 = vld [vmem:[#allocation3 + $0x510] sm:$0xff] }
 0x1c6   :  { %v833_v56 = vld [vmem:[#allocation3 + $0x1888] sm:$0xff]  ;;  %1752 = vmatpush.msrb.mxu3 %v1033_v55  ;;  %v278_v55 = vld [vmem:[#allocation3 + $0x730] sm:$0xff] }
 0x1c7   :  { %v897_v57 = vld [vmem:[#allocation3 + $0x1a88] sm:$0xff]  ;;  %1694 = vmatpush.msrb.mxu0 %v833_v56  ;;  %v78_v56 = vld [vmem:[#allocation3 + $0xf0] sm:$0xff] }
 0x1c8   :  { %v961_v58 = vld [vmem:[#allocation3 + $0x1c88] sm:$0xff]  ;;  %1714 = vmatpush.msrb.mxu1 %v897_v57  ;;  %v142_v57 = vld [vmem:[#allocation3 + $0x2f0] sm:$0xff] }
 0x1c9   :  { %v1029_v59 = vld [vmem:[#allocation3 + $0x1ea8] sm:$0xff]  ;;  %1734 = vmatpush.msrb.mxu2 %v961_v58  ;;  %v206_v58 = vld [vmem:[#allocation3 + $0x4f0] sm:$0xff] }
 0x1ca   :  { %v829_v60 = vld [vmem:[#allocation3 + $0x1868] sm:$0xff]  ;;  %1753 = vmatpush.msrb.mxu3 %v1029_v59  ;;  %v274_v59 = vld [vmem:[#allocation3 + $0x710] sm:$0xff] }
 0x1cb   :  { %v893_v61 = vld [vmem:[#allocation3 + $0x1a68] sm:$0xff]  ;;  %1695 = vmatpush.msrb.mxu0 %v829_v60  ;;  %v74_v60 = vld [vmem:[#allocation3 + $0xd0] sm:$0xff] }
 0x1cc   :  { %v957_v62 = vld [vmem:[#allocation3 + $0x1c68] sm:$0xff]  ;;  %1715 = vmatpush.msrb.mxu1 %v893_v61  ;;  %v138_v61 = vld [vmem:[#allocation3 + $0x2d0] sm:$0xff] }
 0x1cd   :  { %v1025_v63 = vld [vmem:[#allocation3 + $0x1e88] sm:$0xff]  ;;  %1735 = vmatpush.msrb.mxu2 %v957_v62  ;;  %v202_v62 = vld [vmem:[#allocation3 + $0x4d0] sm:$0xff] }
 0x1ce   :  { %v825_v4 = vld [vmem:[#allocation3 + $0x1848] sm:$0xff]  ;;  %1754 = vmatpush.msrb.mxu3 %v1025_v63  ;;  %v270_v63 = vld [vmem:[#allocation3 + $0x6f0] sm:$0xff] }
 0x1cf   :  { %v889_v5 = vld [vmem:[#allocation3 + $0x1a48] sm:$0xff]  ;;  %1696 = vmatpush.msrb.mxu0 %v825_v4  ;;  %v70_v4 = vld [vmem:[#allocation3 + $0xb0] sm:$0xff] }
 0x1d0   :  { %v953_v6 = vld [vmem:[#allocation3 + $0x1c48] sm:$0xff]  ;;  %1716 = vmatpush.msrb.mxu1 %v889_v5  ;;  %v134_v5 = vld [vmem:[#allocation3 + $0x2b0] sm:$0xff] }
 0x1d1   :  { %v1021_v7 = vld [vmem:[#allocation3 + $0x1e68] sm:$0xff]  ;;  %1736 = vmatpush.msrb.mxu2 %v953_v6  ;;  %v198_v6 = vld [vmem:[#allocation3 + $0x4b0] sm:$0xff] }
 0x1d2   :  { %v821_v8 = vld [vmem:[#allocation3 + $0x1828] sm:$0xff]  ;;  %1755 = vmatpush.msrb.mxu3 %v1021_v7  ;;  %v266_v7 = vld [vmem:[#allocation3 + $0x6d0] sm:$0xff] }
 0x1d3   :  { %v885_v9 = vld [vmem:[#allocation3 + $0x1a28] sm:$0xff]  ;;  %1697 = vmatpush.msrb.mxu0 %v821_v8  ;;  %v66_v8 = vld [vmem:[#allocation3 + $0x90] sm:$0xff] }
 0x1d4   :  { %v949_v10 = vld [vmem:[#allocation3 + $0x1c28] sm:$0xff]  ;;  %1717 = vmatpush.msrb.mxu1 %v885_v9  ;;  %v130_v9 = vld [vmem:[#allocation3 + $0x290] sm:$0xff] }
 0x1d5   :  { %v1017_v11 = vld [vmem:[#allocation3 + $0x1e48] sm:$0xff]  ;;  %1737 = vmatpush.msrb.mxu2 %v949_v10  ;;  %v194_v10 = vld [vmem:[#allocation3 + $0x490] sm:$0xff] }
 0x1d6   :  { %v817_v12 = vld [vmem:[#allocation3 + $0x1808] sm:$0xff]  ;;  %1756 = vmatpush.msrb.mxu3 %v1017_v11  ;;  %v262_v11 = vld [vmem:[#allocation3 + $0x6b0] sm:$0xff] }
 0x1d7   :  { %v881_v13 = vld [vmem:[#allocation3 + $0x1a08] sm:$0xff]  ;;  %1698 = vmatpush.msrb.mxu0 %v817_v12  ;;  %v62_v12 = vld [vmem:[#allocation3 + $0x70] sm:$0xff] }
 0x1d8   :  { %v945_v14 = vld [vmem:[#allocation3 + $0x1c08] sm:$0xff]  ;;  %1718 = vmatpush.msrb.mxu1 %v881_v13  ;;  %1699 = vmatmul.f32.vlgmr.msrb.gmra.mxu0 %v2587_v20  ;;  %v126_v13 = vld [vmem:[#allocation3 + $0x270] sm:$0xff] }
 0x1d9   :  { %v1013_v15 = vld [vmem:[#allocation3 + $0x1e28] sm:$0xff]  ;;  %1738 = vmatpush.msrb.mxu2 %v945_v14  ;;  %1763 = vmatpush.msra.mxu0 %v110_v16  ;;  %v190_v14 = vld [vmem:[#allocation3 + $0x470] sm:$0xff] }
 0x1da   :  { %1757 = vmatpush.msrb.mxu3 %v1013_v15  ;;  %v1009_v19 = vld [vmem:[#allocation3 + $0x1e08] sm:$0xff]  ;;  %1783 = vmatpush.msra.mxu1 %v174_v17  ;;  %v258_v15 = vld [vmem:[#allocation3 + $0x690] sm:$0xff] }
 0x1db   :  { %v2588_v21 = vld.sshfl [vmem:[#allocation1 + $0x30] sm:$0xff pattern:$0x73625140]  ;;  %1803 = vmatpush.msra.mxu2 %v238_v18  ;;  %1719 = vmatmul.f32.vlgmr.msrb.gmra.mxu1 %v2589_v26  ;;  %v2590_v27 = vld.sshfl [vmem:[#allocation1 + $0x38] sm:$0xff pattern:$0x73625140] }
 0x1dc   :  { %1739 = vmatmul.f32.vlgmr.msrb.gmra.mxu2 %v2588_v21  ;;  %1758 = vmatpush.msrb.mxu3 %v1009_v19  ;;  %v58_v16 = vld [vmem:[#allocation3 + $0x50] sm:$0xff] }
 0x1dd   :  { %1759 = vmatmul.f32.vlgmr.msrb.gmra.mxu3 %v2590_v27  ;;  %1764 = vmatpush.msra.mxu0 %v106_v22  ;;  %v122_v17 = vld [vmem:[#allocation3 + $0x250] sm:$0xff] }
 0x1de   :  { %1784 = vmatpush.msra.mxu1 %v170_v23  ;;  %1804 = vmatpush.msra.mxu2 %v234_v24  ;;  %v186_v18 = vld [vmem:[#allocation3 + $0x450] sm:$0xff] }
 0x1df   :  { %1823 = vmatpush.msra.mxu3 %v302_v25  ;;  %1765 = vmatpush.msra.mxu0 %v102_v28  ;;  %v254_v19 = vld [vmem:[#allocation3 + $0x670] sm:$0xff] }
 0x1e0   :  { %1785 = vmatpush.msra.mxu1 %v166_v29  ;;  %1805 = vmatpush.msra.mxu2 %v230_v30  ;;  %v54_v20 = vld [vmem:[#allocation3 + $0x30] sm:$0xff] }
 0x1e1   :  { %1824 = vmatpush.msra.mxu3 %v298_v31  ;;  %1766 = vmatpush.msra.mxu0 %v98_v32  ;;  %v118_v21 = vld [vmem:[#allocation3 + $0x230] sm:$0xff] }
 0x1e2   :  { %1786 = vmatpush.msra.mxu1 %v162_v33  ;;  %1806 = vmatpush.msra.mxu2 %v226_v34  ;;  %v182_v22 = vld [vmem:[#allocation3 + $0x430] sm:$0xff] }
 0x1e3   :  { %1825 = vmatpush.msra.mxu3 %v294_v35  ;;  %1767 = vmatpush.msra.mxu0 %v94_v36  ;;  %v250_v23 = vld [vmem:[#allocation3 + $0x650] sm:$0xff] }
 0x1e4   :  { %1787 = vmatpush.msra.mxu1 %v158_v37  ;;  %1807 = vmatpush.msra.mxu2 %v222_v38  ;;  %v50_v24 = vld [vmem:[#allocation3 + $0x10] sm:$0xff] }
 0x1e5   :  { %1826 = vmatpush.msra.mxu3 %v290_v39  ;;  %1768 = vmatpush.msra.mxu0 %v90_v40  ;;  %v114_v25 = vld [vmem:[#allocation3 + $0x210] sm:$0xff] }
 0x1e6   :  { %1788 = vmatpush.msra.mxu1 %v154_v41  ;;  %1808 = vmatpush.msra.mxu2 %v218_v42  ;;  %v178_v26 = vld [vmem:[#allocation3 + $0x410] sm:$0xff] }
 0x1e7   :  { %1827 = vmatpush.msra.mxu3 %v286_v43  ;;  %1769 = vmatpush.msra.mxu0 %v86_v44  ;;  %v246_v27 = vld [vmem:[#allocation3 + $0x630] sm:$0xff] }
 0x1e8   :  { %1789 = vmatpush.msra.mxu1 %v150_v45  ;;  %1809 = vmatpush.msra.mxu2 %v214_v46  ;;  %v366_v28 = vld [vmem:[#allocation3 + $0x9f0] sm:$0xff] }
 0x1e9   :  { %1828 = vmatpush.msra.mxu3 %v282_v47  ;;  %1770 = vmatpush.msra.mxu0 %v82_v52  ;;  %v430_v29 = vld [vmem:[#allocation3 + $0xbf0] sm:$0xff] }
 0x1ea   :  { %1790 = vmatpush.msra.mxu1 %v146_v53  ;;  %1810 = vmatpush.msra.mxu2 %v210_v54  ;;  %v494_v30 = vld [vmem:[#allocation3 + $0xdf0] sm:$0xff] }
 0x1eb   :  { %1829 = vmatpush.msra.mxu3 %v278_v55  ;;  %1771 = vmatpush.msra.mxu0 %v78_v56  ;;  %v242_v31 = vld [vmem:[#allocation3 + $0x610] sm:$0xff] }
 0x1ec   :  { %1791 = vmatpush.msra.mxu1 %v142_v57  ;;  %1811 = vmatpush.msra.mxu2 %v206_v58  ;;  %v362_v32 = vld [vmem:[#allocation3 + $0x9d0] sm:$0xff] }
 0x1ed   :  { %1830 = vmatpush.msra.mxu3 %v274_v59  ;;  %1772 = vmatpush.msra.mxu0 %v74_v60  ;;  %v426_v33 = vld [vmem:[#allocation3 + $0xbd0] sm:$0xff] }
 0x1ee   :  { %1792 = vmatpush.msra.mxu1 %v138_v61  ;;  %1812 = vmatpush.msra.mxu2 %v202_v62  ;;  %v490_v34 = vld [vmem:[#allocation3 + $0xdd0] sm:$0xff] }
 0x1ef   :  { %1831 = vmatpush.msra.mxu3 %v270_v63  ;;  %1773 = vmatpush.msra.mxu0 %v70_v4  ;;  %v558_v35 = vld [vmem:[#allocation3 + $0xff0] sm:$0xff] }
 0x1f0   :  { %1793 = vmatpush.msra.mxu1 %v134_v5  ;;  %1813 = vmatpush.msra.mxu2 %v198_v6  ;;  %v358_v36 = vld [vmem:[#allocation3 + $0x9b0] sm:$0xff] }
 0x1f1   :  { %1832 = vmatpush.msra.mxu3 %v266_v7  ;;  %1774 = vmatpush.msra.mxu0 %v66_v8  ;;  %v422_v37 = vld [vmem:[#allocation3 + $0xbb0] sm:$0xff] }
 0x1f2   :  { %1794 = vmatpush.msra.mxu1 %v130_v9  ;;  %1814 = vmatpush.msra.mxu2 %v194_v10  ;;  %v486_v38 = vld [vmem:[#allocation3 + $0xdb0] sm:$0xff] }
 0x1f3   :  { %1833 = vmatpush.msra.mxu3 %v262_v11  ;;  %1775 = vmatpush.msra.mxu0 %v62_v12  ;;  %v554_v39 = vld [vmem:[#allocation3 + $0xfd0] sm:$0xff] }
 0x1f4   :  { %1795 = vmatpush.msra.mxu1 %v126_v13  ;;  %1815 = vmatpush.msra.mxu2 %v190_v14  ;;  %v354_v40 = vld [vmem:[#allocation3 + $0x990] sm:$0xff] }
 0x1f5   :  { %1834 = vmatpush.msra.mxu3 %v258_v15  ;;  %1776 = vmatpush.msra.mxu0 %v58_v16  ;;  %v418_v41 = vld [vmem:[#allocation3 + $0xb90] sm:$0xff] }
 0x1f6   :  { %1796 = vmatpush.msra.mxu1 %v122_v17  ;;  %1816 = vmatpush.msra.mxu2 %v186_v18  ;;  %v482_v42 = vld [vmem:[#allocation3 + $0xd90] sm:$0xff] }
 0x1f7   :  { %1835 = vmatpush.msra.mxu3 %v254_v19  ;;  %1777 = vmatpush.msra.mxu0 %v54_v20  ;;  %v550_v43 = vld [vmem:[#allocation3 + $0xfb0] sm:$0xff] }
 0x1f8   :  { %1797 = vmatpush.msra.mxu1 %v118_v21  ;;  %1817 = vmatpush.msra.mxu2 %v182_v22  ;;  %v350_v44 = vld [vmem:[#allocation3 + $0x970] sm:$0xff] }
 0x1f9   :  { %1836 = vmatpush.msra.mxu3 %v250_v23  ;;  %1778 = vmatpush.msra.mxu0 %v50_v24  ;;  %v414_v45 = vld [vmem:[#allocation3 + $0xb70] sm:$0xff] }
 0x1fa   :  { %1798 = vmatpush.msra.mxu1 %v114_v25  ;;  %1818 = vmatpush.msra.mxu2 %v178_v26  ;;  %v478_v46 = vld [vmem:[#allocation3 + $0xd70] sm:$0xff] }
 0x1fb   :  { %1837 = vmatpush.msra.mxu3 %v246_v27  ;;  %1843 = vmatpush.msrb.mxu0 %v366_v28  ;;  %v546_v47 = vld [vmem:[#allocation3 + $0xf90] sm:$0xff] }
 0x1fc   :  { %1863 = vmatpush.msrb.mxu1 %v430_v29  ;;  %1883 = vmatpush.msrb.mxu2 %v494_v30  ;;  %v346_v52 = vld [vmem:[#allocation3 + $0x950] sm:$0xff] }
 0x1fd   :  { %1838 = vmatpush.msra.mxu3 %v242_v31  ;;  %1844 = vmatpush.msrb.mxu0 %v362_v32  ;;  %v410_v53 = vld [vmem:[#allocation3 + $0xb50] sm:$0xff] }
 0x1fe   :  { %1864 = vmatpush.msrb.mxu1 %v426_v33  ;;  %1884 = vmatpush.msrb.mxu2 %v490_v34  ;;  %v474_v54 = vld [vmem:[#allocation3 + $0xd50] sm:$0xff] }
 0x1ff   :  { %1903 = vmatpush.msrb.mxu3 %v558_v35  ;;  %1845 = vmatpush.msrb.mxu0 %v358_v36  ;;  %v542_v55 = vld [vmem:[#allocation3 + $0xf70] sm:$0xff] }
 0x200   :  { %1865 = vmatpush.msrb.mxu1 %v422_v37  ;;  %1885 = vmatpush.msrb.mxu2 %v486_v38  ;;  %v342_v56 = vld [vmem:[#allocation3 + $0x930] sm:$0xff] }
 0x201   :  { %1904 = vmatpush.msrb.mxu3 %v554_v39  ;;  %1846 = vmatpush.msrb.mxu0 %v354_v40  ;;  %v406_v57 = vld [vmem:[#allocation3 + $0xb30] sm:$0xff] }
 0x202   :  { %1866 = vmatpush.msrb.mxu1 %v418_v41  ;;  %1886 = vmatpush.msrb.mxu2 %v482_v42  ;;  %v470_v58 = vld [vmem:[#allocation3 + $0xd30] sm:$0xff] }
 0x203   :  { %1905 = vmatpush.msrb.mxu3 %v550_v43  ;;  %1847 = vmatpush.msrb.mxu0 %v350_v44  ;;  %v538_v59 = vld [vmem:[#allocation3 + $0xf50] sm:$0xff] }
 0x204   :  { %1867 = vmatpush.msrb.mxu1 %v414_v45  ;;  %1887 = vmatpush.msrb.mxu2 %v478_v46  ;;  %v338_v60 = vld [vmem:[#allocation3 + $0x910] sm:$0xff] }
 0x205   :  { %1906 = vmatpush.msrb.mxu3 %v546_v47  ;;  %1848 = vmatpush.msrb.mxu0 %v346_v52  ;;  %v402_v61 = vld [vmem:[#allocation3 + $0xb10] sm:$0xff] }
 0x206   :  { %1868 = vmatpush.msrb.mxu1 %v410_v53  ;;  %1888 = vmatpush.msrb.mxu2 %v474_v54  ;;  %v466_v62 = vld [vmem:[#allocation3 + $0xd10] sm:$0xff] }
 0x207   :  { %1907 = vmatpush.msrb.mxu3 %v542_v55  ;;  %1849 = vmatpush.msrb.mxu0 %v342_v56  ;;  %v534_v63 = vld [vmem:[#allocation3 + $0xf30] sm:$0xff] }
 0x208   :  { %1869 = vmatpush.msrb.mxu1 %v406_v57  ;;  %1889 = vmatpush.msrb.mxu2 %v470_v58  ;;  %v334_v4 = vld [vmem:[#allocation3 + $0x8f0] sm:$0xff] }
 0x209   :  { %1908 = vmatpush.msrb.mxu3 %v538_v59  ;;  %v398_v5 = vld [vmem:[#allocation3 + $0xaf0] sm:$0xff]  ;;  %1850 = vmatpush.msrb.mxu0 %v338_v60 }
 0x20a   :  { %1870 = vmatpush.msrb.mxu1 %v402_v61  ;;  %v462_v6 = vld [vmem:[#allocation3 + $0xcf0] sm:$0xff]  ;;  %1890 = vmatpush.msrb.mxu2 %v466_v62 }
 0x20b   :  { %v530_v7 = vld [vmem:[#allocation3 + $0xf10] sm:$0xff]  ;;  %1909 = vmatpush.msrb.mxu3 %v534_v63  ;;  %1851 = vmatpush.msrb.mxu0 %v334_v4 }
 0x20c   :  { %v330_v8 = vld [vmem:[#allocation3 + $0x8d0] sm:$0xff]  ;;  %1871 = vmatpush.msrb.mxu1 %v398_v5  ;;  %1891 = vmatpush.msrb.mxu2 %v462_v6 }
 0x20d   :  { %v394_v9 = vld [vmem:[#allocation3 + $0xad0] sm:$0xff]  ;;  %1910 = vmatpush.msrb.mxu3 %v530_v7  ;;  %1852 = vmatpush.msrb.mxu0 %v330_v8 }
 0x20e   :  { %v458_v10 = vld [vmem:[#allocation3 + $0xcd0] sm:$0xff]  ;;  %1872 = vmatpush.msrb.mxu1 %v394_v9  ;;  %1779 = vmatmul.f32.vlgmr.msra.gmra.mxu0 %v2691_v48 }
 0x20f   :  { %v526_v11 = vld [vmem:[#allocation3 + $0xef0] sm:$0xff]  ;;  %1892 = vmatpush.msrb.mxu2 %v458_v10  ;;  %1799 = vmatmul.f32.vlgmr.msra.gmra.mxu1 %v2693_v49 }
 0x210   :  { %v326_v12 = vld [vmem:[#allocation3 + $0x8b0] sm:$0xff]  ;;  %1911 = vmatpush.msrb.mxu3 %v526_v11  ;;  %1819 = vmatmul.f32.vlgmr.msra.gmra.mxu2 %v2695_v50 }
 0x211   :  { %v390_v13 = vld [vmem:[#allocation3 + $0xab0] sm:$0xff]  ;;  %1853 = vmatpush.msrb.mxu0 %v326_v12  ;;  %1839 = vmatmul.f32.vlgmr.msra.gmra.mxu3 %v2697_v51 }
 0x212   :  { %v454_v14 = vld [vmem:[#allocation3 + $0xcb0] sm:$0xff]  ;;  %1873 = vmatpush.msrb.mxu1 %v390_v13 }
 0x213   :  { %v522_v15 = vld [vmem:[#allocation3 + $0xed0] sm:$0xff]  ;;  %1893 = vmatpush.msrb.mxu2 %v454_v14 }
 0x214   :  { %v322_v16 = vld [vmem:[#allocation3 + $0x890] sm:$0xff]  ;;  %1912 = vmatpush.msrb.mxu3 %v522_v15 }
 0x215   :  { %v386_v17 = vld [vmem:[#allocation3 + $0xa90] sm:$0xff]  ;;  %1854 = vmatpush.msrb.mxu0 %v322_v16 }
 0x216   :  { %v450_v18 = vld [vmem:[#allocation3 + $0xc90] sm:$0xff]  ;;  %1874 = vmatpush.msrb.mxu1 %v386_v17 }
 0x217   :  { %v518_v19 = vld [vmem:[#allocation3 + $0xeb0] sm:$0xff]  ;;  %1894 = vmatpush.msrb.mxu2 %v450_v18 }
 0x218   :  { %v318_v20 = vld [vmem:[#allocation3 + $0x870] sm:$0xff]  ;;  %1913 = vmatpush.msrb.mxu3 %v518_v19 }
 0x219   :  { %v382_v21 = vld [vmem:[#allocation3 + $0xa70] sm:$0xff]  ;;  %1855 = vmatpush.msrb.mxu0 %v318_v20 }
 0x21a   :  { %v446_v22 = vld [vmem:[#allocation3 + $0xc70] sm:$0xff]  ;;  %1875 = vmatpush.msrb.mxu1 %v382_v21 }
 0x21b   :  { %v514_v23 = vld [vmem:[#allocation3 + $0xe90] sm:$0xff]  ;;  %1895 = vmatpush.msrb.mxu2 %v446_v22 }
 0x21c   :  { %v314_v24 = vld [vmem:[#allocation3 + $0x850] sm:$0xff]  ;;  %1914 = vmatpush.msrb.mxu3 %v514_v23 }
 0x21d   :  { %v378_v25 = vld [vmem:[#allocation3 + $0xa50] sm:$0xff]  ;;  %1856 = vmatpush.msrb.mxu0 %v314_v24 }
 0x21e   :  { %v442_v26 = vld [vmem:[#allocation3 + $0xc50] sm:$0xff]  ;;  %1876 = vmatpush.msrb.mxu1 %v378_v25 }
 0x21f   :  { %v510_v27 = vld [vmem:[#allocation3 + $0xe70] sm:$0xff]  ;;  %1896 = vmatpush.msrb.mxu2 %v442_v26 }
 0x220   :  { %v310_v28 = vld [vmem:[#allocation3 + $0x830] sm:$0xff]  ;;  %1915 = vmatpush.msrb.mxu3 %v510_v27 }
 0x221   :  { %v374_v29 = vld [vmem:[#allocation3 + $0xa30] sm:$0xff]  ;;  %1857 = vmatpush.msrb.mxu0 %v310_v28 }
 0x222   :  { %v438_v30 = vld [vmem:[#allocation3 + $0xc30] sm:$0xff]  ;;  %1877 = vmatpush.msrb.mxu1 %v374_v29 }
 0x223   :  { %v506_v31 = vld [vmem:[#allocation3 + $0xe50] sm:$0xff]  ;;  %1897 = vmatpush.msrb.mxu2 %v438_v30 }
 0x224   :  { %v306_v32 = vld [vmem:[#allocation3 + $0x810] sm:$0xff]  ;;  %1916 = vmatpush.msrb.mxu3 %v506_v31 }
 0x225   :  { %v370_v33 = vld [vmem:[#allocation3 + $0xa10] sm:$0xff]  ;;  %1858 = vmatpush.msrb.mxu0 %v306_v32 }
 0x226   :  { %v434_v34 = vld [vmem:[#allocation3 + $0xc10] sm:$0xff]  ;;  %1878 = vmatpush.msrb.mxu1 %v370_v33  ;;  %1859 = vmatmul.f32.vlgmr.msrb.gmra.mxu0 %v2704_v1 }
 0x227   :  { %v502_v35 = vld [vmem:[#allocation3 + $0xe30] sm:$0xff]  ;;  %1898 = vmatpush.msrb.mxu2 %v434_v34  ;;  %1879 = vmatmul.f32.vlgmr.msrb.gmra.mxu1 %v2708_v3 }
 0x228   :  { %v622_v36 = vld [vmem:[#allocation3 + $0x11f0] sm:$0xff]  ;;  %1917 = vmatpush.msrb.mxu3 %v502_v35  ;;  %1899 = vmatmul.f32.vlgmr.msrb.gmra.mxu2 %v2702_v0 }
 0x229   :  { %v686_v37 = vld [vmem:[#allocation3 + $0x13f0] sm:$0xff]  ;;  %1923 = vmatpush.msra.mxu0 %v622_v36 }
 0x22a   :  { %v750_v38 = vld [vmem:[#allocation3 + $0x15f0] sm:$0xff]  ;;  %1943 = vmatpush.msra.mxu1 %v686_v37 }
 0x22b   :  { %v498_v39 = vld [vmem:[#allocation3 + $0xe10] sm:$0xff]  ;;  %1963 = vmatpush.msra.mxu2 %v750_v38 }
 0x22c   :  { %v618_v40 = vld [vmem:[#allocation3 + $0x11d0] sm:$0xff]  ;;  %1918 = vmatpush.msrb.mxu3 %v498_v39 }
 0x22d   :  { %v682_v41 = vld [vmem:[#allocation3 + $0x13d0] sm:$0xff]  ;;  %1924 = vmatpush.msra.mxu0 %v618_v40  ;;  %1919 = vmatmul.f32.vlgmr.msrb.gmra.mxu3 %v2706_v2 }
 0x22e   :  { %v746_v42 = vld [vmem:[#allocation3 + $0x15d0] sm:$0xff]  ;;  %1944 = vmatpush.msra.mxu1 %v682_v41 }
 0x22f   :  { %v814_v43 = vld [vmem:[#allocation3 + $0x17f0] sm:$0xff]  ;;  %1964 = vmatpush.msra.mxu2 %v746_v42 }
 0x230   :  { %v614_v44 = vld [vmem:[#allocation3 + $0x11b0] sm:$0xff]  ;;  %1983 = vmatpush.msra.mxu3 %v814_v43 }
 0x231   :  { %v678_v45 = vld [vmem:[#allocation3 + $0x13b0] sm:$0xff]  ;;  %1925 = vmatpush.msra.mxu0 %v614_v44 }
 0x232   :  { %v742_v46 = vld [vmem:[#allocation3 + $0x15b0] sm:$0xff]  ;;  %1945 = vmatpush.msra.mxu1 %v678_v45 }
 0x233   :  { %v810_v47 = vld [vmem:[#allocation3 + $0x17d0] sm:$0xff]  ;;  %1965 = vmatpush.msra.mxu2 %v742_v46 }
 0x234   :  { %v610_v52 = vld [vmem:[#allocation3 + $0x1190] sm:$0xff]  ;;  %1984 = vmatpush.msra.mxu3 %v810_v47 }
 0x235   :  { %v674_v53 = vld [vmem:[#allocation3 + $0x1390] sm:$0xff]  ;;  %1926 = vmatpush.msra.mxu0 %v610_v52 }
 0x236   :  { %v738_v54 = vld [vmem:[#allocation3 + $0x1590] sm:$0xff]  ;;  %1946 = vmatpush.msra.mxu1 %v674_v53  ;;  %v2592_v53 = vld.sshfl [vmem:[#allocation1 + $0x10] sm:$0xff pattern:$0x73625140] }
 0x237   :  { %v806_v55 = vld [vmem:[#allocation3 + $0x17b0] sm:$0xff]  ;;  %1966 = vmatpush.msra.mxu2 %v738_v54 }
 0x238   :  { %v606_v56 = vld [vmem:[#allocation3 + $0x1170] sm:$0xff]  ;;  %1985 = vmatpush.msra.mxu3 %v806_v55 }
 0x239   :  { %v670_v57 = vld [vmem:[#allocation3 + $0x1370] sm:$0xff]  ;;  %1927 = vmatpush.msra.mxu0 %v606_v56 }
 0x23a   :  { %v734_v58 = vld [vmem:[#allocation3 + $0x1570] sm:$0xff]  ;;  %1947 = vmatpush.msra.mxu1 %v670_v57 }
 0x23b   :  { %v802_v59 = vld [vmem:[#allocation3 + $0x1790] sm:$0xff]  ;;  %1967 = vmatpush.msra.mxu2 %v734_v58  ;;  %v2593_v58 = vld.sshfl [vmem:[#allocation1 + $0x8] sm:$0xff pattern:$0x73625140] }
 0x23c   :  { %v602_v60 = vld [vmem:[#allocation3 + $0x1150] sm:$0xff]  ;;  %1986 = vmatpush.msra.mxu3 %v802_v59 }
 0x23d   :  { %v666_v61 = vld [vmem:[#allocation3 + $0x1350] sm:$0xff]  ;;  %1928 = vmatpush.msra.mxu0 %v602_v60 }
 0x23e   :  { %v730_v62 = vld [vmem:[#allocation3 + $0x1550] sm:$0xff]  ;;  %1948 = vmatpush.msra.mxu1 %v666_v61 }
 0x23f   :  { %v798_v63 = vld [vmem:[#allocation3 + $0x1770] sm:$0xff]  ;;  %1968 = vmatpush.msra.mxu2 %v730_v62 }
 0x240   :  { %v598_v4 = vld [vmem:[#allocation3 + $0x1130] sm:$0xff]  ;;  %1987 = vmatpush.msra.mxu3 %v798_v63 }
 0x241   :  { %v662_v5 = vld [vmem:[#allocation3 + $0x1330] sm:$0xff]  ;;  %1929 = vmatpush.msra.mxu0 %v598_v4 }
 0x242   :  { %v726_v6 = vld [vmem:[#allocation3 + $0x1530] sm:$0xff]  ;;  %1949 = vmatpush.msra.mxu1 %v662_v5 }
 0x243   :  { %v794_v7 = vld [vmem:[#allocation3 + $0x1750] sm:$0xff]  ;;  %1969 = vmatpush.msra.mxu2 %v726_v6 }
 0x244   :  { %v594_v8 = vld [vmem:[#allocation3 + $0x1110] sm:$0xff]  ;;  %1988 = vmatpush.msra.mxu3 %v794_v7 }
 0x245   :  { %v658_v9 = vld [vmem:[#allocation3 + $0x1310] sm:$0xff]  ;;  %1930 = vmatpush.msra.mxu0 %v594_v8 }
 0x246   :  { %v722_v10 = vld [vmem:[#allocation3 + $0x1510] sm:$0xff]  ;;  %1950 = vmatpush.msra.mxu1 %v658_v9 }
 0x247   :  { %v790_v11 = vld [vmem:[#allocation3 + $0x1730] sm:$0xff]  ;;  %1970 = vmatpush.msra.mxu2 %v722_v10 }
 0x248   :  { %v590_v12 = vld [vmem:[#allocation3 + $0x10f0] sm:$0xff]  ;;  %1989 = vmatpush.msra.mxu3 %v790_v11 }
 0x249   :  { %v654_v13 = vld [vmem:[#allocation3 + $0x12f0] sm:$0xff]  ;;  %1931 = vmatpush.msra.mxu0 %v590_v12 }
 0x24a   :  { %v718_v14 = vld [vmem:[#allocation3 + $0x14f0] sm:$0xff]  ;;  %1951 = vmatpush.msra.mxu1 %v654_v13 }
 0x24b   :  { %v786_v15 = vld [vmem:[#allocation3 + $0x1710] sm:$0xff]  ;;  %1971 = vmatpush.msra.mxu2 %v718_v14 }
 0x24c   :  { %v586_v16 = vld [vmem:[#allocation3 + $0x10d0] sm:$0xff]  ;;  %1990 = vmatpush.msra.mxu3 %v786_v15 }
 0x24d   :  { %v650_v17 = vld [vmem:[#allocation3 + $0x12d0] sm:$0xff]  ;;  %1932 = vmatpush.msra.mxu0 %v586_v16 }
 0x24e   :  { %v714_v18 = vld [vmem:[#allocation3 + $0x14d0] sm:$0xff]  ;;  %1952 = vmatpush.msra.mxu1 %v650_v17 }
 0x24f   :  { %v782_v19 = vld [vmem:[#allocation3 + $0x16f0] sm:$0xff]  ;;  %1972 = vmatpush.msra.mxu2 %v714_v18 }
 0x250   :  { %v582_v20 = vld [vmem:[#allocation3 + $0x10b0] sm:$0xff]  ;;  %1991 = vmatpush.msra.mxu3 %v782_v19 }
 0x251   :  { %v646_v21 = vld [vmem:[#allocation3 + $0x12b0] sm:$0xff]  ;;  %1933 = vmatpush.msra.mxu0 %v582_v20 }
 0x252   :  { %v710_v22 = vld [vmem:[#allocation3 + $0x14b0] sm:$0xff]  ;;  %1953 = vmatpush.msra.mxu1 %v646_v21 }
 0x253   :  { %v778_v23 = vld [vmem:[#allocation3 + $0x16d0] sm:$0xff]  ;;  %1973 = vmatpush.msra.mxu2 %v710_v22 }
 0x254   :  { %v578_v24 = vld [vmem:[#allocation3 + $0x1090] sm:$0xff]  ;;  %1992 = vmatpush.msra.mxu3 %v778_v23 }
 0x255   :  { %v642_v25 = vld [vmem:[#allocation3 + $0x1290] sm:$0xff]  ;;  %1934 = vmatpush.msra.mxu0 %v578_v24 }
 0x256   :  { %v706_v26 = vld [vmem:[#allocation3 + $0x1490] sm:$0xff]  ;;  %1954 = vmatpush.msra.mxu1 %v642_v25 }
 0x257   :  { %v774_v27 = vld [vmem:[#allocation3 + $0x16b0] sm:$0xff]  ;;  %1974 = vmatpush.msra.mxu2 %v706_v26 }
 0x258   :  { %v574_v28 = vld [vmem:[#allocation3 + $0x1070] sm:$0xff]  ;;  %1993 = vmatpush.msra.mxu3 %v774_v27 }
 0x259   :  { %v638_v29 = vld [vmem:[#allocation3 + $0x1270] sm:$0xff]  ;;  %1935 = vmatpush.msra.mxu0 %v574_v28 }
 0x25a   :  { %v702_v30 = vld [vmem:[#allocation3 + $0x1470] sm:$0xff]  ;;  %1955 = vmatpush.msra.mxu1 %v638_v29 }
 0x25b   :  { %v770_v31 = vld [vmem:[#allocation3 + $0x1690] sm:$0xff]  ;;  %1975 = vmatpush.msra.mxu2 %v702_v30 }
 0x25c   :  { %v570_v32 = vld [vmem:[#allocation3 + $0x1050] sm:$0xff]  ;;  %1994 = vmatpush.msra.mxu3 %v770_v31 }
 0x25d   :  { %v634_v33 = vld [vmem:[#allocation3 + $0x1250] sm:$0xff]  ;;  %1936 = vmatpush.msra.mxu0 %v570_v32 }
 0x25e   :  { %v698_v34 = vld [vmem:[#allocation3 + $0x1450] sm:$0xff]  ;;  %1956 = vmatpush.msra.mxu1 %v634_v33 }
 0x25f   :  { %v766_v35 = vld [vmem:[#allocation3 + $0x1670] sm:$0xff]  ;;  %1976 = vmatpush.msra.mxu2 %v698_v34 }
 0x260   :  { %v566_v36 = vld [vmem:[#allocation3 + $0x1030] sm:$0xff]  ;;  %1995 = vmatpush.msra.mxu3 %v766_v35 }
 0x261   :  { %v630_v37 = vld [vmem:[#allocation3 + $0x1230] sm:$0xff]  ;;  %1937 = vmatpush.msra.mxu0 %v566_v36 }
 0x262   :  { %v694_v38 = vld [vmem:[#allocation3 + $0x1430] sm:$0xff]  ;;  %1957 = vmatpush.msra.mxu1 %v630_v37 }
 0x263   :  { %v762_v39 = vld [vmem:[#allocation3 + $0x1650] sm:$0xff]  ;;  %1977 = vmatpush.msra.mxu2 %v694_v38 }
 0x264   :  { %v562_v40 = vld [vmem:[#allocation3 + $0x1010] sm:$0xff]  ;;  %1996 = vmatpush.msra.mxu3 %v762_v39 }
 0x265   :  { %v626_v41 = vld [vmem:[#allocation3 + $0x1210] sm:$0xff]  ;;  %1938 = vmatpush.msra.mxu0 %v562_v40 }
 0x266   :  { %v690_v42 = vld [vmem:[#allocation3 + $0x1410] sm:$0xff]  ;;  %1958 = vmatpush.msra.mxu1 %v626_v41 }
 0x267   :  { %v758_v43 = vld [vmem:[#allocation3 + $0x1630] sm:$0xff]  ;;  %1978 = vmatpush.msra.mxu2 %v690_v42  ;;  %1959 = vmatmul.f32.vlgmr.msra.gmra.mxu1 %v2593_v58 }
 0x268   :  { %v878_v44 = vld [vmem:[#allocation3 + $0x19f0] sm:$0xff]  ;;  %1997 = vmatpush.msra.mxu3 %v758_v43  ;;  %1979 = vmatmul.f32.vlgmr.msra.gmra.mxu2 %v2592_v53 }
 0x269   :  { %v942_v45 = vld [vmem:[#allocation3 + $0x1bf0] sm:$0xff]  ;;  %2003 = vmatpush.msrb.mxu0 %v878_v44 }
 0x26a   :  { %v1006_v46 = vld [vmem:[#allocation3 + $0x1df0] sm:$0xff]  ;;  %2023 = vmatpush.msrb.mxu1 %v942_v45 }
 0x26b   :  { %v754_v47 = vld [vmem:[#allocation3 + $0x1610] sm:$0xff]  ;;  %2043 = vmatpush.msrb.mxu2 %v1006_v46 }
 0x26c   :  { %v2591_v52 = vld.sshfl [vmem:[#allocation1] sm:$0xff pattern:$0x73625140]  ;;  %1998 = vmatpush.msra.mxu3 %v754_v47  ;;  %v2594_v59 = vld.sshfl [vmem:[#allocation1 + $0x18] sm:$0xff pattern:$0x73625140] }
 0x26d   :  { %1939 = vmatmul.f32.vlgmr.msra.gmra.mxu0 %v2591_v52  ;;  %v874_v54 = vld [vmem:[#allocation3 + $0x19d0] sm:$0xff]  ;;  %1999 = vmatmul.f32.vlgmr.msra.gmra.mxu3 %v2594_v59 }
 0x26e   :  { %v938_v55 = vld [vmem:[#allocation3 + $0x1bd0] sm:$0xff]  ;;  %2004 = vmatpush.msrb.mxu0 %v874_v54 }
 0x26f   :  { %v1002_v56 = vld [vmem:[#allocation3 + $0x1dd0] sm:$0xff]  ;;  %2024 = vmatpush.msrb.mxu1 %v938_v55 }
 0x270   :  { %v1070_v57 = vld [vmem:[#allocation3 + $0x1ff0] sm:$0xff]  ;;  %2044 = vmatpush.msrb.mxu2 %v1002_v56 }
 0x271   :  { %v870_v60 = vld [vmem:[#allocation3 + $0x19b0] sm:$0xff]  ;;  %2063 = vmatpush.msrb.mxu3 %v1070_v57 }
 0x272   :  { %v934_v61 = vld [vmem:[#allocation3 + $0x1bb0] sm:$0xff]  ;;  %2005 = vmatpush.msrb.mxu0 %v870_v60  ;;  %v111_v60 = vld [vmem:[#allocation3 + $0x1f8] sm:$0xff] }
 0x273   :  { %v998_v62 = vld [vmem:[#allocation3 + $0x1db0] sm:$0xff]  ;;  %2025 = vmatpush.msrb.mxu1 %v934_v61  ;;  %v175_v61 = vld [vmem:[#allocation3 + $0x3f8] sm:$0xff] }
 0x274   :  { %v1066_v63 = vld [vmem:[#allocation3 + $0x1fd0] sm:$0xff]  ;;  %2045 = vmatpush.msrb.mxu2 %v998_v62  ;;  %v239_v62 = vld [vmem:[#allocation3 + $0x5f8] sm:$0xff] }
 0x275   :  { %v866_v4 = vld [vmem:[#allocation3 + $0x1990] sm:$0xff]  ;;  %2064 = vmatpush.msrb.mxu3 %v1066_v63 }
 0x276   :  { %v930_v5 = vld [vmem:[#allocation3 + $0x1b90] sm:$0xff]  ;;  %2006 = vmatpush.msrb.mxu0 %v866_v4 }
 0x277   :  { %v994_v6 = vld [vmem:[#allocation3 + $0x1d90] sm:$0xff]  ;;  %2026 = vmatpush.msrb.mxu1 %v930_v5  ;;  %v2596_v5 = vld.sshfl [vmem:[#allocation1 + $0x30] sm:$0xff pattern:$0x73625140] }
 0x278   :  { %v1062_v7 = vld [vmem:[#allocation3 + $0x1fb0] sm:$0xff]  ;;  %2046 = vmatpush.msrb.mxu2 %v994_v6  ;;  %v107_v6 = vld [vmem:[#allocation3 + $0x1d8] sm:$0xff] }
 0x279   :  { %v862_v8 = vld [vmem:[#allocation3 + $0x1970] sm:$0xff]  ;;  %2065 = vmatpush.msrb.mxu3 %v1062_v7  ;;  %v171_v7 = vld [vmem:[#allocation3 + $0x3d8] sm:$0xff] }
 0x27a   :  { %v926_v9 = vld [vmem:[#allocation3 + $0x1b70] sm:$0xff]  ;;  %2007 = vmatpush.msrb.mxu0 %v862_v8  ;;  %v235_v8 = vld [vmem:[#allocation3 + $0x5d8] sm:$0xff] }
 0x27b   :  { %v990_v10 = vld [vmem:[#allocation3 + $0x1d70] sm:$0xff]  ;;  %2027 = vmatpush.msrb.mxu1 %v926_v9  ;;  %v303_v9 = vld [vmem:[#allocation3 + $0x7f8] sm:$0xff] }
 0x27c   :  { %v1058_v11 = vld [vmem:[#allocation3 + $0x1f90] sm:$0xff]  ;;  %2047 = vmatpush.msrb.mxu2 %v990_v10  ;;  %v2597_v10 = vld.sshfl [vmem:[#allocation1 + $0x28] sm:$0xff pattern:$0x73625140] }
 0x27d   :  { %v858_v12 = vld [vmem:[#allocation3 + $0x1950] sm:$0xff]  ;;  %2066 = vmatpush.msrb.mxu3 %v1058_v11 }
 0x27e   :  { %v922_v13 = vld [vmem:[#allocation3 + $0x1b50] sm:$0xff]  ;;  %2008 = vmatpush.msrb.mxu0 %v858_v12  ;;  %v103_v12 = vld [vmem:[#allocation3 + $0x1b8] sm:$0xff] }
 0x27f   :  { %v986_v14 = vld [vmem:[#allocation3 + $0x1d50] sm:$0xff]  ;;  %2028 = vmatpush.msrb.mxu1 %v922_v13  ;;  %v167_v13 = vld [vmem:[#allocation3 + $0x3b8] sm:$0xff] }
 0x280   :  { %v1054_v15 = vld [vmem:[#allocation3 + $0x1f70] sm:$0xff]  ;;  %2048 = vmatpush.msrb.mxu2 %v986_v14  ;;  %v231_v14 = vld [vmem:[#allocation3 + $0x5b8] sm:$0xff] }
 0x281   :  { %v854_v16 = vld [vmem:[#allocation3 + $0x1930] sm:$0xff]  ;;  %2067 = vmatpush.msrb.mxu3 %v1054_v15  ;;  %v299_v15 = vld [vmem:[#allocation3 + $0x7d8] sm:$0xff] }
 0x282   :  { %v918_v17 = vld [vmem:[#allocation3 + $0x1b30] sm:$0xff]  ;;  %2009 = vmatpush.msrb.mxu0 %v854_v16  ;;  %v99_v16 = vld [vmem:[#allocation3 + $0x198] sm:$0xff] }
 0x283   :  { %v982_v18 = vld [vmem:[#allocation3 + $0x1d30] sm:$0xff]  ;;  %2029 = vmatpush.msrb.mxu1 %v918_v17  ;;  %v163_v17 = vld [vmem:[#allocation3 + $0x398] sm:$0xff] }
 0x284   :  { %v1050_v19 = vld [vmem:[#allocation3 + $0x1f50] sm:$0xff]  ;;  %2049 = vmatpush.msrb.mxu2 %v982_v18  ;;  %v227_v18 = vld [vmem:[#allocation3 + $0x598] sm:$0xff] }
 0x285   :  { %v850_v20 = vld [vmem:[#allocation3 + $0x1910] sm:$0xff]  ;;  %2068 = vmatpush.msrb.mxu3 %v1050_v19  ;;  %v295_v19 = vld [vmem:[#allocation3 + $0x7b8] sm:$0xff] }
 0x286   :  { %v914_v21 = vld [vmem:[#allocation3 + $0x1b10] sm:$0xff]  ;;  %2010 = vmatpush.msrb.mxu0 %v850_v20  ;;  %v95_v20 = vld [vmem:[#allocation3 + $0x178] sm:$0xff] }
 0x287   :  { %v978_v22 = vld [vmem:[#allocation3 + $0x1d10] sm:$0xff]  ;;  %2030 = vmatpush.msrb.mxu1 %v914_v21  ;;  %v159_v21 = vld [vmem:[#allocation3 + $0x378] sm:$0xff] }
 0x288   :  { %v1046_v23 = vld [vmem:[#allocation3 + $0x1f30] sm:$0xff]  ;;  %2050 = vmatpush.msrb.mxu2 %v978_v22  ;;  %v223_v22 = vld [vmem:[#allocation3 + $0x578] sm:$0xff] }
 0x289   :  { %v846_v24 = vld [vmem:[#allocation3 + $0x18f0] sm:$0xff]  ;;  %2069 = vmatpush.msrb.mxu3 %v1046_v23  ;;  %v291_v23 = vld [vmem:[#allocation3 + $0x798] sm:$0xff] }
 0x28a   :  { %v910_v25 = vld [vmem:[#allocation3 + $0x1af0] sm:$0xff]  ;;  %2011 = vmatpush.msrb.mxu0 %v846_v24  ;;  %v91_v24 = vld [vmem:[#allocation3 + $0x158] sm:$0xff] }
 0x28b   :  { %v974_v26 = vld [vmem:[#allocation3 + $0x1cf0] sm:$0xff]  ;;  %2031 = vmatpush.msrb.mxu1 %v910_v25  ;;  %v155_v25 = vld [vmem:[#allocation3 + $0x358] sm:$0xff] }
 0x28c   :  { %v1042_v27 = vld [vmem:[#allocation3 + $0x1f10] sm:$0xff]  ;;  %2051 = vmatpush.msrb.mxu2 %v974_v26  ;;  %v219_v26 = vld [vmem:[#allocation3 + $0x558] sm:$0xff] }
 0x28d   :  { %v842_v28 = vld [vmem:[#allocation3 + $0x18d0] sm:$0xff]  ;;  %2070 = vmatpush.msrb.mxu3 %v1042_v27  ;;  %v287_v27 = vld [vmem:[#allocation3 + $0x778] sm:$0xff] }
 0x28e   :  { %v906_v29 = vld [vmem:[#allocation3 + $0x1ad0] sm:$0xff]  ;;  %2012 = vmatpush.msrb.mxu0 %v842_v28  ;;  %v87_v28 = vld [vmem:[#allocation3 + $0x138] sm:$0xff] }
 0x28f   :  { %v970_v30 = vld [vmem:[#allocation3 + $0x1cd0] sm:$0xff]  ;;  %2032 = vmatpush.msrb.mxu1 %v906_v29  ;;  %v151_v29 = vld [vmem:[#allocation3 + $0x338] sm:$0xff] }
 0x290   :  { %v1038_v31 = vld [vmem:[#allocation3 + $0x1ef0] sm:$0xff]  ;;  %2052 = vmatpush.msrb.mxu2 %v970_v30  ;;  %v215_v30 = vld [vmem:[#allocation3 + $0x538] sm:$0xff] }
 0x291   :  { %v838_v32 = vld [vmem:[#allocation3 + $0x18b0] sm:$0xff]  ;;  %2071 = vmatpush.msrb.mxu3 %v1038_v31  ;;  %v283_v31 = vld [vmem:[#allocation3 + $0x758] sm:$0xff] }
 0x292   :  { %v902_v33 = vld [vmem:[#allocation3 + $0x1ab0] sm:$0xff]  ;;  %2013 = vmatpush.msrb.mxu0 %v838_v32  ;;  %v83_v32 = vld [vmem:[#allocation3 + $0x118] sm:$0xff] }
 0x293   :  { %v966_v34 = vld [vmem:[#allocation3 + $0x1cb0] sm:$0xff]  ;;  %2033 = vmatpush.msrb.mxu1 %v902_v33  ;;  %v147_v33 = vld [vmem:[#allocation3 + $0x318] sm:$0xff] }
 0x294   :  { %v1034_v35 = vld [vmem:[#allocation3 + $0x1ed0] sm:$0xff]  ;;  %2053 = vmatpush.msrb.mxu2 %v966_v34  ;;  %v211_v34 = vld [vmem:[#allocation3 + $0x518] sm:$0xff] }
 0x295   :  { %v834_v36 = vld [vmem:[#allocation3 + $0x1890] sm:$0xff]  ;;  %2072 = vmatpush.msrb.mxu3 %v1034_v35  ;;  %v279_v35 = vld [vmem:[#allocation3 + $0x738] sm:$0xff] }
 0x296   :  { %v898_v37 = vld [vmem:[#allocation3 + $0x1a90] sm:$0xff]  ;;  %2014 = vmatpush.msrb.mxu0 %v834_v36  ;;  %v79_v36 = vld [vmem:[#allocation3 + $0xf8] sm:$0xff] }
 0x297   :  { %v962_v38 = vld [vmem:[#allocation3 + $0x1c90] sm:$0xff]  ;;  %2034 = vmatpush.msrb.mxu1 %v898_v37  ;;  %v143_v37 = vld [vmem:[#allocation3 + $0x2f8] sm:$0xff] }
 0x298   :  { %v1030_v39 = vld [vmem:[#allocation3 + $0x1eb0] sm:$0xff]  ;;  %2054 = vmatpush.msrb.mxu2 %v962_v38  ;;  %v207_v38 = vld [vmem:[#allocation3 + $0x4f8] sm:$0xff] }
 0x299   :  { %v830_v40 = vld [vmem:[#allocation3 + $0x1870] sm:$0xff]  ;;  %2073 = vmatpush.msrb.mxu3 %v1030_v39  ;;  %v275_v39 = vld [vmem:[#allocation3 + $0x718] sm:$0xff] }
 0x29a   :  { %v894_v41 = vld [vmem:[#allocation3 + $0x1a70] sm:$0xff]  ;;  %2015 = vmatpush.msrb.mxu0 %v830_v40  ;;  %v75_v40 = vld [vmem:[#allocation3 + $0xd8] sm:$0xff] }
 0x29b   :  { %v958_v42 = vld [vmem:[#allocation3 + $0x1c70] sm:$0xff]  ;;  %2035 = vmatpush.msrb.mxu1 %v894_v41  ;;  %v139_v41 = vld [vmem:[#allocation3 + $0x2d8] sm:$0xff] }
 0x29c   :  { %v1026_v43 = vld [vmem:[#allocation3 + $0x1e90] sm:$0xff]  ;;  %2055 = vmatpush.msrb.mxu2 %v958_v42  ;;  %v203_v42 = vld [vmem:[#allocation3 + $0x4d8] sm:$0xff] }
 0x29d   :  { %v826_v44 = vld [vmem:[#allocation3 + $0x1850] sm:$0xff]  ;;  %2074 = vmatpush.msrb.mxu3 %v1026_v43  ;;  %v271_v43 = vld [vmem:[#allocation3 + $0x6f8] sm:$0xff] }
 0x29e   :  { %v890_v45 = vld [vmem:[#allocation3 + $0x1a50] sm:$0xff]  ;;  %2016 = vmatpush.msrb.mxu0 %v826_v44  ;;  %v71_v44 = vld [vmem:[#allocation3 + $0xb8] sm:$0xff] }
 0x29f   :  { %v954_v46 = vld [vmem:[#allocation3 + $0x1c50] sm:$0xff]  ;;  %2036 = vmatpush.msrb.mxu1 %v890_v45  ;;  %v135_v45 = vld [vmem:[#allocation3 + $0x2b8] sm:$0xff] }
 0x2a0   :  { %v1022_v47 = vld [vmem:[#allocation3 + $0x1e70] sm:$0xff]  ;;  %2056 = vmatpush.msrb.mxu2 %v954_v46  ;;  %v199_v46 = vld [vmem:[#allocation3 + $0x4b8] sm:$0xff] }
 0x2a1   :  { %v822_v52 = vld [vmem:[#allocation3 + $0x1830] sm:$0xff]  ;;  %2075 = vmatpush.msrb.mxu3 %v1022_v47  ;;  %v267_v47 = vld [vmem:[#allocation3 + $0x6d8] sm:$0xff] }
 0x2a2   :  { %v886_v53 = vld [vmem:[#allocation3 + $0x1a30] sm:$0xff]  ;;  %2017 = vmatpush.msrb.mxu0 %v822_v52  ;;  %v67_v52 = vld [vmem:[#allocation3 + $0x98] sm:$0xff] }
 0x2a3   :  { %v950_v54 = vld [vmem:[#allocation3 + $0x1c30] sm:$0xff]  ;;  %2037 = vmatpush.msrb.mxu1 %v886_v53  ;;  %v131_v53 = vld [vmem:[#allocation3 + $0x298] sm:$0xff] }
 0x2a4   :  { %v1018_v55 = vld [vmem:[#allocation3 + $0x1e50] sm:$0xff]  ;;  %2057 = vmatpush.msrb.mxu2 %v950_v54  ;;  %v195_v54 = vld [vmem:[#allocation3 + $0x498] sm:$0xff] }
 0x2a5   :  { %v818_v56 = vld [vmem:[#allocation3 + $0x1810] sm:$0xff]  ;;  %2076 = vmatpush.msrb.mxu3 %v1018_v55  ;;  %v263_v55 = vld [vmem:[#allocation3 + $0x6b8] sm:$0xff] }
 0x2a6   :  { %v882_v57 = vld [vmem:[#allocation3 + $0x1a10] sm:$0xff]  ;;  %2018 = vmatpush.msrb.mxu0 %v818_v56  ;;  %v63_v56 = vld [vmem:[#allocation3 + $0x78] sm:$0xff] }
 0x2a7   :  { %v946_v58 = vld [vmem:[#allocation3 + $0x1c10] sm:$0xff]  ;;  %2038 = vmatpush.msrb.mxu1 %v882_v57  ;;  %v127_v57 = vld [vmem:[#allocation3 + $0x278] sm:$0xff] }
 0x2a8   :  { %v1014_v59 = vld [vmem:[#allocation3 + $0x1e30] sm:$0xff]  ;;  %2058 = vmatpush.msrb.mxu2 %v946_v58  ;;  %2083 = vmatpush.msra.mxu0 %v111_v60  ;;  %v191_v58 = vld [vmem:[#allocation3 + $0x478] sm:$0xff] }
 0x2a9   :  { %2077 = vmatpush.msrb.mxu3 %v1014_v59  ;;  %v1010_v63 = vld [vmem:[#allocation3 + $0x1e10] sm:$0xff]  ;;  %2059 = vmatmul.f32.vlgmr.msrb.gmra.mxu2 %v2596_v5  ;;  %v259_v59 = vld [vmem:[#allocation3 + $0x698] sm:$0xff] }
 0x2aa   :  { %v2595_v4 = vld.sshfl [vmem:[#allocation1 + $0x20] sm:$0xff pattern:$0x73625140]  ;;  %2103 = vmatpush.msra.mxu1 %v175_v61  ;;  %2123 = vmatpush.msra.mxu2 %v239_v62  ;;  %v2598_v11 = vld.sshfl [vmem:[#allocation1 + $0x38] sm:$0xff pattern:$0x73625140] }
 0x2ab   :  { %2019 = vmatmul.f32.vlgmr.msrb.gmra.mxu0 %v2595_v4  ;;  %2078 = vmatpush.msrb.mxu3 %v1010_v63  ;;  %v59_v60 = vld [vmem:[#allocation3 + $0x58] sm:$0xff] }
 0x2ac   :  { %2039 = vmatmul.f32.vlgmr.msrb.gmra.mxu1 %v2597_v10  ;;  %2079 = vmatmul.f32.vlgmr.msrb.gmra.mxu3 %v2598_v11  ;;  %v123_v61 = vld [vmem:[#allocation3 + $0x258] sm:$0xff] }
 0x2ad   :  { %2084 = vmatpush.msra.mxu0 %v107_v6  ;;  %2104 = vmatpush.msra.mxu1 %v171_v7  ;;  %v187_v62 = vld [vmem:[#allocation3 + $0x458] sm:$0xff] }
 0x2ae   :  { %2124 = vmatpush.msra.mxu2 %v235_v8  ;;  %2143 = vmatpush.msra.mxu3 %v303_v9  ;;  %v255_v63 = vld [vmem:[#allocation3 + $0x678] sm:$0xff] }
 0x2af   :  { %2085 = vmatpush.msra.mxu0 %v103_v12  ;;  %2105 = vmatpush.msra.mxu1 %v167_v13  ;;  %v55_v4 = vld [vmem:[#allocation3 + $0x38] sm:$0xff] }
 0x2b0   :  { %2125 = vmatpush.msra.mxu2 %v231_v14  ;;  %2144 = vmatpush.msra.mxu3 %v299_v15  ;;  %v119_v5 = vld [vmem:[#allocation3 + $0x238] sm:$0xff] }
 0x2b1   :  { %2086 = vmatpush.msra.mxu0 %v99_v16  ;;  %2106 = vmatpush.msra.mxu1 %v163_v17  ;;  %v183_v6 = vld [vmem:[#allocation3 + $0x438] sm:$0xff] }
 0x2b2   :  { %2126 = vmatpush.msra.mxu2 %v227_v18  ;;  %2145 = vmatpush.msra.mxu3 %v295_v19  ;;  %v251_v7 = vld [vmem:[#allocation3 + $0x658] sm:$0xff] }
 0x2b3   :  { %2087 = vmatpush.msra.mxu0 %v95_v20  ;;  %2107 = vmatpush.msra.mxu1 %v159_v21  ;;  %v51_v8 = vld [vmem:[#allocation3 + $0x18] sm:$0xff] }
 0x2b4   :  { %2127 = vmatpush.msra.mxu2 %v223_v22  ;;  %2146 = vmatpush.msra.mxu3 %v291_v23  ;;  %v115_v9 = vld [vmem:[#allocation3 + $0x218] sm:$0xff] }
 0x2b5   :  { %2088 = vmatpush.msra.mxu0 %v91_v24  ;;  %2108 = vmatpush.msra.mxu1 %v155_v25  ;;  %v179_v10 = vld [vmem:[#allocation3 + $0x418] sm:$0xff] }
 0x2b6   :  { %2128 = vmatpush.msra.mxu2 %v219_v26  ;;  %2147 = vmatpush.msra.mxu3 %v287_v27  ;;  %v247_v11 = vld [vmem:[#allocation3 + $0x638] sm:$0xff] }
 0x2b7   :  { %2089 = vmatpush.msra.mxu0 %v87_v28  ;;  %2109 = vmatpush.msra.mxu1 %v151_v29  ;;  %v367_v12 = vld [vmem:[#allocation3 + $0x9f8] sm:$0xff] }
 0x2b8   :  { %2129 = vmatpush.msra.mxu2 %v215_v30  ;;  %2148 = vmatpush.msra.mxu3 %v283_v31  ;;  %v431_v13 = vld [vmem:[#allocation3 + $0xbf8] sm:$0xff] }
 0x2b9   :  { %2090 = vmatpush.msra.mxu0 %v83_v32  ;;  %2110 = vmatpush.msra.mxu1 %v147_v33  ;;  %v495_v14 = vld [vmem:[#allocation3 + $0xdf8] sm:$0xff]  ;;  %v2734_v32 = vpop.f32.mrf.mxu0 }
 0x2ba   :  { %2130 = vmatpush.msra.mxu2 %v211_v34  ;;  %2149 = vmatpush.msra.mxu3 %v279_v35  ;;  %v243_v15 = vld [vmem:[#allocation3 + $0x618] sm:$0xff] }
 0x2bb   :  { %2091 = vmatpush.msra.mxu0 %v79_v36  ;;  %2111 = vmatpush.msra.mxu1 %v143_v37  ;;  %v363_v16 = vld [vmem:[#allocation3 + $0x9d8] sm:$0xff] }
 0x2bc   :  { %2131 = vmatpush.msra.mxu2 %v207_v38  ;;  %2150 = vmatpush.msra.mxu3 %v275_v39  ;;  %v427_v17 = vld [vmem:[#allocation3 + $0xbd8] sm:$0xff] }
 0x2bd   :  { %2092 = vmatpush.msra.mxu0 %v75_v40  ;;  %2112 = vmatpush.msra.mxu1 %v139_v41  ;;  %v491_v18 = vld [vmem:[#allocation3 + $0xdd8] sm:$0xff]  ;;  %v2736_v41 = vpop.f32.mrf.mxu1 }
 0x2be   :  { %2132 = vmatpush.msra.mxu2 %v203_v42  ;;  %2151 = vmatpush.msra.mxu3 %v271_v43  ;;  %v559_v19 = vld [vmem:[#allocation3 + $0xff8] sm:$0xff] }
 0x2bf   :  { %2093 = vmatpush.msra.mxu0 %v71_v44  ;;  %2113 = vmatpush.msra.mxu1 %v135_v45  ;;  %v359_v20 = vld [vmem:[#allocation3 + $0x9b8] sm:$0xff] }
 0x2c0   :  { %2133 = vmatpush.msra.mxu2 %v199_v46  ;;  %2152 = vmatpush.msra.mxu3 %v267_v47  ;;  %v423_v21 = vld [vmem:[#allocation3 + $0xbb8] sm:$0xff] }
 0x2c1   :  { %2094 = vmatpush.msra.mxu0 %v67_v52  ;;  %2114 = vmatpush.msra.mxu1 %v131_v53  ;;  %v487_v22 = vld [vmem:[#allocation3 + $0xdb8] sm:$0xff] }
 0x2c2   :  { %2134 = vmatpush.msra.mxu2 %v195_v54  ;;  %2153 = vmatpush.msra.mxu3 %v263_v55  ;;  %v555_v23 = vld [vmem:[#allocation3 + $0xfd8] sm:$0xff]  ;;  %v2738_v54 = vpop.f32.mrf.mxu2 }
 0x2c3   :  { %2095 = vmatpush.msra.mxu0 %v63_v56  ;;  %2115 = vmatpush.msra.mxu1 %v127_v57  ;;  %v355_v24 = vld [vmem:[#allocation3 + $0x998] sm:$0xff] }
 0x2c4   :  { %2135 = vmatpush.msra.mxu2 %v191_v58  ;;  %2154 = vmatpush.msra.mxu3 %v259_v59  ;;  %v419_v25 = vld [vmem:[#allocation3 + $0xb98] sm:$0xff]  ;;  %v2740_v59 = vpop.f32.mrf.mxu0 }
 0x2c5   :  { %2096 = vmatpush.msra.mxu0 %v59_v60  ;;  %2116 = vmatpush.msra.mxu1 %v123_v61  ;;  %v483_v26 = vld [vmem:[#allocation3 + $0xd98] sm:$0xff] }
 0x2c6   :  { %2136 = vmatpush.msra.mxu2 %v187_v62  ;;  %2155 = vmatpush.msra.mxu3 %v255_v63  ;;  %v551_v27 = vld [vmem:[#allocation3 + $0xfb8] sm:$0xff] }
 0x2c7   :  { %2097 = vmatpush.msra.mxu0 %v55_v4  ;;  %2117 = vmatpush.msra.mxu1 %v119_v5  ;;  %v351_v28 = vld [vmem:[#allocation3 + $0x978] sm:$0xff]  ;;  %v2742_v4 = vpop.f32.mrf.mxu3 }
 0x2c8   :  { %2137 = vmatpush.msra.mxu2 %v183_v6  ;;  %2156 = vmatpush.msra.mxu3 %v251_v7  ;;  %v415_v29 = vld [vmem:[#allocation3 + $0xb78] sm:$0xff] }
 0x2c9   :  { %2098 = vmatpush.msra.mxu0 %v51_v8  ;;  %2118 = vmatpush.msra.mxu1 %v115_v9  ;;  %v479_v30 = vld [vmem:[#allocation3 + $0xd78] sm:$0xff]  ;;  %v2744_v9 = vpop.f32.mrf.mxu1 }
 0x2ca   :  { %2138 = vmatpush.msra.mxu2 %v179_v10  ;;  %2157 = vmatpush.msra.mxu3 %v247_v11  ;;  %v547_v31 = vld [vmem:[#allocation3 + $0xf98] sm:$0xff] }
 0x2cb   :  { %2163 = vmatpush.msrb.mxu0 %v367_v12  ;;  %2183 = vmatpush.msrb.mxu1 %v431_v13  ;;  %v347_v33 = vld [vmem:[#allocation3 + $0x958] sm:$0xff] }
 0x2cc   :  { %2203 = vmatpush.msrb.mxu2 %v495_v14  ;;  %2158 = vmatpush.msra.mxu3 %v243_v15  ;;  %v411_v34 = vld [vmem:[#allocation3 + $0xb58] sm:$0xff] }
 0x2cd   :  { %2164 = vmatpush.msrb.mxu0 %v363_v16  ;;  %2184 = vmatpush.msrb.mxu1 %v427_v17  ;;  %v475_v35 = vld [vmem:[#allocation3 + $0xd58] sm:$0xff] }
 0x2ce   :  { %2204 = vmatpush.msrb.mxu2 %v491_v18  ;;  %2223 = vmatpush.msrb.mxu3 %v559_v19  ;;  %v543_v36 = vld [vmem:[#allocation3 + $0xf78] sm:$0xff]  ;;  %v2746_v18 = vpop.f32.mrf.mxu2  ;;  %v2748_v19 = vpop.f32.mrf.mxu0 }
 0x2cf   :  { %2165 = vmatpush.msrb.mxu0 %v359_v20  ;;  %2185 = vmatpush.msrb.mxu1 %v423_v21  ;;  %v343_v37 = vld [vmem:[#allocation3 + $0x938] sm:$0xff] }
 0x2d0   :  { %2205 = vmatpush.msrb.mxu2 %v487_v22  ;;  %2224 = vmatpush.msrb.mxu3 %v555_v23  ;;  %v407_v38 = vld [vmem:[#allocation3 + $0xb38] sm:$0xff] }
 0x2d1   :  { %2166 = vmatpush.msrb.mxu0 %v355_v24  ;;  %2186 = vmatpush.msrb.mxu1 %v419_v25  ;;  %v471_v39 = vld [vmem:[#allocation3 + $0xd38] sm:$0xff] }
 0x2d2   :  { %2206 = vmatpush.msrb.mxu2 %v483_v26  ;;  %2225 = vmatpush.msrb.mxu3 %v551_v27  ;;  %v539_v40 = vld [vmem:[#allocation3 + $0xf58] sm:$0xff] }
 0x2d3   :  { %2167 = vmatpush.msrb.mxu0 %v351_v28  ;;  %2187 = vmatpush.msrb.mxu1 %v415_v29  ;;  %v339_v42 = vld [vmem:[#allocation3 + $0x918] sm:$0xff]  ;;  %v2750_v28 = vpop.f32.mrf.mxu3  ;;  %v2752_v29 = vpop.f32.mrf.mxu1 }
 0x2d4   :  { %2207 = vmatpush.msrb.mxu2 %v479_v30  ;;  %2226 = vmatpush.msrb.mxu3 %v547_v31  ;;  %v403_v43 = vld [vmem:[#allocation3 + $0xb18] sm:$0xff] }
 0x2d5   :  { %2168 = vmatpush.msrb.mxu0 %v347_v33  ;;  %2188 = vmatpush.msrb.mxu1 %v411_v34  ;;  %v467_v44 = vld [vmem:[#allocation3 + $0xd18] sm:$0xff] }
 0x2d6   :  { %2208 = vmatpush.msrb.mxu2 %v475_v35  ;;  %2227 = vmatpush.msrb.mxu3 %v543_v36  ;;  %v535_v45 = vld [vmem:[#allocation3 + $0xf38] sm:$0xff]  ;;  %v2756_v36 = vpop.f32.mrf.mxu2 }
 0x2d7   :  { %2169 = vmatpush.msrb.mxu0 %v343_v37  ;;  %2189 = vmatpush.msrb.mxu1 %v407_v38  ;;  %v335_v46 = vld [vmem:[#allocation3 + $0x8f8] sm:$0xff]  ;;  %v2758_v37 = vpop.f32.mrf.mxu0 }
 0x2d8   :  { %2209 = vmatpush.msrb.mxu2 %v471_v39  ;;  %2228 = vmatpush.msrb.mxu3 %v539_v40  ;;  %v399_v47 = vld [vmem:[#allocation3 + $0xaf8] sm:$0xff] }
 0x2d9   :  { %2170 = vmatpush.msrb.mxu0 %v339_v42  ;;  %2190 = vmatpush.msrb.mxu1 %v403_v43  ;;  %v463_v52 = vld [vmem:[#allocation3 + $0xcf8] sm:$0xff] }
 0x2da   :  { %v531_v53 = vld [vmem:[#allocation3 + $0xf18] sm:$0xff]  ;;  %2210 = vmatpush.msrb.mxu2 %v467_v44  ;;  %2229 = vmatpush.msrb.mxu3 %v535_v45 }
 0x2db   :  { %v331_v55 = vld [vmem:[#allocation3 + $0x8d8] sm:$0xff]  ;;  %2171 = vmatpush.msrb.mxu0 %v335_v46  ;;  %2191 = vmatpush.msrb.mxu1 %v399_v47  ;;  %v2762_v44 = vpop.f32.mrf.mxu3  ;;  %v2764_v45 = vpop.f32.mrf.mxu1 }
 0x2dc   :  { %v395_v56 = vld [vmem:[#allocation3 + $0xad8] sm:$0xff]  ;;  %2211 = vmatpush.msrb.mxu2 %v463_v52  ;;  %2230 = vmatpush.msrb.mxu3 %v531_v53 }
 0x2dd   :  { %v459_v57 = vld [vmem:[#allocation3 + $0xcd8] sm:$0xff]  ;;  %2172 = vmatpush.msrb.mxu0 %v331_v55  ;;  %2192 = vmatpush.msrb.mxu1 %v395_v56 }
 0x2de   :  { %v527_v58 = vld [vmem:[#allocation3 + $0xef8] sm:$0xff]  ;;  %2212 = vmatpush.msrb.mxu2 %v459_v57  ;;  %2099 = vmatmul.f32.vlgmr.msra.gmra.mxu0 %v2691_v48  ;;  %v2766_v56 = vpop.f32.mrf.mxu2 }
 0x2df   :  { %v327_v60 = vld [vmem:[#allocation3 + $0x8b8] sm:$0xff]  ;;  %2231 = vmatpush.msrb.mxu3 %v527_v58  ;;  %2119 = vmatmul.f32.vlgmr.msra.gmra.mxu1 %v2693_v49  ;;  %v2768_v57 = vpop.f32.mrf.mxu0 }
 0x2e0   :  { %v391_v61 = vld [vmem:[#allocation3 + $0xab8] sm:$0xff]  ;;  %2173 = vmatpush.msrb.mxu0 %v327_v60  ;;  %2139 = vmatmul.f32.vlgmr.msra.gmra.mxu2 %v2695_v50 }
 0x2e1   :  { %v455_v62 = vld [vmem:[#allocation3 + $0xcb8] sm:$0xff]  ;;  %2193 = vmatpush.msrb.mxu1 %v391_v61  ;;  %2159 = vmatmul.f32.vlgmr.msra.gmra.mxu3 %v2697_v51 }
 0x2e2   :  { %v523_v63 = vld [vmem:[#allocation3 + $0xed8] sm:$0xff]  ;;  %2213 = vmatpush.msrb.mxu2 %v455_v62 }
 0x2e3   :  { %v323_v5 = vld [vmem:[#allocation3 + $0x898] sm:$0xff]  ;;  %2232 = vmatpush.msrb.mxu3 %v523_v63 }
 0x2e4   :  { %v387_v6 = vld [vmem:[#allocation3 + $0xa98] sm:$0xff]  ;;  %2174 = vmatpush.msrb.mxu0 %v323_v5  ;;  %v2772_v5 = vpop.f32.mrf.mxu3 }
 0x2e5   :  { %v451_v7 = vld [vmem:[#allocation3 + $0xc98] sm:$0xff]  ;;  %2194 = vmatpush.msrb.mxu1 %v387_v6  ;;  %v2774_v6 = vpop.f32.mrf.mxu1 }
 0x2e6   :  { %v519_v8 = vld [vmem:[#allocation3 + $0xeb8] sm:$0xff]  ;;  %2214 = vmatpush.msrb.mxu2 %v451_v7 }
 0x2e7   :  { %v319_v10 = vld [vmem:[#allocation3 + $0x878] sm:$0xff]  ;;  %2233 = vmatpush.msrb.mxu3 %v519_v8 }
 0x2e8   :  { %v383_v11 = vld [vmem:[#allocation3 + $0xa78] sm:$0xff]  ;;  %2175 = vmatpush.msrb.mxu0 %v319_v10 }
 0x2e9   :  { %v447_v12 = vld [vmem:[#allocation3 + $0xc78] sm:$0xff]  ;;  %2195 = vmatpush.msrb.mxu1 %v383_v11 }
 0x2ea   :  { %v515_v13 = vld [vmem:[#allocation3 + $0xe98] sm:$0xff]  ;;  %2215 = vmatpush.msrb.mxu2 %v447_v12 }
 0x2eb   :  { %v315_v14 = vld [vmem:[#allocation3 + $0x858] sm:$0xff]  ;;  %2234 = vmatpush.msrb.mxu3 %v515_v13 }
 0x2ec   :  { %v379_v15 = vld [vmem:[#allocation3 + $0xa58] sm:$0xff]  ;;  %2176 = vmatpush.msrb.mxu0 %v315_v14  ;;  %v2778_v14 = vpop.f32.mrf.mxu2 }
 0x2ed   :  { %v443_v16 = vld [vmem:[#allocation3 + $0xc58] sm:$0xff]  ;;  %2196 = vmatpush.msrb.mxu1 %v379_v15 }
 0x2ee   :  { %v511_v17 = vld [vmem:[#allocation3 + $0xe78] sm:$0xff]  ;;  %2216 = vmatpush.msrb.mxu2 %v443_v16 }
 0x2ef   :  { %v311_v20 = vld [vmem:[#allocation3 + $0x838] sm:$0xff]  ;;  %2235 = vmatpush.msrb.mxu3 %v511_v17 }
 0x2f0   :  { %v375_v21 = vld [vmem:[#allocation3 + $0xa38] sm:$0xff]  ;;  %2177 = vmatpush.msrb.mxu0 %v311_v20  ;;  %v2780_v20 = vpop.f32.mrf.mxu0 }
 0x2f1   :  { %v439_v22 = vld [vmem:[#allocation3 + $0xc38] sm:$0xff]  ;;  %2197 = vmatpush.msrb.mxu1 %v375_v21 }
 0x2f2   :  { %v507_v23 = vld [vmem:[#allocation3 + $0xe58] sm:$0xff]  ;;  %2217 = vmatpush.msrb.mxu2 %v439_v22 }
 0x2f3   :  { %v307_v24 = vld [vmem:[#allocation3 + $0x818] sm:$0xff]  ;;  %2236 = vmatpush.msrb.mxu3 %v507_v23 }
 0x2f4   :  { %v371_v25 = vld [vmem:[#allocation3 + $0xa18] sm:$0xff]  ;;  %2178 = vmatpush.msrb.mxu0 %v307_v24  ;;  %v2782_v24 = vpop.f32.mrf.mxu3 }
 0x2f5   :  { %v435_v26 = vld [vmem:[#allocation3 + $0xc18] sm:$0xff]  ;;  %2198 = vmatpush.msrb.mxu1 %v371_v25  ;;  %2179 = vmatmul.f32.vlgmr.msrb.gmra.mxu0 %v2704_v1 }
 0x2f6   :  { %v503_v27 = vld [vmem:[#allocation3 + $0xe38] sm:$0xff]  ;;  %2218 = vmatpush.msrb.mxu2 %v435_v26  ;;  %2199 = vmatmul.f32.vlgmr.msrb.gmra.mxu1 %v2708_v3 }
 0x2f7   :  { %v623_v30 = vld [vmem:[#allocation3 + $0x11f8] sm:$0xff]  ;;  %2237 = vmatpush.msrb.mxu3 %v503_v27  ;;  %2219 = vmatmul.f32.vlgmr.msrb.gmra.mxu2 %v2702_v0 }
 0x2f8   :  { %v687_v31 = vld [vmem:[#allocation3 + $0x13f8] sm:$0xff]  ;;  %2243 = vmatpush.msra.mxu0 %v623_v30 }
 0x2f9   :  { %v751_v33 = vld [vmem:[#allocation3 + $0x15f8] sm:$0xff]  ;;  %2263 = vmatpush.msra.mxu1 %v687_v31  ;;  %v2784_v31 = vpop.f32.mrf.mxu1 }
 0x2fa   :  { %v499_v34 = vld [vmem:[#allocation3 + $0xe18] sm:$0xff]  ;;  %2283 = vmatpush.msra.mxu2 %v751_v33 }
 0x2fb   :  { %v619_v35 = vld [vmem:[#allocation3 + $0x11d8] sm:$0xff]  ;;  %2238 = vmatpush.msrb.mxu3 %v499_v34 }
 0x2fc   :  { %v683_v38 = vld [vmem:[#allocation3 + $0x13d8] sm:$0xff]  ;;  %2244 = vmatpush.msra.mxu0 %v619_v35  ;;  %2239 = vmatmul.f32.vlgmr.msrb.gmra.mxu3 %v2706_v2 }
 0x2fd   :  { %v747_v39 = vld [vmem:[#allocation3 + $0x15d8] sm:$0xff]  ;;  %2264 = vmatpush.msra.mxu1 %v683_v38 }
 0x2fe   :  { %v815_v40 = vld [vmem:[#allocation3 + $0x17f8] sm:$0xff]  ;;  %2284 = vmatpush.msra.mxu2 %v747_v39 }
 0x2ff   :  { %v615_v42 = vld [vmem:[#allocation3 + $0x11b8] sm:$0xff]  ;;  %2303 = vmatpush.msra.mxu3 %v815_v40 }
 0x300   :  { %v679_v48 = vld [vmem:[#allocation3 + $0x13b8] sm:$0xff]  ;;  %2245 = vmatpush.msra.mxu0 %v615_v42 }
 0x301   :  { %v743_v49 = vld [vmem:[#allocation3 + $0x15b8] sm:$0xff]  ;;  %2265 = vmatpush.msra.mxu1 %v679_v48 }
 0x302   :  { %v811_v43 = vld [vmem:[#allocation3 + $0x17d8] sm:$0xff]  ;;  %2285 = vmatpush.msra.mxu2 %v743_v49  ;;  %v2786_v49 = vpop.f32.mrf.mxu2 }
 0x303   :  { %v611_v50 = vld [vmem:[#allocation3 + $0x1198] sm:$0xff]  ;;  %2304 = vmatpush.msra.mxu3 %v811_v43  ;;  %v2788_v43 = vpop.f32.mrf.mxu0 }
 0x304   :  { %v675_v46 = vld [vmem:[#allocation3 + $0x1398] sm:$0xff]  ;;  %2246 = vmatpush.msra.mxu0 %v611_v50 }
 0x305   :  { %v739_v47 = vld [vmem:[#allocation3 + $0x1598] sm:$0xff]  ;;  %2266 = vmatpush.msra.mxu1 %v675_v46 }
 0x306   :  { %v807_v52 = vld [vmem:[#allocation3 + $0x17b8] sm:$0xff]  ;;  %2286 = vmatpush.msra.mxu2 %v739_v47 }
 0x307   :  { %v607_v53 = vld [vmem:[#allocation3 + $0x1178] sm:$0xff]  ;;  %2305 = vmatpush.msra.mxu3 %v807_v52 }
 0x308   :  { %v671_v51 = vld [vmem:[#allocation3 + $0x1378] sm:$0xff]  ;;  %2247 = vmatpush.msra.mxu0 %v607_v53 }
 0x309   :  { %v735_v55 = vld [vmem:[#allocation3 + $0x1578] sm:$0xff]  ;;  %2267 = vmatpush.msra.mxu1 %v671_v51 }
 0x30a   :  { %v803_v58 = vld [vmem:[#allocation3 + $0x1798] sm:$0xff]  ;;  %2287 = vmatpush.msra.mxu2 %v735_v55 }
 0x30b   :  { %v603_v60 = vld [vmem:[#allocation3 + $0x1158] sm:$0xff]  ;;  %2306 = vmatpush.msra.mxu3 %v803_v58 }
 0x30c   :  { %v667_v61 = vld [vmem:[#allocation3 + $0x1358] sm:$0xff]  ;;  %2248 = vmatpush.msra.mxu0 %v603_v60  ;;  %v2790_v60 = vpop.f32.mrf.mxu3 }
 0x30d   :  { %v731_v62 = vld [vmem:[#allocation3 + $0x1558] sm:$0xff]  ;;  %2268 = vmatpush.msra.mxu1 %v667_v61  ;;  %v2792_v61 = vpop.f32.mrf.mxu1 }
 0x30e   :  { %v799_v63 = vld [vmem:[#allocation3 + $0x1778] sm:$0xff]  ;;  %2288 = vmatpush.msra.mxu2 %v731_v62 }
 0x30f   :  { %v599_v7 = vld [vmem:[#allocation3 + $0x1138] sm:$0xff]  ;;  %2307 = vmatpush.msra.mxu3 %v799_v63 }
 0x310   :  { %v663_v8 = vld [vmem:[#allocation3 + $0x1338] sm:$0xff]  ;;  %2249 = vmatpush.msra.mxu0 %v599_v7 }
 0x311   :  { %v727_v0 = vld [vmem:[#allocation3 + $0x1538] sm:$0xff]  ;;  %2269 = vmatpush.msra.mxu1 %v663_v8 }
 0x312   :  { %v795_v10 = vld [vmem:[#allocation3 + $0x1758] sm:$0xff]  ;;  %2289 = vmatpush.msra.mxu2 %v727_v0 }
 0x313   :  { %v595_v11 = vld [vmem:[#allocation3 + $0x1118] sm:$0xff]  ;;  %2308 = vmatpush.msra.mxu3 %v795_v10 }
 0x314   :  { %v659_v12 = vld [vmem:[#allocation3 + $0x1318] sm:$0xff]  ;;  %2250 = vmatpush.msra.mxu0 %v595_v11  ;;  %v2794_v11 = vpop.f32.mrf.mxu2 }
 0x315   :  { %v723_v1 = vld [vmem:[#allocation3 + $0x1518] sm:$0xff]  ;;  %2270 = vmatpush.msra.mxu1 %v659_v12  ;;  %v2796_v12 = vpop.f32.mrf.mxu0 }
 0x316   :  { %v791_v13 = vld [vmem:[#allocation3 + $0x1738] sm:$0xff]  ;;  %2290 = vmatpush.msra.mxu2 %v723_v1 }
 0x317   :  { %v591_v2 = vld [vmem:[#allocation3 + $0x10f8] sm:$0xff]  ;;  %2309 = vmatpush.msra.mxu3 %v791_v13 }
 0x318   :  { %v655_v15 = vld [vmem:[#allocation3 + $0x12f8] sm:$0xff]  ;;  %2251 = vmatpush.msra.mxu0 %v591_v2 }
 0x319   :  { %v719_v16 = vld [vmem:[#allocation3 + $0x14f8] sm:$0xff]  ;;  %2271 = vmatpush.msra.mxu1 %v655_v15  ;;  %v2600_v15 = vld.sshfl [vmem:[#allocation1 + $0x10] sm:$0xff pattern:$0x73625140] }
 0x31a   :  { %v787_v17 = vld [vmem:[#allocation3 + $0x1718] sm:$0xff]  ;;  %2291 = vmatpush.msra.mxu2 %v719_v16 }
 0x31b   :  { %v587_v3 = vld [vmem:[#allocation3 + $0x10d8] sm:$0xff]  ;;  %2310 = vmatpush.msra.mxu3 %v787_v17 }
 0x31c   :  { %v651_v21 = vld [vmem:[#allocation3 + $0x12d8] sm:$0xff]  ;;  %2252 = vmatpush.msra.mxu0 %v587_v3 }
 0x31d   :  { %v715_v22 = vld [vmem:[#allocation3 + $0x14d8] sm:$0xff]  ;;  %2272 = vmatpush.msra.mxu1 %v651_v21 }
 0x31e   :  { %v783_v23 = vld [vmem:[#allocation3 + $0x16f8] sm:$0xff]  ;;  %2292 = vmatpush.msra.mxu2 %v715_v22 }
 0x31f   :  { %v583_v25 = vld [vmem:[#allocation3 + $0x10b8] sm:$0xff]  ;;  %2311 = vmatpush.msra.mxu3 %v783_v23  ;;  %v2803_v23 = vpop.f32.mrf.mxu3 }
 0x320   :  { %v647_v26 = vld [vmem:[#allocation3 + $0x12b8] sm:$0xff]  ;;  %2253 = vmatpush.msra.mxu0 %v583_v25  ;;  %v2805_v25 = vpop.f32.mrf.mxu1 }
 0x321   :  { %v711_v27 = vld [vmem:[#allocation3 + $0x14b8] sm:$0xff]  ;;  %2273 = vmatpush.msra.mxu1 %v647_v26 }
 0x322   :  { %v779_v30 = vld [vmem:[#allocation3 + $0x16d8] sm:$0xff]  ;;  %2293 = vmatpush.msra.mxu2 %v711_v27  ;;  %v2602_v27 = vld.sshfl [vmem:[#allocation1 + $0x18] sm:$0xff pattern:$0x73625140] }
 0x323   :  { %v579_v33 = vld [vmem:[#allocation3 + $0x1098] sm:$0xff]  ;;  %2312 = vmatpush.msra.mxu3 %v779_v30 }
 0x324   :  { %v643_v34 = vld [vmem:[#allocation3 + $0x1298] sm:$0xff]  ;;  %2254 = vmatpush.msra.mxu0 %v579_v33 }
 0x325   :  { %v707_v35 = vld [vmem:[#allocation3 + $0x1498] sm:$0xff]  ;;  %2274 = vmatpush.msra.mxu1 %v643_v34 }
 0x326   :  { %v775_v38 = vld [vmem:[#allocation3 + $0x16b8] sm:$0xff]  ;;  %2294 = vmatpush.msra.mxu2 %v707_v35 }
 0x327   :  { %v575_v39 = vld [vmem:[#allocation3 + $0x1078] sm:$0xff]  ;;  %2313 = vmatpush.msra.mxu3 %v775_v38 }
 0x328   :  { %v639_v40 = vld [vmem:[#allocation3 + $0x1278] sm:$0xff]  ;;  %2255 = vmatpush.msra.mxu0 %v575_v39 }
 0x329   :  { %v703_v42 = vld [vmem:[#allocation3 + $0x1478] sm:$0xff]  ;;  %2275 = vmatpush.msra.mxu1 %v639_v40 }
 0x32a   :  { %v771_v48 = vld [vmem:[#allocation3 + $0x1698] sm:$0xff]  ;;  %2295 = vmatpush.msra.mxu2 %v703_v42 }
 0x32b   :  { %v571_v50 = vld [vmem:[#allocation3 + $0x1058] sm:$0xff]  ;;  %2314 = vmatpush.msra.mxu3 %v771_v48 }
 0x32c   :  { %v635_v46 = vld [vmem:[#allocation3 + $0x1258] sm:$0xff]  ;;  %2256 = vmatpush.msra.mxu0 %v571_v50 }
 0x32d   :  { %v699_v47 = vld [vmem:[#allocation3 + $0x1458] sm:$0xff]  ;;  %2276 = vmatpush.msra.mxu1 %v635_v46 }
 0x32e   :  { %v767_v52 = vld [vmem:[#allocation3 + $0x1678] sm:$0xff]  ;;  %2296 = vmatpush.msra.mxu2 %v699_v47  ;;  %v2810_v47 = vpop.f32.mrf.mxu2 }
 0x32f   :  { %v567_v53 = vld [vmem:[#allocation3 + $0x1038] sm:$0xff]  ;;  %2315 = vmatpush.msra.mxu3 %v767_v52  ;;  %v1780_v52 = vpop.f32.mrf.mxu0 }
 0x330   :  { %v631_v51 = vld [vmem:[#allocation3 + $0x1238] sm:$0xff]  ;;  %2257 = vmatpush.msra.mxu0 %v567_v53 }
 0x331   :  { %v695_v55 = vld [vmem:[#allocation3 + $0x1438] sm:$0xff]  ;;  %2277 = vmatpush.msra.mxu1 %v631_v51 }
 0x332   :  { %v763_v58 = vld [vmem:[#allocation3 + $0x1658] sm:$0xff]  ;;  %2297 = vmatpush.msra.mxu2 %v695_v55 }
 0x333   :  { %v563_v62 = vld [vmem:[#allocation3 + $0x1018] sm:$0xff]  ;;  %2316 = vmatpush.msra.mxu3 %v763_v58 }
 0x334   :  { %v627_v63 = vld [vmem:[#allocation3 + $0x1218] sm:$0xff]  ;;  %2258 = vmatpush.msra.mxu0 %v563_v62 }
 0x335   :  { %v691_v7 = vld [vmem:[#allocation3 + $0x1418] sm:$0xff]  ;;  %2278 = vmatpush.msra.mxu1 %v627_v63 }
 0x336   :  { %v759_v8 = vld [vmem:[#allocation3 + $0x1638] sm:$0xff]  ;;  %2298 = vmatpush.msra.mxu2 %v691_v7 }
 0x337   :  { %v879_v0 = vld [vmem:[#allocation3 + $0x19f8] sm:$0xff]  ;;  %2317 = vmatpush.msra.mxu3 %v759_v8  ;;  %2299 = vmatmul.f32.vlgmr.msra.gmra.mxu2 %v2600_v15 }
 0x338   :  { %v943_v10 = vld [vmem:[#allocation3 + $0x1bf8] sm:$0xff]  ;;  %2323 = vmatpush.msrb.mxu0 %v879_v0 }
 0x339   :  { %v1007_v1 = vld [vmem:[#allocation3 + $0x1df8] sm:$0xff]  ;;  %2343 = vmatpush.msrb.mxu1 %v943_v10 }
 0x33a   :  { %v755_v13 = vld [vmem:[#allocation3 + $0x1618] sm:$0xff]  ;;  %2363 = vmatpush.msrb.mxu2 %v1007_v1 }
 0x33b   :  { %v2599_v2 = vld.sshfl [vmem:[#allocation1] sm:$0xff pattern:$0x73625140]  ;;  %2318 = vmatpush.msra.mxu3 %v755_v13  ;;  %v2601_v26 = vld.sshfl [vmem:[#allocation1 + $0x8] sm:$0xff pattern:$0x73625140]  ;;  %v2814_v13 = vpop.f32.mrf.mxu3 }
 0x33c   :  { %2259 = vmatmul.f32.vlgmr.msra.gmra.mxu0 %v2599_v2  ;;  %v875_v16 = vld [vmem:[#allocation3 + $0x19d8] sm:$0xff]  ;;  %2279 = vmatmul.f32.vlgmr.msra.gmra.mxu1 %v2601_v26  ;;  %v1800_v2 = vpop.f32.mrf.mxu1 }
 0x33d   :  { %v939_v17 = vld [vmem:[#allocation3 + $0x1bd8] sm:$0xff]  ;;  %2319 = vmatmul.f32.vlgmr.msra.gmra.mxu3 %v2602_v27  ;;  %2324 = vmatpush.msrb.mxu0 %v875_v16 }
 0x33e   :  { %v2801_v3 = vld [vmem:[%s3050_s2] sm:$0xf]  ;;  %2344 = vmatpush.msrb.mxu1 %v939_v17 }
 0x33f   :  { %v1003_v21 = vld [vmem:[#allocation3 + $0x1dd8] sm:$0xff]  ;;  %v1074_v38 = vperm.slane %v2801_v3, 0  ;;  %v1075_v42 = vperm.slane %v2801_v3, 1  ;;  %v1076_v48 = vperm.slane %v2801_v3, 2 }
 0x340   :  { %v1071_v22 = vld [vmem:[#allocation3 + $0x1ff8] sm:$0xff]  ;;  %2364 = vmatpush.msrb.mxu2 %v1003_v21 }
 0x341   :  { %v871_v30 = vld [vmem:[#allocation3 + $0x19b8] sm:$0xff]  ;;  %2383 = vmatpush.msrb.mxu3 %v1071_v22  ;;  %v1141_v62 = vadd.f32 %v2734_v32, %v1074_v38  ;;  %v1461_v8 = vadd.f32 %v2768_v57, %v1075_v42  ;;  %v1781_v0 = vadd.f32 %v1780_v52, %v1076_v48 }
 0x342   :  { %v935_v33 = vld [vmem:[#allocation3 + $0x1bb8] sm:$0xff]  ;;  %2325 = vmatpush.msrb.mxu0 %v871_v30 }
 0x343   :  { %v999_v34 = vld [vmem:[#allocation3 + $0x1db8] sm:$0xff]  ;;  %2345 = vmatpush.msrb.mxu1 %v935_v33  ;;  %v1161_v21 = vadd.f32 %v2736_v41, %v1141_v62  ;;  %v1481_v26 = vadd.f32 %v2774_v6, %v1461_v8  ;;  %v1801_v27 = vadd.f32 %v1800_v2, %v1781_v0 }
 0x344   :  { %v1067_v35 = vld [vmem:[#allocation3 + $0x1fd8] sm:$0xff]  ;;  %2365 = vmatpush.msrb.mxu2 %v999_v34  ;;  %v1820_v34 = vpop.f32.mrf.mxu2 }
 0x345   :  { %v867_v39 = vld [vmem:[#allocation3 + $0x1998] sm:$0xff]  ;;  %2384 = vmatpush.msrb.mxu3 %v1067_v35  ;;  %v1501_v48 = vadd.f32 %v2778_v14, %v1481_v26 }
 0x346   :  { %v931_v40 = vld [vmem:[#allocation3 + $0x1b98] sm:$0xff]  ;;  %2326 = vmatpush.msrb.mxu0 %v867_v39 }
 0x347   :  { %v995_v50 = vld [vmem:[#allocation3 + $0x1d98] sm:$0xff]  ;;  %2346 = vmatpush.msrb.mxu1 %v931_v40  ;;  %v1181_v40 = vadd.f32 %v2738_v54, %v1161_v21 }
 0x348   :  { %v1063_v46 = vld [vmem:[#allocation3 + $0x1fb8] sm:$0xff]  ;;  %2366 = vmatpush.msrb.mxu2 %v995_v50  ;;  %v1821_v50 = vadd.f32 %v1820_v34, %v1801_v27  ;;  %v1880_v27 = vpop.f32.mrf.mxu1 }
 0x349   :  { %v863_v53 = vld [vmem:[#allocation3 + $0x1978] sm:$0xff]  ;;  %2385 = vmatpush.msrb.mxu3 %v1063_v46  ;;  %v1201_v62 = vadd.f32 %v2742_v4, %v1181_v40 }
 0x34a   :  { %v927_v51 = vld [vmem:[#allocation3 + $0x1b78] sm:$0xff]  ;;  %2327 = vmatpush.msrb.mxu0 %v863_v53  ;;  %v1840_v53 = vpop.f32.mrf.mxu3 }
 0x34b   :  { %v991_v55 = vld [vmem:[#allocation3 + $0x1d78] sm:$0xff]  ;;  %2347 = vmatpush.msrb.mxu1 %v927_v51  ;;  %v1841_v8 = vadd.f32 %v1840_v53, %v1821_v50  ;;  %v2454_v50 = vld [vmem:[%s3051_s3 + $0x178] sm:$0xff] }
 0x34c   :  { %v1059_v58 = vld [vmem:[#allocation3 + $0x1f98] sm:$0xff]  ;;  %2367 = vmatpush.msrb.mxu2 %v991_v55 }
 0x34d   :  { %v859_v63 = vld [vmem:[#allocation3 + $0x1958] sm:$0xff]  ;;  %2386 = vmatpush.msrb.mxu3 %v1059_v58 }
 0x34e   :  { %v923_v7 = vld [vmem:[#allocation3 + $0x1b58] sm:$0xff]  ;;  %2328 = vmatpush.msrb.mxu0 %v859_v63 }
 0x34f   :  { %v987_v10 = vld [vmem:[#allocation3 + $0x1d58] sm:$0xff]  ;;  %2348 = vmatpush.msrb.mxu1 %v923_v7  ;;  %v1521_v7 = vadd.f32 %v2782_v24, %v1501_v48  ;;  %v2438_v48 = vld [vmem:[%s3051_s3 + $0xf8] sm:$0xff] }
 0x350   :  { %v1055_v1 = vld [vmem:[#allocation3 + $0x1f78] sm:$0xff]  ;;  %2368 = vmatpush.msrb.mxu2 %v987_v10 }
 0x351   :  { %v855_v15 = vld [vmem:[#allocation3 + $0x1938] sm:$0xff]  ;;  %2387 = vmatpush.msrb.mxu3 %v1055_v1  ;;  %v1860_v1 = vpop.f32.mrf.mxu0  ;;  %v1541_v21 = vadd.f32 %v2780_v20, %v1521_v7  ;;  %v2606_v7 = vld.sshfl [vmem:[#allocation1 + $0x38] sm:$0xff pattern:$0x73625140] }
 0x352   :  { %v919_v16 = vld [vmem:[#allocation3 + $0x1b38] sm:$0xff]  ;;  %2329 = vmatpush.msrb.mxu0 %v855_v15 }
 0x353   :  { %v983_v32 = vld [vmem:[#allocation3 + $0x1d38] sm:$0xff]  ;;  %2349 = vmatpush.msrb.mxu1 %v919_v16 }
 0x354   :  { %v1051_v17 = vld [vmem:[#allocation3 + $0x1f58] sm:$0xff]  ;;  %2369 = vmatpush.msrb.mxu2 %v983_v32  ;;  %v1221_v32 = vadd.f32 %v2740_v59, %v1201_v62 }
 0x355   :  { %v851_v57 = vld [vmem:[#allocation3 + $0x1918] sm:$0xff]  ;;  %2388 = vmatpush.msrb.mxu3 %v1051_v17 }
 0x356   :  { %v915_v22 = vld [vmem:[#allocation3 + $0x1b18] sm:$0xff]  ;;  %2330 = vmatpush.msrb.mxu0 %v851_v57  ;;  %v1861_v57 = vadd.f32 %v1860_v1, %v1841_v8 }
 0x357   :  { %v979_v30 = vld [vmem:[#allocation3 + $0x1d18] sm:$0xff]  ;;  %2350 = vmatpush.msrb.mxu1 %v915_v22 }
 0x358   :  { %v1047_v33 = vld [vmem:[#allocation3 + $0x1f38] sm:$0xff]  ;;  %2370 = vmatpush.msrb.mxu2 %v979_v30 }
 0x359   :  { %v847_v35 = vld [vmem:[#allocation3 + $0x18f8] sm:$0xff]  ;;  %2389 = vmatpush.msrb.mxu3 %v1047_v33 }
 0x35a   :  { %v911_v38 = vld [vmem:[#allocation3 + $0x1af8] sm:$0xff]  ;;  %2331 = vmatpush.msrb.mxu0 %v847_v35  ;;  %v1241_v35 = vadd.f32 %v2744_v9, %v1221_v32  ;;  %v2422_v9 = vld [vmem:[%s3051_s3 + $0x78] sm:$0xff] }
 0x35b   :  { %v975_v39 = vld [vmem:[#allocation3 + $0x1cf8] sm:$0xff]  ;;  %2351 = vmatpush.msrb.mxu1 %v911_v38 }
 0x35c   :  { %v1043_v41 = vld [vmem:[#allocation3 + $0x1f18] sm:$0xff]  ;;  %2371 = vmatpush.msrb.mxu2 %v975_v39  ;;  %v1561_v39 = vadd.f32 %v2784_v31, %v1541_v21  ;;  %v1261_v31 = vadd.f32 %v2746_v18, %v1241_v35  ;;  %v2421_v18 = vld [vmem:[%s3051_s3 + $0x70] sm:$0xff] }
 0x35d   :  { %v843_v42 = vld [vmem:[#allocation3 + $0x18d8] sm:$0xff]  ;;  %2390 = vmatpush.msrb.mxu3 %v1043_v41  ;;  %v1881_v41 = vadd.f32 %v1880_v27, %v1861_v57 }
 0x35e   :  { %v907_v6 = vld [vmem:[#allocation3 + $0x1ad8] sm:$0xff]  ;;  %2332 = vmatpush.msrb.mxu0 %v843_v42  ;;  %v1281_v62 = vadd.f32 %v2750_v28, %v1261_v31  ;;  %v2446_v31 = vld [vmem:[%s3051_s3 + $0x138] sm:$0xff] }
 0x35f   :  { %v971_v46 = vld [vmem:[#allocation3 + $0x1cd8] sm:$0xff]  ;;  %2352 = vmatpush.msrb.mxu1 %v907_v6  ;;  %v1900_v6 = vpop.f32.mrf.mxu2 }
 0x360   :  { %v1039_v52 = vld [vmem:[#allocation3 + $0x1ef8] sm:$0xff]  ;;  %2372 = vmatpush.msrb.mxu2 %v971_v46  ;;  %v1901_v53 = vadd.f32 %v1900_v6, %v1881_v41  ;;  %v2430_v6 = vld [vmem:[%s3051_s3 + $0xb8] sm:$0xff] }
 0x361   :  { %v839_v51 = vld [vmem:[#allocation3 + $0x18b8] sm:$0xff]  ;;  %2391 = vmatpush.msrb.mxu3 %v1039_v52  ;;  %v1581_v52 = vadd.f32 %v2786_v49, %v1561_v39  ;;  %v2453_v49 = vld [vmem:[%s3051_s3 + $0x170] sm:$0xff] }
 0x362   :  { %v903_v55 = vld [vmem:[#allocation3 + $0x1ab8] sm:$0xff]  ;;  %2333 = vmatpush.msrb.mxu0 %v839_v51 }
 0x363   :  { %v967_v58 = vld [vmem:[#allocation3 + $0x1cb8] sm:$0xff]  ;;  %2353 = vmatpush.msrb.mxu1 %v903_v55  ;;  %v2604_v55 = vld.sshfl [vmem:[#allocation1 + $0x30] sm:$0xff pattern:$0x73625140] }
 0x364   :  { %v1035_v54 = vld [vmem:[#allocation3 + $0x1ed8] sm:$0xff]  ;;  %2373 = vmatpush.msrb.mxu2 %v967_v58  ;;  %v1920_v58 = vpop.f32.mrf.mxu3 }
 0x365   :  { %v835_v63 = vld [vmem:[#allocation3 + $0x1898] sm:$0xff]  ;;  %2392 = vmatpush.msrb.mxu3 %v1035_v54  ;;  %v2437_v54 = vld [vmem:[%s3051_s3 + $0xf0] sm:$0xff]  ;;  %v1921_v1 = vadd.f32 %v1920_v58, %v1901_v53 }
 0x366   :  { %v899_v14 = vld [vmem:[#allocation3 + $0x1a98] sm:$0xff]  ;;  %2334 = vmatpush.msrb.mxu0 %v835_v63  ;;  %v1940_v63 = vpop.f32.mrf.mxu0  ;;  %v2445_v53 = vld [vmem:[%s3051_s3 + $0x130] sm:$0xff] }
 0x367   :  { %v963_v0 = vld [vmem:[#allocation3 + $0x1c98] sm:$0xff]  ;;  %2354 = vmatpush.msrb.mxu1 %v899_v14  ;;  %v1980_v57 = vpop.f32.mrf.mxu2 }
 0x368   :  { %v1031_v10 = vld [vmem:[#allocation3 + $0x1eb8] sm:$0xff]  ;;  %2374 = vmatpush.msrb.mxu2 %v963_v0 }
 0x369   :  { %v831_v2 = vld [vmem:[#allocation3 + $0x1878] sm:$0xff]  ;;  %2393 = vmatpush.msrb.mxu3 %v1031_v10  ;;  %v1601_v10 = vadd.f32 %v2790_v60, %v1581_v52 }
 0x36a   :  { %v895_v15 = vld [vmem:[#allocation3 + $0x1a78] sm:$0xff]  ;;  %2335 = vmatpush.msrb.mxu0 %v831_v2  ;;  %v1301_v2 = vadd.f32 %v2748_v19, %v1281_v62  ;;  %v2418_v19 = vld [vmem:[%s3051_s3 + $0x58] sm:$0xff] }
 0x36b   :  { %v959_v16 = vld [vmem:[#allocation3 + $0x1c78] sm:$0xff]  ;;  %2355 = vmatpush.msrb.mxu1 %v895_v15  ;;  %v1621_v60 = vadd.f32 %v2788_v43, %v1601_v10  ;;  %v2450_v43 = vld [vmem:[%s3051_s3 + $0x158] sm:$0xff] }
 0x36c   :  { %v1027_v4 = vld [vmem:[#allocation3 + $0x1e98] sm:$0xff]  ;;  %2375 = vmatpush.msrb.mxu2 %v959_v16  ;;  %v1321_v21 = vadd.f32 %v2752_v29, %v1301_v2  ;;  %v2442_v10 = vld [vmem:[%s3051_s3 + $0x118] sm:$0xff] }
 0x36d   :  { %v827_v17 = vld [vmem:[#allocation3 + $0x1858] sm:$0xff]  ;;  %2394 = vmatpush.msrb.mxu3 %v1027_v4  ;;  %v1941_v4 = vadd.f32 %v1940_v63, %v1921_v1  ;;  %v1641_v27 = vadd.f32 %v2792_v61, %v1621_v60 }
 0x36e   :  { %v891_v24 = vld [vmem:[#allocation3 + $0x1a58] sm:$0xff]  ;;  %2336 = vmatpush.msrb.mxu0 %v827_v17  ;;  %v1960_v17 = vpop.f32.mrf.mxu1  ;;  %v1341_v29 = vadd.f32 %v2756_v36, %v1321_v21  ;;  %v2470_v21 = vld [vmem:[%s3051_s3 + $0x1f8] sm:$0xff] }
 0x36f   :  { %v955_v22 = vld [vmem:[#allocation3 + $0x1c58] sm:$0xff]  ;;  %2356 = vmatpush.msrb.mxu1 %v891_v24  ;;  %v2434_v24 = vld [vmem:[%s3051_s3 + $0xd8] sm:$0xff]  ;;  %v1661_v61 = vadd.f32 %v2794_v11, %v1641_v27 }
 0x370   :  { %v1023_v26 = vld [vmem:[#allocation3 + $0x1e78] sm:$0xff]  ;;  %2376 = vmatpush.msrb.mxu2 %v955_v22  ;;  %v2417_v22 = vld [vmem:[%s3051_s3 + $0x50] sm:$0xff]  ;;  %v1361_v41 = vadd.f32 %v2762_v44, %v1341_v29  ;;  %v2466_v27 = vld [vmem:[%s3051_s3 + $0x1d8] sm:$0xff]  ;;  %v1077_v29 = vperm.slane %v2801_v3, 3 }
 0x371   :  { %v823_v30 = vld [vmem:[#allocation3 + $0x1838] sm:$0xff]  ;;  %2395 = vmatpush.msrb.mxu3 %v1023_v26  ;;  %v2433_v26 = vld [vmem:[%s3051_s3 + $0xd0] sm:$0xff] }
 0x372   :  { %v887_v33 = vld [vmem:[#allocation3 + $0x1a38] sm:$0xff]  ;;  %2337 = vmatpush.msrb.mxu0 %v823_v30  ;;  %v1961_v30 = vadd.f32 %v1960_v17, %v1941_v4  ;;  %v1381_v44 = vadd.f32 %v2758_v37, %v1361_v41  ;;  %v2461_v3 = vld [vmem:[%s3051_s3 + $0x1b0] sm:$0xff] }
 0x373   :  { %v951_v34 = vld [vmem:[#allocation3 + $0x1c38] sm:$0xff]  ;;  %2357 = vmatpush.msrb.mxu1 %v887_v33  ;;  %v2449_v33 = vld [vmem:[%s3051_s3 + $0x150] sm:$0xff] }
 0x374   :  { %v1019_v59 = vld [vmem:[#allocation3 + $0x1e58] sm:$0xff]  ;;  %2377 = vmatpush.msrb.mxu2 %v951_v34  ;;  %v1981_v35 = vadd.f32 %v1980_v57, %v1961_v30  ;;  %v1401_v58 = vadd.f32 %v2764_v45, %v1381_v44  ;;  %v2469_v57 = vld [vmem:[%s3051_s3 + $0x1f0] sm:$0xff] }
 0x375   :  { %v819_v38 = vld [vmem:[#allocation3 + $0x1818] sm:$0xff]  ;;  %2396 = vmatpush.msrb.mxu3 %v1019_v59  ;;  %v2465_v30 = vld [vmem:[%s3051_s3 + $0x1d0] sm:$0xff] }
 0x376   :  { %v883_v20 = vld [vmem:[#allocation3 + $0x1a18] sm:$0xff]  ;;  %2338 = vmatpush.msrb.mxu0 %v819_v38  ;;  %v1421_v45 = vadd.f32 %v2766_v56, %v1401_v58  ;;  %v2409_v56 = vld [vmem:[%s3051_s3 + $0x10] sm:$0xff] }
 0x377   :  { %v947_v40 = vld [vmem:[#allocation3 + $0x1c18] sm:$0xff]  ;;  %2358 = vmatpush.msrb.mxu1 %v883_v20  ;;  %v2000_v20 = vpop.f32.mrf.mxu3  ;;  %v2457_v44 = vld [vmem:[%s3051_s3 + $0x190] sm:$0xff] }
 0x378   :  { %v1015_v42 = vld [vmem:[#allocation3 + $0x1e38] sm:$0xff]  ;;  %2378 = vmatpush.msrb.mxu2 %v947_v40  ;;  %2475 = vmatpush.msra.mxu0 %v2422_v9  ;;  %v2020_v40 = vpop.f32.mrf.mxu0  ;;  %v1681_v9 = vadd.f32 %v2803_v23, %v1661_v61  ;;  %v1441_v2 = vadd.f32 %v2772_v5, %v1421_v45  ;;  %v2462_v61 = vld [vmem:[%s3051_s3 + $0x1b8] sm:$0xff] }
 0x379   :  { %2397 = vmatpush.msrb.mxu3 %v1015_v42  ;;  %v1011_v46 = vld [vmem:[#allocation3 + $0x1e18] sm:$0xff]  ;;  %2379 = vmatmul.f32.vlgmr.msrb.gmra.mxu2 %v2604_v55  ;;  %v2414_v42 = vld [vmem:[%s3051_s3 + $0x38] sm:$0xff] }
 0x37a   :  { %v2603_v51 = vld.sshfl [vmem:[#allocation1 + $0x20] sm:$0xff pattern:$0x73625140]  ;;  %2495 = vmatpush.msra.mxu1 %v2438_v48  ;;  %2515 = vmatpush.msra.mxu2 %v2454_v50  ;;  %v2605_v14 = vld.sshfl [vmem:[#allocation1 + $0x28] sm:$0xff pattern:$0x73625140]  ;;  %v2001_v48 = vadd.f32 %v2000_v20, %v1981_v35  ;;  %v1701_v23 = vadd.f32 %v2796_v12, %v1681_v9 }
 0x37b   :  { %2339 = vmatmul.f32.vlgmr.msrb.gmra.mxu0 %v2603_v51  ;;  %2398 = vmatpush.msrb.mxu3 %v1011_v46  ;;  %v2420_v8 = vld [vmem:[%s3051_s3 + $0x68] sm:$0xff]  ;;  %v2419_v15 = vld [vmem:[%s3051_s3 + $0x60] sm:$0xff]  ;;  %v2413_v50 = vld [vmem:[%s3051_s3 + $0x30] sm:$0xff]  ;;  %v2040_v51 = vpop.f32.mrf.mxu1 }
 0x37c   :  { %2359 = vmatmul.f32.vlgmr.msrb.gmra.mxu1 %v2605_v14  ;;  %2399 = vmatmul.f32.vlgmr.msrb.gmra.mxu3 %v2606_v7  ;;  %v2436_v0 = vld [vmem:[%s3051_s3 + $0xe8] sm:$0xff]  ;;  %v2435_v16 = vld [vmem:[%s3051_s3 + $0xe0] sm:$0xff]  ;;  %v2429_v46 = vld [vmem:[%s3051_s3 + $0xb0] sm:$0xff]  ;;  %v2021_v52 = vadd.f32 %v2020_v40, %v2001_v48  ;;  %v1721_v62 = vadd.f32 %v2805_v25, %v1701_v23 }
 0x37d   :  { %2476 = vmatpush.msra.mxu0 %v2421_v18  ;;  %2496 = vmatpush.msra.mxu1 %v2437_v54  ;;  %v2452_v28 = vld [vmem:[%s3051_s3 + $0x168] sm:$0xff]  ;;  %v2451_v32 = vld [vmem:[%s3051_s3 + $0x160] sm:$0xff]  ;;  %v2060_v18 = vpop.f32.mrf.mxu2  ;;  %v2410_v7 = vld [vmem:[%s3051_s3 + $0x18] sm:$0xff] }
 0x37e   :  { %2516 = vmatpush.msra.mxu2 %v2453_v49  ;;  %v2416_v34 = vld [vmem:[%s3051_s3 + $0x48] sm:$0xff]  ;;  %v2415_v36 = vld [vmem:[%s3051_s3 + $0x40] sm:$0xff]  ;;  %v2041_v63 = vadd.f32 %v2040_v51, %v2021_v52  ;;  %v1741_v25 = vadd.f32 %v2810_v47, %v1721_v62  ;;  %v2441_v47 = vld [vmem:[%s3051_s3 + $0x110] sm:$0xff]  ;;  %2535 = vmatpush.msra.mxu3 %v2470_v21 }
 0x37f   :  { %2477 = vmatpush.msra.mxu0 %v2420_v8  ;;  %2497 = vmatpush.msra.mxu1 %v2436_v0  ;;  %v2432_v59 = vld [vmem:[%s3051_s3 + $0xc8] sm:$0xff]  ;;  %v2431_v39 = vld [vmem:[%s3051_s3 + $0xc0] sm:$0xff]  ;;  %v2426_v8 = vld [vmem:[%s3051_s3 + $0x98] sm:$0xff]  ;;  %v2080_v1 = vpop.f32.mrf.mxu3 }
 0x380   :  { %2517 = vmatpush.msra.mxu2 %v2452_v28  ;;  %v2448_v38 = vld [vmem:[%s3051_s3 + $0x148] sm:$0xff]  ;;  %v2447_v11 = vld [vmem:[%s3051_s3 + $0x140] sm:$0xff]  ;;  %v2061_v0 = vadd.f32 %v2060_v18, %v2041_v63  ;;  %v2425_v28 = vld [vmem:[%s3051_s3 + $0x90] sm:$0xff]  ;;  %v1761_v60 = vadd.f32 %v2814_v13, %v1741_v25  ;;  %2536 = vmatpush.msra.mxu3 %v2469_v57 }
 0x381   :  { %2478 = vmatpush.msra.mxu0 %v2419_v15  ;;  %2498 = vmatpush.msra.mxu1 %v2435_v16  ;;  %v2412_v37 = vld [vmem:[%s3051_s3 + $0x28] sm:$0xff]  ;;  %v2411_v54 = vld [vmem:[%s3051_s3 + $0x20] sm:$0xff]  ;;  %v2458_v48 = vld [vmem:[%s3051_s3 + $0x198] sm:$0xff] }
 0x382   :  { %2518 = vmatpush.msra.mxu2 %v2451_v32  ;;  %v2428_v55 = vld [vmem:[%s3051_s3 + $0xa8] sm:$0xff]  ;;  %v2427_v49 = vld [vmem:[%s3051_s3 + $0xa0] sm:$0xff]  ;;  %v2081_v4 = vadd.f32 %v2080_v1, %v2061_v0 }
 0x383   :  { %2479 = vmatpush.msra.mxu0 %v2418_v19  ;;  %2499 = vmatpush.msra.mxu1 %v2434_v24  ;;  %v2444_v12 = vld [vmem:[%s3051_s3 + $0x128] sm:$0xff]  ;;  %v2443_v14 = vld [vmem:[%s3051_s3 + $0x120] sm:$0xff]  ;;  %v2403_v19 = vmax.f32 %v1441_v2, 0.0  ;;  %v2404_v24 = vmax.f32 %v1761_v60, 0.0 }
 0x384   :  { %2519 = vmatpush.msra.mxu2 %v2450_v43  ;;  %v2408_v15 = vld [vmem:[%s3051_s3 + $0x8] sm:$0xff]  ;;  %v2407_v5 = vld [vmem:[%s3051_s3] sm:$0xff]  ;;  %v2405_v43 = vmax.f32 %v2081_v4, 0.0 }
 0x385   :  { %2480 = vmatpush.msra.mxu0 %v2417_v22  ;;  %2500 = vmatpush.msra.mxu1 %v2433_v26  ;;  %v2424_v16 = vld [vmem:[%s3051_s3 + $0x88] sm:$0xff]  ;;  %v2423_v17 = vld [vmem:[%s3051_s3 + $0x80] sm:$0xff] }
 0x386   :  { %2520 = vmatpush.msra.mxu2 %v2449_v33  ;;  %v2440_v32 = vld [vmem:[%s3051_s3 + $0x108] sm:$0xff]  ;;  %v2439_v13 = vld [vmem:[%s3051_s3 + $0x100] sm:$0xff] }
 0x387   :  { %2481 = vmatpush.msra.mxu0 %v2416_v34  ;;  %2501 = vmatpush.msra.mxu1 %v2432_v59  ;;  %v2468_v22 = vld [vmem:[%s3051_s3 + $0x1e8] sm:$0xff]  ;;  %v2467_v26 = vld [vmem:[%s3051_s3 + $0x1e0] sm:$0xff]  ;;  %v2100_v34 = vpop.f32.mrf.mxu0 }
 0x388   :  { %2521 = vmatpush.msra.mxu2 %v2448_v38  ;;  %2537 = vmatpush.msra.mxu3 %v2468_v22  ;;  %v2464_v33 = vld [vmem:[%s3051_s3 + $0x1c8] sm:$0xff]  ;;  %v2463_v59 = vld [vmem:[%s3051_s3 + $0x1c0] sm:$0xff]  ;;  %v2101_v35 = vadd.f32 %v2100_v34, %v1077_v29  ;;  %v2120_v38 = vpop.f32.mrf.mxu1 }
 0x389   :  { %2482 = vmatpush.msra.mxu0 %v2415_v36  ;;  %2502 = vmatpush.msra.mxu1 %v2431_v39  ;;  %v2140_v36 = vpop.f32.mrf.mxu2  ;;  %v2456_v23 = vld [vmem:[%s3051_s3 + $0x188] sm:$0xff]  ;;  %v2455_v52 = vld [vmem:[%s3051_s3 + $0x180] sm:$0xff] }
 0x38a   :  { %2522 = vmatpush.msra.mxu2 %v2447_v11  ;;  %2538 = vmatpush.msra.mxu3 %v2467_v26  ;;  %v2121_v20 = vadd.f32 %v2120_v38, %v2101_v35  ;;  %v2160_v11 = vpop.f32.mrf.mxu3 }
 0x38b   :  { %2483 = vmatpush.msra.mxu0 %v2414_v42  ;;  %2503 = vmatpush.msra.mxu1 %v2430_v6  ;;  %v2460_v42 = vld [vmem:[%s3051_s3 + $0x1a8] sm:$0xff]  ;;  %v2459_v6 = vld [vmem:[%s3051_s3 + $0x1a0] sm:$0xff] }
 0x38c   :  { %2523 = vmatpush.msra.mxu2 %v2446_v31  ;;  %2539 = vmatpush.msra.mxu3 %v2466_v27  ;;  %v2141_v39 = vadd.f32 %v2140_v36, %v2121_v20 }
 0x38d   :  { %2484 = vmatpush.msra.mxu0 %v2413_v50  ;;  %2504 = vmatpush.msra.mxu1 %v2429_v46 }
 0x38e   :  { %2524 = vmatpush.msra.mxu2 %v2445_v53  ;;  %2540 = vmatpush.msra.mxu3 %v2465_v30  ;;  %v2161_v41 = vadd.f32 %v2160_v11, %v2141_v39 }
 0x38f   :  { %2485 = vmatpush.msra.mxu0 %v2412_v37  ;;  %2505 = vmatpush.msra.mxu1 %v2428_v55  ;;  %v2180_v40 = vpop.f32.mrf.mxu0 }
 0x390   :  { %2525 = vmatpush.msra.mxu2 %v2444_v12  ;;  %2541 = vmatpush.msra.mxu3 %v2464_v33  ;;  %v2181_v9 = vadd.f32 %v2180_v40, %v2161_v41  ;;  %v2200_v31 = vpop.f32.mrf.mxu1 }
 0x391   :  { %2486 = vmatpush.msra.mxu0 %v2411_v54  ;;  %2506 = vmatpush.msra.mxu1 %v2427_v49  ;;  %v2220_v46 = vpop.f32.mrf.mxu2 }
 0x392   :  { %2526 = vmatpush.msra.mxu2 %v2443_v14  ;;  %2542 = vmatpush.msra.mxu3 %v2463_v59  ;;  %v2201_v50 = vadd.f32 %v2200_v31, %v2181_v9  ;;  %v2240_v51 = vpop.f32.mrf.mxu3 }
 0x393   :  { %2487 = vmatpush.msra.mxu0 %v2410_v7  ;;  %2507 = vmatpush.msra.mxu1 %v2426_v8 }
 0x394   :  { %2527 = vmatpush.msra.mxu2 %v2442_v10  ;;  %2543 = vmatpush.msra.mxu3 %v2462_v61  ;;  %v2221_v53 = vadd.f32 %v2220_v46, %v2201_v50 }
 0x395   :  { %2488 = vmatpush.msra.mxu0 %v2409_v56  ;;  %2508 = vmatpush.msra.mxu1 %v2425_v28  ;;  %v2580_v28 = vld [vmem:[%s3052_s4] ss:$0 sm:$0xff] }
 0x396   :  { %2528 = vmatpush.msra.mxu2 %v2441_v47  ;;  %2544 = vmatpush.msra.mxu3 %v2461_v3  ;;  %v2241_v55 = vadd.f32 %v2240_v51, %v2221_v53 }
 0x397   :  { %2489 = vmatpush.msra.mxu0 %v2408_v15  ;;  %2509 = vmatpush.msra.mxu1 %v2424_v16 }
 0x398   :  { %2529 = vmatpush.msra.mxu2 %v2440_v32  ;;  %2545 = vmatpush.msra.mxu3 %v2460_v42 }
 0x399   :  { %2490 = vmatpush.msra.mxu0 %v2407_v5  ;;  %2510 = vmatpush.msra.mxu1 %v2423_v17  ;;  %v2581_v17 = vld [vmem:[%s3053_s5] ss:$0 sm:$0xff] }
 0x39a   :  { %2530 = vmatpush.msra.mxu2 %v2439_v13  ;;  %2491 = vmatmul.f32.vlgmr.msra.gmra.mxu0 %v2403_v19 }
 0x39b   :  { %2511 = vmatmul.f32.vlgmr.msra.gmra.mxu1 %v2404_v24  ;;  %2531 = vmatmul.f32.vlgmr.msra.gmra.mxu2 %v2405_v43  ;;  %v2582_v43 = vld [vmem:[#allocation2] ss:$0 sm:$0xff] }
 0x39c   :  { %2546 = vmatpush.msra.mxu3 %v2459_v6 }
 0x39e   :  { %2547 = vmatpush.msra.mxu3 %v2458_v48 }
 0x3a0   :  { %2548 = vmatpush.msra.mxu3 %v2457_v44 }
 0x3a2   :  { %2549 = vmatpush.msra.mxu3 %v2456_v23 }
 0x3a4   :  { %2550 = vmatpush.msra.mxu3 %v2455_v52 }
 0x3b9   :  { %v2260_v37 = vpop.f32.mrf.mxu0  ;;  %v2280_v58 = vpop.f32.mrf.mxu1 }
 0x3ba   :  { %v2261_v12 = vadd.f32 %v2260_v37, %v2241_v55  ;;  %v2300_v18 = vpop.f32.mrf.mxu2 }
 0x3bc   :  { %v2281_v54 = vadd.f32 %v2280_v58, %v2261_v12 }
 0x3be   :  { %v2301_v49 = vadd.f32 %v2300_v18, %v2281_v54 }
 0x3c0   :  { %v2320_v62 = vpop.f32.mrf.mxu3 }
 0x3c1   :  { %v2321_v63 = vadd.f32 %v2320_v62, %v2301_v49 }
 0x3f8   :  { %v2340_v14 = vpop.f32.mrf.mxu0 }
 0x3f9   :  { %v2341_v45 = vadd.f32 %v2340_v14, %v2321_v63  ;;  %v2360_v7 = vpop.f32.mrf.mxu1 }
 0x3fb   :  { %v2361_v8 = vadd.f32 %v2360_v7, %v2341_v45 }
 0x3fc   :  { %v2380_v25 = vpop.f32.mrf.mxu2 }
 0x3fd   :  { %v2381_v0 = vadd.f32 %v2380_v25, %v2361_v8 }
 0x3ff   :  { %v2400_v10 = vpop.f32.mrf.mxu3 }
 0x400   :  { %v2401_v1 = vadd.f32 %v2400_v10, %v2381_v0 }
 0x402   :  { %v2406_v56 = vmax.f32 %v2401_v1, 0.0 }
 0x404   :  { %2551 = vmatmul.f32.vlgmr.msra.gmra.mxu3 %v2406_v56 }
 0x417   :  { %v2492_v47 = vpop.f32.mrf.mxu0 }
 0x418   :  { %v2493_v2 = vadd.f32 %v2580_v28, %v2492_v47  ;;  %v2512_v15 = vpop.f32.mrf.mxu1 }
 0x41a   :  { %v2513_v60 = vadd.f32 %v2512_v15, %v2493_v2 }
 0x41e   :  { %v2532_v16 = vpop.f32.mrf.mxu2 }
 0x41f   :  { %v2533_v4 = vadd.f32 %v2532_v16, %v2513_v60 }
 0x487   :  { %v2552_v32 = vpop.f32.mrf.mxu3 }
 0x488   :  { %v2553_v5 = vadd.f32 %v2552_v32, %v2533_v4 }
 0x48a   :  { %v2555_v13 = vmax.f32 %v2553_v5, 0.0 }
 0x48c   :  { %v2560_v19 = vmul.f32 %v2581_v17, %v2555_v13 }
 0x48e   :  { %v2562_v24 = vsel %vm2561_vm0, %v2560_v19, 0.0 }
 0x48f   :  { %2563 = vadd.xlane.f32.xlu0 %v2562_v24 }
 0x502   :  { %v2564_v21 = vpop.xlane.xlu0 %2563 }
 0x503   :  { %v2569_v57 = vadd.f32 %v2582_v43, %v2564_v21 }
 0x505   :  { %2571 = vst.msk [vmem:[%s3055_s7] sm:$0x3] %vm2570_vm1, %v2569_v57 }
 0x506   :  { %2576 = vsyncpa [#allocation4], 1 }

</bundles_post_ra>
